<compile_context>
chip_gen: v7x
topology: tpu7x:2x2x1
jax: 0.10.0
libtpu: 0.0.40
codegen_flags: <defaults>
</compile_context>

<pallas_src>
import functools

import jax
import jax.numpy as jnp
from jax.experimental import pallas as pl
from jax.experimental.pallas import tpu as pltpu

EPS = 1e-5
ROW_TILE_DEFAULT = 1024       # target rows per block for the pointwise kernels


# --------------------------------------------------------------------------
# helpers
# --------------------------------------------------------------------------
def _pick_row_tile(rows, target):
    """Largest multiple-of-8 divisor of `rows` that is <= target (else rows)."""
    if rows <= target:
        return rows
    d = target - (target % 8)
    while d >= 8:
        if rows % d == 0:
            return d
        d -= 8
    return rows


def _vmem_limit(block_bytes, scratch_bytes=0):
    # double-buffered blocks + scratch + margin, capped so it also fits v7x's
    # 64 MiB physical VMEM with headroom (derived from block sizes, not a constant).
    est = 2 * sum(block_bytes) + scratch_bytes + (4 << 20)
    return int(min(max(est, 16 << 20), 32 << 20))


def _welford_init(mean_ref, m2_ref):
    mean_ref[...] = jnp.zeros(mean_ref.shape, mean_ref.dtype)
    m2_ref[...] = jnp.zeros(m2_ref.shape, m2_ref.dtype)


def _welford_update(mean_ref, m2_ref, h, step, nb):
    """Chan/Welford streaming combine of per-channel (mean, M2) with one block.

    h: (rows, C) f32 block; nb = rows per block (static); step = linear grid
    step index (traced int32).  With zero-initialized state the combine is
    exact for the first block (na = 0)."""
    nbf = float(nb)
    mean_b = jnp.sum(h, axis=0, keepdims=True) * (1.0 / nbf)
    m2_b = jnp.sum((h - mean_b) ** 2, axis=0, keepdims=True)
    na = step.astype(jnp.float32) * nbf
    n = na + nbf
    delta = mean_b - mean_ref[...]
    mean_ref[...] += delta * (nbf / n)
    m2_ref[...] += m2_b + delta * delta * (na * nbf / n)


def _bn_scale_shift(mean_ref, m2_ref, g_ref, b_ref, count):
    # biased variance = M2 / count ; eps = 1e-5 (matches nn.BatchNorm2d training)
    var = m2_ref[...] * (1.0 / float(count))
    scale = g_ref[...] * jax.lax.rsqrt(var + EPS)
    shift = b_ref[...] - mean_ref[...] * scale
    return scale, shift


# --------------------------------------------------------------------------
# kernel 1: 1x1 conv (channel matmul) + BN1 streaming statistics
# grid = (N, row_tiles), both "arbitrary" (resident stats accumulator)
# --------------------------------------------------------------------------
def _conv1_kernel(x_ref, w1_ref, h1_ref, mean1_ref, m21_ref, *, nb):
    step = pl.program_id(0) * pl.num_programs(1) + pl.program_id(1)

    @pl.when(step == 0)
    def _():
        _welford_init(mean1_ref, m21_ref)

    h = jnp.dot(x_ref[...], w1_ref[...], preferred_element_type=jnp.float32)
    hq = h.astype(jnp.bfloat16)           # bf16 storage -> half the HBM traffic
    h1_ref[...] = hq
    # stats from the bf16-rounded values we actually normalize later
    _welford_update(mean1_ref, m21_ref, hq.astype(jnp.float32), step, nb)


# --------------------------------------------------------------------------
# kernel 2: BN1 + ReLU, 3x3 conv via 9 accumulating matmuls off a zero-halo
# bf16 scratch (+ optional projection-skip 1x1 conv), BN2 / skip-BN statistics
# grid = (N,)
# --------------------------------------------------------------------------
def _conv2_skip_kernel(*refs, H, W, Ho, Wo, stride, count1, use_skip):
    if use_skip:
        (h1p_ref, g1_ref, b1_ref, mean1_ref, m21_ref, w2_ref, x_ref, ws_ref,
         h2_ref, mean2_ref, m22_ref, sp_ref, means_ref, m2s_ref,
         pad_ref) = refs
    else:
        (h1p_ref, g1_ref, b1_ref, mean1_ref, m21_ref, w2_ref,
         h2_ref, mean2_ref, m22_ref, pad_ref) = refs
        x_ref = ws_ref = sp_ref = means_ref = m2s_ref = None

    cmid = w2_ref.shape[-1]
    rows2 = Ho * Wo
    step = pl.program_id(0)

    @pl.when(step == 0)
    def _():
        # zero once: the 1-pixel halo of the padded scratch (interior is
        # rewritten every step; the halo never is) and the BN accumulators.
        pad_ref[...] = jnp.zeros(pad_ref.shape, pad_ref.dtype)
        _welford_init(mean2_ref, m22_ref)
        if use_skip:
            _welford_init(means_ref, m2s_ref)

    # BN1 (batch statistics from kernel 1) + ReLU in f32.
    scale1, shift1 = _bn_scale_shift(mean1_ref, m21_ref, g1_ref, b1_ref, count1)
    h1 = jnp.maximum(h1p_ref[...].astype(jnp.float32) * scale1 + shift1, 0.0)
    pad_ref[1:H + 1, 1:W + 1, :] = h1.reshape(H, W, cmid).astype(jnp.bfloat16)

    # 3x3 conv, padding=1, stride=s: 9 accumulating MXU matmuls (no im2col).
    acc = jnp.zeros((rows2, cmid), jnp.float32)
    for ky in range(3):
        for kx in range(3):
            if stride == 1:
                win = pad_ref[ky:ky + Ho, kx:kx + Wo, :]
            else:
                # TODO(synk): stride>1 window path is unexercised by the tests.
                sh = (Ho - 1) * stride + 1
                sw = (Wo - 1) * stride + 1
                win = pad_ref[ky:ky + sh, kx:kx + sw, :][::stride, ::stride, :]
            acc = acc + jnp.dot(win.reshape(rows2, cmid), w2_ref[ky * 3 + kx],
                                preferred_element_type=jnp.float32)

    h2q = acc.astype(jnp.bfloat16)
    h2_ref[...] = h2q
    _welford_update(mean2_ref, m22_ref, h2q.astype(jnp.float32), step, rows2)

    if use_skip:
        if stride == 1:
            xs = x_ref[...]
        else:
            cin = x_ref.shape[-1]
            xs = x_ref[...].reshape(H, W, cin)[::stride, ::stride, :].reshape(rows2, cin)
        sp = jnp.dot(xs, ws_ref[...], preferred_element_type=jnp.float32)
        spq = sp.astype(jnp.bfloat16)
        sp_ref[...] = spq
        _welford_update(means_ref, m2s_ref, spq.astype(jnp.float32), step, rows2)


# --------------------------------------------------------------------------
# kernel 3: BN2 + ReLU, 1x1 conv to 4*out + BN3 streaming statistics
# grid = (N, row_tiles), both "arbitrary"
# --------------------------------------------------------------------------
def _conv3_kernel(h2p_ref, g2_ref, b2_ref, mean2_ref, m22_ref, w3_ref,
                  h3_ref, mean3_ref, m23_ref, *, count2, nb):
    step = pl.program_id(0) * pl.num_programs(1) + pl.program_id(1)

    @pl.when(step == 0)
    def _():
        _welford_init(mean3_ref, m23_ref)

    scale2, shift2 = _bn_scale_shift(mean2_ref, m22_ref, g2_ref, b2_ref, count2)
    h2 = jnp.maximum(h2p_ref[...].astype(jnp.float32) * scale2 + shift2, 0.0)
    h3 = jnp.dot(h2.astype(jnp.bfloat16), w3_ref[...],
                 preferred_element_type=jnp.float32)
    h3q = h3.astype(jnp.bfloat16)
    h3_ref[...] = h3q
    _welford_update(mean3_ref, m23_ref, h3q.astype(jnp.float32), step, nb)


# --------------------------------------------------------------------------
# kernel 4: BN3, skip BN (or identity skip), residual add
# grid = (N, row_tiles), both "parallel" (no accumulators)
# --------------------------------------------------------------------------
def _output_kernel(*refs, count2, use_skip):
    if use_skip:
        (h3p_ref, g3_ref, b3_ref, mean3_ref, m23_ref,
         sp_ref, gs_ref, bs_ref, means_ref, m2s_ref, o_ref) = refs
    else:
        (h3p_ref, g3_ref, b3_ref, mean3_ref, m23_ref, xid_ref, o_ref) = refs
        sp_ref = gs_ref = bs_ref = means_ref = m2s_ref = None

    scale3, shift3 = _bn_scale_shift(mean3_ref, m23_ref, g3_ref, b3_ref, count2)
    y = h3p_ref[...].astype(jnp.float32) * scale3 + shift3
    if use_skip:
        ss, sh = _bn_scale_shift(means_ref, m2s_ref, gs_ref, bs_ref, count2)
        y = y + (sp_ref[...].astype(jnp.float32) * ss + sh)
    else:
        y = y + xid_ref[...]
    o_ref[...] = y


# --------------------------------------------------------------------------
# wrapper
# --------------------------------------------------------------------------
def _residual_block2_impl(x_nchw, params, *, in_channels, out_channels,
                          stride=1, row_tile=ROW_TILE_DEFAULT):
    N, C, H, W = x_nchw.shape
    assert C == in_channels
    cmid = out_channels
    c4 = 4 * out_channels
    use_skip = (in_channels != c4)
    if not use_skip:
        assert stride == 1, "identity skip requires stride == 1"
    Ho = (H + 2 - 3) // stride + 1
    Wo = (W + 2 - 3) // stride + 1
    rows1, rows2 = H * W, Ho * Wo
    count1, count2 = N * rows1, N * rows2
    f32, bf16 = jnp.float32, jnp.bfloat16

    # NCHW -> channels-last rows (channels on the lane dim).  NOTE: this and
    # the final transpose are full HBM passes done by XLA outside the kernels;
    # chain stacked blocks in NHWC to eliminate them.
    x_rows = jnp.transpose(x_nchw, (0, 2, 3, 1)).reshape(N, rows1, in_channels)
    x_bf16 = x_rows.astype(bf16)                         # conv operand (MXU)
    # f32 rows are only needed (materialized) for the identity residual add.
    x_f32 = x_rows.astype(f32) if not use_skip else None

    w1 = params["w1"].astype(bf16)        # (cin, cmid)
    w2 = params["w2"].astype(bf16)        # (9, cmid, cmid), one matrix per tap
    w3 = params["w3"].astype(bf16)        # (cmid, c4)
    ws = params["ws"].astype(bf16)        # (cin, c4)

    tr1 = _pick_row_tile(rows1, row_tile)
    tr2 = _pick_row_tile(rows2, row_tile)
    nt1, nt2 = rows1 // tr1, rows2 // tr2

    def row_spec(tr, c):          # (n, r)-indexed row-tile of an (N, rows, c) array
        return pl.BlockSpec((None, tr, c), lambda n, r: (n, r, 0))

    def const2(shape):            # same small block for every (n, r) step
        return pl.BlockSpec(shape, lambda n, r: (0,) * len(shape))

    def img_spec(rows, c):        # whole-image block, grid (N,)
        return pl.BlockSpec((None, rows, c), lambda n: (n, 0, 0))

    def const1(shape):
        return pl.BlockSpec(shape, lambda n: (0,) * len(shape))

    # ---- kernel 1: conv1 + BN1 statistics --------------------------------
    h1_pre, mean1, m21 = pl.pallas_call(
        functools.partial(_conv1_kernel, nb=tr1),
        grid=(N, nt1),
        in_specs=[row_spec(tr1, in_channels), const2((in_channels, cmid))],
        out_specs=(row_spec(tr1, cmid), const2((1, cmid)), const2((1, cmid))),
        out_shape=(jax.ShapeDtypeStruct((N, rows1, cmid), bf16),
                   jax.ShapeDtypeStruct((1, cmid), f32),
                   jax.ShapeDtypeStruct((1, cmid), f32)),
        compiler_params=pltpu.CompilerParams(
            dimension_semantics=("arbitrary", "arbitrary"),
            vmem_limit_bytes=_vmem_limit(
                [2 * tr1 * in_channels, 2 * in_channels * cmid,
                 2 * tr1 * cmid, 8 * cmid])),
        cost_estimate=pl.CostEstimate(
            flops=2 * count1 * in_channels * cmid, transcendentals=0,
            bytes_accessed=2 * count1 * (in_channels + cmid)),
    )(x_bf16, w1)

    # ---- kernel 2: BN1+ReLU, 3x3 conv, (projection skip conv) ------------
    k2 = functools.partial(_conv2_skip_kernel, H=H, W=W, Ho=Ho, Wo=Wo,
                           stride=stride, count1=count1, use_skip=use_skip)
    in2 = [img_spec(rows1, cmid), const1((1, cmid)), const1((1, cmid)),
           const1((1, cmid)), const1((1, cmid)), const1((9, cmid, cmid))]
    args2 = [h1_pre, params["g1"], params["b1"], mean1, m21, w2]
    out_specs2 = [img_spec(rows2, cmid), const1((1, cmid)), const1((1, cmid))]
    out_shape2 = [jax.ShapeDtypeStruct((N, rows2, cmid), bf16),
                  jax.ShapeDtypeStruct((1, cmid), f32),
                  jax.ShapeDtypeStruct((1, cmid), f32)]
    blocks2 = [2 * rows1 * cmid, 2 * 9 * cmid * cmid, 2 * rows2 * cmid, 32 * cmid]
    flops2 = 2 * count2 * 9 * cmid * cmid
    bytes2 = 2 * count1 * cmid + 2 * count2 * cmid
    if use_skip:
        in2 += [img_spec(rows1, in_channels), const1((in_channels, c4))]
        args2 += [x_bf16, ws]
        out_specs2 += [img_spec(rows2, c4), const1((1, c4)), const1((1, c4))]
        out_shape2 += [jax.ShapeDtypeStruct((N, rows2, c4), bf16),
                       jax.ShapeDtypeStruct((1, c4), f32),
                       jax.ShapeDtypeStruct((1, c4), f32)]
        blocks2 += [2 * rows1 * in_channels, 2 * in_channels * c4,
                    2 * rows2 * c4, 16 * c4]
        flops2 += 2 * count2 * in_channels * c4
        bytes2 += 2 * count1 * in_channels + 2 * count2 * c4
    pad_bytes = 2 * (H + 2) * (W + 2) * cmid
    outs2 = pl.pallas_call(
        k2,
        grid=(N,),
        in_specs=in2,
        out_specs=tuple(out_specs2),
        out_shape=tuple(out_shape2),
        scratch_shapes=[pltpu.VMEM((H + 2, W + 2, cmid), bf16)],
        compiler_params=pltpu.CompilerParams(
            dimension_semantics=("arbitrary",),
            vmem_limit_bytes=_vmem_limit(blocks2, pad_bytes)),
        cost_estimate=pl.CostEstimate(flops=flops2, transcendentals=0,
                                      bytes_accessed=bytes2),
    )(*args2)
    if use_skip:
        h2_pre, mean2, m22, s_pre, mean_s, m2s = outs2
    else:
        h2_pre, mean2, m22 = outs2
        s_pre = mean_s = m2s = None

    # ---- kernel 3: BN2+ReLU, conv3 + BN3 statistics -----------------------
    h3_pre, mean3, m23 = pl.pallas_call(
        functools.partial(_conv3_kernel, count2=count2, nb=tr2),
        grid=(N, nt2),
        in_specs=[row_spec(tr2, cmid), const2((1, cmid)), const2((1, cmid)),
                  const2((1, cmid)), const2((1, cmid)), const2((cmid, c4))],
        out_specs=(row_spec(tr2, c4), const2((1, c4)), const2((1, c4))),
        out_shape=(jax.ShapeDtypeStruct((N, rows2, c4), bf16),
                   jax.ShapeDtypeStruct((1, c4), f32),
                   jax.ShapeDtypeStruct((1, c4), f32)),
        compiler_params=pltpu.CompilerParams(
            dimension_semantics=("arbitrary", "arbitrary"),
            vmem_limit_bytes=_vmem_limit(
                [2 * tr2 * cmid, 2 * cmid * c4, 2 * tr2 * c4, 8 * c4])),
        cost_estimate=pl.CostEstimate(
            flops=2 * count2 * cmid * c4, transcendentals=0,
            bytes_accessed=2 * count2 * (cmid + c4)),
    )(h2_pre, params["g2"], params["b2"], mean2, m22, w3)

    # ---- kernel 4: BN3, skip BN / identity, residual add ("parallel") ----
    k4 = functools.partial(_output_kernel, count2=count2, use_skip=use_skip)
    in4 = [row_spec(tr2, c4), const2((1, c4)), const2((1, c4)),
           const2((1, c4)), const2((1, c4))]
    args4 = [h3_pre, params["g3"], params["b3"], mean3, m23]
    blocks4 = [2 * tr2 * c4, 4 * tr2 * c4]
    if use_skip:
        in4 += [row_spec(tr2, c4), const2((1, c4)), const2((1, c4)),
                const2((1, c4)), const2((1, c4))]
        args4 += [s_pre, params["gs"], params["bs"], mean_s, m2s]
        blocks4 += [2 * tr2 * c4]
    else:
        in4 += [row_spec(tr2, c4)]
        args4 += [x_f32]
        blocks4 += [4 * tr2 * c4]
    out_rows = pl.pallas_call(
        k4,
        grid=(N, nt2),
        in_specs=in4,
        out_specs=row_spec(tr2, c4),
        out_shape=jax.ShapeDtypeStruct((N, rows2, c4), f32),
        compiler_params=pltpu.CompilerParams(
            dimension_semantics=("parallel", "parallel"),
            vmem_limit_bytes=_vmem_limit(blocks4)),
        cost_estimate=pl.CostEstimate(flops=8 * count2 * c4, transcendentals=0,
                                      bytes_accessed=8 * count2 * c4),
    )(*args4)

    out = out_rows.reshape(N, Ho, Wo, c4)
    return jnp.transpose(out, (0, 3, 1, 2))  # back to NCHW


residual_block2 = jax.jit(
    _residual_block2_impl,
    static_argnames=("in_channels", "out_channels", "stride", "row_tile"))


# --------------------------------------------------------------------------
# parameter init (conv weights stored channels-last)
# --------------------------------------------------------------------------
def init_params(key, in_channels, out_channels):
    c4 = out_channels * 4
    ks = jax.random.split(key, 8)

    def conv_w(k, shape, fan_in):
        return jax.random.normal(k, shape, jnp.float32) / jnp.sqrt(float(fan_in))

    return dict(
        w1=conv_w(ks[0], (in_channels, out_channels), in_channels),
        g1=1.0 + 0.1 * jax.random.normal(ks[4], (1, out_channels), jnp.float32),
        b1=0.1 * jax.random.normal(ks[5], (1, out_channels), jnp.float32),
        w2=conv_w(ks[1], (9, out_channels, out_channels), 9 * out_channels),
        g2=jnp.ones((1, out_channels), jnp.float32),
        b2=jnp.zeros((1, out_channels), jnp.float32),
        w3=conv_w(ks[2], (out_channels, c4), out_channels),
        g3=1.0 + 0.1 * jax.random.normal(ks[6], (1, c4), jnp.float32),
        b3=0.1 * jax.random.normal(ks[7], (1, c4), jnp.float32),
        ws=conv_w(ks[3], (in_channels, c4), in_channels),
        gs=jnp.ones((1, c4), jnp.float32),
        bs=jnp.zeros((1, c4), jnp.float32),
    )


# --------------------------------------------------------------------------
# pure-JAX reference: identical math/quantization points as the kernels
# (bf16 conv operands, f32 accumulation, bf16-stored pre-BN activations,
#  f32 BN with biased variance)
# --------------------------------------------------------------------------
def _reference(x_nchw, params, *, in_channels, out_channels, stride=1):
    c4 = out_channels * 4
    f32, bf16 = jnp.float32, jnp.bfloat16
    x = jnp.transpose(x_nchw, (0, 2, 3, 1)).astype(f32)
    xb = x.astype(bf16)

    def conv(h_bf16, w, s, pad):
        return jax.lax.conv_general_dilated(
            h_bf16, w.astype(bf16), (s, s), pad,
            dimension_numbers=("NHWC", "HWIO", "NHWC"),
            preferred_element_type=f32)

    def bn(h, g, b):
        hq = h.astype(bf16).astype(f32)   # kernels store pre-BN activations in bf16
        mean = jnp.mean(hq, axis=(0, 1, 2), keepdims=True)
        var = jnp.mean((hq - mean) ** 2, axis=(0, 1, 2), keepdims=True)
        scale = g.reshape(1, 1, 1, -1) * jax.lax.rsqrt(var + EPS)
        shift = b.reshape(1, 1, 1, -1) - mean * scale
        return hq * scale + shift

    h = conv(xb, params["w1"].reshape(1, 1, in_channels, out_channels), 1, "VALID")
    h = jnp.maximum(bn(h, params["g1"], params["b1"]), 0.0)
    h = conv(h.astype(bf16),
             params["w2"].reshape(3, 3, out_channels, out_channels),
             stride, ((1, 1), (1, 1)))
    h = jnp.maximum(bn(h, params["g2"], params["b2"]), 0.0)
    h = conv(h.astype(bf16), params["w3"].reshape(1, 1, out_channels, c4), 1, "VALID")
    h = bn(h, params["g3"], params["b3"])
    if in_channels != c4:
        s_ = conv(xb, params["ws"].reshape(1, 1, in_channels, c4), stride, "VALID")
        s_ = bn(s_, params["gs"], params["bs"])
    else:
        s_ = x
    return jnp.transpose(h + s_, (0, 3, 1, 2))


if __name__ == "__main__":
    def check(name, y, y_ref):
        # Max-error tolerance absorbs rare bf16 "boundary flip" spikes on large
        # activations (chained bf16 storage of intermediates); the tight mean
        # abs error catches any systematic bug.
        err = jnp.abs(y - y_ref)
        max_err = float(jnp.max(err))
        mean_err = float(jnp.mean(err))
        ok = bool(jnp.allclose(y, y_ref, atol=4e-2, rtol=4e-2)) and mean_err < 3e-3
        assert ok, f"{name}: max_err={max_err:.3e} mean_err={mean_err:.3e}"

    key = jax.random.PRNGKey(0)
    kx, kp = jax.random.split(key)

    # Case 1: projection skip (in_channels != 4*out_channels), stride=1
    N, in_c, H, W, out_c = 2, 4, 16, 16, 4
    x = jax.random.normal(kx, (N, in_c, H, W), jnp.float32)
    params = init_params(kp, in_c, out_c)
    y = jax.block_until_ready(
        residual_block2(x, params, in_channels=in_c, out_channels=out_c, stride=1))
    assert y.shape == (N, 4 * out_c, H, W)
    check("case1", y, _reference(x, params, in_channels=in_c, out_channels=out_c))

    # Case 2: identity skip (in_channels == 4*out_channels), stride=1
    in_c2, out_c2 = 16, 4
    x2 = jax.random.normal(jax.random.PRNGKey(1), (N, in_c2, H, W), jnp.float32)
    params2 = init_params(jax.random.PRNGKey(2), in_c2, out_c2)
    y2 = jax.block_until_ready(
        residual_block2(x2, params2, in_channels=in_c2, out_channels=out_c2, stride=1))
    assert y2.shape == (N, 4 * out_c2, H, W)
    check("case2", y2, _reference(x2, params2, in_channels=in_c2, out_channels=out_c2))

    # Case 3: lane-dense channels (c4 = 128), 32x32 spatial, and a small
    # row_tile so the row-tiled grids and the Welford cross-block combine are
    # actually exercised (4 row tiles per image in K1/K3/K4).
    in_c3, out_c3, H3, W3 = 64, 32, 32, 32
    x3 = jax.random.normal(jax.random.PRNGKey(3), (N, in_c3, H3, W3), jnp.float32)
    params3 = init_params(jax.random.PRNGKey(4), in_c3, out_c3)
    y3 = jax.block_until_ready(
        residual_block2(x3, params3, in_channels=in_c3, out_channels=out_c3,
                        stride=1, row_tile=256))
    assert y3.shape == (N, 4 * out_c3, H3, W3)
    check("case3", y3, _reference(x3, params3, in_channels=in_c3, out_channels=out_c3))

    print("KERNEL_OK")
</pallas_src>

<mosaic_0001>
module attributes {stable_mosaic.version = 11 : i64} {
  func.func @_conv1_kernel(%arg0: i32, %arg1: i32, %arg2: memref<1x256x4xbf16, #tpu.memory_space<vmem>>, %arg3: memref<4x4xbf16, #tpu.memory_space<vmem>>, %arg4: memref<1x256x4xbf16, #tpu.memory_space<vmem>>, %arg5: memref<1x4xf32, #tpu.memory_space<vmem>>, %arg6: memref<1x4xf32, #tpu.memory_space<vmem>>) attributes {dimension_semantics = [#tpu.dimension_semantics<arbitrary>, #tpu.dimension_semantics<arbitrary>], iteration_bounds = array<i64: 2, 1>, scalar_prefetch = 0 : i64, scratch_operands = 0 : i64, tpu.core_type = #tpu.core_type<tc>, window_params = [{transform_indices = @transform_0, window_bounds = array<i64: 1, 256, 4>}, {pipeline_mode = #tpu.pipeline_mode<synchronous>, transform_indices = @transform_1, window_bounds = array<i64: 4, 4>}, {transform_indices = @transform_2, window_bounds = array<i64: 1, 256, 4>}, {pipeline_mode = #tpu.pipeline_mode<synchronous>, transform_indices = @transform_3, window_bounds = array<i64: 1, 4>}, {pipeline_mode = #tpu.pipeline_mode<synchronous>, transform_indices = @transform_4, window_bounds = array<i64: 1, 4>}]} {
    %c1_i32 = arith.constant 1 : i32
    %0 = arith.muli %arg0, %c1_i32 : i32
    %1 = arith.addi %0, %arg1 : i32
    %c0_i32 = arith.constant 0 : i32
    %2 = arith.cmpi eq, %1, %c0_i32 : i32
    %3 = arith.extui %2 : i1 to i32
    %c0_i32_0 = arith.constant 0 : i32
    %4 = arith.cmpi ne, %3, %c0_i32_0 : i32
    scf.if %4 {
      %cst_25 = arith.constant 0.000000e+00 : f32
      %43 = vector.broadcast %cst_25 : f32 to vector<1x4xf32>
      %c0_26 = arith.constant 0 : index
      %c0_27 = arith.constant 0 : index
      %44 = vector.load %arg5[%c0_26, %c0_27] : memref<1x4xf32, #tpu.memory_space<vmem>>, vector<1x4xf32>
      tpu.vector_store %arg5[%c0_26, %c0_27], %43 {strides = array<i32>} : memref<1x4xf32, #tpu.memory_space<vmem>>, vector<1x4xf32>,
      %cst_28 = arith.constant 0.000000e+00 : f32
      %45 = vector.broadcast %cst_28 : f32 to vector<1x4xf32>
      %c0_29 = arith.constant 0 : index
      %c0_30 = arith.constant 0 : index
      %46 = vector.load %arg6[%c0_29, %c0_30] : memref<1x4xf32, #tpu.memory_space<vmem>>, vector<1x4xf32>
      tpu.vector_store %arg6[%c0_29, %c0_30], %45 {strides = array<i32>} : memref<1x4xf32, #tpu.memory_space<vmem>>, vector<1x4xf32>,
    } else {
    }
    %c0 = arith.constant 0 : index
    %c0_1 = arith.constant 0 : index
    %c0_2 = arith.constant 0 : index
    %5 = vector.load %arg2[%c0, %c0_1, %c0_2] : memref<1x256x4xbf16, #tpu.memory_space<vmem>>, vector<1x256x4xbf16>
    %6 = vector.shape_cast %5 : vector<1x256x4xbf16> to vector<256x4xbf16>
    %c0_3 = arith.constant 0 : index
    %c0_4 = arith.constant 0 : index
    %7 = vector.load %arg3[%c0_3, %c0_4] : memref<4x4xbf16, #tpu.memory_space<vmem>>, vector<4x4xbf16>
    %cst = arith.constant dense<0.000000e+00> : vector<256x4xf32>
    %8 = tpu.matmul %6, %7, %cst {dimension_numbers = #tpu.dot_dimension_numbers<[1], [0], [0], [1], [0, 0, 1, 1], [], []>} : vector<256x4xbf16>, vector<4x4xbf16>, vector<256x4xf32> -> vector<256x4xf32>
    %9 = arith.truncf %8 : vector<256x4xf32> to vector<256x4xbf16>
    %c0_5 = arith.constant 0 : index
    %c0_6 = arith.constant 0 : index
    %c0_7 = arith.constant 0 : index
    %10 = vector.load %arg4[%c0_5, %c0_6, %c0_7] : memref<1x256x4xbf16, #tpu.memory_space<vmem>>, vector<1x256x4xbf16>
    %11 = vector.shape_cast %10 : vector<1x256x4xbf16> to vector<256x4xbf16>
    %12 = vector.shape_cast %9 : vector<256x4xbf16> to vector<1x256x4xbf16>
    tpu.vector_store %arg4[%c0_5, %c0_6, %c0_7], %12 {strides = array<i32>} : memref<1x256x4xbf16, #tpu.memory_space<vmem>>, vector<1x256x4xbf16>,
    %13 = arith.extf %9 : vector<256x4xbf16> to vector<256x4xf32>
    %cst_8 = arith.constant dense<0.000000e+00> : vector<4xf32>
    %14 = vector.multi_reduction <add>, %13, %cst_8 [0] : vector<256x4xf32> to vector<4xf32>
    %15 = vector.shape_cast %14 : vector<4xf32> to vector<1x4xf32>
    %cst_9 = arith.constant 3.906250e-03 : f32
    %16 = vector.broadcast %cst_9 : f32 to vector<1x4xf32>
    %17 = arith.mulf %15, %16 : vector<1x4xf32>
    %18 = vector.broadcast %17 : vector<1x4xf32> to vector<256x4xf32>
    %19 = arith.subf %13, %18 : vector<256x4xf32>
    %20 = arith.mulf %19, %19 : vector<256x4xf32>
    %cst_10 = arith.constant dense<0.000000e+00> : vector<4xf32>
    %21 = vector.multi_reduction <add>, %20, %cst_10 [0] : vector<256x4xf32> to vector<4xf32>
    %22 = vector.shape_cast %21 : vector<4xf32> to vector<1x4xf32>
    %23 = arith.sitofp %1 : i32 to f32
    %cst_11 = arith.constant 2.560000e+02 : f32
    %24 = arith.mulf %23, %cst_11 : f32
    %cst_12 = arith.constant 2.560000e+02 : f32
    %25 = arith.addf %24, %cst_12 : f32
    %c0_13 = arith.constant 0 : index
    %c0_14 = arith.constant 0 : index
    %26 = vector.load %arg5[%c0_13, %c0_14] : memref<1x4xf32, #tpu.memory_space<vmem>>, vector<1x4xf32>
    %27 = arith.subf %17, %26 : vector<1x4xf32>
    %c0_15 = arith.constant 0 : index
    %c0_16 = arith.constant 0 : index
    %28 = vector.load %arg5[%c0_15, %c0_16] : memref<1x4xf32, #tpu.memory_space<vmem>>, vector<1x4xf32>
    %cst_17 = arith.constant 2.560000e+02 : f32
    %29 = arith.divf %cst_17, %25 : f32
    %30 = vector.broadcast %29 : f32 to vector<1x4xf32>
    %31 = arith.mulf %27, %30 : vector<1x4xf32>
    %32 = arith.addf %28, %31 : vector<1x4xf32>
    %c0_18 = arith.constant 0 : index
    %c0_19 = arith.constant 0 : index
    %33 = vector.load %arg5[%c0_18, %c0_19] : memref<1x4xf32, #tpu.memory_space<vmem>>, vector<1x4xf32>
    tpu.vector_store %arg5[%c0_18, %c0_19], %32 {strides = array<i32>} : memref<1x4xf32, #tpu.memory_space<vmem>>, vector<1x4xf32>,
    %c0_20 = arith.constant 0 : index
    %c0_21 = arith.constant 0 : index
    %34 = vector.load %arg6[%c0_20, %c0_21] : memref<1x4xf32, #tpu.memory_space<vmem>>, vector<1x4xf32>
    %35 = arith.mulf %27, %27 : vector<1x4xf32>
    %cst_22 = arith.constant 2.560000e+02 : f32
    %36 = arith.mulf %24, %cst_22 : f32
    %37 = arith.divf %36, %25 : f32
    %38 = vector.broadcast %37 : f32 to vector<1x4xf32>
    %39 = arith.mulf %35, %38 : vector<1x4xf32>
    %40 = arith.addf %22, %39 : vector<1x4xf32>
    %41 = arith.addf %34, %40 : vector<1x4xf32>
    %c0_23 = arith.constant 0 : index
    %c0_24 = arith.constant 0 : index
    %42 = vector.load %arg6[%c0_23, %c0_24] : memref<1x4xf32, #tpu.memory_space<vmem>>, vector<1x4xf32>
    tpu.vector_store %arg6[%c0_23, %c0_24], %41 {strides = array<i32>} : memref<1x4xf32, #tpu.memory_space<vmem>>, vector<1x4xf32>,
    return
  }
  func.func @transform_0(%arg0: i32, %arg1: i32) -> (i32, i32, i32) {
    %c0_i32 = arith.constant 0 : i32
    %c0_i32_0 = arith.constant 0 : i32
    return %arg0, %arg1, %c0_i32 : i32, i32, i32
  }
  func.func @transform_1(%arg0: i32, %arg1: i32) -> (i32, i32) {
    %c0_i32 = arith.constant 0 : i32
    %c0_i32_0 = arith.constant 0 : i32
    %c0_i32_1 = arith.constant 0 : i32
    return %c0_i32, %c0_i32_0 : i32, i32
  }
  func.func @transform_2(%arg0: i32, %arg1: i32) -> (i32, i32, i32) {
    %c0_i32 = arith.constant 0 : i32
    %c0_i32_0 = arith.constant 0 : i32
    return %arg0, %arg1, %c0_i32 : i32, i32, i32
  }
  func.func @transform_3(%arg0: i32, %arg1: i32) -> (i32, i32) {
    %c0_i32 = arith.constant 0 : i32
    %c0_i32_0 = arith.constant 0 : i32
    %c0_i32_1 = arith.constant 0 : i32
    return %c0_i32, %c0_i32_0 : i32, i32
  }
  func.func @transform_4(%arg0: i32, %arg1: i32) -> (i32, i32) {
    %c0_i32 = arith.constant 0 : i32
    %c0_i32_0 = arith.constant 0 : i32
    %c0_i32_1 = arith.constant 0 : i32
    return %c0_i32, %c0_i32_0 : i32, i32
  }
}

module attributes {stable_mosaic.version = 11 : i64} {
  func.func @_conv2_skip_kernel(%arg0: i32, %arg1: memref<1x256x4xbf16, #tpu.memory_space<vmem>>, %arg2: memref<1x4xf32, #tpu.memory_space<vmem>>, %arg3: memref<1x4xf32, #tpu.memory_space<vmem>>, %arg4: memref<1x4xf32, #tpu.memory_space<vmem>>, %arg5: memref<1x4xf32, #tpu.memory_space<vmem>>, %arg6: memref<9x4x4xbf16, #tpu.memory_space<vmem>>, %arg7: memref<1x256x4xbf16, #tpu.memory_space<vmem>>, %arg8: memref<4x16xbf16, #tpu.memory_space<vmem>>, %arg9: memref<1x256x4xbf16, #tpu.memory_space<vmem>>, %arg10: memref<1x4xf32, #tpu.memory_space<vmem>>, %arg11: memref<1x4xf32, #tpu.memory_space<vmem>>, %arg12: memref<1x256x16xbf16, #tpu.memory_space<vmem>>, %arg13: memref<1x16xf32, #tpu.memory_space<vmem>>, %arg14: memref<1x16xf32, #tpu.memory_space<vmem>>, %arg15: memref<18x18x4xbf16, #tpu.memory_space<vmem>>) attributes {dimension_semantics = [#tpu.dimension_semantics<arbitrary>], iteration_bounds = array<i64: 2>, scalar_prefetch = 0 : i64, scratch_operands = 1 : i64, tpu.core_type = #tpu.core_type<tc>, window_params = [{transform_indices = @transform_0, window_bounds = array<i64: 1, 256, 4>}, {pipeline_mode = #tpu.pipeline_mode<synchronous>, transform_indices = @transform_1, window_bounds = array<i64: 1, 4>}, {pipeline_mode = #tpu.pipeline_mode<synchronous>, transform_indices = @transform_2, window_bounds = array<i64: 1, 4>}, {pipeline_mode = #tpu.pipeline_mode<synchronous>, transform_indices = @transform_3, window_bounds = array<i64: 1, 4>}, {pipeline_mode = #tpu.pipeline_mode<synchronous>, transform_indices = @transform_4, window_bounds = array<i64: 1, 4>}, {pipeline_mode = #tpu.pipeline_mode<synchronous>, transform_indices = @transform_5, window_bounds = array<i64: 9, 4, 4>}, {transform_indices = @transform_6, window_bounds = array<i64: 1, 256, 4>}, {pipeline_mode = #tpu.pipeline_mode<synchronous>, transform_indices = @transform_7, window_bounds = array<i64: 4, 16>}, {transform_indices = @transform_8, window_bounds = array<i64: 1, 256, 4>}, {pipeline_mode = #tpu.pipeline_mode<synchronous>, transform_indices = @transform_9, window_bounds = array<i64: 1, 4>}, {pipeline_mode = #tpu.pipeline_mode<synchronous>, transform_indices = @transform_10, window_bounds = array<i64: 1, 4>}, {transform_indices = @transform_11, window_bounds = array<i64: 1, 256, 16>}, {pipeline_mode = #tpu.pipeline_mode<synchronous>, transform_indices = @transform_12, window_bounds = array<i64: 1, 16>}, {pipeline_mode = #tpu.pipeline_mode<synchronous>, transform_indices = @transform_13, window_bounds = array<i64: 1, 16>}]} {
    %c0_i32 = arith.constant 0 : i32
    %0 = arith.cmpi eq, %arg0, %c0_i32 : i32
    %1 = arith.extui %0 : i1 to i32
    %c0_i32_0 = arith.constant 0 : i32
    %2 = arith.cmpi ne, %1, %c0_i32_0 : i32
    scf.if %2 {
      %cst_118 = arith.constant 0.000000e+00 : bf16
      %154 = vector.broadcast %cst_118 : bf16 to vector<18x18x4xbf16>
      %c0_119 = arith.constant 0 : index
      %c0_120 = arith.constant 0 : index
      %c0_121 = arith.constant 0 : index
      %155 = vector.load %arg15[%c0_119, %c0_120, %c0_121] : memref<18x18x4xbf16, #tpu.memory_space<vmem>>, vector<18x18x4xbf16>
      tpu.vector_store %arg15[%c0_119, %c0_120, %c0_121], %154 {strides = array<i32>} : memref<18x18x4xbf16, #tpu.memory_space<vmem>>, vector<18x18x4xbf16>,
      %cst_122 = arith.constant 0.000000e+00 : f32
      %156 = vector.broadcast %cst_122 : f32 to vector<1x4xf32>
      %c0_123 = arith.constant 0 : index
      %c0_124 = arith.constant 0 : index
      %157 = vector.load %arg10[%c0_123, %c0_124] : memref<1x4xf32, #tpu.memory_space<vmem>>, vector<1x4xf32>
      tpu.vector_store %arg10[%c0_123, %c0_124], %156 {strides = array<i32>} : memref<1x4xf32, #tpu.memory_space<vmem>>, vector<1x4xf32>,
      %cst_125 = arith.constant 0.000000e+00 : f32
      %158 = vector.broadcast %cst_125 : f32 to vector<1x4xf32>
      %c0_126 = arith.constant 0 : index
      %c0_127 = arith.constant 0 : index
      %159 = vector.load %arg11[%c0_126, %c0_127] : memref<1x4xf32, #tpu.memory_space<vmem>>, vector<1x4xf32>
      tpu.vector_store %arg11[%c0_126, %c0_127], %158 {strides = array<i32>} : memref<1x4xf32, #tpu.memory_space<vmem>>, vector<1x4xf32>,
      %cst_128 = arith.constant 0.000000e+00 : f32
      %160 = vector.broadcast %cst_128 : f32 to vector<1x16xf32>
      %c0_129 = arith.constant 0 : index
      %c0_130 = arith.constant 0 : index
      %161 = vector.load %arg13[%c0_129, %c0_130] : memref<1x16xf32, #tpu.memory_space<vmem>>, vector<1x16xf32>
      tpu.vector_store %arg13[%c0_129, %c0_130], %160 {strides = array<i32>} : memref<1x16xf32, #tpu.memory_space<vmem>>, vector<1x16xf32>,
      %cst_131 = arith.constant 0.000000e+00 : f32
      %162 = vector.broadcast %cst_131 : f32 to vector<1x16xf32>
      %c0_132 = arith.constant 0 : index
      %c0_133 = arith.constant 0 : index
      %163 = vector.load %arg14[%c0_132, %c0_133] : memref<1x16xf32, #tpu.memory_space<vmem>>, vector<1x16xf32>
      tpu.vector_store %arg14[%c0_132, %c0_133], %162 {strides = array<i32>} : memref<1x16xf32, #tpu.memory_space<vmem>>, vector<1x16xf32>,
    } else {
    }
    %c0 = arith.constant 0 : index
    %c0_1 = arith.constant 0 : index
    %3 = vector.load %arg5[%c0, %c0_1] : memref<1x4xf32, #tpu.memory_space<vmem>>, vector<1x4xf32>
    %cst = arith.constant 0.001953125 : f32
    %4 = vector.broadcast %cst : f32 to vector<1x4xf32>
    %5 = arith.mulf %3, %4 : vector<1x4xf32>
    %c0_2 = arith.constant 0 : index
    %c0_3 = arith.constant 0 : index
    %6 = vector.load %arg2[%c0_2, %c0_3] : memref<1x4xf32, #tpu.memory_space<vmem>>, vector<1x4xf32>
    %cst_4 = arith.constant 9.99999974E-6 : f32
    %7 = vector.broadcast %cst_4 : f32 to vector<1x4xf32>
    %8 = arith.addf %5, %7 : vector<1x4xf32>
    %9 = math.rsqrt %8 : vector<1x4xf32>
    %10 = arith.mulf %6, %9 : vector<1x4xf32>
    %c0_5 = arith.constant 0 : index
    %c0_6 = arith.constant 0 : index
    %11 = vector.load %arg3[%c0_5, %c0_6] : memref<1x4xf32, #tpu.memory_space<vmem>>, vector<1x4xf32>
    %c0_7 = arith.constant 0 : index
    %c0_8 = arith.constant 0 : index
    %12 = vector.load %arg4[%c0_7, %c0_8] : memref<1x4xf32, #tpu.memory_space<vmem>>, vector<1x4xf32>
    %13 = arith.mulf %12, %10 : vector<1x4xf32>
    %14 = arith.subf %11, %13 : vector<1x4xf32>
    %c0_9 = arith.constant 0 : index
    %c0_10 = arith.constant 0 : index
    %c0_11 = arith.constant 0 : index
    %15 = vector.load %arg1[%c0_9, %c0_10, %c0_11] : memref<1x256x4xbf16, #tpu.memory_space<vmem>>, vector<1x256x4xbf16>
    %16 = vector.shape_cast %15 : vector<1x256x4xbf16> to vector<256x4xbf16>
    %17 = arith.extf %16 : vector<256x4xbf16> to vector<256x4xf32>
    %18 = vector.broadcast %10 : vector<1x4xf32> to vector<256x4xf32>
    %19 = arith.mulf %17, %18 : vector<256x4xf32>
    %20 = vector.broadcast %14 : vector<1x4xf32> to vector<256x4xf32>
    %21 = arith.addf %19, %20 : vector<256x4xf32>
    %cst_12 = arith.constant 0.000000e+00 : f32
    %22 = vector.broadcast %cst_12 : f32 to vector<256x4xf32>
    %23 = arith.maximumf %21, %22 : vector<256x4xf32>
    %24 = vector.shape_cast %23 : vector<256x4xf32> to vector<16x16x4xf32>
    %25 = arith.truncf %24 : vector<16x16x4xf32> to vector<16x16x4xbf16>
    %c1 = arith.constant 1 : index
    %c1_13 = arith.constant 1 : index
    %c0_14 = arith.constant 0 : index
    %26 = vector.load %arg15[%c1, %c1_13, %c0_14] : memref<18x18x4xbf16, #tpu.memory_space<vmem>>, vector<16x16x4xbf16>
    tpu.vector_store %arg15[%c1, %c1_13, %c0_14], %25 {strides = array<i32>} : memref<18x18x4xbf16, #tpu.memory_space<vmem>>, vector<16x16x4xbf16>,
    %cst_15 = arith.constant 0.000000e+00 : f32
    %27 = vector.broadcast %cst_15 : f32 to vector<256x4xf32>
    %c0_16 = arith.constant 0 : index
    %c0_17 = arith.constant 0 : index
    %c0_18 = arith.constant 0 : index
    %28 = vector.load %arg15[%c0_16, %c0_17, %c0_18] : memref<18x18x4xbf16, #tpu.memory_space<vmem>>, vector<16x16x4xbf16>
    %29 = vector.shape_cast %28 : vector<16x16x4xbf16> to vector<256x4xbf16>
    %c0_19 = arith.constant 0 : index
    %c0_20 = arith.constant 0 : index
    %c0_21 = arith.constant 0 : index
    %30 = vector.load %arg6[%c0_19, %c0_20, %c0_21] : memref<9x4x4xbf16, #tpu.memory_space<vmem>>, vector<1x4x4xbf16>
    %31 = vector.shape_cast %30 : vector<1x4x4xbf16> to vector<4x4xbf16>
    %cst_22 = arith.constant dense<0.000000e+00> : vector<256x4xf32>
    %32 = tpu.matmul %29, %31, %cst_22 {dimension_numbers = #tpu.dot_dimension_numbers<[1], [0], [0], [1], [0, 0, 1, 1], [], []>} : vector<256x4xbf16>, vector<4x4xbf16>, vector<256x4xf32> -> vector<256x4xf32>
    %33 = arith.addf %27, %32 : vector<256x4xf32>
    %c0_23 = arith.constant 0 : index
    %c1_24 = arith.constant 1 : index
    %c0_25 = arith.constant 0 : index
    %34 = vector.load %arg15[%c0_23, %c1_24, %c0_25] : memref<18x18x4xbf16, #tpu.memory_space<vmem>>, vector<16x16x4xbf16>
    %35 = vector.shape_cast %34 : vector<16x16x4xbf16> to vector<256x4xbf16>
    %c1_26 = arith.constant 1 : index
    %c0_27 = arith.constant 0 : index
    %c0_28 = arith.constant 0 : index
    %36 = vector.load %arg6[%c1_26, %c0_27, %c0_28] : memref<9x4x4xbf16, #tpu.memory_space<vmem>>, vector<1x4x4xbf16>
    %37 = vector.shape_cast %36 : vector<1x4x4xbf16> to vector<4x4xbf16>
    %cst_29 = arith.constant dense<0.000000e+00> : vector<256x4xf32>
    %38 = tpu.matmul %35, %37, %cst_29 {dimension_numbers = #tpu.dot_dimension_numbers<[1], [0], [0], [1], [0, 0, 1, 1], [], []>} : vector<256x4xbf16>, vector<4x4xbf16>, vector<256x4xf32> -> vector<256x4xf32>
    %39 = arith.addf %33, %38 : vector<256x4xf32>
    %c0_30 = arith.constant 0 : index
    %c2 = arith.constant 2 : index
    %c0_31 = arith.constant 0 : index
    %40 = vector.load %arg15[%c0_30, %c2, %c0_31] : memref<18x18x4xbf16, #tpu.memory_space<vmem>>, vector<16x16x4xbf16>
    %41 = vector.shape_cast %40 : vector<16x16x4xbf16> to vector<256x4xbf16>
    %c2_32 = arith.constant 2 : index
    %c0_33 = arith.constant 0 : index
    %c0_34 = arith.constant 0 : index
    %42 = vector.load %arg6[%c2_32, %c0_33, %c0_34] : memref<9x4x4xbf16, #tpu.memory_space<vmem>>, vector<1x4x4xbf16>
    %43 = vector.shape_cast %42 : vector<1x4x4xbf16> to vector<4x4xbf16>
    %cst_35 = arith.constant dense<0.000000e+00> : vector<256x4xf32>
    %44 = tpu.matmul %41, %43, %cst_35 {dimension_numbers = #tpu.dot_dimension_numbers<[1], [0], [0], [1], [0, 0, 1, 1], [], []>} : vector<256x4xbf16>, vector<4x4xbf16>, vector<256x4xf32> -> vector<256x4xf32>
    %45 = arith.addf %39, %44 : vector<256x4xf32>
    %c1_36 = arith.constant 1 : index
    %c0_37 = arith.constant 0 : index
    %c0_38 = arith.constant 0 : index
    %46 = vector.load %arg15[%c1_36, %c0_37, %c0_38] : memref<18x18x4xbf16, #tpu.memory_space<vmem>>, vector<16x16x4xbf16>
    %47 = vector.shape_cast %46 : vector<16x16x4xbf16> to vector<256x4xbf16>
    %c3 = arith.constant 3 : index
    %c0_39 = arith.constant 0 : index
    %c0_40 = arith.constant 0 : index
    %48 = vector.load %arg6[%c3, %c0_39, %c0_40] : memref<9x4x4xbf16, #tpu.memory_space<vmem>>, vector<1x4x4xbf16>
    %49 = vector.shape_cast %48 : vector<1x4x4xbf16> to vector<4x4xbf16>
    %cst_41 = arith.constant dense<0.000000e+00> : vector<256x4xf32>
    %50 = tpu.matmul %47, %49, %cst_41 {dimension_numbers = #tpu.dot_dimension_numbers<[1], [0], [0], [1], [0, 0, 1, 1], [], []>} : vector<256x4xbf16>, vector<4x4xbf16>, vector<256x4xf32> -> vector<256x4xf32>
    %51 = arith.addf %45, %50 : vector<256x4xf32>
    %c1_42 = arith.constant 1 : index
    %c1_43 = arith.constant 1 : index
    %c0_44 = arith.constant 0 : index
    %52 = vector.load %arg15[%c1_42, %c1_43, %c0_44] : memref<18x18x4xbf16, #tpu.memory_space<vmem>>, vector<16x16x4xbf16>
    %53 = vector.shape_cast %52 : vector<16x16x4xbf16> to vector<256x4xbf16>
    %c4 = arith.constant 4 : index
    %c0_45 = arith.constant 0 : index
    %c0_46 = arith.constant 0 : index
    %54 = vector.load %arg6[%c4, %c0_45, %c0_46] : memref<9x4x4xbf16, #tpu.memory_space<vmem>>, vector<1x4x4xbf16>
    %55 = vector.shape_cast %54 : vector<1x4x4xbf16> to vector<4x4xbf16>
    %cst_47 = arith.constant dense<0.000000e+00> : vector<256x4xf32>
    %56 = tpu.matmul %53, %55, %cst_47 {dimension_numbers = #tpu.dot_dimension_numbers<[1], [0], [0], [1], [0, 0, 1, 1], [], []>} : vector<256x4xbf16>, vector<4x4xbf16>, vector<256x4xf32> -> vector<256x4xf32>
    %57 = arith.addf %51, %56 : vector<256x4xf32>
    %c1_48 = arith.constant 1 : index
    %c2_49 = arith.constant 2 : index
    %c0_50 = arith.constant 0 : index
    %58 = vector.load %arg15[%c1_48, %c2_49, %c0_50] : memref<18x18x4xbf16, #tpu.memory_space<vmem>>, vector<16x16x4xbf16>
    %59 = vector.shape_cast %58 : vector<16x16x4xbf16> to vector<256x4xbf16>
    %c5 = arith.constant 5 : index
    %c0_51 = arith.constant 0 : index
    %c0_52 = arith.constant 0 : index
    %60 = vector.load %arg6[%c5, %c0_51, %c0_52] : memref<9x4x4xbf16, #tpu.memory_space<vmem>>, vector<1x4x4xbf16>
    %61 = vector.shape_cast %60 : vector<1x4x4xbf16> to vector<4x4xbf16>
    %cst_53 = arith.constant dense<0.000000e+00> : vector<256x4xf32>
    %62 = tpu.matmul %59, %61, %cst_53 {dimension_numbers = #tpu.dot_dimension_numbers<[1], [0], [0], [1], [0, 0, 1, 1], [], []>} : vector<256x4xbf16>, vector<4x4xbf16>, vector<256x4xf32> -> vector<256x4xf32>
    %63 = arith.addf %57, %62 : vector<256x4xf32>
    %c2_54 = arith.constant 2 : index
    %c0_55 = arith.constant 0 : index
    %c0_56 = arith.constant 0 : index
    %64 = vector.load %arg15[%c2_54, %c0_55, %c0_56] : memref<18x18x4xbf16, #tpu.memory_space<vmem>>, vector<16x16x4xbf16>
    %65 = vector.shape_cast %64 : vector<16x16x4xbf16> to vector<256x4xbf16>
    %c6 = arith.constant 6 : index
    %c0_57 = arith.constant 0 : index
    %c0_58 = arith.constant 0 : index
    %66 = vector.load %arg6[%c6, %c0_57, %c0_58] : memref<9x4x4xbf16, #tpu.memory_space<vmem>>, vector<1x4x4xbf16>
    %67 = vector.shape_cast %66 : vector<1x4x4xbf16> to vector<4x4xbf16>
    %cst_59 = arith.constant dense<0.000000e+00> : vector<256x4xf32>
    %68 = tpu.matmul %65, %67, %cst_59 {dimension_numbers = #tpu.dot_dimension_numbers<[1], [0], [0], [1], [0, 0, 1, 1], [], []>} : vector<256x4xbf16>, vector<4x4xbf16>, vector<256x4xf32> -> vector<256x4xf32>
    %69 = arith.addf %63, %68 : vector<256x4xf32>
    %c2_60 = arith.constant 2 : index
    %c1_61 = arith.constant 1 : index
    %c0_62 = arith.constant 0 : index
    %70 = vector.load %arg15[%c2_60, %c1_61, %c0_62] : memref<18x18x4xbf16, #tpu.memory_space<vmem>>, vector<16x16x4xbf16>
    %71 = vector.shape_cast %70 : vector<16x16x4xbf16> to vector<256x4xbf16>
    %c7 = arith.constant 7 : index
    %c0_63 = arith.constant 0 : index
    %c0_64 = arith.constant 0 : index
    %72 = vector.load %arg6[%c7, %c0_63, %c0_64] : memref<9x4x4xbf16, #tpu.memory_space<vmem>>, vector<1x4x4xbf16>
    %73 = vector.shape_cast %72 : vector<1x4x4xbf16> to vector<4x4xbf16>
    %cst_65 = arith.constant dense<0.000000e+00> : vector<256x4xf32>
    %74 = tpu.matmul %71, %73, %cst_65 {dimension_numbers = #tpu.dot_dimension_numbers<[1], [0], [0], [1], [0, 0, 1, 1], [], []>} : vector<256x4xbf16>, vector<4x4xbf16>, vector<256x4xf32> -> vector<256x4xf32>
    %75 = arith.addf %69, %74 : vector<256x4xf32>
    %c2_66 = arith.constant 2 : index
    %c2_67 = arith.constant 2 : index
    %c0_68 = arith.constant 0 : index
    %76 = vector.load %arg15[%c2_66, %c2_67, %c0_68] : memref<18x18x4xbf16, #tpu.memory_space<vmem>>, vector<16x16x4xbf16>
    %77 = vector.shape_cast %76 : vector<16x16x4xbf16> to vector<256x4xbf16>
    %c8 = arith.constant 8 : index
    %c0_69 = arith.constant 0 : index
    %c0_70 = arith.constant 0 : index
    %78 = vector.load %arg6[%c8, %c0_69, %c0_70] : memref<9x4x4xbf16, #tpu.memory_space<vmem>>, vector<1x4x4xbf16>
    %79 = vector.shape_cast %78 : vector<1x4x4xbf16> to vector<4x4xbf16>
    %cst_71 = arith.constant dense<0.000000e+00> : vector<256x4xf32>
    %80 = tpu.matmul %77, %79, %cst_71 {dimension_numbers = #tpu.dot_dimension_numbers<[1], [0], [0], [1], [0, 0, 1, 1], [], []>} : vector<256x4xbf16>, vector<4x4xbf16>, vector<256x4xf32> -> vector<256x4xf32>
    %81 = arith.addf %75, %80 : vector<256x4xf32>
    %82 = arith.truncf %81 : vector<256x4xf32> to vector<256x4xbf16>
    %c0_72 = arith.constant 0 : index
    %c0_73 = arith.constant 0 : index
    %c0_74 = arith.constant 0 : index
    %83 = vector.load %arg9[%c0_72, %c0_73, %c0_74] : memref<1x256x4xbf16, #tpu.memory_space<vmem>>, vector<1x256x4xbf16>
    %84 = vector.shape_cast %83 : vector<1x256x4xbf16> to vector<256x4xbf16>
    %85 = vector.shape_cast %82 : vector<256x4xbf16> to vector<1x256x4xbf16>
    tpu.vector_store %arg9[%c0_72, %c0_73, %c0_74], %85 {strides = array<i32>} : memref<1x256x4xbf16, #tpu.memory_space<vmem>>, vector<1x256x4xbf16>,
    %86 = arith.extf %82 : vector<256x4xbf16> to vector<256x4xf32>
    %cst_75 = arith.constant dense<0.000000e+00> : vector<4xf32>
    %87 = vector.multi_reduction <add>, %86, %cst_75 [0] : vector<256x4xf32> to vector<4xf32>
    %88 = vector.shape_cast %87 : vector<4xf32> to vector<1x4xf32>
    %cst_76 = arith.constant 3.906250e-03 : f32
    %89 = vector.broadcast %cst_76 : f32 to vector<1x4xf32>
    %90 = arith.mulf %88, %89 : vector<1x4xf32>
    %91 = vector.broadcast %90 : vector<1x4xf32> to vector<256x4xf32>
    %92 = arith.subf %86, %91 : vector<256x4xf32>
    %93 = arith.mulf %92, %92 : vector<256x4xf32>
    %cst_77 = arith.constant dense<0.000000e+00> : vector<4xf32>
    %94 = vector.multi_reduction <add>, %93, %cst_77 [0] : vector<256x4xf32> to vector<4xf32>
    %95 = vector.shape_cast %94 : vector<4xf32> to vector<1x4xf32>
    %96 = arith.sitofp %arg0 : i32 to f32
    %cst_78 = arith.constant 2.560000e+02 : f32
    %97 = arith.mulf %96, %cst_78 : f32
    %cst_79 = arith.constant 2.560000e+02 : f32
    %98 = arith.addf %97, %cst_79 : f32
    %c0_80 = arith.constant 0 : index
    %c0_81 = arith.constant 0 : index
    %99 = vector.load %arg10[%c0_80, %c0_81] : memref<1x4xf32, #tpu.memory_space<vmem>>, vector<1x4xf32>
    %100 = arith.subf %90, %99 : vector<1x4xf32>
    %c0_82 = arith.constant 0 : index
    %c0_83 = arith.constant 0 : index
    %101 = vector.load %arg10[%c0_82, %c0_83] : memref<1x4xf32, #tpu.memory_space<vmem>>, vector<1x4xf32>
    %cst_84 = arith.constant 2.560000e+02 : f32
    %102 = arith.divf %cst_84, %98 : f32
    %103 = vector.broadcast %102 : f32 to vector<1x4xf32>
    %104 = arith.mulf %100, %103 : vector<1x4xf32>
    %105 = arith.addf %101, %104 : vector<1x4xf32>
    %c0_85 = arith.constant 0 : index
    %c0_86 = arith.constant 0 : index
    %106 = vector.load %arg10[%c0_85, %c0_86] : memref<1x4xf32, #tpu.memory_space<vmem>>, vector<1x4xf32>
    tpu.vector_store %arg10[%c0_85, %c0_86], %105 {strides = array<i32>} : memref<1x4xf32, #tpu.memory_space<vmem>>, vector<1x4xf32>,
    %c0_87 = arith.constant 0 : index
    %c0_88 = arith.constant 0 : index
    %107 = vector.load %arg11[%c0_87, %c0_88] : memref<1x4xf32, #tpu.memory_space<vmem>>, vector<1x4xf32>
    %108 = arith.mulf %100, %100 : vector<1x4xf32>
    %cst_89 = arith.constant 2.560000e+02 : f32
    %109 = arith.mulf %97, %cst_89 : f32
    %110 = arith.divf %109, %98 : f32
    %111 = vector.broadcast %110 : f32 to vector<1x4xf32>
    %112 = arith.mulf %108, %111 : vector<1x4xf32>
    %113 = arith.addf %95, %112 : vector<1x4xf32>
    %114 = arith.addf %107, %113 : vector<1x4xf32>
    %c0_90 = arith.constant 0 : index
    %c0_91 = arith.constant 0 : index
    %115 = vector.load %arg11[%c0_90, %c0_91] : memref<1x4xf32, #tpu.memory_space<vmem>>, vector<1x4xf32>
    tpu.vector_store %arg11[%c0_90, %c0_91], %114 {strides = array<i32>} : memref<1x4xf32, #tpu.memory_space<vmem>>, vector<1x4xf32>,
    %c0_92 = arith.constant 0 : index
    %c0_93 = arith.constant 0 : index
    %c0_94 = arith.constant 0 : index
    %116 = vector.load %arg7[%c0_92, %c0_93, %c0_94] : memref<1x256x4xbf16, #tpu.memory_space<vmem>>, vector<1x256x4xbf16>
    %117 = vector.shape_cast %116 : vector<1x256x4xbf16> to vector<256x4xbf16>
    %c0_95 = arith.constant 0 : index
    %c0_96 = arith.constant 0 : index
    %118 = vector.load %arg8[%c0_95, %c0_96] : memref<4x16xbf16, #tpu.memory_space<vmem>>, vector<4x16xbf16>
    %cst_97 = arith.constant dense<0.000000e+00> : vector<256x16xf32>
    %119 = tpu.matmul %117, %118, %cst_97 {dimension_numbers = #tpu.dot_dimension_numbers<[1], [0], [0], [1], [0, 0, 1, 1], [], []>} : vector<256x4xbf16>, vector<4x16xbf16>, vector<256x16xf32> -> vector<256x16xf32>
    %120 = arith.truncf %119 : vector<256x16xf32> to vector<256x16xbf16>
    %c0_98 = arith.constant 0 : index
    %c0_99 = arith.constant 0 : index
    %c0_100 = arith.constant 0 : index
    %121 = vector.load %arg12[%c0_98, %c0_99, %c0_100] : memref<1x256x16xbf16, #tpu.memory_space<vmem>>, vector<1x256x16xbf16>
    %122 = vector.shape_cast %121 : vector<1x256x16xbf16> to vector<256x16xbf16>
    %123 = vector.shape_cast %120 : vector<256x16xbf16> to vector<1x256x16xbf16>
    tpu.vector_store %arg12[%c0_98, %c0_99, %c0_100], %123 {strides = array<i32>} : memref<1x256x16xbf16, #tpu.memory_space<vmem>>, vector<1x256x16xbf16>,
    %124 = arith.extf %120 : vector<256x16xbf16> to vector<256x16xf32>
    %cst_101 = arith.constant dense<0.000000e+00> : vector<16xf32>
    %125 = vector.multi_reduction <add>, %124, %cst_101 [0] : vector<256x16xf32> to vector<16xf32>
    %126 = vector.shape_cast %125 : vector<16xf32> to vector<1x16xf32>
    %cst_102 = arith.constant 3.906250e-03 : f32
    %127 = vector.broadcast %cst_102 : f32 to vector<1x16xf32>
    %128 = arith.mulf %126, %127 : vector<1x16xf32>
    %129 = vector.broadcast %128 : vector<1x16xf32> to vector<256x16xf32>
    %130 = arith.subf %124, %129 : vector<256x16xf32>
    %131 = arith.mulf %130, %130 : vector<256x16xf32>
    %cst_103 = arith.constant dense<0.000000e+00> : vector<16xf32>
    %132 = vector.multi_reduction <add>, %131, %cst_103 [0] : vector<256x16xf32> to vector<16xf32>
    %133 = vector.shape_cast %132 : vector<16xf32> to vector<1x16xf32>
    %134 = arith.sitofp %arg0 : i32 to f32
    %cst_104 = arith.constant 2.560000e+02 : f32
    %135 = arith.mulf %134, %cst_104 : f32
    %cst_105 = arith.constant 2.560000e+02 : f32
    %136 = arith.addf %135, %cst_105 : f32
    %c0_106 = arith.constant 0 : index
    %c0_107 = arith.constant 0 : index
    %137 = vector.load %arg13[%c0_106, %c0_107] : memref<1x16xf32, #tpu.memory_space<vmem>>, vector<1x16xf32>
    %138 = arith.subf %128, %137 : vector<1x16xf32>
    %c0_108 = arith.constant 0 : index
    %c0_109 = arith.constant 0 : index
    %139 = vector.load %arg13[%c0_108, %c0_109] : memref<1x16xf32, #tpu.memory_space<vmem>>, vector<1x16xf32>
    %cst_110 = arith.constant 2.560000e+02 : f32
    %140 = arith.divf %cst_110, %136 : f32
    %141 = vector.broadcast %140 : f32 to vector<1x16xf32>
    %142 = arith.mulf %138, %141 : vector<1x16xf32>
    %143 = arith.addf %139, %142 : vector<1x16xf32>
    %c0_111 = arith.constant 0 : index
    %c0_112 = arith.constant 0 : index
    %144 = vector.load %arg13[%c0_111, %c0_112] : memref<1x16xf32, #tpu.memory_space<vmem>>, vector<1x16xf32>
    tpu.vector_store %arg13[%c0_111, %c0_112], %143 {strides = array<i32>} : memref<1x16xf32, #tpu.memory_space<vmem>>, vector<1x16xf32>,
    %c0_113 = arith.constant 0 : index
    %c0_114 = arith.constant 0 : index
    %145 = vector.load %arg14[%c0_113, %c0_114] : memref<1x16xf32, #tpu.memory_space<vmem>>, vector<1x16xf32>
    %146 = arith.mulf %138, %138 : vector<1x16xf32>
    %cst_115 = arith.constant 2.560000e+02 : f32
    %147 = arith.mulf %135, %cst_115 : f32
    %148 = arith.divf %147, %136 : f32
    %149 = vector.broadcast %148 : f32 to vector<1x16xf32>
    %150 = arith.mulf %146, %149 : vector<1x16xf32>
    %151 = arith.addf %133, %150 : vector<1x16xf32>
    %152 = arith.addf %145, %151 : vector<1x16xf32>
    %c0_116 = arith.constant 0 : index
    %c0_117 = arith.constant 0 : index
    %153 = vector.load %arg14[%c0_116, %c0_117] : memref<1x16xf32, #tpu.memory_space<vmem>>, vector<1x16xf32>
    tpu.vector_store %arg14[%c0_116, %c0_117], %152 {strides = array<i32>} : memref<1x16xf32, #tpu.memory_space<vmem>>, vector<1x16xf32>,
    return
  }
  func.func @transform_0(%arg0: i32) -> (i32, i32, i32) {
    %c0_i32 = arith.constant 0 : i32
    %c0_i32_0 = arith.constant 0 : i32
    %c0_i32_1 = arith.constant 0 : i32
    return %arg0, %c0_i32, %c0_i32_0 : i32, i32, i32
  }
  func.func @transform_1(%arg0: i32) -> (i32, i32) {
    %c0_i32 = arith.constant 0 : i32
    %c0_i32_0 = arith.constant 0 : i32
    %c0_i32_1 = arith.constant 0 : i32
    return %c0_i32, %c0_i32_0 : i32, i32
  }
  func.func @transform_2(%arg0: i32) -> (i32, i32) {
    %c0_i32 = arith.constant 0 : i32
    %c0_i32_0 = arith.constant 0 : i32
    %c0_i32_1 = arith.constant 0 : i32
    return %c0_i32, %c0_i32_0 : i32, i32
  }
  func.func @transform_3(%arg0: i32) -> (i32, i32) {
    %c0_i32 = arith.constant 0 : i32
    %c0_i32_0 = arith.constant 0 : i32
    %c0_i32_1 = arith.constant 0 : i32
    return %c0_i32, %c0_i32_0 : i32, i32
  }
  func.func @transform_4(%arg0: i32) -> (i32, i32) {
    %c0_i32 = arith.constant 0 : i32
    %c0_i32_0 = arith.constant 0 : i32
    %c0_i32_1 = arith.constant 0 : i32
    return %c0_i32, %c0_i32_0 : i32, i32
  }
  func.func @transform_5(%arg0: i32) -> (i32, i32, i32) {
    %c0_i32 = arith.constant 0 : i32
    %c0_i32_0 = arith.constant 0 : i32
    %c0_i32_1 = arith.constant 0 : i32
    %c0_i32_2 = arith.constant 0 : i32
    return %c0_i32, %c0_i32_0, %c0_i32_1 : i32, i32, i32
  }
  func.func @transform_6(%arg0: i32) -> (i32, i32, i32) {
    %c0_i32 = arith.constant 0 : i32
    %c0_i32_0 = arith.constant 0 : i32
    %c0_i32_1 = arith.constant 0 : i32
    return %arg0, %c0_i32, %c0_i32_0 : i32, i32, i32
  }
  func.func @transform_7(%arg0: i32) -> (i32, i32) {
    %c0_i32 = arith.constant 0 : i32
    %c0_i32_0 = arith.constant 0 : i32
    %c0_i32_1 = arith.constant 0 : i32
    return %c0_i32, %c0_i32_0 : i32, i32
  }
  func.func @transform_8(%arg0: i32) -> (i32, i32, i32) {
    %c0_i32 = arith.constant 0 : i32
    %c0_i32_0 = arith.constant 0 : i32
    %c0_i32_1 = arith.constant 0 : i32
    return %arg0, %c0_i32, %c0_i32_0 : i32, i32, i32
  }
  func.func @transform_9(%arg0: i32) -> (i32, i32) {
    %c0_i32 = arith.constant 0 : i32
    %c0_i32_0 = arith.constant 0 : i32
    %c0_i32_1 = arith.constant 0 : i32
    return %c0_i32, %c0_i32_0 : i32, i32
  }
  func.func @transform_10(%arg0: i32) -> (i32, i32) {
    %c0_i32 = arith.constant 0 : i32
    %c0_i32_0 = arith.constant 0 : i32
    %c0_i32_1 = arith.constant 0 : i32
    return %c0_i32, %c0_i32_0 : i32, i32
  }
  func.func @transform_11(%arg0: i32) -> (i32, i32, i32) {
    %c0_i32 = arith.constant 0 : i32
    %c0_i32_0 = arith.constant 0 : i32
    %c0_i32_1 = arith.constant 0 : i32
    return %arg0, %c0_i32, %c0_i32_0 : i32, i32, i32
  }
  func.func @transform_12(%arg0: i32) -> (i32, i32) {
    %c0_i32 = arith.constant 0 : i32
    %c0_i32_0 = arith.constant 0 : i32
    %c0_i32_1 = arith.constant 0 : i32
    return %c0_i32, %c0_i32_0 : i32, i32
  }
  func.func @transform_13(%arg0: i32) -> (i32, i32) {
    %c0_i32 = arith.constant 0 : i32
    %c0_i32_0 = arith.constant 0 : i32
    %c0_i32_1 = arith.constant 0 : i32
    return %c0_i32, %c0_i32_0 : i32, i32
  }
}

module attributes {stable_mosaic.version = 11 : i64} {
  func.func @_conv3_kernel(%arg0: i32, %arg1: i32, %arg2: memref<1x256x4xbf16, #tpu.memory_space<vmem>>, %arg3: memref<1x4xf32, #tpu.memory_space<vmem>>, %arg4: memref<1x4xf32, #tpu.memory_space<vmem>>, %arg5: memref<1x4xf32, #tpu.memory_space<vmem>>, %arg6: memref<1x4xf32, #tpu.memory_space<vmem>>, %arg7: memref<4x16xbf16, #tpu.memory_space<vmem>>, %arg8: memref<1x256x16xbf16, #tpu.memory_space<vmem>>, %arg9: memref<1x16xf32, #tpu.memory_space<vmem>>, %arg10: memref<1x16xf32, #tpu.memory_space<vmem>>) attributes {dimension_semantics = [#tpu.dimension_semantics<arbitrary>, #tpu.dimension_semantics<arbitrary>], iteration_bounds = array<i64: 2, 1>, scalar_prefetch = 0 : i64, scratch_operands = 0 : i64, tpu.core_type = #tpu.core_type<tc>, window_params = [{transform_indices = @transform_0, window_bounds = array<i64: 1, 256, 4>}, {pipeline_mode = #tpu.pipeline_mode<synchronous>, transform_indices = @transform_1, window_bounds = array<i64: 1, 4>}, {pipeline_mode = #tpu.pipeline_mode<synchronous>, transform_indices = @transform_2, window_bounds = array<i64: 1, 4>}, {pipeline_mode = #tpu.pipeline_mode<synchronous>, transform_indices = @transform_3, window_bounds = array<i64: 1, 4>}, {pipeline_mode = #tpu.pipeline_mode<synchronous>, transform_indices = @transform_4, window_bounds = array<i64: 1, 4>}, {pipeline_mode = #tpu.pipeline_mode<synchronous>, transform_indices = @transform_5, window_bounds = array<i64: 4, 16>}, {transform_indices = @transform_6, window_bounds = array<i64: 1, 256, 16>}, {pipeline_mode = #tpu.pipeline_mode<synchronous>, transform_indices = @transform_7, window_bounds = array<i64: 1, 16>}, {pipeline_mode = #tpu.pipeline_mode<synchronous>, transform_indices = @transform_8, window_bounds = array<i64: 1, 16>}]} {
    %c1_i32 = arith.constant 1 : i32
    %0 = arith.muli %arg0, %c1_i32 : i32
    %1 = arith.addi %0, %arg1 : i32
    %c0_i32 = arith.constant 0 : i32
    %2 = arith.cmpi eq, %1, %c0_i32 : i32
    %3 = arith.extui %2 : i1 to i32
    %c0_i32_0 = arith.constant 0 : i32
    %4 = arith.cmpi ne, %3, %c0_i32_0 : i32
    scf.if %4 {
      %cst_36 = arith.constant 0.000000e+00 : f32
      %63 = vector.broadcast %cst_36 : f32 to vector<1x16xf32>
      %c0_37 = arith.constant 0 : index
      %c0_38 = arith.constant 0 : index
      %64 = vector.load %arg9[%c0_37, %c0_38] : memref<1x16xf32, #tpu.memory_space<vmem>>, vector<1x16xf32>
      tpu.vector_store %arg9[%c0_37, %c0_38], %63 {strides = array<i32>} : memref<1x16xf32, #tpu.memory_space<vmem>>, vector<1x16xf32>,
      %cst_39 = arith.constant 0.000000e+00 : f32
      %65 = vector.broadcast %cst_39 : f32 to vector<1x16xf32>
      %c0_40 = arith.constant 0 : index
      %c0_41 = arith.constant 0 : index
      %66 = vector.load %arg10[%c0_40, %c0_41] : memref<1x16xf32, #tpu.memory_space<vmem>>, vector<1x16xf32>
      tpu.vector_store %arg10[%c0_40, %c0_41], %65 {strides = array<i32>} : memref<1x16xf32, #tpu.memory_space<vmem>>, vector<1x16xf32>,
    } else {
    }
    %c0 = arith.constant 0 : index
    %c0_1 = arith.constant 0 : index
    %5 = vector.load %arg6[%c0, %c0_1] : memref<1x4xf32, #tpu.memory_space<vmem>>, vector<1x4xf32>
    %cst = arith.constant 0.001953125 : f32
    %6 = vector.broadcast %cst : f32 to vector<1x4xf32>
    %7 = arith.mulf %5, %6 : vector<1x4xf32>
    %c0_2 = arith.constant 0 : index
    %c0_3 = arith.constant 0 : index
    %8 = vector.load %arg3[%c0_2, %c0_3] : memref<1x4xf32, #tpu.memory_space<vmem>>, vector<1x4xf32>
    %cst_4 = arith.constant 9.99999974E-6 : f32
    %9 = vector.broadcast %cst_4 : f32 to vector<1x4xf32>
    %10 = arith.addf %7, %9 : vector<1x4xf32>
    %11 = math.rsqrt %10 : vector<1x4xf32>
    %12 = arith.mulf %8, %11 : vector<1x4xf32>
    %c0_5 = arith.constant 0 : index
    %c0_6 = arith.constant 0 : index
    %13 = vector.load %arg4[%c0_5, %c0_6] : memref<1x4xf32, #tpu.memory_space<vmem>>, vector<1x4xf32>
    %c0_7 = arith.constant 0 : index
    %c0_8 = arith.constant 0 : index
    %14 = vector.load %arg5[%c0_7, %c0_8] : memref<1x4xf32, #tpu.memory_space<vmem>>, vector<1x4xf32>
    %15 = arith.mulf %14, %12 : vector<1x4xf32>
    %16 = arith.subf %13, %15 : vector<1x4xf32>
    %c0_9 = arith.constant 0 : index
    %c0_10 = arith.constant 0 : index
    %c0_11 = arith.constant 0 : index
    %17 = vector.load %arg2[%c0_9, %c0_10, %c0_11] : memref<1x256x4xbf16, #tpu.memory_space<vmem>>, vector<1x256x4xbf16>
    %18 = vector.shape_cast %17 : vector<1x256x4xbf16> to vector<256x4xbf16>
    %19 = arith.extf %18 : vector<256x4xbf16> to vector<256x4xf32>
    %20 = vector.broadcast %12 : vector<1x4xf32> to vector<256x4xf32>
    %21 = arith.mulf %19, %20 : vector<256x4xf32>
    %22 = vector.broadcast %16 : vector<1x4xf32> to vector<256x4xf32>
    %23 = arith.addf %21, %22 : vector<256x4xf32>
    %cst_12 = arith.constant 0.000000e+00 : f32
    %24 = vector.broadcast %cst_12 : f32 to vector<256x4xf32>
    %25 = arith.maximumf %23, %24 : vector<256x4xf32>
    %26 = arith.truncf %25 : vector<256x4xf32> to vector<256x4xbf16>
    %c0_13 = arith.constant 0 : index
    %c0_14 = arith.constant 0 : index
    %27 = vector.load %arg7[%c0_13, %c0_14] : memref<4x16xbf16, #tpu.memory_space<vmem>>, vector<4x16xbf16>
    %cst_15 = arith.constant dense<0.000000e+00> : vector<256x16xf32>
    %28 = tpu.matmul %26, %27, %cst_15 {dimension_numbers = #tpu.dot_dimension_numbers<[1], [0], [0], [1], [0, 0, 1, 1], [], []>} : vector<256x4xbf16>, vector<4x16xbf16>, vector<256x16xf32> -> vector<256x16xf32>
    %29 = arith.truncf %28 : vector<256x16xf32> to vector<256x16xbf16>
    %c0_16 = arith.constant 0 : index
    %c0_17 = arith.constant 0 : index
    %c0_18 = arith.constant 0 : index
    %30 = vector.load %arg8[%c0_16, %c0_17, %c0_18] : memref<1x256x16xbf16, #tpu.memory_space<vmem>>, vector<1x256x16xbf16>
    %31 = vector.shape_cast %30 : vector<1x256x16xbf16> to vector<256x16xbf16>
    %32 = vector.shape_cast %29 : vector<256x16xbf16> to vector<1x256x16xbf16>
    tpu.vector_store %arg8[%c0_16, %c0_17, %c0_18], %32 {strides = array<i32>} : memref<1x256x16xbf16, #tpu.memory_space<vmem>>, vector<1x256x16xbf16>,
    %33 = arith.extf %29 : vector<256x16xbf16> to vector<256x16xf32>
    %cst_19 = arith.constant dense<0.000000e+00> : vector<16xf32>
    %34 = vector.multi_reduction <add>, %33, %cst_19 [0] : vector<256x16xf32> to vector<16xf32>
    %35 = vector.shape_cast %34 : vector<16xf32> to vector<1x16xf32>
    %cst_20 = arith.constant 3.906250e-03 : f32
    %36 = vector.broadcast %cst_20 : f32 to vector<1x16xf32>
    %37 = arith.mulf %35, %36 : vector<1x16xf32>
    %38 = vector.broadcast %37 : vector<1x16xf32> to vector<256x16xf32>
    %39 = arith.subf %33, %38 : vector<256x16xf32>
    %40 = arith.mulf %39, %39 : vector<256x16xf32>
    %cst_21 = arith.constant dense<0.000000e+00> : vector<16xf32>
    %41 = vector.multi_reduction <add>, %40, %cst_21 [0] : vector<256x16xf32> to vector<16xf32>
    %42 = vector.shape_cast %41 : vector<16xf32> to vector<1x16xf32>
    %43 = arith.sitofp %1 : i32 to f32
    %cst_22 = arith.constant 2.560000e+02 : f32
    %44 = arith.mulf %43, %cst_22 : f32
    %cst_23 = arith.constant 2.560000e+02 : f32
    %45 = arith.addf %44, %cst_23 : f32
    %c0_24 = arith.constant 0 : index
    %c0_25 = arith.constant 0 : index
    %46 = vector.load %arg9[%c0_24, %c0_25] : memref<1x16xf32, #tpu.memory_space<vmem>>, vector<1x16xf32>
    %47 = arith.subf %37, %46 : vector<1x16xf32>
    %c0_26 = arith.constant 0 : index
    %c0_27 = arith.constant 0 : index
    %48 = vector.load %arg9[%c0_26, %c0_27] : memref<1x16xf32, #tpu.memory_space<vmem>>, vector<1x16xf32>
    %cst_28 = arith.constant 2.560000e+02 : f32
    %49 = arith.divf %cst_28, %45 : f32
    %50 = vector.broadcast %49 : f32 to vector<1x16xf32>
    %51 = arith.mulf %47, %50 : vector<1x16xf32>
    %52 = arith.addf %48, %51 : vector<1x16xf32>
    %c0_29 = arith.constant 0 : index
    %c0_30 = arith.constant 0 : index
    %53 = vector.load %arg9[%c0_29, %c0_30] : memref<1x16xf32, #tpu.memory_space<vmem>>, vector<1x16xf32>
    tpu.vector_store %arg9[%c0_29, %c0_30], %52 {strides = array<i32>} : memref<1x16xf32, #tpu.memory_space<vmem>>, vector<1x16xf32>,
    %c0_31 = arith.constant 0 : index
    %c0_32 = arith.constant 0 : index
    %54 = vector.load %arg10[%c0_31, %c0_32] : memref<1x16xf32, #tpu.memory_space<vmem>>, vector<1x16xf32>
    %55 = arith.mulf %47, %47 : vector<1x16xf32>
    %cst_33 = arith.constant 2.560000e+02 : f32
    %56 = arith.mulf %44, %cst_33 : f32
    %57 = arith.divf %56, %45 : f32
    %58 = vector.broadcast %57 : f32 to vector<1x16xf32>
    %59 = arith.mulf %55, %58 : vector<1x16xf32>
    %60 = arith.addf %42, %59 : vector<1x16xf32>
    %61 = arith.addf %54, %60 : vector<1x16xf32>
    %c0_34 = arith.constant 0 : index
    %c0_35 = arith.constant 0 : index
    %62 = vector.load %arg10[%c0_34, %c0_35] : memref<1x16xf32, #tpu.memory_space<vmem>>, vector<1x16xf32>
    tpu.vector_store %arg10[%c0_34, %c0_35], %61 {strides = array<i32>} : memref<1x16xf32, #tpu.memory_space<vmem>>, vector<1x16xf32>,
    return
  }
  func.func @transform_0(%arg0: i32, %arg1: i32) -> (i32, i32, i32) {
    %c0_i32 = arith.constant 0 : i32
    %c0_i32_0 = arith.constant 0 : i32
    return %arg0, %arg1, %c0_i32 : i32, i32, i32
  }
  func.func @transform_1(%arg0: i32, %arg1: i32) -> (i32, i32) {
    %c0_i32 = arith.constant 0 : i32
    %c0_i32_0 = arith.constant 0 : i32
    %c0_i32_1 = arith.constant 0 : i32
    return %c0_i32, %c0_i32_0 : i32, i32
  }
  func.func @transform_2(%arg0: i32, %arg1: i32) -> (i32, i32) {
    %c0_i32 = arith.constant 0 : i32
    %c0_i32_0 = arith.constant 0 : i32
    %c0_i32_1 = arith.constant 0 : i32
    return %c0_i32, %c0_i32_0 : i32, i32
  }
  func.func @transform_3(%arg0: i32, %arg1: i32) -> (i32, i32) {
    %c0_i32 = arith.constant 0 : i32
    %c0_i32_0 = arith.constant 0 : i32
    %c0_i32_1 = arith.constant 0 : i32
    return %c0_i32, %c0_i32_0 : i32, i32
  }
  func.func @transform_4(%arg0: i32, %arg1: i32) -> (i32, i32) {
    %c0_i32 = arith.constant 0 : i32
    %c0_i32_0 = arith.constant 0 : i32
    %c0_i32_1 = arith.constant 0 : i32
    return %c0_i32, %c0_i32_0 : i32, i32
  }
  func.func @transform_5(%arg0: i32, %arg1: i32) -> (i32, i32) {
    %c0_i32 = arith.constant 0 : i32
    %c0_i32_0 = arith.constant 0 : i32
    %c0_i32_1 = arith.constant 0 : i32
    return %c0_i32, %c0_i32_0 : i32, i32
  }
  func.func @transform_6(%arg0: i32, %arg1: i32) -> (i32, i32, i32) {
    %c0_i32 = arith.constant 0 : i32
    %c0_i32_0 = arith.constant 0 : i32
    return %arg0, %arg1, %c0_i32 : i32, i32, i32
  }
  func.func @transform_7(%arg0: i32, %arg1: i32) -> (i32, i32) {
    %c0_i32 = arith.constant 0 : i32
    %c0_i32_0 = arith.constant 0 : i32
    %c0_i32_1 = arith.constant 0 : i32
    return %c0_i32, %c0_i32_0 : i32, i32
  }
  func.func @transform_8(%arg0: i32, %arg1: i32) -> (i32, i32) {
    %c0_i32 = arith.constant 0 : i32
    %c0_i32_0 = arith.constant 0 : i32
    %c0_i32_1 = arith.constant 0 : i32
    return %c0_i32, %c0_i32_0 : i32, i32
  }
}

module attributes {stable_mosaic.version = 11 : i64} {
  func.func @_output_kernel(%arg0: i32, %arg1: i32, %arg2: memref<1x256x16xbf16, #tpu.memory_space<vmem>>, %arg3: memref<1x16xf32, #tpu.memory_space<vmem>>, %arg4: memref<1x16xf32, #tpu.memory_space<vmem>>, %arg5: memref<1x16xf32, #tpu.memory_space<vmem>>, %arg6: memref<1x16xf32, #tpu.memory_space<vmem>>, %arg7: memref<1x256x16xbf16, #tpu.memory_space<vmem>>, %arg8: memref<1x16xf32, #tpu.memory_space<vmem>>, %arg9: memref<1x16xf32, #tpu.memory_space<vmem>>, %arg10: memref<1x16xf32, #tpu.memory_space<vmem>>, %arg11: memref<1x16xf32, #tpu.memory_space<vmem>>, %arg12: memref<1x256x16xf32, #tpu.memory_space<vmem>>) attributes {dimension_semantics = [#tpu.dimension_semantics<parallel>, #tpu.dimension_semantics<parallel>], iteration_bounds = array<i64: 2, 1>, scalar_prefetch = 0 : i64, scratch_operands = 0 : i64, tpu.core_type = #tpu.core_type<tc>, window_params = [{transform_indices = @transform_0, window_bounds = array<i64: 1, 256, 16>}, {pipeline_mode = #tpu.pipeline_mode<synchronous>, transform_indices = @transform_1, window_bounds = array<i64: 1, 16>}, {pipeline_mode = #tpu.pipeline_mode<synchronous>, transform_indices = @transform_2, window_bounds = array<i64: 1, 16>}, {pipeline_mode = #tpu.pipeline_mode<synchronous>, transform_indices = @transform_3, window_bounds = array<i64: 1, 16>}, {pipeline_mode = #tpu.pipeline_mode<synchronous>, transform_indices = @transform_4, window_bounds = array<i64: 1, 16>}, {transform_indices = @transform_5, window_bounds = array<i64: 1, 256, 16>}, {pipeline_mode = #tpu.pipeline_mode<synchronous>, transform_indices = @transform_6, window_bounds = array<i64: 1, 16>}, {pipeline_mode = #tpu.pipeline_mode<synchronous>, transform_indices = @transform_7, window_bounds = array<i64: 1, 16>}, {pipeline_mode = #tpu.pipeline_mode<synchronous>, transform_indices = @transform_8, window_bounds = array<i64: 1, 16>}, {pipeline_mode = #tpu.pipeline_mode<synchronous>, transform_indices = @transform_9, window_bounds = array<i64: 1, 16>}, {transform_indices = @transform_10, window_bounds = array<i64: 1, 256, 16>}]} {
    %c0 = arith.constant 0 : index
    %c0_0 = arith.constant 0 : index
    %0 = vector.load %arg6[%c0, %c0_0] : memref<1x16xf32, #tpu.memory_space<vmem>>, vector<1x16xf32>
    %cst = arith.constant 0.001953125 : f32
    %1 = vector.broadcast %cst : f32 to vector<1x16xf32>
    %2 = arith.mulf %0, %1 : vector<1x16xf32>
    %c0_1 = arith.constant 0 : index
    %c0_2 = arith.constant 0 : index
    %3 = vector.load %arg3[%c0_1, %c0_2] : memref<1x16xf32, #tpu.memory_space<vmem>>, vector<1x16xf32>
    %cst_3 = arith.constant 9.99999974E-6 : f32
    %4 = vector.broadcast %cst_3 : f32 to vector<1x16xf32>
    %5 = arith.addf %2, %4 : vector<1x16xf32>
    %6 = math.rsqrt %5 : vector<1x16xf32>
    %7 = arith.mulf %3, %6 : vector<1x16xf32>
    %c0_4 = arith.constant 0 : index
    %c0_5 = arith.constant 0 : index
    %8 = vector.load %arg4[%c0_4, %c0_5] : memref<1x16xf32, #tpu.memory_space<vmem>>, vector<1x16xf32>
    %c0_6 = arith.constant 0 : index
    %c0_7 = arith.constant 0 : index
    %9 = vector.load %arg5[%c0_6, %c0_7] : memref<1x16xf32, #tpu.memory_space<vmem>>, vector<1x16xf32>
    %10 = arith.mulf %9, %7 : vector<1x16xf32>
    %11 = arith.subf %8, %10 : vector<1x16xf32>
    %c0_8 = arith.constant 0 : index
    %c0_9 = arith.constant 0 : index
    %c0_10 = arith.constant 0 : index
    %12 = vector.load %arg2[%c0_8, %c0_9, %c0_10] : memref<1x256x16xbf16, #tpu.memory_space<vmem>>, vector<1x256x16xbf16>
    %13 = vector.shape_cast %12 : vector<1x256x16xbf16> to vector<256x16xbf16>
    %14 = arith.extf %13 : vector<256x16xbf16> to vector<256x16xf32>
    %15 = vector.broadcast %7 : vector<1x16xf32> to vector<256x16xf32>
    %16 = arith.mulf %14, %15 : vector<256x16xf32>
    %17 = vector.broadcast %11 : vector<1x16xf32> to vector<256x16xf32>
    %18 = arith.addf %16, %17 : vector<256x16xf32>
    %c0_11 = arith.constant 0 : index
    %c0_12 = arith.constant 0 : index
    %19 = vector.load %arg11[%c0_11, %c0_12] : memref<1x16xf32, #tpu.memory_space<vmem>>, vector<1x16xf32>
    %cst_13 = arith.constant 0.001953125 : f32
    %20 = vector.broadcast %cst_13 : f32 to vector<1x16xf32>
    %21 = arith.mulf %19, %20 : vector<1x16xf32>
    %c0_14 = arith.constant 0 : index
    %c0_15 = arith.constant 0 : index
    %22 = vector.load %arg8[%c0_14, %c0_15] : memref<1x16xf32, #tpu.memory_space<vmem>>, vector<1x16xf32>
    %cst_16 = arith.constant 9.99999974E-6 : f32
    %23 = vector.broadcast %cst_16 : f32 to vector<1x16xf32>
    %24 = arith.addf %21, %23 : vector<1x16xf32>
    %25 = math.rsqrt %24 : vector<1x16xf32>
    %26 = arith.mulf %22, %25 : vector<1x16xf32>
    %c0_17 = arith.constant 0 : index
    %c0_18 = arith.constant 0 : index
    %27 = vector.load %arg9[%c0_17, %c0_18] : memref<1x16xf32, #tpu.memory_space<vmem>>, vector<1x16xf32>
    %c0_19 = arith.constant 0 : index
    %c0_20 = arith.constant 0 : index
    %28 = vector.load %arg10[%c0_19, %c0_20] : memref<1x16xf32, #tpu.memory_space<vmem>>, vector<1x16xf32>
    %29 = arith.mulf %28, %26 : vector<1x16xf32>
    %30 = arith.subf %27, %29 : vector<1x16xf32>
    %c0_21 = arith.constant 0 : index
    %c0_22 = arith.constant 0 : index
    %c0_23 = arith.constant 0 : index
    %31 = vector.load %arg7[%c0_21, %c0_22, %c0_23] : memref<1x256x16xbf16, #tpu.memory_space<vmem>>, vector<1x256x16xbf16>
    %32 = vector.shape_cast %31 : vector<1x256x16xbf16> to vector<256x16xbf16>
    %33 = arith.extf %32 : vector<256x16xbf16> to vector<256x16xf32>
    %34 = vector.broadcast %26 : vector<1x16xf32> to vector<256x16xf32>
    %35 = arith.mulf %33, %34 : vector<256x16xf32>
    %36 = vector.broadcast %30 : vector<1x16xf32> to vector<256x16xf32>
    %37 = arith.addf %35, %36 : vector<256x16xf32>
    %38 = arith.addf %18, %37 : vector<256x16xf32>
    %c0_24 = arith.constant 0 : index
    %c0_25 = arith.constant 0 : index
    %c0_26 = arith.constant 0 : index
    %39 = vector.load %arg12[%c0_24, %c0_25, %c0_26] : memref<1x256x16xf32, #tpu.memory_space<vmem>>, vector<1x256x16xf32>
    %40 = vector.shape_cast %39 : vector<1x256x16xf32> to vector<256x16xf32>
    %41 = vector.shape_cast %38 : vector<256x16xf32> to vector<1x256x16xf32>
    tpu.vector_store %arg12[%c0_24, %c0_25, %c0_26], %41 {strides = array<i32>} : memref<1x256x16xf32, #tpu.memory_space<vmem>>, vector<1x256x16xf32>,
    return
  }
  func.func @transform_0(%arg0: i32, %arg1: i32) -> (i32, i32, i32) {
    %c0_i32 = arith.constant 0 : i32
    %c0_i32_0 = arith.constant 0 : i32
    return %arg0, %arg1, %c0_i32 : i32, i32, i32
  }
  func.func @transform_1(%arg0: i32, %arg1: i32) -> (i32, i32) {
    %c0_i32 = arith.constant 0 : i32
    %c0_i32_0 = arith.constant 0 : i32
    %c0_i32_1 = arith.constant 0 : i32
    return %c0_i32, %c0_i32_0 : i32, i32
  }
  func.func @transform_2(%arg0: i32, %arg1: i32) -> (i32, i32) {
    %c0_i32 = arith.constant 0 : i32
    %c0_i32_0 = arith.constant 0 : i32
    %c0_i32_1 = arith.constant 0 : i32
    return %c0_i32, %c0_i32_0 : i32, i32
  }
  func.func @transform_3(%arg0: i32, %arg1: i32) -> (i32, i32) {
    %c0_i32 = arith.constant 0 : i32
    %c0_i32_0 = arith.constant 0 : i32
    %c0_i32_1 = arith.constant 0 : i32
    return %c0_i32, %c0_i32_0 : i32, i32
  }
  func.func @transform_4(%arg0: i32, %arg1: i32) -> (i32, i32) {
    %c0_i32 = arith.constant 0 : i32
    %c0_i32_0 = arith.constant 0 : i32
    %c0_i32_1 = arith.constant 0 : i32
    return %c0_i32, %c0_i32_0 : i32, i32
  }
  func.func @transform_5(%arg0: i32, %arg1: i32) -> (i32, i32, i32) {
    %c0_i32 = arith.constant 0 : i32
    %c0_i32_0 = arith.constant 0 : i32
    return %arg0, %arg1, %c0_i32 : i32, i32, i32
  }
  func.func @transform_6(%arg0: i32, %arg1: i32) -> (i32, i32) {
    %c0_i32 = arith.constant 0 : i32
    %c0_i32_0 = arith.constant 0 : i32
    %c0_i32_1 = arith.constant 0 : i32
    return %c0_i32, %c0_i32_0 : i32, i32
  }
  func.func @transform_7(%arg0: i32, %arg1: i32) -> (i32, i32) {
    %c0_i32 = arith.constant 0 : i32
    %c0_i32_0 = arith.constant 0 : i32
    %c0_i32_1 = arith.constant 0 : i32
    return %c0_i32, %c0_i32_0 : i32, i32
  }
  func.func @transform_8(%arg0: i32, %arg1: i32) -> (i32, i32) {
    %c0_i32 = arith.constant 0 : i32
    %c0_i32_0 = arith.constant 0 : i32
    %c0_i32_1 = arith.constant 0 : i32
    return %c0_i32, %c0_i32_0 : i32, i32
  }
  func.func @transform_9(%arg0: i32, %arg1: i32) -> (i32, i32) {
    %c0_i32 = arith.constant 0 : i32
    %c0_i32_0 = arith.constant 0 : i32
    %c0_i32_1 = arith.constant 0 : i32
    return %c0_i32, %c0_i32_0 : i32, i32
  }
  func.func @transform_10(%arg0: i32, %arg1: i32) -> (i32, i32, i32) {
    %c0_i32 = arith.constant 0 : i32
    %c0_i32_0 = arith.constant 0 : i32
    return %arg0, %arg1, %c0_i32 : i32, i32, i32
  }
}

</mosaic_0001>

<bundles_post_ra>
// kernel: _residual_block2_impl.4
= control target key start
LH: loop header
LB: loop body
LE: loop exit
PB: predicated region body
PF: predicated region fallthrough
CT: control target
= control target key end

     0   :  { %s1349_s15 = smov 0   ;;  %s1351_s16 = smov 0   ;;  %s1831_s0 = inlined_call_operand.vmem [shape: bf16[2,256,4], index: 0, kind: input, shape index: {}]   ;;  %s1832_s1 = inlined_call_operand.vmem [shape: bf16[4,4], index: 1, kind: input, shape index: {}]   ;;  %s1833_s2 = inlined_call_operand.vmem [shape: bf16[2,256,4], index: 2, kind: output, shape index: {0}]   ;;  %s1834_s3 = inlined_call_operand.vmem [shape: f32[1,4], index: 3, kind: output, shape index: {1}]   ;;  %s1835_s4 = inlined_call_operand.vmem [shape: f32[1,4], index: 4, kind: output, shape index: {2}]  }
   0x1   :  { %s1353_s17 = smov 0  }
   0x2 LB: > { %s27_s18 = sadd.s32 1, %s1317_s16  ;;  %p1093_p0 = scmp.ge.s32.totalorder %s1321_s17, 1  ;;  %s1321_s17 = sphi %s1353_s17, %s15_s17   ;;  %s1317_s16 = sphi %s1351_s16, %s1837_s16   ;;  %s1313_s15 = sphi %s1349_s15, %s1836_s15  }
   0x3   : > { %p29_p1 = scmp.ge.s32.totalorder %s27_s18, 2  ;;  %p178_p2 = scmp.lt.s32.totalorder %s1321_s17, 3 }
   0x5   : > { %s1839_s18 = smov (%p29_p1, %s27_s18), 0  ;;  %p179_p3 = pnand %p1093_p0, %p178_p2 }
   0x6   : > { %p213_p4 = scmp.lt.s32.totalorder (!%p179_p3), %s1313_s15, 1  ;;  %p1098_p5 = scmp.ne.s32.totalorder (!%p179_p3), %s1313_s15, 0 }
   0x7   : > { %182 = sbr.rel (%p179_p3) target bundleno = 411 (0x19b), region = 28 }
   0xe   : > { %s214_s19 = scalar_select %p213_p4, %s1313_s15, 1 }
   0xf   : > { %237 = sbr.rel (%p1098_p5) target bundleno = 22 (0x16), region = 32  ;;  %vm238_vm0 = vcmask (!%p1098_p5), 24576   ;;  %v1323_v0 = vmov (!%p1098_p5), 0.0  }
  0x10   : > { %s1165_s20 = sshll.u32 %s214_s19, 7  ;;  %239 = vst.msk [vmem:[%s1834_s3] sm:$0x1] (!%p1098_p5), %vm238_vm0, %v1323_v0  ;;  %240 = vst.msk [vmem:[%s1835_s4] sm:$0x1] (!%p1098_p5), %vm238_vm0, %v1323_v0 }
  0x11   : > { %s1374_s23 = scalar_lea.vmem %s1831_s0, %s1165_s20  ;;  %s1379_s26 = scalar_lea.vmem %s1833_s2, %s1165_s20 }
  0x16 PF: > { %v273_v1 = vld [vmem:[%s1832_s1] sm:$0x3]  ;;  %vm403_vm1 = vcmask 1041408   ;;  %vm354_vm2 = vcmask 31744   ;;  %v1282_v4 = vld [vmem:[%s1374_s23 + $0x8] sm:$0xff]   ;;  %v1283_v5 = vld [vmem:[%s1374_s23 + $0x10] sm:$0xff]   ;;  %s964_s7 = scvt.s32.f32 %s1313_s15 }
  0x17   : > { %v1281_v2 = vld [vmem:[%s1374_s23] sm:$0xff]   ;;  %1252 = vmatprep.subr.msk.bf16.mxu0 %vm403_vm1, %v273_v1  ;;  %v405_v3 = vsel %vm403_vm1, %v273_v1, 0  ;;  %1253 = vmatprep.subr.msk.bf16.mxu1 %vm403_vm1, %v273_v1  ;;  %v1284_v6 = vld [vmem:[%s1374_s23 + $0x18] sm:$0xff]   ;;  %v1290_v9 = vld [vmem:[%s1374_s23 + $0x48] sm:$0xff]   ;;  %vm696_vm3 = vcmask 27648   ;;  %vm976_vm4 = vcmask 24576  }
  0x18   : > { %1217 = vmatpush3.bf16.msra.mxu0 %v405_v3  ;;  %1218 = vmatprep.mubr.msk.bf16.mxu0 %vm354_vm2, %v1281_v2  ;;  %v1285_v7 = vld [vmem:[%s1374_s23 + $0x20] sm:$0xff]   ;;  %v1291_v10 = vld [vmem:[%s1374_s23 + $0x50] sm:$0xff]   ;;  %v1292_v11 = vld [vmem:[%s1374_s23 + $0x58] sm:$0xff]   ;;  %s1424_s8 = smul.f32 256.0, %s964_s7 }
  0x19   : > { %1251 = vmatpush3.bf16.msra.mxu1 %v405_v3  ;;  %v1289_v8 = vld [vmem:[%s1374_s23 + $0x40] sm:$0xff]   ;;  %v1286_v12 = vld [vmem:[%s1374_s23 + $0x28] sm:$0xff]   ;;  %v1287_v14 = vld [vmem:[%s1374_s23 + $0x30] sm:$0xff]  }
  0x1a   : > { %1234 = vmatprep.mubr.msk.bf16.mxu1 %vm354_vm2, %v1289_v8  ;;  %v1293_v13 = vld [vmem:[%s1374_s23 + $0x60] sm:$0xff]   ;;  %v1294_v15 = vld [vmem:[%s1374_s23 + $0x68] sm:$0xff]   ;;  %v1288_v16 = vld [vmem:[%s1374_s23 + $0x38] sm:$0xff]   ;;  %s966_s9 = sadd.f32 256.0, %s1424_s8  ;;  %s980_s19 = smul.f32 256.0, %s1424_s8 }
  0x1b   : > { %1219 = vmatmul.mubr.msk.bf16.vlgmr.msra.gmra.mrb[0].mxu0 %vm354_vm2, %v1282_v4  ;;  %v1295_v17 = vld [vmem:[%s1374_s23 + $0x70] sm:$0xff]   ;;  %v1296_v18 = vld [vmem:[%s1374_s23 + $0x78] sm:$0xff]  }
  0x1c   : > { %1222 = vmatprep.mubr.msk.bf16.mxu0 %vm354_vm2, %v1283_v5  ;;  %1235 = vmatmul.mubr.msk.bf16.vlgmr.msra.gmra.mrb[0].mxu1 %vm354_vm2, %v1290_v9  ;;  %v969_v19 = vstv %s966_s9 }
  0x1d   : > { %1238 = vmatprep.mubr.msk.bf16.mxu1 %vm354_vm2, %v1291_v10  ;;  %1297 = vrcp.f32 %v969_v19 }
  0x23   : > { %1223 = vmatmul.mubr.msk.bf16.gmra.mrb[4].mxu0 %vm354_vm2, %v1284_v6 }
  0x24   : > { %1226 = vmatprep.mubr.msk.bf16.mxu0 %vm354_vm2, %v1285_v7  ;;  %1239 = vmatmul.mubr.msk.bf16.gmra.mrb[4].mxu1 %vm354_vm2, %v1292_v11 }
  0x25   : > { %1242 = vmatprep.mubr.msk.bf16.mxu1 %vm354_vm2, %v1293_v13 }
  0x27   : > { %v1298_v20 = vpop.eup %1297 }
  0x28   : > { %1254 = vpush %v1298_v20 }
  0x2b   : > { %1227 = vmatmul.mubr.msk.bf16.gmra.mrb[8].mxu0 %vm354_vm2, %v1286_v12 }
  0x2c   : > { %1230 = vmatprep.mubr.msk.bf16.mxu0 %vm354_vm2, %v1287_v14  ;;  %1243 = vmatmul.mubr.msk.bf16.gmra.mrb[8].mxu1 %vm354_vm2, %v1294_v15 }
  0x2d   : > { %1246 = vmatprep.mubr.msk.bf16.mxu1 %vm354_vm2, %v1295_v17 }
  0x33   : > { %1231 = vmatmul.mubr.msk.bf16.gmra.mrb[12].mxu0 %vm354_vm2, %v1288_v16 }
  0x34   : > { %1247 = vmatmul.mubr.msk.bf16.gmra.mrb[12].mxu1 %vm354_vm2, %v1296_v18 }
  0x59   : > { %s1700_s10 = spop %1254 }
  0x5a   : > { %s972_s11 = smul.f32 256.0, %s1700_s10 }
  0x5b   : > { %s984_s20 = smul.f32 %s1700_s10, %s980_s19 }
  0xee   : > { %v1220_v21 = vpop.f32.mrb[0].mxu0 }
  0xef   : > { %v1169_v22 = vpack.c.bf16 %v1220_v21, %v1220_v21  ;;  %v441_v23 = vpop.f32.mrb[1].mxu0  ;;  %v1236_v34 = vpop.f32.mrb[0].mxu1 }
  0xf0   : > { %v1167_v24 = vpack.c.bf16 %v441_v23, %v441_v23  ;;  %v1221_v25 = vpop.f32.mrb[2].mxu0  ;;  %v1185_v38 = vpack.c.bf16 %v1236_v34, %v1236_v34  ;;  %v505_v39 = vpop.f32.mrb[1].mxu1 }
  0xf1   : > { %699 = vst.msk [vmem:[%s1379_s26 + $0x8] sm:$0xf] %vm696_vm3, %v1169_v22  ;;  %v1429_v26 = vpack.c.bf16 %v1221_v25, %v1220_v21  ;;  %v1170_v27 = vpack.c.bf16 %v1221_v25, %v1221_v25  ;;  %v444_v28 = vpop.f32.mrb[3].mxu0  ;;  %v1183_v44 = vpack.c.bf16 %v505_v39, %v505_v39  ;;  %v1237_v45 = vpop.f32.mrb[2].mxu1 }
  0xf2   : > { %697 = vst.msk [vmem:[%s1379_s26] sm:$0xf] %vm696_vm3, %v1167_v24  ;;  %v1433_v29 = vpack.c.bf16 %v444_v28, %v441_v23  ;;  %v1168_v30 = vpack.c.bf16 %v444_v28, %v444_v28  ;;  %715 = vst.msk [vmem:[%s1379_s26 + $0x48] sm:$0xf] %vm696_vm3, %v1185_v38  ;;  %v1454_v49 = vpack.c.bf16 %v1237_v45, %v1236_v34  ;;  %v508_v51 = vpop.f32.mrb[3].mxu1 }
  0xf3   : > { %700 = vst.msk [vmem:[%s1379_s26 + $0xc] sm:$0xf] %vm696_vm3, %v1170_v27  ;;  %v731_v31 = vunpack.c.l.bf16 %v1429_v26  ;;  %v732_v40 = vunpack.c.h.bf16 %v1429_v26  ;;  %v1186_v50 = vpack.c.bf16 %v1237_v45, %v1237_v45  ;;  %713 = vst.msk [vmem:[%s1379_s26 + $0x40] sm:$0xf] %vm696_vm3, %v1183_v44  ;;  %v1462_v56 = vpack.c.bf16 %v508_v51, %v505_v39 }
  0xf4   : > { %698 = vst.msk [vmem:[%s1379_s26 + $0x4] sm:$0xf] %vm696_vm3, %v1168_v30  ;;  %v729_v32 = vunpack.c.l.bf16 %v1433_v29  ;;  %v730_v33 = vunpack.c.h.bf16 %v1433_v29  ;;  %v1184_v59 = vpack.c.bf16 %v508_v51, %v508_v51 }
  0xf5   : > { %v764_v46 = vsel %vm354_vm2, %v731_v31, 0.0  ;;  %716 = vst.msk [vmem:[%s1379_s26 + $0x4c] sm:$0xf] %vm696_vm3, %v1186_v50  ;;  %v766_v60 = vsel %vm354_vm2, %v732_v40, 0.0 }
  0xf6   : > { %v761_v35 = vsel %vm354_vm2, %v729_v32, 0.0  ;;  %v762_v36 = vsel %vm354_vm2, %v730_v33, 0.0  ;;  %v1224_v37 = vpop.f32.mrb[4].mxu0  ;;  %714 = vst.msk [vmem:[%s1379_s26 + $0x44] sm:$0xf] %vm696_vm3, %v1184_v59 }
  0xf7   : > { %v763_v41 = vadd.f32 %v762_v36, %v761_v35  ;;  %v1173_v42 = vpack.c.bf16 %v1224_v37, %v1224_v37  ;;  %v457_v43 = vpop.f32.mrb[5].mxu0  ;;  %v1240_v0 = vpop.f32.mrb[4].mxu1 }
  0xf8   : > { %v1171_v47 = vpack.c.bf16 %v457_v43, %v457_v43  ;;  %v1225_v48 = vpop.f32.mrb[6].mxu0  ;;  %v1189_v4 = vpack.c.bf16 %v1240_v0, %v1240_v0  ;;  %v521_v5 = vpop.f32.mrb[5].mxu1 }
  0xf9   : > { %v765_v52 = vadd.f32 %v764_v46, %v763_v41  ;;  %703 = vst.msk [vmem:[%s1379_s26 + $0x18] sm:$0xf] %vm696_vm3, %v1173_v42  ;;  %v1458_v53 = vpack.c.bf16 %v1225_v48, %v1224_v37  ;;  %v1174_v54 = vpack.c.bf16 %v1225_v48, %v1225_v48  ;;  %v460_v55 = vpop.f32.mrb[7].mxu0  ;;  %v1241_v11 = vpop.f32.mrb[6].mxu1  ;;  %v1187_v14 = vpack.c.bf16 %v521_v5, %v521_v5 }
  0xfa   : > { %701 = vst.msk [vmem:[%s1379_s26 + $0x10] sm:$0xf] %vm696_vm3, %v1171_v47  ;;  %v1466_v57 = vpack.c.bf16 %v460_v55, %v457_v43  ;;  %v1172_v58 = vpack.c.bf16 %v460_v55, %v460_v55  ;;  %719 = vst.msk [vmem:[%s1379_s26 + $0x58] sm:$0xf] %vm696_vm3, %v1189_v4  ;;  %v1491_v15 = vpack.c.bf16 %v1241_v11, %v1240_v0  ;;  %v524_v17 = vpop.f32.mrb[7].mxu1 }
  0xfb   : > { %704 = vst.msk [vmem:[%s1379_s26 + $0x1c] sm:$0xf] %vm696_vm3, %v1174_v54  ;;  %v767_v63 = vadd.f32 %v766_v60, %v765_v52  ;;  %v735_v1 = vunpack.c.l.bf16 %v1458_v53  ;;  %v736_v6 = vunpack.c.h.bf16 %v1458_v53  ;;  %v1190_v16 = vpack.c.bf16 %v1241_v11, %v1241_v11  ;;  %717 = vst.msk [vmem:[%s1379_s26 + $0x50] sm:$0xf] %vm696_vm3, %v1187_v14 }
  0xfc   : > { %702 = vst.msk [vmem:[%s1379_s26 + $0x14] sm:$0xf] %vm696_vm3, %v1172_v58  ;;  %v733_v61 = vunpack.c.l.bf16 %v1466_v57  ;;  %v734_v62 = vunpack.c.h.bf16 %v1466_v57  ;;  %v1497_v22 = vpack.c.bf16 %v524_v17, %v521_v5  ;;  %v1188_v28 = vpack.c.bf16 %v524_v17, %v524_v17 }
  0xfd   : > { %v772_v23 = vsel %vm354_vm2, %v735_v1, 0.0  ;;  %720 = vst.msk [vmem:[%s1379_s26 + $0x5c] sm:$0xf] %vm696_vm3, %v1190_v16  ;;  %v774_v30 = vsel %vm354_vm2, %v736_v6, 0.0 }
  0xfe   : > { %v768_v2 = vsel %vm354_vm2, %v733_v61, 0.0  ;;  %v1228_v3 = vpop.f32.mrb[8].mxu0  ;;  %v770_v8 = vsel %vm354_vm2, %v734_v62, 0.0  ;;  %718 = vst.msk [vmem:[%s1379_s26 + $0x54] sm:$0xf] %vm696_vm3, %v1188_v28 }
  0xff   : > { %v769_v7 = vadd.f32 %v768_v2, %v767_v63  ;;  %v1177_v9 = vpack.c.bf16 %v1228_v3, %v1228_v3  ;;  %v473_v10 = vpop.f32.mrb[9].mxu0  ;;  %v1244_v37 = vpop.f32.mrb[8].mxu1 }
 0x100   : > { %v1175_v12 = vpack.c.bf16 %v473_v10, %v473_v10  ;;  %v1229_v13 = vpop.f32.mrb[10].mxu0  ;;  %v1193_v42 = vpack.c.bf16 %v1244_v37, %v1244_v37  ;;  %v537_v43 = vpop.f32.mrb[9].mxu1 }
 0x101   : > { %v771_v18 = vadd.f32 %v770_v8, %v769_v7  ;;  %707 = vst.msk [vmem:[%s1379_s26 + $0x28] sm:$0xf] %vm696_vm3, %v1177_v9  ;;  %v1495_v19 = vpack.c.bf16 %v1229_v13, %v1228_v3  ;;  %v1178_v20 = vpack.c.bf16 %v1229_v13, %v1229_v13  ;;  %v476_v21 = vpop.f32.mrb[11].mxu0  ;;  %v1191_v48 = vpack.c.bf16 %v537_v43, %v537_v43  ;;  %v1245_v50 = vpop.f32.mrb[10].mxu1 }
 0x102   : > { %705 = vst.msk [vmem:[%s1379_s26 + $0x20] sm:$0xf] %vm696_vm3, %v1175_v12  ;;  %v1504_v24 = vpack.c.bf16 %v476_v21, %v473_v10  ;;  %v1176_v25 = vpack.c.bf16 %v476_v21, %v476_v21  ;;  %723 = vst.msk [vmem:[%s1379_s26 + $0x68] sm:$0xf] %vm696_vm3, %v1193_v42  ;;  %v1531_v55 = vpack.c.bf16 %v1245_v50, %v1244_v37  ;;  %v540_v59 = vpop.f32.mrb[11].mxu1 }
 0x103   : > { %v773_v27 = vadd.f32 %v772_v23, %v771_v18  ;;  %708 = vst.msk [vmem:[%s1379_s26 + $0x2c] sm:$0xf] %vm696_vm3, %v1178_v20  ;;  %v739_v38 = vunpack.c.l.bf16 %v1495_v19  ;;  %v740_v44 = vunpack.c.h.bf16 %v1495_v19  ;;  %v1194_v58 = vpack.c.bf16 %v1245_v50, %v1245_v50  ;;  %721 = vst.msk [vmem:[%s1379_s26 + $0x60] sm:$0xf] %vm696_vm3, %v1191_v48 }
 0x104   : > { %706 = vst.msk [vmem:[%s1379_s26 + $0x24] sm:$0xf] %vm696_vm3, %v1176_v25  ;;  %v737_v34 = vunpack.c.l.bf16 %v1504_v24  ;;  %v738_v35 = vunpack.c.h.bf16 %v1504_v24  ;;  %v1539_v3 = vpack.c.bf16 %v540_v59, %v537_v43  ;;  %v1192_v9 = vpack.c.bf16 %v540_v59, %v540_v59 }
 0x105   : > { %v775_v36 = vadd.f32 %v774_v30, %v773_v27  ;;  %v780_v4 = vsel %vm354_vm2, %v739_v38, 0.0  ;;  %724 = vst.msk [vmem:[%s1379_s26 + $0x6c] sm:$0xf] %vm696_vm3, %v1194_v58  ;;  %v782_v10 = vsel %vm354_vm2, %v740_v44, 0.0  ;;  %v746_v48 = vunpack.c.h.bf16 %v1462_v56 }
 0x106   : > { %v776_v39 = vsel %vm354_vm2, %v737_v34, 0.0  ;;  %v1232_v41 = vpop.f32.mrb[12].mxu0  ;;  %v778_v51 = vsel %vm354_vm2, %v738_v35, 0.0  ;;  %722 = vst.msk [vmem:[%s1379_s26 + $0x64] sm:$0xf] %vm696_vm3, %v1192_v9  ;;  %v748_v58 = vunpack.c.h.bf16 %v1454_v49 }
 0x107   : > { %v777_v45 = vadd.f32 %v776_v39, %v775_v36  ;;  %v1181_v46 = vpack.c.bf16 %v1232_v41, %v1232_v41  ;;  %v489_v47 = vpop.f32.mrb[13].mxu0  ;;  %v1248_v14 = vpop.f32.mrb[12].mxu1  ;;  %v794_v59 = vsel %vm354_vm2, %v746_v48, 0.0 }
 0x108   : > { %v1179_v52 = vpack.c.bf16 %v489_v47, %v489_v47  ;;  %v1233_v54 = vpop.f32.mrb[14].mxu0  ;;  %v1197_v18 = vpack.c.bf16 %v1248_v14, %v1248_v14  ;;  %v553_v20 = vpop.f32.mrb[13].mxu1 }
 0x109   : > { %v779_v60 = vadd.f32 %v778_v51, %v777_v45  ;;  %711 = vst.msk [vmem:[%s1379_s26 + $0x38] sm:$0xf] %vm696_vm3, %v1181_v46  ;;  %v1535_v63 = vpack.c.bf16 %v1233_v54, %v1232_v41  ;;  %v1182_v0 = vpack.c.bf16 %v1233_v54, %v1233_v54  ;;  %v492_v2 = vpop.f32.mrb[15].mxu0  ;;  %v1195_v23 = vpack.c.bf16 %v553_v20, %v553_v20  ;;  %v1249_v25 = vpop.f32.mrb[14].mxu1 }
 0x10a   : > { %709 = vst.msk [vmem:[%s1379_s26 + $0x30] sm:$0xf] %vm696_vm3, %v1179_v52  ;;  %v1546_v5 = vpack.c.bf16 %v492_v2, %v489_v47  ;;  %v1180_v7 = vpack.c.bf16 %v492_v2, %v492_v2  ;;  %727 = vst.msk [vmem:[%s1379_s26 + $0x78] sm:$0xf] %vm696_vm3, %v1197_v18  ;;  %v1571_v30 = vpack.c.bf16 %v1249_v25, %v1248_v14  ;;  %v556_v37 = vpop.f32.mrb[15].mxu1  ;;  %v745_v45 = vunpack.c.l.bf16 %v1462_v56 }
 0x10b   : > { %v781_v8 = vadd.f32 %v780_v4, %v779_v60  ;;  %712 = vst.msk [vmem:[%s1379_s26 + $0x3c] sm:$0xf] %vm696_vm3, %v1182_v0  ;;  %v743_v16 = vunpack.c.l.bf16 %v1535_v63  ;;  %v744_v27 = vunpack.c.h.bf16 %v1535_v63  ;;  %v1198_v36 = vpack.c.bf16 %v1249_v25, %v1249_v25  ;;  %725 = vst.msk [vmem:[%s1379_s26 + $0x70] sm:$0xf] %vm696_vm3, %v1195_v23 }
 0x10c   : > { %710 = vst.msk [vmem:[%s1379_s26 + $0x34] sm:$0xf] %vm696_vm3, %v1180_v7  ;;  %v741_v11 = vunpack.c.l.bf16 %v1546_v5  ;;  %v742_v12 = vunpack.c.h.bf16 %v1546_v5  ;;  %v1575_v41 = vpack.c.bf16 %v556_v37, %v553_v20  ;;  %v1196_v42 = vpack.c.bf16 %v556_v37, %v556_v37 }
 0x10d   : > { %v783_v13 = vadd.f32 %v782_v10, %v781_v8  ;;  %v788_v43 = vsel %vm354_vm2, %v743_v16, 0.0  ;;  %728 = vst.msk [vmem:[%s1379_s26 + $0x7c] sm:$0xf] %vm696_vm3, %v1198_v36  ;;  %v790_v47 = vsel %vm354_vm2, %v744_v27, 0.0  ;;  %v747_v51 = vunpack.c.l.bf16 %v1454_v49 }
 0x10e   : > { %v784_v17 = vsel %vm354_vm2, %v741_v11, 0.0  ;;  %v786_v28 = vsel %vm354_vm2, %v742_v12, 0.0  ;;  %726 = vst.msk [vmem:[%s1379_s26 + $0x74] sm:$0xf] %vm696_vm3, %v1196_v42  ;;  %v792_v52 = vsel %vm354_vm2, %v745_v45, 0.0  ;;  %v749_v2 = vunpack.c.l.bf16 %v1497_v22 }
 0x10f   : > { %v785_v21 = vadd.f32 %v784_v17, %v783_v13  ;;  %v796_v0 = vsel %vm354_vm2, %v747_v51, 0.0  ;;  %v798_v7 = vsel %vm354_vm2, %v748_v58, 0.0  ;;  %v750_v8 = vunpack.c.h.bf16 %v1497_v22 }
 0x110   : > { %v751_v10 = vunpack.c.l.bf16 %v1491_v15  ;;  %v800_v13 = vsel %vm354_vm2, %v749_v2, 0.0  ;;  %v752_v17 = vunpack.c.h.bf16 %v1491_v15  ;;  %v753_v23 = vunpack.c.l.bf16 %v1539_v3 }
 0x111   : > { %v787_v39 = vadd.f32 %v786_v28, %v785_v21  ;;  %v802_v18 = vsel %vm354_vm2, %v750_v8, 0.0  ;;  %v754_v36 = vunpack.c.h.bf16 %v1539_v3  ;;  %v758_v3 = vunpack.c.h.bf16 %v1575_v41 }
 0x112   : > { %v804_v21 = vsel %vm354_vm2, %v751_v10, 0.0  ;;  %v806_v28 = vsel %vm354_vm2, %v752_v17, 0.0  ;;  %v808_v42 = vsel %vm354_vm2, %v753_v23, 0.0 }
 0x113   : > { %v789_v46 = vadd.f32 %v788_v43, %v787_v39  ;;  %v755_v39 = vunpack.c.l.bf16 %v1531_v55 }
 0x115   : > { %v791_v50 = vadd.f32 %v790_v47, %v789_v46  ;;  %v756_v46 = vunpack.c.h.bf16 %v1531_v55  ;;  %v810_v47 = vsel %vm354_vm2, %v754_v36, 0.0  ;;  %v760_v55 = vunpack.c.h.bf16 %v1571_v30 }
 0x117   : > { %v793_v54 = vadd.f32 %v792_v52, %v791_v50  ;;  %v812_v52 = vsel %vm354_vm2, %v755_v39, 0.0 }
 0x119   : > { %v795_v60 = vadd.f32 %v794_v59, %v793_v54  ;;  %v757_v54 = vunpack.c.l.bf16 %v1575_v41 }
 0x11b   : > { %v797_v4 = vadd.f32 %v796_v0, %v795_v60  ;;  %v814_v60 = vsel %vm354_vm2, %v756_v46, 0.0 }
 0x11d   : > { %v799_v9 = vadd.f32 %v798_v7, %v797_v4  ;;  %v759_v4 = vunpack.c.l.bf16 %v1571_v30  ;;  %v816_v7 = vsel %vm354_vm2, %v757_v54, 0.0 }
 0x11f   : > { %v801_v14 = vadd.f32 %v800_v13, %v799_v9  ;;  %v818_v13 = vsel %vm354_vm2, %v758_v3, 0.0 }
 0x121   : > { %v803_v20 = vadd.f32 %v802_v18, %v801_v14  ;;  %v820_v18 = vsel %vm354_vm2, %v759_v4, 0.0 }
 0x123   : > { %v805_v25 = vadd.f32 %v804_v21, %v803_v20  ;;  %v822_v21 = vsel %vm354_vm2, %v760_v55, 0.0 }
 0x125   : > { %v807_v37 = vadd.f32 %v806_v28, %v805_v25 }
 0x127   : > { %v809_v43 = vadd.f32 %v808_v42, %v807_v37 }
 0x129   : > { %v811_v50 = vadd.f32 %v810_v47, %v809_v43 }
 0x12b   : > { %v813_v59 = vadd.f32 %v812_v52, %v811_v50 }
 0x12d   : > { %v815_v0 = vadd.f32 %v814_v60, %v813_v59 }
 0x12f   : > { %v817_v9 = vadd.f32 %v816_v7, %v815_v0 }
 0x131   : > { %v819_v14 = vadd.f32 %v818_v13, %v817_v9 }
 0x133   : > { %v821_v20 = vadd.f32 %v820_v18, %v819_v14 }
 0x135   : > { %v823_v25 = vadd.f32 %v822_v21, %v821_v20 }
 0x137   : > { %v824_v41 = vrot.slane %v823_v25, 4 }
 0x139   : > { %v825_v28 = vadd.f32 %v824_v41, %v823_v25  ;;  %v967_v41 = vld [vmem:[%s1834_s3] sm:$0x1] }
 0x13b   : > { %v826_v37 = vrot.slane %v825_v28, 2 }
 0x13d   : > { %v827_v42 = vadd.f32 %v826_v37, %v825_v28 }
 0x13f   : > { %v828_v43 = vrot.slane %v827_v42, 1 }
 0x141   : > { %v829_v47 = vadd.f32 %v828_v43, %v827_v42  ;;  %v973_v42 = vstv %s972_s11 }
 0x143   : > { %v1637_v50 = vmul.f32 0.00390625, %v829_v47 }
 0x145   : > { %v1642_v52 = vsub.f32 %v741_v11, %v1637_v50  ;;  %v1647_v59 = vsub.f32 %v742_v12, %v1637_v50  ;;  %v1652_v60 = vsub.f32 %v743_v16, %v1637_v50  ;;  %v1657_v0 = vsub.f32 %v744_v27, %v1637_v50 }
 0x146   : > { %v831_v11 = vsub.f32 %v729_v32, %v1637_v50  ;;  %v1663_v7 = vsub.f32 %v753_v23, %v1637_v50  ;;  %v1666_v5 = vsub.f32 %v754_v36, %v1637_v50  ;;  %v1669_v12 = vsub.f32 %v755_v39, %v1637_v50 }
 0x147   : > { %v1672_v16 = vsub.f32 %v756_v46, %v1637_v50  ;;  %v832_v63 = vsub.f32 %v730_v33, %v1637_v50  ;;  %v1678_v27 = vsub.f32 %v757_v54, %v1637_v50  ;;  %v1681_v32 = vsub.f32 %v758_v3, %v1637_v50 }
 0x148   : > { %v1684_v23 = vsub.f32 %v759_v4, %v1637_v50  ;;  %v833_v36 = vsub.f32 %v731_v31, %v1637_v50  ;;  %v834_v39 = vsub.f32 %v732_v40, %v1637_v50  ;;  %v863_v46 = vmul.f32 %v831_v11, %v831_v11 }
 0x149   : > { %v864_v29 = vmul.f32 %v832_v63, %v832_v63  ;;  %v835_v33 = vsub.f32 %v733_v61, %v1637_v50  ;;  %v836_v3 = vsub.f32 %v734_v62, %v1637_v50  ;;  %v837_v26 = vsub.f32 %v735_v1, %v1637_v50 }
 0x14a   : > { %v865_v54 = vmul.f32 %v833_v36, %v833_v36  ;;  %v866_v4 = vmul.f32 %v834_v39, %v834_v39  ;;  %v895_v9 = vsel %vm354_vm2, %v863_v46, 0.0  ;;  %v838_v57 = vsub.f32 %v736_v6, %v1637_v50 }
 0x14b   : > { %v896_v31 = vsel %vm354_vm2, %v864_v29, 0.0  ;;  %v867_v40 = vmul.f32 %v835_v33, %v835_v33  ;;  %v868_v62 = vmul.f32 %v836_v3, %v836_v3  ;;  %v839_v21 = vsub.f32 %v737_v34, %v1637_v50 }
 0x14c   : > { %v897_v13 = vadd.f32 %v896_v31, %v895_v9  ;;  %v898_v61 = vsel %vm354_vm2, %v865_v54, 0.0  ;;  %v900_v18 = vsel %vm354_vm2, %v866_v4, 0.0  ;;  %v869_v25 = vmul.f32 %v837_v26, %v837_v26 }
 0x14d   : > { %v902_v1 = vsel %vm354_vm2, %v867_v40, 0.0  ;;  %v840_v53 = vsub.f32 %v738_v35, %v1637_v50  ;;  %v870_v6 = vmul.f32 %v838_v57, %v838_v57  ;;  %v904_v37 = vsel %vm354_vm2, %v868_v62, 0.0 }
 0x14e   : > { %v899_v14 = vadd.f32 %v898_v61, %v897_v13  ;;  %v1723_v47 = vsub.f32 %v1637_v50, %v967_v41  ;;  %v841_v34 = vsub.f32 %v739_v38, %v1637_v50  ;;  %v871_v11 = vmul.f32 %v839_v21, %v839_v21 }
 0x14f   : > { %v906_v63 = vsel %vm354_vm2, %v869_v25, 0.0  ;;  %v842_v24 = vsub.f32 %v740_v44, %v1637_v50  ;;  %v872_v35 = vmul.f32 %v840_v53, %v840_v53  ;;  %v908_v46 = vsel %vm354_vm2, %v870_v6, 0.0 }
 0x150   : > { %v901_v20 = vadd.f32 %v900_v18, %v899_v14  ;;  %v974_v39 = vmul.f32 %v973_v42, %v1723_v47  ;;  %v873_v54 = vmul.f32 %v841_v34, %v841_v34  ;;  %v910_v3 = vsel %vm354_vm2, %v871_v11, 0.0 }
 0x151   : > { %v874_v4 = vmul.f32 %v842_v24, %v842_v24  ;;  %v912_v9 = vsel %vm354_vm2, %v872_v35, 0.0  ;;  %v875_v44 = vmul.f32 %v1642_v52, %v1642_v52  ;;  %v876_v26 = vmul.f32 %v1647_v59, %v1647_v59 }
 0x152   : > { %v903_v28 = vadd.f32 %v902_v1, %v901_v20  ;;  %v975_v33 = vadd.f32 %v974_v39, %v967_v41  ;;  %v914_v31 = vsel %vm354_vm2, %v873_v54, 0.0  ;;  %v847_v14 = vsub.f32 %v745_v45, %v1637_v50 }
 0x153   : > { %v916_v40 = vsel %vm354_vm2, %v874_v4, 0.0  ;;  %v877_v57 = vmul.f32 %v1652_v60, %v1652_v60  ;;  %v918_v62 = vsel %vm354_vm2, %v875_v44, 0.0  ;;  %v848_v52 = vsub.f32 %v746_v48, %v1637_v50 }
 0x154   : > { %v905_v43 = vadd.f32 %v904_v37, %v903_v28  ;;  %977 = vst.msk [vmem:[%s1834_s3] sm:$0x1] %vm976_vm4, %v975_v33  ;;  %v878_v59 = vmul.f32 %v1657_v0, %v1657_v0  ;;  %v920_v20 = vsel %vm354_vm2, %v876_v26, 0.0  ;;  %v849_v45 = vsub.f32 %v747_v51, %v1637_v50 }
 0x155   : > { %v879_v25 = vmul.f32 %v847_v14, %v847_v14  ;;  %v922_v60 = vsel %vm354_vm2, %v877_v57, 0.0  ;;  %v850_v41 = vsub.f32 %v748_v58, %v1637_v50  ;;  %v880_v56 = vmul.f32 %v848_v52, %v848_v52 }
 0x156   : > { %v907_v36 = vadd.f32 %v906_v63, %v905_v43  ;;  %v924_v48 = vsel %vm354_vm2, %v878_v59, 0.0  ;;  %v851_v0 = vsub.f32 %v749_v2, %v1637_v50  ;;  %v881_v53 = vmul.f32 %v849_v45, %v849_v45 }
 0x157   : > { %v926_v6 = vsel %vm354_vm2, %v879_v25, 0.0  ;;  %v852_v37 = vsub.f32 %v750_v8, %v1637_v50  ;;  %v882_v42 = vmul.f32 %v850_v41, %v850_v41  ;;  %v928_v49 = vsel %vm354_vm2, %v880_v56, 0.0  ;;  %v978_v56 = vld [vmem:[%s1835_s4] sm:$0x1] }
 0x158   : > { %v909_v29 = vadd.f32 %v908_v46, %v907_v36  ;;  %v853_v43 = vsub.f32 %v751_v10, %v1637_v50  ;;  %v883_v34 = vmul.f32 %v851_v0, %v851_v0  ;;  %v930_v11 = vsel %vm354_vm2, %v881_v53, 0.0 }
 0x159   : > { %v854_v63 = vsub.f32 %v752_v17, %v1637_v50  ;;  %v884_v36 = vmul.f32 %v852_v37, %v852_v37  ;;  %v932_v22 = vsel %vm354_vm2, %v882_v42, 0.0  ;;  %v887_v33 = vmul.f32 %v1663_v7, %v1663_v7 }
 0x15a   : > { %v911_v38 = vadd.f32 %v910_v3, %v909_v29  ;;  %v885_v39 = vmul.f32 %v853_v43, %v853_v43  ;;  %v934_v24 = vsel %vm354_vm2, %v883_v34, 0.0  ;;  %v888_v15 = vmul.f32 %v1666_v5, %v1666_v5 }
 0x15b   : > { %v886_v46 = vmul.f32 %v854_v63, %v854_v63  ;;  %v936_v29 = vsel %vm354_vm2, %v884_v36, 0.0  ;;  %v889_v4 = vmul.f32 %v1669_v12, %v1669_v12  ;;  %v890_v44 = vmul.f32 %v1672_v16, %v1672_v16 }
 0x15c   : > { %v913_v19 = vadd.f32 %v912_v9, %v911_v38  ;;  %v938_v54 = vsel %vm354_vm2, %v885_v39, 0.0  ;;  %v942_v9 = vsel %vm354_vm2, %v887_v33, 0.0  ;;  %v944_v7 = vsel %vm354_vm2, %v888_v15, 0.0 }
 0x15d   : > { %v940_v17 = vsel %vm354_vm2, %v886_v46, 0.0  ;;  %v946_v5 = vsel %vm354_vm2, %v889_v4, 0.0  ;;  %v948_v12 = vsel %vm354_vm2, %v890_v44, 0.0  ;;  %v862_v16 = vsub.f32 %v760_v55, %v1637_v50 }
 0x15e   : > { %v915_v13 = vadd.f32 %v914_v31, %v913_v19  ;;  %v893_v14 = vmul.f32 %v1684_v23, %v1684_v23  ;;  %v979_v23 = vmul.f32 %v1723_v47, %v1723_v47  ;;  %v985_v25 = vstv %s984_s20 }
 0x160   : > { %v917_v61 = vadd.f32 %v916_v40, %v915_v13  ;;  %v891_v13 = vmul.f32 %v1678_v27, %v1678_v27  ;;  %v892_v40 = vmul.f32 %v1681_v32, %v1681_v32  ;;  %v954_v32 = vsel %vm354_vm2, %v893_v14, 0.0 }
 0x161   : > { %v986_v41 = vmul.f32 %v985_v25, %v979_v23 }
 0x162   : > { %v919_v18 = vadd.f32 %v918_v62, %v917_v61  ;;  %v950_v27 = vsel %vm354_vm2, %v891_v13, 0.0  ;;  %v952_v62 = vsel %vm354_vm2, %v892_v40, 0.0 }
 0x164   : > { %v921_v21 = vadd.f32 %v920_v20, %v919_v18  ;;  %v894_v18 = vmul.f32 %v862_v16, %v862_v16 }
 0x166   : > { %v923_v1 = vadd.f32 %v922_v60, %v921_v21  ;;  %v956_v20 = vsel %vm354_vm2, %v894_v18, 0.0 }
 0x168   : > { %v925_v28 = vadd.f32 %v924_v48, %v923_v1 }
 0x16a   : > { %v927_v51 = vadd.f32 %v926_v6, %v925_v28 }
 0x16c   : > { %v929_v58 = vadd.f32 %v928_v49, %v927_v51 }
 0x16e   : > { %v931_v2 = vadd.f32 %v930_v11, %v929_v58 }
 0x170   : > { %v933_v8 = vadd.f32 %v932_v22, %v931_v2 }
 0x172   : > { %v935_v35 = vadd.f32 %v934_v24, %v933_v8 }
 0x174   : > { %v937_v10 = vadd.f32 %v936_v29, %v935_v35 }
 0x176   : > { %v939_v3 = vadd.f32 %v938_v54, %v937_v10 }
 0x178   : > { %v941_v38 = vadd.f32 %v940_v17, %v939_v3 }
 0x17a   : > { %v943_v19 = vadd.f32 %v942_v9, %v941_v38 }
 0x17c   : > { %v945_v31 = vadd.f32 %v944_v7, %v943_v19 }
 0x17e   : > { %v947_v26 = vadd.f32 %v946_v5, %v945_v31 }
 0x180   : > { %v949_v61 = vadd.f32 %v948_v12, %v947_v26 }
 0x182   : > { %v951_v57 = vadd.f32 %v950_v27, %v949_v61 }
 0x184   : > { %v953_v52 = vadd.f32 %v952_v62, %v951_v57 }
 0x186   : > { %v955_v59 = vadd.f32 %v954_v32, %v953_v52 }
 0x188   : > { %v957_v21 = vadd.f32 %v956_v20, %v955_v59 }
 0x18a   : > { %v958_v30 = vrot.slane %v957_v21, 4 }
 0x18c   : > { %v959_v55 = vadd.f32 %v958_v30, %v957_v21 }
 0x18e   : > { %v960_v50 = vrot.slane %v959_v55, 2 }
 0x190   : > { %v961_v45 = vadd.f32 %v960_v50, %v959_v55 }
 0x192   : > { %v962_v60 = vrot.slane %v961_v45, 1 }
 0x194   : > { %v963_v1 = vadd.f32 %v962_v60, %v961_v45 }
 0x196   : > { %v987_v48 = vadd.f32 %v986_v41, %v963_v1 }
 0x198   : > { %v988_v28 = vadd.f32 %v987_v48, %v978_v56 }
 0x19a   : > { %989 = vst.msk [vmem:[%s1835_s4] sm:$0x1] %vm976_vm4, %v988_v28 }
 0x19b PF: > { %s15_s17 = sadd.s32 1, %s1321_s17   ;;  %s1836_s15 = smov %s1317_s16 }
 0x19c   : > { %p12_p6 = scmp.ge.s32.totalorder %s15_s17, 4   ;;  %s1837_s16 = smov %s1839_s18 }
 0x19e   :  { %14 = sbr.rel (!%p12_p6) target bundleno = 2 (0x2), region = 78 }

// kernel: _residual_block2_impl.7
= control target key start
LH: loop header
LB: loop body
LE: loop exit
PB: predicated region body
PF: predicated region fallthrough
CT: control target
= control target key end

     0   :  { %s1186_s13 = smov 0   ;;  %s1188_s14 = smov 0   ;;  %s1684_s0 = inlined_call_operand.vmem [shape: bf16[2,256,16], index: 0, kind: input, shape index: {}]   ;;  %s1685_s1 = inlined_call_operand.vmem [shape: f32[1,16], index: 1, kind: input, shape index: {}]   ;;  %s1686_s2 = inlined_call_operand.vmem [shape: f32[1,16], index: 2, kind: input, shape index: {}]   ;;  %s1687_s3 = inlined_call_operand.vmem [shape: f32[1,16], index: 3, kind: input, shape index: {}]   ;;  %s1688_s4 = inlined_call_operand.vmem [shape: f32[1,16], index: 4, kind: input, shape index: {}]   ;;  %s1689_s5 = inlined_call_operand.vmem [shape: bf16[2,256,16], index: 5, kind: input, shape index: {}]   ;;  %s1690_s6 = inlined_call_operand.vmem [shape: f32[1,16], index: 6, kind: input, shape index: {}]   ;;  %s1691_s7 = inlined_call_operand.vmem [shape: f32[1,16], index: 7, kind: input, shape index: {}]   ;;  %s1692_s8 = inlined_call_operand.vmem [shape: f32[1,16], index: 8, kind: input, shape index: {}]   ;;  %s1693_s9 = inlined_call_operand.vmem [shape: f32[1,16], index: 9, kind: input, shape index: {}]   ;;  %s1694_s10 = inlined_call_operand.vmem [shape: f32[2,256,16], index: 10, kind: output, shape index: {}]  }
   0x1   :  { %s1190_s15 = smov 0  }
   0x2 LB: > { %s32_s16 = sadd.s32 1, %s1125_s14  ;;  %p909_p0 = scmp.ge.s32.totalorder %s1129_s15, 1  ;;  %s1129_s15 = sphi %s1190_s15, %s20_s15   ;;  %s1125_s14 = sphi %s1188_s14, %s1716_s14   ;;  %s1121_s13 = sphi %s1186_s13, %s1715_s13  }
   0x3   : > { %p34_p1 = scmp.ge.s32.totalorder %s32_s16, 2  ;;  %p350_p2 = scmp.lt.s32.totalorder %s1129_s15, 3 }
   0x5   : > { %s1718_s16 = smov (%p34_p1, %s32_s16), 0  ;;  %p351_p3 = pnand %p909_p0, %p350_p2 }
   0x6   : > { %p406_p4 = scmp.lt.s32.totalorder (!%p351_p3), %s1121_s13, 1  ;;  %v435_v0 = vld [vmem:[%s1688_s4] sm:$0x1] (!%p351_p3)  ;;  %v510_v1 = vlaneseq (!%p351_p3)  ;;  %vm767_vm0 = vcmask (!%p351_p3), 130048  }
   0x7   : > { %354 = sbr.rel (%p351_p3) target bundleno = 84 (0x54), region = 60  ;;  %v436_v2 = vmul.f32 (!%p351_p3), 0.001953125, %v435_v0  ;;  %v585_v4 = vld [vmem:[%s1693_s9] sm:$0x1] (!%p351_p3) }
   0x8   : > { %v511_v3 = vshrl.u32 (!%p351_p3), %v510_v1, 7  ;;  %v586_v6 = vmul.f32 (!%p351_p3), 0.001953125, %v585_v4  ;;  %v437_v50 = vld [vmem:[%s1685_s1] sm:$0x1] (!%p351_p3) }
   0x9   : > { %v438_v5 = vadd.f32 (!%p351_p3), 1e-05, %v436_v2  ;;  %v442_v0 = vld [vmem:[%s1687_s3] sm:$0x1] (!%p351_p3) }
   0xa   : > { %v588_v7 = vadd.f32 (!%p351_p3), 1e-05, %v586_v6  ;;  %v1226_v9 = vsub.s32 (!%p351_p3), 0, %v511_v3  ;;  %v587_v1 = vld [vmem:[%s1690_s6] sm:$0x1] (!%p351_p3) }
   0xb   : > { %1103 = vrsqrt.f32 (!%p351_p3), %v438_v5  ;;  %v441_v3 = vld [vmem:[%s1686_s2] sm:$0x1] (!%p351_p3) }
   0xc   : > { %1105 = vrsqrt.f32 (!%p351_p3), %v588_v7  ;;  %v592_v5 = vld [vmem:[%s1692_s8] sm:$0x1] (!%p351_p3) }
   0xd   : > { %v591_v52 = vld [vmem:[%s1691_s7] sm:$0x1] (!%p351_p3) }
   0xe   : > { %s1720_s13 = smov (!%p406_p4, %s1121_s13), 1 }
   0xf   : > { %s918_s21 = sshll.u32 %s1720_s13, 7  ;;  %s920_s25 = sshll.u32 %s1720_s13, 8 }
  0x10   : > { %s1216_s24 = scalar_lea.vmem %s1684_s0, %s918_s21  ;;  %s1221_s27 = scalar_lea.vmem %s1689_s5, %s918_s21 }
  0x11   : > { %v1224_v8 = vld [vmem:[%s1216_s24] sm:$0xff]   ;;  %v1232_v11 = vld [vmem:[%s1216_s24 + $0x8] sm:$0xff]   ;;  %v1241_v16 = vld [vmem:[%s1216_s24 + $0x10] sm:$0xff]   ;;  %s1424_s28 = scalar_lea.vmem %s1694_s10, %s920_s25 }
  0x12   : > { %v1229_v10 = vld [vmem:[%s1221_s27] sm:$0xff]   ;;  %v923_v12 = vunpack.c.l.bf16 %v1224_v8  ;;  %v924_v14 = vunpack.c.h.bf16 %v1224_v8  ;;  %v1238_v15 = vld [vmem:[%s1221_s27 + $0x8] sm:$0xff]   ;;  %v1244_v17 = vld [vmem:[%s1221_s27 + $0x10] sm:$0xff]   ;;  %v927_v19 = vunpack.c.l.bf16 %v1232_v11  ;;  %v928_v21 = vunpack.c.h.bf16 %v1232_v11 }
  0x13   : > { %v987_v13 = vunpack.c.l.bf16 %v1229_v10  ;;  %v988_v18 = vunpack.c.h.bf16 %v1229_v10  ;;  %v991_v20 = vunpack.c.l.bf16 %v1238_v15  ;;  %v1251_v22 = vld [vmem:[%s1216_s24 + $0x18] sm:$0xff]   ;;  %v1257_v24 = vld [vmem:[%s1216_s24 + $0x20] sm:$0xff]   ;;  %v992_v25 = vunpack.c.h.bf16 %v1238_v15  ;;  %v1267_v30 = vld [vmem:[%s1216_s24 + $0x28] sm:$0xff]  }
  0x14   : > { %v1254_v23 = vld [vmem:[%s1221_s27 + $0x18] sm:$0xff]   ;;  %v931_v26 = vunpack.c.l.bf16 %v1241_v16  ;;  %v995_v27 = vunpack.c.l.bf16 %v1244_v17  ;;  %v932_v28 = vunpack.c.h.bf16 %v1241_v16  ;;  %v1264_v29 = vld [vmem:[%s1221_s27 + $0x20] sm:$0xff]   ;;  %v1270_v31 = vld [vmem:[%s1221_s27 + $0x28] sm:$0xff]   ;;  %v996_v32 = vunpack.c.h.bf16 %v1244_v17 }
  0x15   : > { %v935_v33 = vunpack.c.l.bf16 %v1251_v22  ;;  %v999_v34 = vunpack.c.l.bf16 %v1254_v23  ;;  %v936_v35 = vunpack.c.h.bf16 %v1251_v22  ;;  %v1277_v36 = vld [vmem:[%s1216_s24 + $0x30] sm:$0xff]   ;;  %v1000_v38 = vunpack.c.h.bf16 %v1254_v23  ;;  %v1287_v42 = vld [vmem:[%s1216_s24 + $0x38] sm:$0xff]   ;;  %v1297_v48 = vld [vmem:[%s1216_s24 + $0x40] sm:$0xff]   ;;  %v1104_v63 = vpop.eup %1103 }
  0x16   : > { %v1280_v37 = vld [vmem:[%s1221_s27 + $0x30] sm:$0xff]   ;;  %v939_v39 = vunpack.c.l.bf16 %v1257_v24  ;;  %v1003_v40 = vunpack.c.l.bf16 %v1264_v29  ;;  %v940_v41 = vunpack.c.h.bf16 %v1257_v24  ;;  %v1290_v43 = vld [vmem:[%s1221_s27 + $0x38] sm:$0xff]   ;;  %v1004_v44 = vunpack.c.h.bf16 %v1264_v29  ;;  %v1300_v49 = vld [vmem:[%s1221_s27 + $0x40] sm:$0xff]   ;;  %v1106_v54 = vpop.eup %1105 }
  0x17   : > { %v943_v45 = vunpack.c.l.bf16 %v1267_v30  ;;  %v1007_v46 = vunpack.c.l.bf16 %v1270_v31  ;;  %v944_v47 = vunpack.c.h.bf16 %v1267_v30  ;;  %v1008_v51 = vunpack.c.h.bf16 %v1270_v31  ;;  %v1310_v55 = vld [vmem:[%s1216_s24 + $0x48] sm:$0xff]   ;;  %v1320_v61 = vld [vmem:[%s1216_s24 + $0x50] sm:$0xff]   ;;  %v1339_v58 = vld [vmem:[%s1216_s24 + $0x58] sm:$0xff]  }
  0x18   : > { %v1313_v56 = vld [vmem:[%s1221_s27 + $0x48] sm:$0xff]   ;;  %v1323_v62 = vld [vmem:[%s1221_s27 + $0x50] sm:$0xff]   ;;  %v440_v6 = vmul.f32 %v1104_v63, %v437_v50  ;;  %v1342_v57 = vld [vmem:[%s1221_s27 + $0x58] sm:$0xff]   ;;  %v590_v2 = vmul.f32 %v1106_v54, %v587_v1  ;;  %v964_v53 = vunpack.c.h.bf16 %v1320_v61  ;;  %v967_v63 = vunpack.c.l.bf16 %v1339_v58 }
  0x19   : > { %v968_v59 = vunpack.c.h.bf16 %v1339_v58 }
  0x1a   : > { %v443_v7 = vmul.f32 %v442_v0, %v440_v6  ;;  %v1355_v4 = vrot.slane %v440_v6, %v1226_v9  ;;  %v593_v1 = vmul.f32 %v592_v5, %v590_v2  ;;  %v1369_v6 = vrot.slane %v590_v2, %v1226_v9 }
  0x1c   : > { %v444_v0 = vsub.f32 %v441_v3, %v443_v7  ;;  %v515_v54 = vmul.f32 %v923_v12, %v1355_v4  ;;  %v516_v50 = vmul.f32 %v924_v14, %v1355_v4  ;;  %v517_v60 = vmul.f32 %v927_v19, %v1355_v4 }
  0x1d   : > { %v518_v3 = vmul.f32 %v928_v21, %v1355_v4  ;;  %v519_v12 = vmul.f32 %v931_v26, %v1355_v4  ;;  %v594_v2 = vsub.f32 %v591_v52, %v593_v1  ;;  %v665_v8 = vmul.f32 %v987_v13, %v1369_v6 }
  0x1e   : > { %v1384_v5 = vrot.slane %v444_v0, %v1226_v9  ;;  %v666_v14 = vmul.f32 %v988_v18, %v1369_v6  ;;  %v667_v11 = vmul.f32 %v991_v20, %v1369_v6  ;;  %v668_v19 = vmul.f32 %v992_v25, %v1369_v6 }
  0x1f   : > { %v669_v21 = vmul.f32 %v995_v27, %v1369_v6  ;;  %v520_v13 = vmul.f32 %v932_v28, %v1355_v4  ;;  %v1407_v18 = vrot.slane %v594_v2, %v1226_v9  ;;  %v670_v16 = vmul.f32 %v996_v32, %v1369_v6 }
  0x20   : > { %v553_v10 = vadd.f32 %v1384_v5, %v515_v54  ;;  %v554_v20 = vadd.f32 %v1384_v5, %v516_v50  ;;  %v555_v26 = vadd.f32 %v1384_v5, %v517_v60  ;;  %v556_v15 = vadd.f32 %v1384_v5, %v518_v3 }
  0x21   : > { %v557_v25 = vadd.f32 %v1384_v5, %v519_v12  ;;  %v558_v27 = vadd.f32 %v1384_v5, %v520_v13  ;;  %v703_v28 = vadd.f32 %v1407_v18, %v665_v8  ;;  %v704_v52 = vadd.f32 %v1407_v18, %v666_v14 }
  0x22   : > { %v705_v9 = vadd.f32 %v1407_v18, %v667_v11  ;;  %v706_v7 = vadd.f32 %v1407_v18, %v668_v19  ;;  %v707_v17 = vadd.f32 %v1407_v18, %v669_v21  ;;  %v708_v32 = vadd.f32 %v1407_v18, %v670_v16 }
  0x23   : > { %v521_v60 = vmul.f32 %v935_v33, %v1355_v4  ;;  %v671_v50 = vmul.f32 %v999_v34, %v1369_v6  ;;  %v735_v0 = vadd.f32 %v703_v28, %v553_v10  ;;  %v736_v54 = vadd.f32 %v704_v52, %v554_v20 }
  0x24   : > { %v737_v1 = vadd.f32 %v705_v9, %v555_v26  ;;  %v738_v3 = vadd.f32 %v706_v7, %v556_v15  ;;  %v739_v12 = vadd.f32 %v707_v17, %v557_v25  ;;  %v740_v2 = vadd.f32 %v708_v32, %v558_v27 }
  0x25   : > { %v559_v8 = vadd.f32 %v1384_v5, %v521_v60  ;;  %v709_v14 = vadd.f32 %v1407_v18, %v671_v50  ;;  %768 = vst.msk [vmem:[%s1424_s28] sm:$0xff] %vm767_vm0, %v735_v0  ;;  %769 = vst.msk [vmem:[%s1424_s28 + $0x8] sm:$0xff] %vm767_vm0, %v736_v54  ;;  %v522_v33 = vmul.f32 %v936_v35, %v1355_v4  ;;  %v1695_v27 = vunpack.c.l.bf16 %v1277_v36 }
  0x26   : > { %770 = vst.msk [vmem:[%s1424_s28 + $0x10] sm:$0xff] %vm767_vm0, %v737_v1  ;;  %771 = vst.msk [vmem:[%s1424_s28 + $0x18] sm:$0xff] %vm767_vm0, %v738_v3  ;;  %v672_v34 = vmul.f32 %v1000_v38, %v1369_v6  ;;  %v523_v11 = vmul.f32 %v939_v39, %v1355_v4  ;;  %v673_v19 = vmul.f32 %v1003_v40, %v1369_v6  ;;  %v1698_v52 = vunpack.c.h.bf16 %v1280_v37 }
  0x27   : > { %772 = vst.msk [vmem:[%s1424_s28 + $0x20] sm:$0xff] %vm767_vm0, %v739_v12  ;;  %773 = vst.msk [vmem:[%s1424_s28 + $0x28] sm:$0xff] %vm767_vm0, %v740_v2  ;;  %v741_v21 = vadd.f32 %v709_v14, %v559_v8  ;;  %v524_v22 = vmul.f32 %v940_v41, %v1355_v4  ;;  %v674_v23 = vmul.f32 %v1004_v44, %v1369_v6  ;;  %v1699_v60 = vunpack.c.l.bf16 %v1287_v42 }
  0x28   : > { %v525_v35 = vmul.f32 %v943_v45, %v1355_v4  ;;  %v560_v38 = vadd.f32 %v1384_v5, %v522_v33  ;;  %v710_v39 = vadd.f32 %v1407_v18, %v672_v34  ;;  %v561_v40 = vadd.f32 %v1384_v5, %v523_v11 }
  0x29   : > { %v711_v13 = vadd.f32 %v1407_v18, %v673_v19  ;;  %774 = vst.msk [vmem:[%s1424_s28 + $0x30] sm:$0xff] %vm767_vm0, %v741_v21  ;;  %v562_v24 = vadd.f32 %v1384_v5, %v524_v22  ;;  %v712_v29 = vadd.f32 %v1407_v18, %v674_v23  ;;  %v675_v44 = vmul.f32 %v1007_v46, %v1369_v6 }
  0x2a   : > { %v563_v41 = vadd.f32 %v1384_v5, %v525_v35  ;;  %v742_v45 = vadd.f32 %v710_v39, %v560_v38  ;;  %v526_v20 = vmul.f32 %v944_v47, %v1355_v4  ;;  %v676_v26 = vmul.f32 %v1008_v51, %v1369_v6 }
  0x2b   : > { %v743_v10 = vadd.f32 %v711_v13, %v561_v40  ;;  %v744_v15 = vadd.f32 %v712_v29, %v562_v24  ;;  %v713_v25 = vadd.f32 %v1407_v18, %v675_v44  ;;  %v527_v16 = vmul.f32 %v1695_v27, %v1355_v4 }
  0x2c   : > { %v1696_v46 = vunpack.c.l.bf16 %v1280_v37  ;;  %775 = vst.msk [vmem:[%s1424_s28 + $0x38] sm:$0xff] %vm767_vm0, %v742_v45  ;;  %v564_v30 = vadd.f32 %v1384_v5, %v526_v20  ;;  %v714_v31 = vadd.f32 %v1407_v18, %v676_v26  ;;  %v1697_v47 = vunpack.c.h.bf16 %v1277_v36 }
  0x2d   : > { %776 = vst.msk [vmem:[%s1424_s28 + $0x40] sm:$0xff] %vm767_vm0, %v743_v10  ;;  %v678_v9 = vmul.f32 %v1698_v52, %v1369_v6  ;;  %777 = vst.msk [vmem:[%s1424_s28 + $0x48] sm:$0xff] %vm767_vm0, %v744_v15  ;;  %v745_v7 = vadd.f32 %v713_v25, %v563_v41  ;;  %v565_v17 = vadd.f32 %v1384_v5, %v527_v16  ;;  %v1700_v37 = vunpack.c.l.bf16 %v1290_v43 }
  0x2e   : > { %v677_v28 = vmul.f32 %v1696_v46, %v1369_v6  ;;  %v528_v51 = vmul.f32 %v1697_v47, %v1355_v4  ;;  %v529_v50 = vmul.f32 %v1699_v60, %v1355_v4  ;;  %v746_v0 = vadd.f32 %v714_v31, %v564_v30 }
  0x2f   : > { %v716_v54 = vadd.f32 %v1407_v18, %v678_v9  ;;  %v679_v1 = vmul.f32 %v1700_v37, %v1369_v6  ;;  %778 = vst.msk [vmem:[%s1424_s28 + $0x50] sm:$0xff] %vm767_vm0, %v745_v7  ;;  %v1701_v2 = vunpack.c.h.bf16 %v1287_v42  ;;  %v1702_v14 = vunpack.c.h.bf16 %v1290_v43 }
  0x30   : > { %v715_v32 = vadd.f32 %v1407_v18, %v677_v28  ;;  %v566_v36 = vadd.f32 %v1384_v5, %v528_v51  ;;  %v567_v12 = vadd.f32 %v1384_v5, %v529_v50  ;;  %779 = vst.msk [vmem:[%s1424_s28 + $0x58] sm:$0xff] %vm767_vm0, %v746_v0  ;;  %v1703_v19 = vunpack.c.l.bf16 %v1297_v48 }
  0x31   : > { %v530_v8 = vmul.f32 %v1701_v2, %v1355_v4  ;;  %v680_v33 = vmul.f32 %v1702_v14, %v1369_v6  ;;  %v717_v11 = vadd.f32 %v1407_v18, %v679_v1  ;;  %v1704_v22 = vunpack.c.l.bf16 %v1300_v49 }
  0x32   : > { %v747_v3 = vadd.f32 %v715_v32, %v565_v17  ;;  %v748_v34 = vadd.f32 %v716_v54, %v566_v36  ;;  %v531_v21 = vmul.f32 %v1703_v19, %v1355_v4  ;;  %v1705_v35 = vunpack.c.h.bf16 %v1297_v48  ;;  %v1060_v36 = vld [vmem:[%s1216_s24 + $0x60] sm:$0xff]   ;;  %v1076_v19 = vld [vmem:[%s1221_s27 + $0x68] sm:$0xff]  }
  0x33   : > { %v681_v23 = vmul.f32 %v1704_v22, %v1369_v6  ;;  %v568_v42 = vadd.f32 %v1384_v5, %v530_v8  ;;  %v718_v43 = vadd.f32 %v1407_v18, %v680_v33  ;;  %v1706_v39 = vunpack.c.h.bf16 %v1300_v49  ;;  %v1061_v8 = vld [vmem:[%s1216_s24 + $0x68] sm:$0xff]  }
  0x34   : > { %780 = vst.msk [vmem:[%s1424_s28 + $0x60] sm:$0xff] %vm767_vm0, %v747_v3  ;;  %v532_v38 = vmul.f32 %v1705_v35, %v1355_v4  ;;  %781 = vst.msk [vmem:[%s1424_s28 + $0x68] sm:$0xff] %vm767_vm0, %v748_v34  ;;  %v749_v13 = vadd.f32 %v717_v11, %v567_v12  ;;  %v569_v24 = vadd.f32 %v1384_v5, %v531_v21  ;;  %v1707_v41 = vunpack.c.l.bf16 %v1310_v55 }
  0x35   : > { %v682_v40 = vmul.f32 %v1706_v39, %v1369_v6  ;;  %v719_v29 = vadd.f32 %v1407_v18, %v681_v23  ;;  %v750_v45 = vadd.f32 %v718_v43, %v568_v42  ;;  %v1708_v49 = vunpack.c.l.bf16 %v1313_v56 }
  0x36   : > { %v533_v44 = vmul.f32 %v1707_v41, %v1355_v4  ;;  %v570_v48 = vadd.f32 %v1384_v5, %v532_v38  ;;  %782 = vst.msk [vmem:[%s1424_s28 + $0x70] sm:$0xff] %vm767_vm0, %v749_v13  ;;  %v1709_v25 = vunpack.c.h.bf16 %v1310_v55  ;;  %v1710_v16 = vunpack.c.h.bf16 %v1313_v56 }
  0x37   : > { %v720_v10 = vadd.f32 %v1407_v18, %v682_v40  ;;  %v683_v20 = vmul.f32 %v1708_v49, %v1369_v6  ;;  %v751_v26 = vadd.f32 %v719_v29, %v569_v24  ;;  %783 = vst.msk [vmem:[%s1424_s28 + $0x78] sm:$0xff] %vm767_vm0, %v750_v45  ;;  %v1711_v31 = vunpack.c.l.bf16 %v1320_v61  ;;  %v1075_v61 = vld [vmem:[%s1221_s27 + $0x60] sm:$0xff]   ;;  %v1077_v45 = vld [vmem:[%s1221_s27 + $0x70] sm:$0xff]  }
  0x38   : > { %v571_v15 = vadd.f32 %v1384_v5, %v533_v44  ;;  %v534_v27 = vmul.f32 %v1709_v25, %v1355_v4  ;;  %v684_v46 = vmul.f32 %v1710_v16, %v1369_v6  ;;  %v1712_v51 = vunpack.c.l.bf16 %v1323_v62  ;;  %v1062_v44 = vld [vmem:[%s1216_s24 + $0x70] sm:$0xff]   ;;  %v1063_v16 = vld [vmem:[%s1216_s24 + $0x78] sm:$0xff]  }
  0x39   : > { %v752_v28 = vadd.f32 %v720_v10, %v570_v48  ;;  %v721_v30 = vadd.f32 %v1407_v18, %v683_v20  ;;  %v535_v47 = vmul.f32 %v1711_v31, %v1355_v4  ;;  %784 = vst.msk [vmem:[%s1424_s28 + $0x80] sm:$0xff] %vm767_vm0, %v751_v26  ;;  %v536_v9 = vmul.f32 %v964_v53, %v1355_v4 }
  0x3a   : > { %v685_v55 = vmul.f32 %v1712_v51, %v1369_v6  ;;  %v572_v56 = vadd.f32 %v1384_v5, %v534_v27  ;;  %v722_v52 = vadd.f32 %v1407_v18, %v684_v46  ;;  %v1713_v7 = vunpack.c.h.bf16 %v1323_v62 }
  0x3b   : > { %785 = vst.msk [vmem:[%s1424_s28 + $0x88] sm:$0xff] %vm767_vm0, %v752_v28  ;;  %v753_v32 = vadd.f32 %v721_v30, %v571_v15  ;;  %v573_v60 = vadd.f32 %v1384_v5, %v535_v47  ;;  %v537_v0 = vmul.f32 %v967_v63, %v1355_v4  ;;  %v574_v62 = vadd.f32 %v1384_v5, %v536_v9  ;;  %v1078_v47 = vld [vmem:[%s1221_s27 + $0x78] sm:$0xff]  }
  0x3c   : > { %v686_v17 = vmul.f32 %v1713_v7, %v1369_v6  ;;  %v723_v50 = vadd.f32 %v1407_v18, %v685_v55  ;;  %v754_v53 = vadd.f32 %v722_v52, %v572_v56  ;;  %v1714_v37 = vunpack.c.l.bf16 %v1342_v57 }
  0x3d   : > { %786 = vst.msk [vmem:[%s1424_s28 + $0x90] sm:$0xff] %vm767_vm0, %v753_v32  ;;  %v575_v12 = vadd.f32 %v1384_v5, %v537_v0  ;;  %v538_v63 = vmul.f32 %v968_v59, %v1355_v4  ;;  %v1032_v2 = vunpack.c.h.bf16 %v1342_v57  ;;  %v971_v34 = vunpack.c.l.bf16 %v1060_v36 }
  0x3e   : > { %v724_v54 = vadd.f32 %v1407_v18, %v686_v17  ;;  %v687_v1 = vmul.f32 %v1714_v37, %v1369_v6  ;;  %v755_v3 = vadd.f32 %v723_v50, %v573_v60  ;;  %787 = vst.msk [vmem:[%s1424_s28 + $0x98] sm:$0xff] %vm767_vm0, %v754_v53  ;;  %v1035_v11 = vunpack.c.l.bf16 %v1075_v61 }
  0x3f   : > { %v576_v21 = vadd.f32 %v1384_v5, %v538_v63  ;;  %v688_v22 = vmul.f32 %v1032_v2, %v1369_v6  ;;  %v972_v58 = vunpack.c.h.bf16 %v1060_v36  ;;  %v1036_v59 = vunpack.c.h.bf16 %v1075_v61 }
  0x40   : > { %v756_v14 = vadd.f32 %v724_v54, %v574_v62  ;;  %v725_v33 = vadd.f32 %v1407_v18, %v687_v1  ;;  %788 = vst.msk [vmem:[%s1424_s28 + $0xa0] sm:$0xff] %vm767_vm0, %v755_v3  ;;  %v539_v23 = vmul.f32 %v971_v34, %v1355_v4  ;;  %v689_v42 = vmul.f32 %v1035_v11, %v1369_v6 }
  0x41   : > { %v975_v43 = vunpack.c.l.bf16 %v1061_v8  ;;  %v726_v35 = vadd.f32 %v1407_v18, %v688_v22  ;;  %v540_v38 = vmul.f32 %v972_v58, %v1355_v4  ;;  %v690_v39 = vmul.f32 %v1036_v59, %v1369_v6 }
  0x42   : > { %789 = vst.msk [vmem:[%s1424_s28 + $0xa8] sm:$0xff] %vm767_vm0, %v756_v14  ;;  %v757_v57 = vadd.f32 %v725_v33, %v575_v12  ;;  %v1039_v40 = vunpack.c.l.bf16 %v1076_v19  ;;  %v577_v13 = vadd.f32 %v1384_v5, %v539_v23  ;;  %v727_v24 = vadd.f32 %v1407_v18, %v689_v42 }
  0x43   : > { %v541_v29 = vmul.f32 %v975_v43, %v1355_v4  ;;  %v976_v41 = vunpack.c.h.bf16 %v1061_v8  ;;  %v758_v48 = vadd.f32 %v726_v35, %v576_v21  ;;  %v578_v10 = vadd.f32 %v1384_v5, %v540_v38 }
  0x44   : > { %790 = vst.msk [vmem:[%s1424_s28 + $0xb0] sm:$0xff] %vm767_vm0, %v757_v57  ;;  %v728_v49 = vadd.f32 %v1407_v18, %v690_v39  ;;  %v691_v20 = vmul.f32 %v1039_v40, %v1369_v6  ;;  %v759_v26 = vadd.f32 %v727_v24, %v577_v13  ;;  %v1040_v27 = vunpack.c.h.bf16 %v1076_v19 }
  0x45   : > { %v579_v15 = vadd.f32 %v1384_v5, %v541_v29  ;;  %v542_v25 = vmul.f32 %v976_v41, %v1355_v4  ;;  %791 = vst.msk [vmem:[%s1424_s28 + $0xb8] sm:$0xff] %vm767_vm0, %v758_v48  ;;  %v979_v30 = vunpack.c.l.bf16 %v1062_v44  ;;  %v1043_v31 = vunpack.c.l.bf16 %v1077_v45 }
  0x46   : > { %v760_v46 = vadd.f32 %v728_v49, %v578_v10  ;;  %v729_v28 = vadd.f32 %v1407_v18, %v691_v20  ;;  %792 = vst.msk [vmem:[%s1424_s28 + $0xc0] sm:$0xff] %vm767_vm0, %v759_v26  ;;  %v692_v55 = vmul.f32 %v1040_v27, %v1369_v6  ;;  %v980_v56 = vunpack.c.h.bf16 %v1062_v44 }
  0x47   : > { %v580_v51 = vadd.f32 %v1384_v5, %v542_v25  ;;  %v1044_v52 = vunpack.c.h.bf16 %v1077_v45  ;;  %v543_v7 = vmul.f32 %v979_v30, %v1355_v4  ;;  %v693_v17 = vmul.f32 %v1043_v31, %v1369_v6 }
  0x48   : > { %793 = vst.msk [vmem:[%s1424_s28 + $0xc8] sm:$0xff] %vm767_vm0, %v760_v46  ;;  %v761_v9 = vadd.f32 %v729_v28, %v579_v15  ;;  %v983_v32 = vunpack.c.l.bf16 %v1063_v16  ;;  %v730_v60 = vadd.f32 %v1407_v18, %v692_v55  ;;  %v544_v50 = vmul.f32 %v980_v56, %v1355_v4 }
  0x49   : > { %v694_v0 = vmul.f32 %v1044_v52, %v1369_v6  ;;  %v1047_v36 = vunpack.c.l.bf16 %v1078_v47  ;;  %v581_v61 = vadd.f32 %v1384_v5, %v543_v7  ;;  %v731_v53 = vadd.f32 %v1407_v18, %v693_v17 }
  0x4a   : > { %794 = vst.msk [vmem:[%s1424_s28 + $0xd0] sm:$0xff] %vm767_vm0, %v761_v9  ;;  %v545_v62 = vmul.f32 %v983_v32, %v1355_v4  ;;  %v984_v54 = vunpack.c.h.bf16 %v1063_v16  ;;  %v762_v37 = vadd.f32 %v730_v60, %v580_v51  ;;  %v582_v1 = vadd.f32 %v1384_v5, %v544_v50 }
  0x4b   : > { %v732_v3 = vadd.f32 %v1407_v18, %v694_v0  ;;  %v695_v12 = vmul.f32 %v1047_v36, %v1369_v6  ;;  %v763_v63 = vadd.f32 %v731_v53, %v581_v61  ;;  %v1048_v14 = vunpack.c.h.bf16 %v1078_v47 }
  0x4c   : > { %v583_v2 = vadd.f32 %v1384_v5, %v545_v62  ;;  %v546_v8 = vmul.f32 %v984_v54, %v1355_v4  ;;  %795 = vst.msk [vmem:[%s1424_s28 + $0xd8] sm:$0xff] %vm767_vm0, %v762_v37 }
  0x4d   : > { %v764_v33 = vadd.f32 %v732_v3, %v582_v1  ;;  %v733_v34 = vadd.f32 %v1407_v18, %v695_v12  ;;  %796 = vst.msk [vmem:[%s1424_s28 + $0xe0] sm:$0xff] %vm767_vm0, %v763_v63  ;;  %v696_v19 = vmul.f32 %v1048_v14, %v1369_v6 }
  0x4e   : > { %v584_v11 = vadd.f32 %v1384_v5, %v546_v8 }
  0x4f   : > { %797 = vst.msk [vmem:[%s1424_s28 + $0xe8] sm:$0xff] %vm767_vm0, %v764_v33  ;;  %v765_v21 = vadd.f32 %v733_v34, %v583_v2  ;;  %v734_v22 = vadd.f32 %v1407_v18, %v696_v19 }
  0x51   : > { %798 = vst.msk [vmem:[%s1424_s28 + $0xf0] sm:$0xff] %vm767_vm0, %v765_v21  ;;  %v766_v4 = vadd.f32 %v734_v22, %v584_v11 }
  0x53   : > { %799 = vst.msk [vmem:[%s1424_s28 + $0xf8] sm:$0xff] %vm767_vm0, %v766_v4 }
  0x54 PF: > { %s20_s15 = sadd.s32 1, %s1129_s15   ;;  %s1715_s13 = smov %s1125_s14 }
  0x55   : > { %p17_p5 = scmp.ge.s32.totalorder %s20_s15, 4   ;;  %s1716_s14 = smov %s1718_s16 }
  0x57   :  { %19 = sbr.rel (!%p17_p5) target bundleno = 2 (0x2), region = 93 }

// kernel: _residual_block2_impl.6
= control target key start
LH: loop header
LB: loop body
LE: loop exit
PB: predicated region body
PF: predicated region fallthrough
CT: control target
= control target key end

     0   :  { %s1613_s27 = smov 0   ;;  %s1615_s28 = smov 0   ;;  %s2227_s0 = inlined_call_operand.vmem [shape: bf16[2,256,4], index: 0, kind: input, shape index: {}]   ;;  %s2228_s1 = inlined_call_operand.vmem [shape: f32[1,4], index: 1, kind: input, shape index: {}]   ;;  %s2229_s2 = inlined_call_operand.vmem [shape: f32[1,4], index: 2, kind: input, shape index: {}]   ;;  %s2230_s3 = inlined_call_operand.vmem [shape: f32[1,4], index: 3, kind: input, shape index: {}]   ;;  %s2231_s4 = inlined_call_operand.vmem [shape: f32[1,4], index: 4, kind: input, shape index: {}]   ;;  %s2232_s5 = inlined_call_operand.vmem [shape: bf16[4,16], index: 5, kind: input, shape index: {}]   ;;  %s2233_s6 = inlined_call_operand.vmem [shape: bf16[2,256,16], index: 6, kind: output, shape index: {0}]   ;;  %s2234_s7 = inlined_call_operand.vmem [shape: f32[1,16], index: 7, kind: output, shape index: {1}]   ;;  %s2235_s8 = inlined_call_operand.vmem [shape: f32[1,16], index: 8, kind: output, shape index: {2}]  }
   0x1   :  { %s1617_s29 = smov 0  }
   0x2 LB: > { %s31_s30 = sadd.s32 1, %s1561_s28  ;;  %p1288_p0 = scmp.ge.s32.totalorder %s1565_s29, 1  ;;  %s1565_s29 = sphi %s1617_s29, %s19_s29   ;;  %s1561_s28 = sphi %s1615_s28, %s2237_s28   ;;  %s1557_s27 = sphi %s1613_s27, %s2236_s27  }
   0x3   : > { %p33_p1 = scmp.ge.s32.totalorder %s31_s30, 2  ;;  %p278_p2 = scmp.lt.s32.totalorder %s1565_s29, 3 }
   0x5   : > { %s2239_s30 = smov (%p33_p1, %s31_s30), 0  ;;  %p279_p3 = pnand %p1288_p0, %p278_p2 }
   0x6   : > { %p321_p4 = scmp.lt.s32.totalorder (!%p279_p3), %s1557_s27, 1  ;;  %p1293_p5 = scmp.ne.s32.totalorder (!%p279_p3), %s1557_s27, 0 }
   0x7   : > { %282 = sbr.rel (%p279_p3) target bundleno = 438 (0x1b6), region = 44 }
   0xe   : > { %s322_s9 = scalar_select %p321_p4, %s1557_s27, 1 }
   0xf   : > { %345 = sbr.rel (%p1293_p5) target bundleno = 22 (0x16), region = 48  ;;  %vm346_vm0 = vcmask (!%p1293_p5), 122880   ;;  %v1567_v0 = vmov (!%p1293_p5), 0.0  }
  0x10   : > { %s1344_s10 = sshll.u32 %s322_s9, 7  ;;  %347 = vst.msk [vmem:[%s2234_s7] sm:$0x1] (!%p1293_p5), %vm346_vm0, %v1567_v0  ;;  %348 = vst.msk [vmem:[%s2235_s8] sm:$0x1] (!%p1293_p5), %vm346_vm0, %v1567_v0 }
  0x11   : > { %s1638_s13 = scalar_lea.vmem %s2227_s0, %s1344_s10  ;;  %s1643_s16 = scalar_lea.vmem %s2233_s6, %s1344_s10 }
  0x16 PF: > { %v547_v1 = vld [vmem:[%s2232_s5] sm:$0x3]  ;;  %vm597_vm1 = vcmask 1041408   ;;  %v424_v6 = vlaneseq  ;;  %v1442_v9 = vld [vmem:[%s1638_s13 + $0x8] sm:$0xff]   ;;  %v1443_v10 = vld [vmem:[%s1638_s13 + $0x10] sm:$0xff]   ;;  %vm548_vm2 = vcmask 31744  }
  0x17   : > { %v349_v2 = vld [vmem:[%s2231_s4] sm:$0x1]  ;;  %1510 = vmatprep.subr.msk.bf16.mxu0 %vm597_vm1, %v547_v1  ;;  %v599_v3 = vsel %vm597_vm1, %v547_v1, 0  ;;  %1511 = vmatprep.subr.msk.bf16.mxu1 %vm597_vm1, %v547_v1  ;;  %v1444_v11 = vld [vmem:[%s1638_s13 + $0x18] sm:$0xff]   ;;  %v1446_v13 = vld [vmem:[%s1638_s13 + $0x28] sm:$0xff]   ;;  %v1384_v17 = vunpack.c.l.bf16 %v1442_v9  ;;  %v1385_v18 = vunpack.c.h.bf16 %v1442_v9  ;;  %v1388_v21 = vunpack.c.l.bf16 %v1443_v10 }
  0x18   : > { %v350_v4 = vmul.f32 0.001953125, %v349_v2  ;;  %1475 = vmatpush3.bf16.msra.mxu0 %v599_v3  ;;  %1509 = vmatpush3.bf16.msra.mxu1 %v599_v3  ;;  %v1379_v7 = vld [vmem:[%s1638_s13] sm:$0xff]   ;;  %v425_v8 = vshrl.u32 %v424_v6, 7  ;;  %v1447_v19 = vld [vmem:[%s1638_s13 + $0x30] sm:$0xff]   ;;  %v1389_v22 = vunpack.c.h.bf16 %v1443_v10  ;;  %v1392_v23 = vunpack.c.l.bf16 %v1444_v11  ;;  %v1669_v24 = vld [vmem:[%s1638_s13 + $0x38] sm:$0xff]  }
  0x19   : > { %v1445_v12 = vld [vmem:[%s1638_s13 + $0x20] sm:$0xff]   ;;  %v1380_v15 = vunpack.c.l.bf16 %v1379_v7  ;;  %v1381_v16 = vunpack.c.h.bf16 %v1379_v7  ;;  %v1393_v28 = vunpack.c.h.bf16 %v1444_v11  ;;  %v1400_v31 = vunpack.c.l.bf16 %v1446_v13  ;;  %v1678_v32 = vld [vmem:[%s1638_s13 + $0x48] sm:$0xff]   ;;  %v1681_v37 = vld [vmem:[%s1638_s13 + $0x50] sm:$0xff]  }
  0x1a   : > { %v352_v5 = vadd.f32 1e-05, %v350_v4  ;;  %v351_v14 = vld [vmem:[%s2228_s1] sm:$0x1]  ;;  %v426_v20 = vsub.s32 0, %v425_v8  ;;  %v1396_v29 = vunpack.c.l.bf16 %v1445_v12  ;;  %v1397_v30 = vunpack.c.h.bf16 %v1445_v12  ;;  %v1684_v38 = vld [vmem:[%s1638_s13 + $0x58] sm:$0xff]  }
  0x1b   : > { %v1672_v25 = vld [vmem:[%s1638_s13 + $0x40] sm:$0xff]   ;;  %v1401_v34 = vunpack.c.h.bf16 %v1446_v13  ;;  %v1404_v35 = vunpack.c.l.bf16 %v1447_v19  ;;  %v1405_v36 = vunpack.c.h.bf16 %v1447_v19  ;;  %v1408_v40 = vunpack.c.l.bf16 %v1669_v24 }
  0x1c   : > { %1539 = vrsqrt.f32 %v352_v5  ;;  %v356_v27 = vld [vmem:[%s2230_s3] sm:$0x1]  ;;  %v1409_v41 = vunpack.c.h.bf16 %v1669_v24  ;;  %v1412_v42 = vunpack.c.l.bf16 %v1672_v25  ;;  %v1413_v43 = vunpack.c.h.bf16 %v1672_v25 }
  0x1d   : > { %v355_v39 = vld [vmem:[%s2229_s2] sm:$0x1]  ;;  %v1416_v46 = vunpack.c.l.bf16 %v1678_v32  ;;  %v1417_v47 = vunpack.c.h.bf16 %v1678_v32  ;;  %v1420_v48 = vunpack.c.l.bf16 %v1681_v37  ;;  %v1421_v49 = vunpack.c.h.bf16 %v1681_v37 }
  0x1e   : > { %v1424_v50 = vunpack.c.l.bf16 %v1684_v38  ;;  %v1425_v51 = vunpack.c.h.bf16 %v1684_v38  ;;  %vm890_vm3 = vcmask 125952   ;;  %vm955_vm4 = vcmask 130048  }
  0x1f   : > { %vm1171_vm5 = vcmask 122880  }
  0x26   : > { %v1540_v26 = vpop.eup %1539 }
  0x27   : > { %v354_v33 = vmul.f32 %v1540_v26, %v351_v14 }
  0x29   : > { %v357_v44 = vmul.f32 %v356_v27, %v354_v33  ;;  %v1693_v45 = vrot.slane %v354_v33, %v426_v20 }
  0x2b   : > { %v358_v52 = vsub.f32 %v355_v39, %v357_v44  ;;  %v429_v53 = vmul.f32 %v1380_v15, %v1693_v45  ;;  %v430_v54 = vmul.f32 %v1381_v16, %v1693_v45  ;;  %v431_v55 = vmul.f32 %v1384_v17, %v1693_v45  ;;  %v1726_v16 = vld [vmem:[%s1638_s13 + $0x60] sm:$0xff]  }
  0x2c   : > { %v432_v56 = vmul.f32 %v1385_v18, %v1693_v45  ;;  %v433_v57 = vmul.f32 %v1388_v21, %v1693_v45  ;;  %v434_v58 = vmul.f32 %v1389_v22, %v1693_v45  ;;  %v435_v59 = vmul.f32 %v1392_v23, %v1693_v45  ;;  %v1729_v21 = vld [vmem:[%s1638_s13 + $0x68] sm:$0xff]  }
  0x2d   : > { %v1708_v60 = vrot.slane %v358_v52, %v426_v20  ;;  %v436_v61 = vmul.f32 %v1393_v28, %v1693_v45  ;;  %v437_v62 = vmul.f32 %v1396_v29, %v1693_v45  ;;  %v438_v63 = vmul.f32 %v1397_v30, %v1693_v45  ;;  %v1734_v28 = vld [vmem:[%s1638_s13 + $0x70] sm:$0xff]  }
  0x2e   : > { %v439_v0 = vmul.f32 %v1400_v31, %v1693_v45  ;;  %v440_v1 = vmul.f32 %v1401_v34, %v1693_v45  ;;  %v441_v2 = vmul.f32 %v1404_v35, %v1693_v45  ;;  %v442_v3 = vmul.f32 %v1405_v36, %v1693_v45 }
  0x2f   : > { %v467_v4 = vadd.f32 %v1708_v60, %v429_v53  ;;  %v468_v5 = vadd.f32 %v1708_v60, %v430_v54  ;;  %v469_v6 = vadd.f32 %v1708_v60, %v431_v55  ;;  %v470_v7 = vadd.f32 %v1708_v60, %v432_v56 }
  0x30   : > { %v471_v8 = vadd.f32 %v1708_v60, %v433_v57  ;;  %v472_v9 = vadd.f32 %v1708_v60, %v434_v58  ;;  %v473_v10 = vadd.f32 %v1708_v60, %v435_v59  ;;  %v474_v11 = vadd.f32 %v1708_v60, %v436_v61 }
  0x31   : > { %v499_v12 = vmax.f32 %v467_v4, 0.0  ;;  %v500_v13 = vmax.f32 %v468_v5, 0.0  ;;  %v501_v14 = vmax.f32 %v469_v6, 0.0  ;;  %v502_v15 = vmax.f32 %v470_v7, 0.0 }
  0x32   : > { %v503_v17 = vmax.f32 %v471_v8, 0.0  ;;  %v504_v18 = vmax.f32 %v472_v9, 0.0  ;;  %v505_v19 = vmax.f32 %v473_v10, 0.0  ;;  %v506_v20 = vmax.f32 %v474_v11, 0.0 }
  0x33   : > { %v531_v22 = vpack.c.bf16 %v500_v13, %v499_v12  ;;  %v532_v23 = vpack.c.bf16 %v502_v15, %v501_v14  ;;  %v475_v26 = vadd.f32 %v1708_v60, %v437_v62  ;;  %v476_v27 = vadd.f32 %v1708_v60, %v438_v63 }
  0x34   : > { %v533_v29 = vpack.c.bf16 %v504_v18, %v503_v17  ;;  %v477_v30 = vadd.f32 %v1708_v60, %v439_v0  ;;  %v478_v31 = vadd.f32 %v1708_v60, %v440_v1  ;;  %v1428_v33 = vunpack.c.l.bf16 %v1726_v16 }
  0x35   : > { %1476 = vmatprep.mubr.msk.bf16.mxu0 %vm548_vm2, %v531_v22  ;;  %v507_v34 = vmax.f32 %v475_v26, 0.0  ;;  %v508_v35 = vmax.f32 %v476_v27, 0.0  ;;  %v1429_v36 = vunpack.c.h.bf16 %v1726_v16  ;;  %v1432_v39 = vunpack.c.l.bf16 %v1729_v21 }
  0x36   : > { %1477 = vmatmul.mubr.msk.bf16.vlgmr.msra.gmra.mrb[0].mxu0 %vm548_vm2, %v532_v23  ;;  %v479_v44 = vadd.f32 %v1708_v60, %v441_v2  ;;  %v480_v52 = vadd.f32 %v1708_v60, %v442_v3  ;;  %v1433_v53 = vunpack.c.h.bf16 %v1729_v21  ;;  %v1436_v54 = vunpack.c.l.bf16 %v1734_v28  ;;  %v1456_v21 = vld [vmem:[%s1638_s13 + $0x78] sm:$0xff]   ;;  %s1159_s13 = scvt.s32.f32 %s1557_s27 }
  0x37   : > { %1480 = vmatprep.mubr.msk.bf16.mxu0 %vm548_vm2, %v533_v29  ;;  %v534_v55 = vpack.c.bf16 %v506_v20, %v505_v19  ;;  %v509_v56 = vmax.f32 %v477_v30, 0.0  ;;  %v445_v57 = vmul.f32 %v1412_v42, %v1693_v45  ;;  %v1437_v58 = vunpack.c.h.bf16 %v1734_v28 }
  0x38   : > { %v510_v59 = vmax.f32 %v478_v31, 0.0  ;;  %v443_v61 = vmul.f32 %v1408_v40, %v1693_v45  ;;  %v444_v62 = vmul.f32 %v1409_v41, %v1693_v45  ;;  %v446_v63 = vmul.f32 %v1413_v43, %v1693_v45  ;;  %s1820_s14 = smul.f32 256.0, %s1159_s13 }
  0x39   : > { %v535_v0 = vpack.c.bf16 %v508_v35, %v507_v34  ;;  %v483_v1 = vadd.f32 %v1708_v60, %v445_v57  ;;  %v447_v42 = vmul.f32 %v1416_v46, %v1693_v45  ;;  %v448_v2 = vmul.f32 %v1417_v47, %v1693_v45 }
  0x3a   : > { %v511_v40 = vmax.f32 %v479_v44, 0.0  ;;  %v512_v3 = vmax.f32 %v480_v52, 0.0  ;;  %v484_v24 = vadd.f32 %v1708_v60, %v446_v63  ;;  %v449_v25 = vmul.f32 %v1420_v48, %v1693_v45  ;;  %s1161_s15 = sadd.f32 256.0, %s1820_s14  ;;  %s1175_s21 = smul.f32 256.0, %s1820_s14 }
  0x3b   : > { %v515_v41 = vmax.f32 %v483_v1, 0.0  ;;  %v485_v43 = vadd.f32 %v1708_v60, %v447_v42  ;;  %v486_v4 = vadd.f32 %v1708_v60, %v448_v2  ;;  %v450_v46 = vmul.f32 %v1421_v49, %v1693_v45 }
  0x3c   : > { %v536_v5 = vpack.c.bf16 %v510_v59, %v509_v56  ;;  %v516_v32 = vmax.f32 %v484_v24, 0.0  ;;  %v487_v47 = vadd.f32 %v1708_v60, %v449_v25  ;;  %v451_v6 = vmul.f32 %v1424_v50, %v1693_v45 }
  0x3d   : > { %v517_v7 = vmax.f32 %v485_v43, 0.0  ;;  %v518_v8 = vmax.f32 %v486_v4, 0.0  ;;  %v488_v48 = vadd.f32 %v1708_v60, %v450_v46  ;;  %v452_v9 = vmul.f32 %v1425_v51, %v1693_v45 }
  0x3e   : > { %1481 = vmatmul.mubr.msk.bf16.gmra.mrb[4].mxu0 %vm548_vm2, %v534_v55  ;;  %v539_v37 = vpack.c.bf16 %v516_v32, %v515_v41  ;;  %v519_v49 = vmax.f32 %v487_v47, 0.0  ;;  %v489_v10 = vadd.f32 %v1708_v60, %v451_v6  ;;  %v453_v11 = vmul.f32 %v1428_v33, %v1693_v45 }
  0x3f   : > { %1484 = vmatprep.mubr.msk.bf16.mxu0 %vm548_vm2, %v535_v0  ;;  %v540_v50 = vpack.c.bf16 %v518_v8, %v517_v7  ;;  %v520_v12 = vmax.f32 %v488_v48, 0.0  ;;  %v490_v13 = vadd.f32 %v1708_v60, %v452_v9  ;;  %v454_v14 = vmul.f32 %v1429_v36, %v1693_v45 }
  0x40   : > { %v481_v38 = vadd.f32 %v1708_v60, %v443_v61  ;;  %1492 = vmatprep.mubr.msk.bf16.mxu1 %vm548_vm2, %v539_v37  ;;  %v521_v51 = vmax.f32 %v489_v10, 0.0  ;;  %v491_v15 = vadd.f32 %v1708_v60, %v453_v11  ;;  %v455_v16 = vmul.f32 %v1432_v39, %v1693_v45 }
  0x41   : > { %1493 = vmatmul.mubr.msk.bf16.vlgmr.msra.gmra.mrb[0].mxu1 %vm548_vm2, %v540_v50  ;;  %v541_v17 = vpack.c.bf16 %v520_v12, %v519_v49  ;;  %v522_v18 = vmax.f32 %v490_v13, 0.0  ;;  %v492_v19 = vadd.f32 %v1708_v60, %v454_v14  ;;  %v456_v20 = vmul.f32 %v1433_v53, %v1693_v45 }
  0x42   : > { %v482_v22 = vadd.f32 %v1708_v60, %v444_v62  ;;  %v523_v23 = vmax.f32 %v491_v15, 0.0  ;;  %v457_v26 = vmul.f32 %v1436_v54, %v1693_v45  ;;  %v458_v27 = vmul.f32 %v1437_v58, %v1693_v45 }
  0x43   : > { %v537_v28 = vpack.c.bf16 %v512_v3, %v511_v40  ;;  %1496 = vmatprep.mubr.msk.bf16.mxu1 %vm548_vm2, %v541_v17  ;;  %v524_v29 = vmax.f32 %v492_v19, 0.0  ;;  %v1440_v30 = vunpack.c.l.bf16 %v1456_v21  ;;  %v1441_v31 = vunpack.c.h.bf16 %v1456_v21 }
  0x44   : > { %v513_v33 = vmax.f32 %v481_v38, 0.0  ;;  %v542_v34 = vpack.c.bf16 %v522_v18, %v521_v51  ;;  %v493_v35 = vadd.f32 %v1708_v60, %v455_v16  ;;  %v494_v36 = vadd.f32 %v1708_v60, %v456_v20 }
  0x45   : > { %v514_v39 = vmax.f32 %v482_v22, 0.0  ;;  %v543_v44 = vpack.c.bf16 %v524_v29, %v523_v23  ;;  %v495_v52 = vadd.f32 %v1708_v60, %v457_v26  ;;  %v496_v53 = vadd.f32 %v1708_v60, %v458_v27 }
  0x46   : > { %1485 = vmatmul.mubr.msk.bf16.gmra.mrb[8].mxu0 %vm548_vm2, %v536_v5  ;;  %v525_v54 = vmax.f32 %v493_v35, 0.0  ;;  %v526_v55 = vmax.f32 %v494_v36, 0.0  ;;  %v459_v56 = vmul.f32 %v1440_v30, %v1693_v45  ;;  %v460_v57 = vmul.f32 %v1441_v31, %v1693_v45 }
  0x47   : > { %1488 = vmatprep.mubr.msk.bf16.mxu0 %vm548_vm2, %v537_v28  ;;  %v538_v58 = vpack.c.bf16 %v514_v39, %v513_v33  ;;  %v527_v59 = vmax.f32 %v495_v52, 0.0  ;;  %v528_v61 = vmax.f32 %v496_v53, 0.0 }
  0x48   : > { %v544_v62 = vpack.c.bf16 %v526_v55, %v525_v54  ;;  %v497_v63 = vadd.f32 %v1708_v60, %v459_v56  ;;  %v498_v0 = vadd.f32 %v1708_v60, %v460_v57  ;;  %v1164_v60 = vstv %s1161_s15 }
  0x49   : > { %1497 = vmatmul.mubr.msk.bf16.gmra.mrb[4].mxu1 %vm548_vm2, %v542_v34  ;;  %v545_v1 = vpack.c.bf16 %v528_v61, %v527_v59  ;;  %1541 = vrcp.f32 %v1164_v60 }
  0x4a   : > { %1500 = vmatprep.mubr.msk.bf16.mxu1 %vm548_vm2, %v543_v44  ;;  %v529_v42 = vmax.f32 %v497_v63, 0.0  ;;  %v530_v2 = vmax.f32 %v498_v0, 0.0 }
  0x4c   : > { %v546_v45 = vpack.c.bf16 %v530_v2, %v529_v42 }
  0x4e   : > { %1489 = vmatmul.mubr.msk.bf16.gmra.mrb[12].mxu0 %vm548_vm2, %v538_v58 }
  0x51   : > { %1501 = vmatmul.mubr.msk.bf16.gmra.mrb[8].mxu1 %vm548_vm2, %v544_v62 }
  0x52   : > { %1504 = vmatprep.mubr.msk.bf16.mxu1 %vm548_vm2, %v545_v1 }
  0x53   : > { %v1542_v40 = vpop.eup %1541 }
  0x54   : > { %1512 = vpush %v1542_v40 }
  0x59   : > { %1505 = vmatmul.mubr.msk.bf16.gmra.mrb[12].mxu1 %vm548_vm2, %v546_v45 }
  0x85   : > { %s2097_s27 = spop %1512 }
  0x86   : > { %s1179_s22 = smul.f32 %s2097_s27, %s1175_s21 }
 0x109   : > { %v1478_v3 = vpop.f32.mrb[0].mxu0 }
 0x10a   : > { %v1348_v24 = vpack.c.bf16 %v1478_v3, %v1478_v3  ;;  %v635_v25 = vpop.f32.mrb[1].mxu0 }
 0x10b   : > { %v1346_v41 = vpack.c.bf16 %v635_v25, %v635_v25  ;;  %v1479_v43 = vpop.f32.mrb[2].mxu0 }
 0x10c   : > { %893 = vst.msk [vmem:[%s1643_s16 + $0x8] sm:$0xf] %vm890_vm3, %v1348_v24  ;;  %v1825_v4 = vpack.c.bf16 %v1479_v43, %v1478_v3  ;;  %v1349_v46 = vpack.c.bf16 %v1479_v43, %v1479_v43  ;;  %v638_v5 = vpop.f32.mrb[3].mxu0 }
 0x10d   : > { %891 = vst.msk [vmem:[%s1643_s16] sm:$0xf] %vm890_vm3, %v1346_v41  ;;  %v1829_v32 = vpack.c.bf16 %v638_v5, %v635_v25  ;;  %v1347_v47 = vpack.c.bf16 %v638_v5, %v638_v5 }
 0x10e   : > { %894 = vst.msk [vmem:[%s1643_s16 + $0xc] sm:$0xf] %vm890_vm3, %v1349_v46  ;;  %v925_v6 = vunpack.c.l.bf16 %v1825_v4  ;;  %v926_v49 = vunpack.c.h.bf16 %v1825_v4 }
 0x10f   : > { %892 = vst.msk [vmem:[%s1643_s16 + $0x4] sm:$0xf] %vm890_vm3, %v1347_v47  ;;  %v923_v7 = vunpack.c.l.bf16 %v1829_v32  ;;  %v924_v8 = vunpack.c.h.bf16 %v1829_v32 }
 0x110   : > { %v959_v12 = vsel %vm955_vm4, %v925_v6, 0.0  ;;  %v961_v22 = vsel %vm955_vm4, %v926_v49, 0.0 }
 0x111   : > { %v956_v48 = vsel %vm955_vm4, %v923_v7, 0.0  ;;  %v957_v9 = vsel %vm955_vm4, %v924_v8, 0.0  ;;  %v1482_v37 = vpop.f32.mrb[4].mxu0 }
 0x112   : > { %v958_v10 = vadd.f32 %v957_v9, %v956_v48  ;;  %v1352_v11 = vpack.c.bf16 %v1482_v37, %v1482_v37  ;;  %v651_v50 = vpop.f32.mrb[5].mxu0 }
 0x113   : > { %v1350_v13 = vpack.c.bf16 %v651_v50, %v651_v50  ;;  %v1483_v14 = vpop.f32.mrb[6].mxu0 }
 0x114   : > { %v960_v38 = vadd.f32 %v959_v12, %v958_v10  ;;  %897 = vst.msk [vmem:[%s1643_s16 + $0x18] sm:$0xf] %vm890_vm3, %v1352_v11  ;;  %v1850_v51 = vpack.c.bf16 %v1483_v14, %v1482_v37  ;;  %v1353_v15 = vpack.c.bf16 %v1483_v14, %v1483_v14  ;;  %v654_v16 = vpop.f32.mrb[7].mxu0  ;;  %v1494_v17 = vpop.f32.mrb[0].mxu1 }
 0x115   : > { %895 = vst.msk [vmem:[%s1643_s16 + $0x10] sm:$0xf] %vm890_vm3, %v1350_v13  ;;  %v1854_v18 = vpack.c.bf16 %v654_v16, %v651_v50  ;;  %v1351_v19 = vpack.c.bf16 %v654_v16, %v654_v16  ;;  %v1364_v20 = vpack.c.bf16 %v1494_v17, %v1494_v17  ;;  %v699_v21 = vpop.f32.mrb[1].mxu1 }
 0x116   : > { %898 = vst.msk [vmem:[%s1643_s16 + $0x1c] sm:$0xf] %vm890_vm3, %v1353_v15  ;;  %v1362_v23 = vpack.c.bf16 %v699_v21, %v699_v21  ;;  %v1495_v26 = vpop.f32.mrb[2].mxu1  ;;  %v962_v33 = vadd.f32 %v961_v22, %v960_v38  ;;  %v929_v36 = vunpack.c.l.bf16 %v1850_v51  ;;  %v930_v52 = vunpack.c.h.bf16 %v1850_v51 }
 0x117   : > { %896 = vst.msk [vmem:[%s1643_s16 + $0x14] sm:$0xf] %vm890_vm3, %v1351_v19  ;;  %v927_v27 = vunpack.c.l.bf16 %v1854_v18  ;;  %v928_v28 = vunpack.c.h.bf16 %v1854_v18  ;;  %909 = vst.msk [vmem:[%s1643_s16 + $0x48] sm:$0xf] %vm890_vm3, %v1364_v20  ;;  %v1867_v29 = vpack.c.bf16 %v1495_v26, %v1494_v17  ;;  %v1365_v30 = vpack.c.bf16 %v1495_v26, %v1495_v26  ;;  %v702_v31 = vpop.f32.mrb[3].mxu1 }
 0x118   : > { %907 = vst.msk [vmem:[%s1643_s16 + $0x40] sm:$0xf] %vm890_vm3, %v1362_v23  ;;  %v1871_v34 = vpack.c.bf16 %v702_v31, %v699_v21  ;;  %v1363_v35 = vpack.c.bf16 %v702_v31, %v702_v31  ;;  %v967_v1 = vsel %vm955_vm4, %v929_v36, 0.0  ;;  %v969_v40 = vsel %vm955_vm4, %v930_v52, 0.0 }
 0x119   : > { %v963_v39 = vsel %vm955_vm4, %v927_v27, 0.0  ;;  %v1486_v44 = vpop.f32.mrb[8].mxu0  ;;  %910 = vst.msk [vmem:[%s1643_s16 + $0x4c] sm:$0xf] %vm890_vm3, %v1365_v30  ;;  %v965_v56 = vsel %vm955_vm4, %v928_v28, 0.0 }
 0x11a   : > { %v964_v53 = vadd.f32 %v963_v39, %v962_v33  ;;  %v1356_v54 = vpack.c.bf16 %v1486_v44, %v1486_v44  ;;  %v667_v55 = vpop.f32.mrb[9].mxu0  ;;  %908 = vst.msk [vmem:[%s1643_s16 + $0x44] sm:$0xf] %vm890_vm3, %v1363_v35 }
 0x11b   : > { %v1354_v57 = vpack.c.bf16 %v667_v55, %v667_v55  ;;  %v1487_v58 = vpop.f32.mrb[10].mxu0 }
 0x11c   : > { %v966_v59 = vadd.f32 %v965_v56, %v964_v53  ;;  %901 = vst.msk [vmem:[%s1643_s16 + $0x28] sm:$0xf] %vm890_vm3, %v1356_v54  ;;  %v1887_v61 = vpack.c.bf16 %v1487_v58, %v1486_v44  ;;  %v1357_v62 = vpack.c.bf16 %v1487_v58, %v1487_v58  ;;  %v670_v63 = vpop.f32.mrb[11].mxu0  ;;  %v1498_v0 = vpop.f32.mrb[4].mxu1 }
 0x11d   : > { %899 = vst.msk [vmem:[%s1643_s16 + $0x20] sm:$0xf] %vm890_vm3, %v1354_v57  ;;  %v1894_v42 = vpack.c.bf16 %v670_v63, %v667_v55  ;;  %v1355_v2 = vpack.c.bf16 %v670_v63, %v670_v63  ;;  %v1368_v45 = vpack.c.bf16 %v1498_v0, %v1498_v0  ;;  %v715_v60 = vpop.f32.mrb[5].mxu1 }
 0x11e   : > { %v968_v3 = vadd.f32 %v967_v1, %v966_v59  ;;  %902 = vst.msk [vmem:[%s1643_s16 + $0x2c] sm:$0xf] %vm890_vm3, %v1357_v62  ;;  %v1366_v24 = vpack.c.bf16 %v715_v60, %v715_v60  ;;  %v1499_v25 = vpop.f32.mrb[6].mxu1  ;;  %v933_v37 = vunpack.c.l.bf16 %v1887_v61  ;;  %v934_v50 = vunpack.c.h.bf16 %v1887_v61 }
 0x11f   : > { %900 = vst.msk [vmem:[%s1643_s16 + $0x24] sm:$0xf] %vm890_vm3, %v1355_v2  ;;  %v931_v41 = vunpack.c.l.bf16 %v1894_v42  ;;  %v932_v43 = vunpack.c.h.bf16 %v1894_v42  ;;  %913 = vst.msk [vmem:[%s1643_s16 + $0x58] sm:$0xf] %vm890_vm3, %v1368_v45  ;;  %v1907_v46 = vpack.c.bf16 %v1499_v25, %v1498_v0  ;;  %v1369_v5 = vpack.c.bf16 %v1499_v25, %v1499_v25  ;;  %v718_v47 = vpop.f32.mrb[7].mxu1 }
 0x120   : > { %v970_v48 = vadd.f32 %v969_v40, %v968_v3  ;;  %911 = vst.msk [vmem:[%s1643_s16 + $0x50] sm:$0xf] %vm890_vm3, %v1366_v24  ;;  %v1911_v9 = vpack.c.bf16 %v718_v47, %v715_v60  ;;  %v1367_v38 = vpack.c.bf16 %v718_v47, %v718_v47  ;;  %v975_v26 = vsel %vm955_vm4, %v933_v37, 0.0 }
 0x121   : > { %v971_v10 = vsel %vm955_vm4, %v931_v41, 0.0  ;;  %v1490_v11 = vpop.f32.mrb[12].mxu0  ;;  %914 = vst.msk [vmem:[%s1643_s16 + $0x5c] sm:$0xf] %vm890_vm3, %v1369_v5  ;;  %v973_v15 = vsel %vm955_vm4, %v932_v43, 0.0  ;;  %v977_v39 = vsel %vm955_vm4, %v934_v50, 0.0  ;;  %v939_v5 = vunpack.c.l.bf16 %v1871_v34 }
 0x122   : > { %v972_v12 = vadd.f32 %v971_v10, %v970_v48  ;;  %v1360_v13 = vpack.c.bf16 %v1490_v11, %v1490_v11  ;;  %v683_v14 = vpop.f32.mrb[13].mxu0  ;;  %912 = vst.msk [vmem:[%s1643_s16 + $0x54] sm:$0xf] %vm890_vm3, %v1367_v38 }
 0x123   : > { %v1358_v16 = vpack.c.bf16 %v683_v14, %v683_v14  ;;  %v1491_v17 = vpop.f32.mrb[14].mxu0 }
 0x124   : > { %v974_v19 = vadd.f32 %v973_v15, %v972_v12  ;;  %905 = vst.msk [vmem:[%s1643_s16 + $0x38] sm:$0xf] %vm890_vm3, %v1360_v13  ;;  %v1925_v20 = vpack.c.bf16 %v1491_v17, %v1490_v11  ;;  %v1361_v21 = vpack.c.bf16 %v1491_v17, %v1491_v17  ;;  %v686_v22 = vpop.f32.mrb[15].mxu0  ;;  %v1502_v23 = vpop.f32.mrb[8].mxu1 }
 0x125   : > { %903 = vst.msk [vmem:[%s1643_s16 + $0x30] sm:$0xf] %vm890_vm3, %v1358_v16  ;;  %v1934_v30 = vpack.c.bf16 %v686_v22, %v683_v14  ;;  %v1359_v31 = vpack.c.bf16 %v686_v22, %v686_v22  ;;  %v1372_v33 = vpack.c.bf16 %v1502_v23, %v1502_v23  ;;  %v731_v35 = vpop.f32.mrb[9].mxu1  ;;  %v940_v14 = vunpack.c.h.bf16 %v1871_v34 }
 0x126   : > { %v976_v44 = vadd.f32 %v975_v26, %v974_v19  ;;  %906 = vst.msk [vmem:[%s1643_s16 + $0x3c] sm:$0xf] %vm890_vm3, %v1361_v21  ;;  %v1370_v53 = vpack.c.bf16 %v731_v35, %v731_v35  ;;  %v1503_v54 = vpop.f32.mrb[10].mxu1  ;;  %v937_v0 = vunpack.c.l.bf16 %v1925_v20  ;;  %v938_v60 = vunpack.c.h.bf16 %v1925_v20 }
 0x127   : > { %904 = vst.msk [vmem:[%s1643_s16 + $0x34] sm:$0xf] %vm890_vm3, %v1359_v31  ;;  %v935_v55 = vunpack.c.l.bf16 %v1934_v30  ;;  %v936_v56 = vunpack.c.h.bf16 %v1934_v30  ;;  %917 = vst.msk [vmem:[%s1643_s16 + $0x68] sm:$0xf] %vm890_vm3, %v1372_v33  ;;  %v1947_v57 = vpack.c.bf16 %v1503_v54, %v1502_v23  ;;  %v1373_v58 = vpack.c.bf16 %v1503_v54, %v1503_v54  ;;  %v734_v59 = vpop.f32.mrb[11].mxu1 }
 0x128   : > { %v978_v62 = vadd.f32 %v977_v39, %v976_v44  ;;  %915 = vst.msk [vmem:[%s1643_s16 + $0x60] sm:$0xf] %vm890_vm3, %v1370_v53  ;;  %v1951_v63 = vpack.c.bf16 %v734_v59, %v731_v35  ;;  %v1371_v45 = vpack.c.bf16 %v734_v59, %v734_v59  ;;  %v983_v25 = vsel %vm955_vm4, %v937_v0, 0.0 }
 0x129   : > { %v979_v1 = vsel %vm955_vm4, %v935_v55, 0.0  ;;  %918 = vst.msk [vmem:[%s1643_s16 + $0x6c] sm:$0xf] %vm890_vm3, %v1373_v58  ;;  %v981_v40 = vsel %vm955_vm4, %v936_v56, 0.0  ;;  %v985_v13 = vsel %vm955_vm4, %v938_v60, 0.0  ;;  %v941_v22 = vunpack.c.l.bf16 %v1867_v29 }
 0x12a   : > { %v980_v2 = vadd.f32 %v979_v1, %v978_v62  ;;  %916 = vst.msk [vmem:[%s1643_s16 + $0x64] sm:$0xf] %vm890_vm3, %v1371_v45  ;;  %v987_v23 = vsel %vm955_vm4, %v939_v5, 0.0  ;;  %v942_v31 = vunpack.c.h.bf16 %v1867_v29  ;;  %v989_v33 = vsel %vm955_vm4, %v940_v14, 0.0 }
 0x12b   : > { %v991_v39 = vsel %vm955_vm4, %v941_v22, 0.0  ;;  %v943_v44 = vunpack.c.l.bf16 %v1911_v9  ;;  %v944_v58 = vunpack.c.h.bf16 %v1911_v9  ;;  %v945_v62 = vunpack.c.l.bf16 %v1907_v46 }
 0x12c   : > { %v982_v3 = vadd.f32 %v981_v40, %v980_v2  ;;  %v1506_v24 = vpop.f32.mrb[12].mxu1  ;;  %v993_v54 = vsel %vm955_vm4, %v942_v31, 0.0  ;;  %v946_v45 = vunpack.c.h.bf16 %v1907_v46 }
 0x12d   : > { %v1376_v47 = vpack.c.bf16 %v1506_v24, %v1506_v24  ;;  %v747_v48 = vpop.f32.mrb[13].mxu1  ;;  %v995_v1 = vsel %vm955_vm4, %v943_v44, 0.0  ;;  %v997_v40 = vsel %vm955_vm4, %v944_v58, 0.0 }
 0x12e   : > { %v984_v10 = vadd.f32 %v983_v25, %v982_v3  ;;  %v1374_v11 = vpack.c.bf16 %v747_v48, %v747_v48  ;;  %v1507_v12 = vpop.f32.mrb[14].mxu1  ;;  %v947_v25 = vunpack.c.l.bf16 %v1951_v63 }
 0x12f   : > { %921 = vst.msk [vmem:[%s1643_s16 + $0x78] sm:$0xf] %vm890_vm3, %v1376_v47  ;;  %v1975_v38 = vpack.c.bf16 %v1507_v12, %v1506_v24  ;;  %v1377_v15 = vpack.c.bf16 %v1507_v12, %v1507_v12  ;;  %v750_v16 = vpop.f32.mrb[15].mxu1  ;;  %v999_v24 = vsel %vm955_vm4, %v945_v62, 0.0  ;;  %v949_v12 = vunpack.c.l.bf16 %v1947_v57 }
 0x130   : > { %v986_v17 = vadd.f32 %v985_v13, %v984_v10  ;;  %919 = vst.msk [vmem:[%s1643_s16 + $0x70] sm:$0xf] %vm890_vm3, %v1374_v11  ;;  %v1979_v19 = vpack.c.bf16 %v750_v16, %v747_v48  ;;  %v1375_v21 = vpack.c.bf16 %v750_v16, %v750_v16  ;;  %v1001_v48 = vsel %vm955_vm4, %v946_v45, 0.0 }
 0x131   : > { %922 = vst.msk [vmem:[%s1643_s16 + $0x7c] sm:$0xf] %vm890_vm3, %v1377_v15  ;;  %v948_v10 = vunpack.c.h.bf16 %v1951_v63  ;;  %v1003_v13 = vsel %vm955_vm4, %v947_v25, 0.0  ;;  %v950_v16 = vunpack.c.h.bf16 %v1947_v57  ;;  %v954_v57 = vunpack.c.h.bf16 %v1975_v38 }
 0x132   : > { %v988_v26 = vadd.f32 %v987_v23, %v986_v17  ;;  %920 = vst.msk [vmem:[%s1643_s16 + $0x74] sm:$0xf] %vm890_vm3, %v1375_v21  ;;  %v1007_v23 = vsel %vm955_vm4, %v949_v12, 0.0  ;;  %v952_v63 = vunpack.c.h.bf16 %v1979_v19  ;;  %s1167_s16 = smul.f32 256.0, %s2097_s27 }
 0x133   : > { %v1005_v17 = vsel %vm955_vm4, %v948_v10, 0.0 }
 0x134   : > { %v990_v35 = vadd.f32 %v989_v33, %v988_v26  ;;  %v951_v26 = vunpack.c.l.bf16 %v1979_v19 }
 0x136   : > { %v992_v53 = vadd.f32 %v991_v39, %v990_v35  ;;  %v1009_v35 = vsel %vm955_vm4, %v950_v16, 0.0 }
 0x138   : > { %v994_v59 = vadd.f32 %v993_v54, %v992_v53  ;;  %v953_v53 = vunpack.c.l.bf16 %v1975_v38  ;;  %v1011_v54 = vsel %vm955_vm4, %v951_v26, 0.0 }
 0x13a   : > { %v996_v2 = vadd.f32 %v995_v1, %v994_v59  ;;  %v1013_v1 = vsel %vm955_vm4, %v952_v63, 0.0 }
 0x13c   : > { %v998_v3 = vadd.f32 %v997_v40, %v996_v2  ;;  %v1015_v40 = vsel %vm955_vm4, %v953_v53, 0.0 }
 0x13e   : > { %v1000_v47 = vadd.f32 %v999_v24, %v998_v3  ;;  %v1017_v24 = vsel %vm955_vm4, %v954_v57, 0.0 }
 0x140   : > { %v1002_v11 = vadd.f32 %v1001_v48, %v1000_v47 }
 0x142   : > { %v1004_v15 = vadd.f32 %v1003_v13, %v1002_v11 }
 0x144   : > { %v1006_v21 = vadd.f32 %v1005_v17, %v1004_v15 }
 0x146   : > { %v1008_v33 = vadd.f32 %v1007_v23, %v1006_v21 }
 0x148   : > { %v1010_v39 = vadd.f32 %v1009_v35, %v1008_v33 }
 0x14a   : > { %v1012_v59 = vadd.f32 %v1011_v54, %v1010_v39 }
 0x14c   : > { %v1014_v2 = vadd.f32 %v1013_v1, %v1012_v59 }
 0x14e   : > { %v1016_v3 = vadd.f32 %v1015_v40, %v1014_v2 }
 0x150   : > { %v1018_v47 = vadd.f32 %v1017_v24, %v1016_v3 }
 0x152   : > { %v1019_v19 = vrot.slane %v1018_v47, 4 }
 0x154   : > { %v1020_v48 = vadd.f32 %v1019_v19, %v1018_v47  ;;  %v1162_v19 = vld [vmem:[%s2234_s7] sm:$0x1] }
 0x156   : > { %v1021_v11 = vrot.slane %v1020_v48, 2 }
 0x158   : > { %v1022_v13 = vadd.f32 %v1021_v11, %v1020_v48 }
 0x15a   : > { %v1023_v15 = vrot.slane %v1022_v13, 1 }
 0x15c   : > { %v1024_v17 = vadd.f32 %v1023_v15, %v1022_v13  ;;  %v1168_v13 = vstv %s1167_s16 }
 0x15e   : > { %v2031_v21 = vmul.f32 0.00390625, %v1024_v17 }
 0x160   : > { %v2036_v23 = vsub.f32 %v935_v55, %v2031_v21  ;;  %v2041_v33 = vsub.f32 %v936_v56, %v2031_v21  ;;  %v2046_v35 = vsub.f32 %v937_v0, %v2031_v21  ;;  %v2051_v39 = vsub.f32 %v938_v60, %v2031_v21 }
 0x161   : > { %v1026_v55 = vsub.f32 %v923_v7, %v2031_v21  ;;  %v2057_v54 = vsub.f32 %v944_v58, %v2031_v21  ;;  %v2060_v30 = vsub.f32 %v947_v25, %v2031_v21  ;;  %v2063_v56 = vsub.f32 %v948_v10, %v2031_v21 }
 0x162   : > { %v2066_v0 = vsub.f32 %v949_v12, %v2031_v21  ;;  %v2069_v20 = vsub.f32 %v950_v16, %v2031_v21  ;;  %v1027_v60 = vsub.f32 %v924_v8, %v2031_v21  ;;  %v2075_v7 = vsub.f32 %v951_v26, %v2031_v21 }
 0x163   : > { %v2078_v58 = vsub.f32 %v952_v63, %v2031_v21  ;;  %v2081_v25 = vsub.f32 %v953_v53, %v2031_v21  ;;  %v1028_v10 = vsub.f32 %v925_v6, %v2031_v21  ;;  %v1029_v12 = vsub.f32 %v926_v49, %v2031_v21 }
 0x164   : > { %v1058_v16 = vmul.f32 %v1026_v55, %v1026_v55  ;;  %v1059_v32 = vmul.f32 %v1027_v60, %v1027_v60  ;;  %v1030_v8 = vsub.f32 %v927_v27, %v2031_v21  ;;  %v1031_v63 = vsub.f32 %v928_v28, %v2031_v21 }
 0x165   : > { %v1060_v26 = vmul.f32 %v1028_v10, %v1028_v10  ;;  %v1061_v53 = vmul.f32 %v1029_v12, %v1029_v12  ;;  %v1032_v4 = vsub.f32 %v929_v36, %v2031_v21  ;;  %v1033_v18 = vsub.f32 %v930_v52, %v2031_v21 }
 0x166   : > { %v1090_v59 = vsel %vm955_vm4, %v1058_v16, 0.0  ;;  %v1091_v6 = vsel %vm955_vm4, %v1059_v32, 0.0  ;;  %v1062_v49 = vmul.f32 %v1030_v8, %v1030_v8  ;;  %v1063_v28 = vmul.f32 %v1031_v63, %v1031_v63 }
 0x167   : > { %v1092_v1 = vadd.f32 %v1091_v6, %v1090_v59  ;;  %v1093_v27 = vsel %vm955_vm4, %v1060_v26, 0.0  ;;  %v1095_v40 = vsel %vm955_vm4, %v1061_v53, 0.0  ;;  %v1034_v24 = vsub.f32 %v931_v41, %v2031_v21 }
 0x168   : > { %v1064_v47 = vmul.f32 %v1032_v4, %v1032_v4  ;;  %v1097_v36 = vsel %vm955_vm4, %v1062_v49, 0.0  ;;  %v1035_v51 = vsub.f32 %v932_v43, %v2031_v21  ;;  %v1065_v52 = vmul.f32 %v1033_v18, %v1033_v18 }
 0x169   : > { %v1094_v2 = vadd.f32 %v1093_v27, %v1092_v1  ;;  %v1099_v11 = vsel %vm955_vm4, %v1063_v28, 0.0  ;;  %v2120_v17 = vsub.f32 %v2031_v21, %v1162_v19  ;;  %v1036_v41 = vsub.f32 %v933_v37, %v2031_v21 }
 0x16a   : > { %v1066_v55 = vmul.f32 %v1034_v24, %v1034_v24  ;;  %v1101_v60 = vsel %vm955_vm4, %v1064_v47, 0.0  ;;  %v1037_v42 = vsub.f32 %v934_v50, %v2031_v21  ;;  %v1067_v43 = vmul.f32 %v1035_v51, %v1035_v51 }
 0x16b   : > { %v1096_v3 = vadd.f32 %v1095_v40, %v1094_v2  ;;  %v1169_v12 = vmul.f32 %v1168_v13, %v2120_v17  ;;  %v1103_v16 = vsel %vm955_vm4, %v1065_v52, 0.0  ;;  %v1068_v26 = vmul.f32 %v1036_v41, %v1036_v41 }
 0x16c   : > { %v1105_v63 = vsel %vm955_vm4, %v1066_v55, 0.0  ;;  %v1069_v53 = vmul.f32 %v1037_v42, %v1037_v42  ;;  %v1107_v59 = vsel %vm955_vm4, %v1067_v43, 0.0  ;;  %v1070_v50 = vmul.f32 %v2036_v23, %v2036_v23 }
 0x16d   : > { %v1098_v48 = vadd.f32 %v1097_v36, %v1096_v3  ;;  %v1170_v8 = vadd.f32 %v1169_v12, %v1162_v19  ;;  %v1109_v6 = vsel %vm955_vm4, %v1068_v26, 0.0  ;;  %v1071_v4 = vmul.f32 %v2041_v33, %v2041_v33 }
 0x16e   : > { %v1111_v49 = vsel %vm955_vm4, %v1069_v53, 0.0  ;;  %v1042_v2 = vsub.f32 %v939_v5, %v2031_v21  ;;  %v1072_v18 = vmul.f32 %v2046_v35, %v2046_v35  ;;  %v1113_v28 = vsel %vm955_vm4, %v1070_v50, 0.0 }
 0x16f   : > { %v1100_v15 = vadd.f32 %v1099_v11, %v1098_v48  ;;  %1172 = vst.msk [vmem:[%s2234_s7] sm:$0x1] %vm1171_vm5, %v1170_v8  ;;  %v1043_v23 = vsub.f32 %v940_v14, %v2031_v21  ;;  %v1073_v33 = vmul.f32 %v2051_v39, %v2051_v39  ;;  %v1115_v3 = vsel %vm955_vm4, %v1071_v4, 0.0 }
 0x170   : > { %v1044_v5 = vsub.f32 %v941_v22, %v2031_v21  ;;  %v1074_v47 = vmul.f32 %v1042_v2, %v1042_v2  ;;  %v1117_v35 = vsel %vm955_vm4, %v1072_v18, 0.0  ;;  %v1045_v19 = vsub.f32 %v942_v31, %v2031_v21 }
 0x171   : > { %v1102_v10 = vadd.f32 %v1101_v60, %v1100_v15  ;;  %v1075_v34 = vmul.f32 %v1043_v23, %v1043_v23  ;;  %v1119_v14 = vsel %vm955_vm4, %v1073_v33, 0.0  ;;  %v1046_v39 = vsub.f32 %v943_v44, %v2031_v21 }
 0x172   : > { %v1076_v51 = vmul.f32 %v1044_v5, %v1044_v5  ;;  %v1121_v52 = vsel %vm955_vm4, %v1074_v47, 0.0  ;;  %v1077_v11 = vmul.f32 %v1045_v19, %v1045_v19  ;;  %v1048_v29 = vsub.f32 %v945_v62, %v2031_v21  ;;  %v1173_v19 = vld [vmem:[%s2235_s8] sm:$0x1] }
 0x173   : > { %v1104_v32 = vadd.f32 %v1103_v16, %v1102_v10  ;;  %v1123_v13 = vsel %vm955_vm4, %v1075_v34, 0.0  ;;  %v1078_v31 = vmul.f32 %v1046_v39, %v1046_v39  ;;  %v1049_v9 = vsub.f32 %v946_v45, %v2031_v21 }
 0x174   : > { %v1125_v41 = vsel %vm955_vm4, %v1076_v51, 0.0  ;;  %v1079_v44 = vmul.f32 %v2057_v54, %v2057_v54  ;;  %v1127_v60 = vsel %vm955_vm4, %v1077_v11, 0.0  ;;  %v1080_v12 = vmul.f32 %v1048_v29, %v1048_v29 }
 0x175   : > { %v1106_v37 = vadd.f32 %v1105_v63, %v1104_v32  ;;  %v1129_v42 = vsel %vm955_vm4, %v1078_v31, 0.0  ;;  %v1081_v16 = vmul.f32 %v1049_v9, %v1049_v9  ;;  %v1082_v8 = vmul.f32 %v2060_v30, %v2060_v30 }
 0x176   : > { %v1131_v62 = vsel %vm955_vm4, %v1079_v44, 0.0  ;;  %v1133_v46 = vsel %vm955_vm4, %v1080_v12, 0.0  ;;  %v1083_v54 = vmul.f32 %v2063_v56, %v2063_v56  ;;  %v1087_v4 = vmul.f32 %v2078_v58, %v2078_v58 }
 0x177   : > { %v1108_v61 = vadd.f32 %v1107_v59, %v1106_v37  ;;  %v1135_v26 = vsel %vm955_vm4, %v1081_v16, 0.0  ;;  %v1084_v37 = vmul.f32 %v2066_v0, %v2066_v0  ;;  %v1137_v53 = vsel %vm955_vm4, %v1082_v8, 0.0 }
 0x178   : > { %v1139_v30 = vsel %vm955_vm4, %v1083_v54, 0.0  ;;  %v1147_v18 = vsel %vm955_vm4, %v1087_v4, 0.0  ;;  %v1180_v5 = vstv %s1179_s22 }
 0x179   : > { %v1110_v1 = vadd.f32 %v1109_v6, %v1108_v61  ;;  %v1085_v61 = vmul.f32 %v2069_v20, %v2069_v20  ;;  %v1086_v6 = vmul.f32 %v2075_v7, %v2075_v7  ;;  %v1141_v56 = vsel %vm955_vm4, %v1084_v37, 0.0 }
 0x17a   : > { %v1057_v20 = vsub.f32 %v954_v57, %v2031_v21 }
 0x17b   : > { %v1112_v27 = vadd.f32 %v1111_v49, %v1110_v1  ;;  %v1143_v0 = vsel %vm955_vm4, %v1085_v61, 0.0  ;;  %v1145_v7 = vsel %vm955_vm4, %v1086_v6, 0.0 }
 0x17d   : > { %v1114_v40 = vadd.f32 %v1113_v28, %v1112_v27  ;;  %v1088_v27 = vmul.f32 %v2081_v25, %v2081_v25  ;;  %v1089_v28 = vmul.f32 %v1057_v20, %v1057_v20  ;;  %v1174_v25 = vmul.f32 %v2120_v17, %v2120_v17 }
 0x17f   : > { %v1116_v24 = vadd.f32 %v1115_v3, %v1114_v40  ;;  %v1149_v58 = vsel %vm955_vm4, %v1088_v27, 0.0  ;;  %v1151_v33 = vsel %vm955_vm4, %v1089_v28, 0.0 }
 0x181   : > { %v1118_v36 = vadd.f32 %v1117_v35, %v1116_v24 }
 0x183   : > { %v1120_v48 = vadd.f32 %v1119_v14, %v1118_v36  ;;  %v1181_v36 = vmul.f32 %v1180_v5, %v1174_v25 }
 0x185   : > { %v1122_v22 = vadd.f32 %v1121_v52, %v1120_v48 }
 0x187   : > { %v1124_v15 = vadd.f32 %v1123_v13, %v1122_v22 }
 0x189   : > { %v1126_v55 = vadd.f32 %v1125_v41, %v1124_v15 }
 0x18b   : > { %v1128_v10 = vadd.f32 %v1127_v60, %v1126_v55 }
 0x18d   : > { %v1130_v43 = vadd.f32 %v1129_v42, %v1128_v10 }
 0x18f   : > { %v1132_v32 = vadd.f32 %v1131_v62, %v1130_v43 }
 0x191   : > { %v1134_v45 = vadd.f32 %v1133_v46, %v1132_v32 }
 0x193   : > { %v1136_v63 = vadd.f32 %v1135_v26, %v1134_v45 }
 0x195   : > { %v1138_v59 = vadd.f32 %v1137_v53, %v1136_v63 }
 0x197   : > { %v1140_v50 = vadd.f32 %v1139_v30, %v1138_v59 }
 0x199   : > { %v1142_v1 = vadd.f32 %v1141_v56, %v1140_v50 }
 0x19b   : > { %v1144_v49 = vadd.f32 %v1143_v0, %v1142_v1 }
 0x19d   : > { %v1146_v2 = vadd.f32 %v1145_v7, %v1144_v49 }
 0x19f   : > { %v1148_v40 = vadd.f32 %v1147_v18, %v1146_v2 }
 0x1a1   : > { %v1150_v23 = vadd.f32 %v1149_v58, %v1148_v40 }
 0x1a3   : > { %v1152_v3 = vadd.f32 %v1151_v33, %v1150_v23 }
 0x1a5   : > { %v1153_v38 = vrot.slane %v1152_v3, 4 }
 0x1a7   : > { %v1154_v57 = vadd.f32 %v1153_v38, %v1152_v3 }
 0x1a9   : > { %v1155_v21 = vrot.slane %v1154_v57, 2 }
 0x1ab   : > { %v1156_v24 = vadd.f32 %v1155_v21, %v1154_v57 }
 0x1ad   : > { %v1157_v47 = vrot.slane %v1156_v24, 1 }
 0x1af   : > { %v1158_v35 = vadd.f32 %v1157_v47, %v1156_v24 }
 0x1b1   : > { %v1182_v34 = vadd.f32 %v1181_v36, %v1158_v35 }
 0x1b3   : > { %v1183_v14 = vadd.f32 %v1182_v34, %v1173_v19 }
 0x1b5   : > { %1184 = vst.msk [vmem:[%s2235_s8] sm:$0x1] %vm1171_vm5, %v1183_v14 }
 0x1b6 PF: > { %s19_s29 = sadd.s32 1, %s1565_s29   ;;  %s2236_s27 = smov %s1561_s28 }
 0x1b7   : > { %p16_p6 = scmp.ge.s32.totalorder %s19_s29, 4   ;;  %s2237_s28 = smov %s2239_s30 }
 0x1b9   :  { %18 = sbr.rel (!%p16_p6) target bundleno = 2 (0x2), region = 94 }

// kernel: _residual_block2_impl.5
= control target key start
LH: loop header
LB: loop body
LE: loop exit
PB: predicated region body
PF: predicated region fallthrough
CT: control target
= control target key end

     0   :  { %s8737_s25 = smov 0   ;;  %s11705_s0 = inlined_call_operand.vmem [shape: bf16[2,256,4], index: 0, kind: input, shape index: {}]   ;;  %s11706_s1 = inlined_call_operand.vmem [shape: f32[1,4], index: 1, kind: input, shape index: {}]   ;;  %s11707_s2 = inlined_call_operand.vmem [shape: f32[1,4], index: 2, kind: input, shape index: {}]   ;;  %s11708_s3 = inlined_call_operand.vmem [shape: f32[1,4], index: 3, kind: input, shape index: {}]   ;;  %s11709_s4 = inlined_call_operand.vmem [shape: f32[1,4], index: 4, kind: input, shape index: {}]   ;;  %s11710_s5 = inlined_call_operand.vmem [shape: bf16[9,4,4], index: 5, kind: input, shape index: {}]   ;;  %s11711_s6 = inlined_call_operand.vmem [shape: bf16[2,256,4], index: 6, kind: input, shape index: {}]   ;;  %s11712_s7 = inlined_call_operand.vmem [shape: bf16[4,16], index: 7, kind: input, shape index: {}]   ;;  %s11713_s8 = inlined_call_operand.vmem [shape: bf16[2,256,4], index: 8, kind: output, shape index: {0}]   ;;  %s11714_s9 = inlined_call_operand.vmem [shape: f32[1,4], index: 9, kind: output, shape index: {1}]   ;;  %s11715_s10 = inlined_call_operand.vmem [shape: f32[1,4], index: 10, kind: output, shape index: {2}]   ;;  %s11716_s11 = inlined_call_operand.vmem [shape: bf16[2,256,16], index: 11, kind: output, shape index: {3}]   ;;  %s11717_s12 = inlined_call_operand.vmem [shape: f32[1,16], index: 12, kind: output, shape index: {4}]   ;;  %s11718_s13 = inlined_call_operand.vmem [shape: f32[1,16], index: 13, kind: output, shape index: {5}]  }
   0x1 LB: > { %s8743_s26 = sadd.s32 4294967295, %s8663_s25   ;;  %p7089_p0 = scmp.ge.s32.totalorder %s8663_s25, 1  ;;  %s8663_s25 = sphi %s8737_s25, %s24_s25  }
   0x2   : > { %p388_p1 = scmp.lt.s32.totalorder %s8663_s25, 3 }
   0x4   : > { %p389_p2 = pnand %p7089_p0, %p388_p1 }
   0x6   : > { %392 = sbr.rel (%p389_p2) target bundleno = 923 (0x39b), region = 52 }
   0xd   : > { %p442_p3 = scmp.lt.s32.totalorder %s8743_s26, 1  ;;  %p7098_p4 = scmp.ne.s32.totalorder %s8743_s26, 0 }
   0xe   : > { %vm467_vm0 = vcmask (!%p7098_p4), 27648   ;;  %vm470_vm1 = vcmask (!%p7098_p4), 24576   ;;  %v8665_v0 = vmov (!%p7098_p4), 0   ;;  %v8666_v1 = vmov (!%p7098_p4), 0.0  }
   0xf   : > { %s443_s27 = scalar_select %p442_p3, %s8743_s26, 1 }
  0x10   : > { %466 = sbr.rel (%p7098_p4) target bundleno = 45 (0x2d), region = 56  ;;  %468 = vst.msk [vmem:[#allocation2] sm:$0xf] (!%p7098_p4), %vm467_vm0, %v8665_v0  ;;  %469 = vst.msk [vmem:[#allocation2 + $0x4] sm:$0xf] (!%p7098_p4), %vm467_vm0, %v8665_v0  ;;  %vm525_vm2 = vcmask (!%p7098_p4), 122880  }
  0x11   : > { %s7573_s28 = sshll.u32 %s443_s27, 7  ;;  %472 = vst.msk [vmem:[#allocation2 + $0xc] sm:$0xf] (!%p7098_p4), %vm467_vm0, %v8665_v0  ;;  %473 = vst.msk [vmem:[#allocation2 + $0x10] sm:$0xf] (!%p7098_p4), %vm467_vm0, %v8665_v0 }
  0x12   : > { %s8752_s14 = scalar_lea.vmem %s11705_s0, %s7573_s28  ;;  %s8757_s17 = scalar_lea.vmem %s11711_s6, %s7573_s28  ;;  %475 = vst.msk [vmem:[#allocation2 + $0x18] sm:$0xf] (!%p7098_p4), %vm467_vm0, %v8665_v0  ;;  %476 = vst.msk [vmem:[#allocation2 + $0x1c] sm:$0xf] (!%p7098_p4), %vm467_vm0, %v8665_v0 }
  0x13   : > { %s8762_s20 = scalar_lea.vmem %s11713_s8, %s7573_s28  ;;  %s8767_s23 = scalar_lea.vmem %s11716_s11, %s7573_s28  ;;  %478 = vst.msk [vmem:[#allocation2 + $0x24] sm:$0xf] (!%p7098_p4), %vm467_vm0, %v8665_v0  ;;  %479 = vst.msk [vmem:[#allocation2 + $0x28] sm:$0xf] (!%p7098_p4), %vm467_vm0, %v8665_v0 }
  0x14   : > { %481 = vst.msk [vmem:[#allocation2 + $0x30] sm:$0xf] (!%p7098_p4), %vm467_vm0, %v8665_v0  ;;  %482 = vst.msk [vmem:[#allocation2 + $0x34] sm:$0xf] (!%p7098_p4), %vm467_vm0, %v8665_v0 }
  0x15   : > { %484 = vst.msk [vmem:[#allocation2 + $0x3c] sm:$0xf] (!%p7098_p4), %vm467_vm0, %v8665_v0  ;;  %485 = vst.msk [vmem:[#allocation2 + $0x40] sm:$0xf] (!%p7098_p4), %vm467_vm0, %v8665_v0 }
  0x16   : > { %487 = vst.msk [vmem:[#allocation2 + $0x48] sm:$0xf] (!%p7098_p4), %vm467_vm0, %v8665_v0  ;;  %488 = vst.msk [vmem:[#allocation2 + $0x4c] sm:$0xf] (!%p7098_p4), %vm467_vm0, %v8665_v0 }
  0x17   : > { %490 = vst.msk [vmem:[#allocation2 + $0x54] sm:$0xf] %vm467_vm0, %v8665_v0  ;;  %491 = vst.msk [vmem:[#allocation2 + $0x58] sm:$0xf] %vm467_vm0, %v8665_v0 }
  0x18   : > { %493 = vst.msk [vmem:[#allocation2 + $0x60] sm:$0xf] %vm467_vm0, %v8665_v0  ;;  %494 = vst.msk [vmem:[#allocation2 + $0x64] sm:$0xf] %vm467_vm0, %v8665_v0 }
  0x19   : > { %496 = vst.msk [vmem:[#allocation2 + $0x6c] sm:$0xf] %vm467_vm0, %v8665_v0  ;;  %497 = vst.msk [vmem:[#allocation2 + $0x70] sm:$0xf] %vm467_vm0, %v8665_v0 }
  0x1a   : > { %499 = vst.msk [vmem:[#allocation2 + $0x78] sm:$0xf] %vm467_vm0, %v8665_v0  ;;  %500 = vst.msk [vmem:[#allocation2 + $0x7c] sm:$0xf] %vm467_vm0, %v8665_v0 }
  0x1b   : > { %502 = vst.msk [vmem:[#allocation2 + $0x84] sm:$0xf] %vm467_vm0, %v8665_v0  ;;  %503 = vst.msk [vmem:[#allocation2 + $0x88] sm:$0xf] %vm467_vm0, %v8665_v0 }
  0x1c   : > { %505 = vst.msk [vmem:[#allocation2 + $0x90] sm:$0xf] %vm467_vm0, %v8665_v0  ;;  %506 = vst.msk [vmem:[#allocation2 + $0x94] sm:$0xf] %vm467_vm0, %v8665_v0 }
  0x1d   : > { %508 = vst.msk [vmem:[#allocation2 + $0x9c] sm:$0xf] %vm467_vm0, %v8665_v0  ;;  %509 = vst.msk [vmem:[#allocation2 + $0xa0] sm:$0xf] %vm467_vm0, %v8665_v0 }
  0x1e   : > { %511 = vst.msk [vmem:[#allocation2 + $0xa8] sm:$0xf] %vm467_vm0, %v8665_v0  ;;  %512 = vst.msk [vmem:[#allocation2 + $0xac] sm:$0xf] %vm467_vm0, %v8665_v0 }
  0x1f   : > { %514 = vst.msk [vmem:[#allocation2 + $0xb4] sm:$0xf] %vm467_vm0, %v8665_v0  ;;  %515 = vst.msk [vmem:[#allocation2 + $0xb8] sm:$0xf] %vm467_vm0, %v8665_v0 }
  0x20   : > { %517 = vst.msk [vmem:[#allocation2 + $0xc0] sm:$0xf] %vm467_vm0, %v8665_v0  ;;  %518 = vst.msk [vmem:[#allocation2 + $0xc4] sm:$0xf] %vm467_vm0, %v8665_v0 }
  0x21   : > { %520 = vst.msk [vmem:[#allocation2 + $0xcc] sm:$0xf] %vm467_vm0, %v8665_v0  ;;  %521 = vst.msk [vmem:[#allocation2 + $0xd0] sm:$0xf] %vm467_vm0, %v8665_v0 }
  0x22   : > { %471 = vst.msk [vmem:[#allocation2 + $0x8] sm:$0x1] %vm470_vm1, %v8665_v0  ;;  %474 = vst.msk [vmem:[#allocation2 + $0x14] sm:$0x1] %vm470_vm1, %v8665_v0 }
  0x23   : > { %477 = vst.msk [vmem:[#allocation2 + $0x20] sm:$0x1] %vm470_vm1, %v8665_v0  ;;  %480 = vst.msk [vmem:[#allocation2 + $0x2c] sm:$0x1] %vm470_vm1, %v8665_v0 }
  0x24   : > { %483 = vst.msk [vmem:[#allocation2 + $0x38] sm:$0x1] %vm470_vm1, %v8665_v0  ;;  %486 = vst.msk [vmem:[#allocation2 + $0x44] sm:$0x1] %vm470_vm1, %v8665_v0 }
  0x25   : > { %489 = vst.msk [vmem:[#allocation2 + $0x50] sm:$0x1] %vm470_vm1, %v8665_v0  ;;  %492 = vst.msk [vmem:[#allocation2 + $0x5c] sm:$0x1] %vm470_vm1, %v8665_v0 }
  0x26   : > { %495 = vst.msk [vmem:[#allocation2 + $0x68] sm:$0x1] %vm470_vm1, %v8665_v0  ;;  %498 = vst.msk [vmem:[#allocation2 + $0x74] sm:$0x1] %vm470_vm1, %v8665_v0 }
  0x27   : > { %501 = vst.msk [vmem:[#allocation2 + $0x80] sm:$0x1] %vm470_vm1, %v8665_v0  ;;  %504 = vst.msk [vmem:[#allocation2 + $0x8c] sm:$0x1] %vm470_vm1, %v8665_v0 }
  0x28   : > { %507 = vst.msk [vmem:[#allocation2 + $0x98] sm:$0x1] %vm470_vm1, %v8665_v0  ;;  %510 = vst.msk [vmem:[#allocation2 + $0xa4] sm:$0x1] %vm470_vm1, %v8665_v0 }
  0x29   : > { %513 = vst.msk [vmem:[#allocation2 + $0xb0] sm:$0x1] %vm470_vm1, %v8665_v0  ;;  %516 = vst.msk [vmem:[#allocation2 + $0xbc] sm:$0x1] %vm470_vm1, %v8665_v0 }
  0x2a   : > { %519 = vst.msk [vmem:[#allocation2 + $0xc8] sm:$0x1] %vm470_vm1, %v8665_v0  ;;  %522 = vst.msk [vmem:[#allocation2 + $0xd4] sm:$0x1] %vm470_vm1, %v8665_v0 }
  0x2b   : > { %523 = vst.msk [vmem:[%s11714_s9] sm:$0x1] %vm470_vm1, %v8666_v1  ;;  %524 = vst.msk [vmem:[%s11715_s10] sm:$0x1] %vm470_vm1, %v8666_v1 }
  0x2c   : > { %526 = vst.msk [vmem:[%s11717_s12] sm:$0x1] %vm525_vm2, %v8666_v1  ;;  %527 = vst.msk [vmem:[%s11718_s13] sm:$0x1] %vm525_vm2, %v8666_v1 }
  0x2d PF: > { %v7131_v2 = vld [vmem:[%s11710_s5 + $0x2] sm:$0x3]  ;;  %vm1783_vm3 = vcmask 1041408   ;;  %v7278_v3 = vld [vmem:[%s11710_s5 + $0x8] sm:$0x3]  ;;  %v603_v27 = vlaneseq  ;;  %vm1734_vm7 = vcmask 31744  }
  0x2e   : > { %8518 = vmatprep.subr.msk.bf16.mxu1 %vm1783_vm3, %v7131_v2  ;;  %8522 = vmatprep.subr.msk.bf16.mxu0 %vm1783_vm3, %v7278_v3  ;;  %v1785_v4 = vsel %vm1783_vm3, %v7131_v2, 0  ;;  %v3586_v5 = vsel %vm1783_vm3, %v7278_v3, 0  ;;  %v1248_v6 = vld [vmem:[#allocation2] sm:$0xf]  ;;  %v1249_v7 = vld [vmem:[#allocation2 + $0x4] sm:$0xf] }
  0x2f   : > { %7923 = vmatpush3.bf16.msra.mxu1 %v1785_v4  ;;  %8059 = vmatpush3.bf16.msra.mxu0 %v3586_v5  ;;  %v1281_v8 = vld [vmem:[#allocation2 + $0x8] sm:$0x1]  ;;  %v1301_v9 = vshrl.u32 %v1248_v6, 16  ;;  %v1304_v10 = vshll.u32 %v1248_v6, 16  ;;  %v1310_v11 = vshll.u32 %v1249_v7, 16  ;;  %v1314_v12 = vshrl.u32 %v1249_v7, 16 }
  0x30   : > { %v528_v13 = vld [vmem:[%s11709_s4] sm:$0x1]  ;;  %vm1297_vm4 = vsmask.f32 3328  ;;  %vm1298_vm5 = vsmask.f32 7440 }
  0x31   : > { %v1320_v14 = vshll.u32 %v1281_v8, 16  ;;  %v529_v15 = vmul.f32 0.001953125, %v528_v13  ;;  %v1303_v16 = vrot.slane %v1301_v9, 4  ;;  %v1306_v17 = vrot.slane %v1304_v10, 5  ;;  %vm8851_vm6 = vmor %vm1297_vm4, %vm1298_vm5  ;;  %v7327_v28 = vld [vmem:[%s11710_s5 + $0xa] sm:$0x3] }
  0x32   : > { %v1312_v18 = vrot.slane %v1310_v11, 5  ;;  %v1316_v19 = vrot.slane %v1314_v12, 4  ;;  %8523 = vmatprep.subr.msk.bf16.mxu0 %vm1783_vm3, %v7327_v28  ;;  %v1280_v31 = vld [vmem:[%s11710_s5] sm:$0x3]  ;;  %v604_v33 = vshrl.u32 %v603_v27, 7  ;;  %v7737_v35 = vld [vmem:[%s8752_s14 + $0x8] sm:$0xff]  }
  0x33   : > { %v531_v20 = vadd.f32 1e-05, %v529_v15  ;;  %v1307_v21 = vor.u32 %v1306_v17, %v1303_v16  ;;  %v1322_v23 = vrot.slane %v1320_v14, 5  ;;  %8519 = vmatprep.subr.msk.bf16.mxu1 %vm1783_vm3, %v1280_v31  ;;  %v7674_v34 = vld [vmem:[%s8752_s14] sm:$0xff]   ;;  %v7738_v37 = vld [vmem:[%s8752_s14 + $0x10] sm:$0xff]   ;;  %v7739_v38 = vld [vmem:[%s8752_s14 + $0x18] sm:$0xff]   ;;  %v7679_v47 = vunpack.c.l.bf16 %v7737_v35 }
  0x34   : > { %v1317_v22 = vor.u32 %v1316_v19, %v1312_v18  ;;  %v530_v36 = vld [vmem:[%s11706_s1] sm:$0x1]  ;;  %v7675_v40 = vunpack.c.l.bf16 %v7674_v34  ;;  %v7676_v41 = vunpack.c.h.bf16 %v7674_v34  ;;  %v605_v42 = vsub.s32 0, %v604_v33  ;;  %v8880_v44 = vld [vmem:[%s8752_s14 + $0x28] sm:$0xff]   ;;  %v8892_v51 = vld [vmem:[%s8752_s14 + $0x30] sm:$0xff]  }
  0x35   : > { %8588 = vrsqrt.f32 %v531_v20  ;;  %v1308_v25 = vrot.slane %v1307_v21, 4  ;;  %v535_v39 = vld [vmem:[%s11708_s3] sm:$0x1]  ;;  %v7680_v48 = vunpack.c.h.bf16 %v7737_v35  ;;  %v8886_v49 = vsel %vm1783_vm3, %v7327_v28, 0  ;;  %v8895_v52 = vld [vmem:[%s8752_s14 + $0x38] sm:$0xff]   ;;  %v8902_v62 = vld [vmem:[%s8752_s14 + $0x48] sm:$0xff]  }
  0x36   : > { %v1318_v26 = vrot.slane %v1317_v22, 4  ;;  %v7740_v43 = vld [vmem:[%s8752_s14 + $0x20] sm:$0xff]   ;;  %v8889_v50 = vsel %vm1783_vm3, %v1280_v31, 0  ;;  %v7683_v55 = vunpack.c.l.bf16 %v7738_v37  ;;  %v7684_v56 = vunpack.c.h.bf16 %v7738_v37 }
  0x37   : > { %v1313_v29 = vsel %vm8851_vm6, %v1308_v25, %v1312_v18  ;;  %v534_v46 = vld [vmem:[%s11707_s2] sm:$0x1]  ;;  %v7687_v57 = vunpack.c.l.bf16 %v7739_v38  ;;  %v7688_v58 = vunpack.c.h.bf16 %v7739_v38  ;;  %v7691_v59 = vunpack.c.l.bf16 %v7740_v43 }
  0x38   : > { %v1323_v30 = vsel %vm8851_vm6, %v1318_v26, %v1322_v23  ;;  %v8898_v53 = vld [vmem:[%s8752_s14 + $0x40] sm:$0xff]   ;;  %v7692_v60 = vunpack.c.h.bf16 %v7740_v43  ;;  %v7695_v61 = vunpack.c.l.bf16 %v8880_v44  ;;  %v7696_v1 = vunpack.c.h.bf16 %v8880_v44 }
  0x39   : > { %v7132_v32 = vcombine.low %v1313_v29, %v1323_v30  ;;  %v7699_v2 = vunpack.c.l.bf16 %v8892_v51  ;;  %v7700_v3 = vunpack.c.h.bf16 %v8892_v51  ;;  %v7703_v4 = vunpack.c.l.bf16 %v8895_v52 }
  0x3a   : > { %v7704_v5 = vunpack.c.h.bf16 %v8895_v52  ;;  %v7707_v6 = vunpack.c.l.bf16 %v8898_v53  ;;  %vm806_vm8 = vsmask.f32 256  ;;  %vm807_vm9 = vsmask.f32 4368 }
  0x3b   : > { %7924 = vmatprep.mubr.msk.bf16.mxu1 %vm1734_vm7, %v7132_v32  ;;  %vm1130_vm10 = vcmask 27648   ;;  %vm1131_vm11 = vsmask.f32 7938  ;;  %vm1138_vm12 = vcmask 24576   ;;  %v7708_v17 = vunpack.c.h.bf16 %v8898_v53  ;;  %vm8948_vm13 = vmor %vm806_vm8, %vm807_vm9 }
  0x3c   : > { %v7711_v18 = vunpack.c.l.bf16 %v8902_v62  ;;  %v7712_v22 = vunpack.c.h.bf16 %v8902_v62  ;;  %vm8954_vm14 = vmand %vm1130_vm10, %vm1131_vm11  ;;  %vm2288_vm0 = vcmask 1042432   ;;  %vm2289_vm1 = vcmask 1046532  }
  0x3d   : > { %vm8960_vm15 = vmand %vm1138_vm12, %vm806_vm8  ;;  %vm6745_vm4 = vcmask 130048   ;;  %vm6953_vm5 = vcmask 122880  }
  0x3e   : > { %vm9475_vm2 = vmor %vm2288_vm0, %vm2289_vm1 }
  0x3f   : > { %v8589_v45 = vpop.eup %8588 }
  0x40   : > { %v533_v54 = vmul.f32 %v8589_v45, %v530_v36 }
  0x42   : > { %v536_v63 = vmul.f32 %v535_v39, %v533_v54  ;;  %v8904_v0 = vrot.slane %v533_v54, %v605_v42 }
  0x44   : > { %v537_v7 = vsub.f32 %v534_v46, %v536_v63  ;;  %v608_v8 = vmul.f32 %v7675_v40, %v8904_v0  ;;  %v609_v9 = vmul.f32 %v7676_v41, %v8904_v0  ;;  %v610_v10 = vmul.f32 %v7679_v47, %v8904_v0 }
  0x45   : > { %v611_v11 = vmul.f32 %v7680_v48, %v8904_v0  ;;  %v612_v12 = vmul.f32 %v7683_v55, %v8904_v0  ;;  %v613_v13 = vmul.f32 %v7684_v56, %v8904_v0  ;;  %v614_v14 = vmul.f32 %v7687_v57, %v8904_v0 }
  0x46   : > { %v8919_v15 = vrot.slane %v537_v7, %v605_v42  ;;  %v615_v16 = vmul.f32 %v7688_v58, %v8904_v0  ;;  %v8925_v19 = vmul.f32 %v7691_v59, %v8904_v0  ;;  %v8928_v20 = vmul.f32 %v7692_v60, %v8904_v0 }
  0x47   : > { %v8931_v21 = vmul.f32 %v7695_v61, %v8904_v0  ;;  %v627_v53 = vmul.f32 %v7712_v22, %v8904_v0 }
  0x48   : > { %v646_v23 = vadd.f32 %v8919_v15, %v608_v8  ;;  %v647_v25 = vadd.f32 %v8919_v15, %v609_v9  ;;  %v648_v26 = vadd.f32 %v8919_v15, %v610_v10  ;;  %v649_v27 = vadd.f32 %v8919_v15, %v611_v11  ;;  %v1133_v10 = vld [vmem:[#allocation2 + $0xc] sm:$0xf] }
  0x49   : > { %v650_v28 = vadd.f32 %v8919_v15, %v612_v12  ;;  %v651_v29 = vadd.f32 %v8919_v15, %v613_v13  ;;  %v652_v30 = vadd.f32 %v8919_v15, %v614_v14  ;;  %v653_v31 = vadd.f32 %v8919_v15, %v615_v16  ;;  %v1140_v14 = vld [vmem:[#allocation2 + $0x14] sm:$0x1] }
  0x4a   : > { %v678_v32 = vmax.f32 %v646_v23, 0.0  ;;  %v679_v33 = vmax.f32 %v647_v25, 0.0  ;;  %v680_v34 = vmax.f32 %v648_v26, 0.0  ;;  %v681_v35 = vmax.f32 %v649_v27, 0.0 }
  0x4b   : > { %v682_v36 = vmax.f32 %v650_v28, 0.0  ;;  %v683_v37 = vmax.f32 %v651_v29, 0.0  ;;  %v684_v38 = vmax.f32 %v652_v30, 0.0  ;;  %v685_v39 = vmax.f32 %v653_v31, 0.0  ;;  %v1143_v31 = vld [vmem:[#allocation2 + $0x18] sm:$0xf] }
  0x4c   : > { %v7577_v40 = vpack.c.bf16 %v678_v32, %v678_v32  ;;  %v7578_v41 = vpack.c.bf16 %v679_v33, %v679_v33  ;;  %v7579_v42 = vpack.c.bf16 %v680_v34, %v680_v34  ;;  %v7580_v43 = vpack.c.bf16 %v681_v35, %v681_v35  ;;  %v1147_v32 = vld [vmem:[#allocation2 + $0x20] sm:$0x1] }
  0x4d   : > { %v7581_v45 = vpack.c.bf16 %v682_v36, %v682_v36  ;;  %v7582_v46 = vpack.c.bf16 %v683_v37, %v683_v37  ;;  %v8942_v47 = vpack.c.bf16 %v684_v38, %v684_v38  ;;  %v8944_v48 = vpack.c.bf16 %v685_v39, %v685_v39 }
  0x4e   : > { %v810_v54 = vshrl.u32 %v7577_v40, 16  ;;  %v813_v55 = vshll.u32 %v7577_v40, 16  ;;  %v818_v56 = vshrl.u32 %v7578_v41, 16  ;;  %v821_v57 = vshll.u32 %v7578_v41, 16 }
  0x4f   : > { %v827_v59 = vshrl.u32 %v7579_v42, 16  ;;  %v830_v60 = vshll.u32 %v7579_v42, 16  ;;  %v835_v61 = vshrl.u32 %v7580_v43, 16  ;;  %v838_v63 = vshll.u32 %v7580_v43, 16 }
  0x50   : > { %v812_v7 = vrot.slane %v810_v54, 7  ;;  %v820_v8 = vrot.slane %v818_v56, 7  ;;  %v844_v11 = vshrl.u32 %v7581_v45, 16  ;;  %v847_v12 = vshll.u32 %v7581_v45, 16  ;;  %v1154_v56 = vld [vmem:[#allocation2 + $0x2c] sm:$0x1] }
  0x51   : > { %v829_v16 = vrot.slane %v827_v59, 7  ;;  %v837_v23 = vrot.slane %v835_v61, 7  ;;  %v852_v25 = vshrl.u32 %v7582_v46, 16  ;;  %v855_v26 = vshll.u32 %v7582_v46, 16  ;;  %v1150_v46 = vld [vmem:[#allocation2 + $0x24] sm:$0xf] }
  0x52   : > { %v815_v27 = vor.u32 %v813_v55, %v812_v7  ;;  %v816_v28 = vrot.slane %v812_v7, 4  ;;  %v823_v29 = vor.u32 %v821_v57, %v820_v8  ;;  %v825_v30 = vrot.slane %v820_v8, 4 }
  0x53   : > { %v832_v33 = vor.u32 %v830_v60, %v829_v16  ;;  %v833_v34 = vrot.slane %v829_v16, 4  ;;  %v840_v35 = vor.u32 %v838_v63, %v837_v23  ;;  %v842_v36 = vrot.slane %v837_v23, 4  ;;  %v8981_v60 = vld [vmem:[%s8752_s14 + $0x50] sm:$0xff]  }
  0x54   : > { %v824_v37 = vsel %vm8948_vm13, %v816_v28, %v823_v29  ;;  %v1134_v38 = vsel %vm8954_vm14, %v815_v27, %v1133_v10  ;;  %v1141_v39 = vsel %vm8960_vm15, %v825_v30, %v1140_v14  ;;  %v846_v40 = vrot.slane %v844_v11, 7 }
  0x55   : > { %1135 = vst [vmem:[#allocation2 + $0xc] sm:$0xf] %v1134_v38  ;;  %1137 = vst.msk [vmem:[#allocation2 + $0x10] sm:$0xf] %vm1130_vm10, %v824_v37  ;;  %v841_v41 = vsel %vm8948_vm13, %v833_v34, %v840_v35  ;;  %v1144_v42 = vsel %vm8954_vm14, %v832_v33, %v1143_v31  ;;  %v1148_v43 = vsel %vm8960_vm15, %v842_v36, %v1147_v32  ;;  %v854_v45 = vrot.slane %v852_v25, 7 }
  0x56   : > { %1142 = vst [vmem:[#allocation2 + $0x14] sm:$0x1] %v1141_v39  ;;  %1145 = vst [vmem:[#allocation2 + $0x18] sm:$0xf] %v1144_v42  ;;  %v849_v54 = vor.u32 %v847_v12, %v846_v40  ;;  %v850_v55 = vrot.slane %v846_v40, 4  ;;  %v861_v57 = vshrl.u32 %v8942_v47, 16  ;;  %v654_v12 = vadd.f32 %v8919_v15, %v8925_v19 }
  0x57   : > { %1146 = vst.msk [vmem:[#allocation2 + $0x1c] sm:$0xf] %vm1130_vm10, %v841_v41  ;;  %1149 = vst [vmem:[#allocation2 + $0x20] sm:$0x1] %v1148_v43  ;;  %v864_v59 = vshll.u32 %v8942_v47, 16  ;;  %v857_v61 = vor.u32 %v855_v26, %v854_v45  ;;  %v859_v63 = vrot.slane %v854_v45, 4  ;;  %v655_v14 = vadd.f32 %v8919_v15, %v8928_v20 }
  0x58   : > { %v869_v7 = vshrl.u32 %v8944_v48, 16  ;;  %v872_v8 = vshll.u32 %v8944_v48, 16  ;;  %v1151_v10 = vsel %vm8954_vm14, %v849_v54, %v1150_v46  ;;  %v8987_v11 = vrot.slane %v861_v57, 7  ;;  %v1157_v48 = vld [vmem:[#allocation2 + $0x30] sm:$0xf] }
  0x59   : > { %v858_v47 = vsel %vm8948_vm13, %v850_v55, %v857_v61  ;;  %1152 = vst [vmem:[#allocation2 + $0x24] sm:$0xf] %v1151_v10  ;;  %v1155_v16 = vsel %vm8960_vm15, %v859_v63, %v1154_v56  ;;  %v7715_v25 = vunpack.c.l.bf16 %v8981_v60  ;;  %v619_v20 = vmul.f32 %v7696_v1, %v8904_v0 }
  0x5a   : > { %v8997_v23 = vrot.slane %v869_v7, 7  ;;  %1153 = vst.msk [vmem:[#allocation2 + $0x28] sm:$0xf] %vm1130_vm10, %v858_v47  ;;  %1156 = vst [vmem:[#allocation2 + $0x2c] sm:$0x1] %v1155_v16  ;;  %v866_v19 = vor.u32 %v864_v59, %v8987_v11  ;;  %v9007_v26 = vadd.f32 %v8919_v15, %v8931_v21  ;;  %v7716_v27 = vunpack.c.h.bf16 %v8981_v60 }
  0x5b   : > { %v867_v28 = vrot.slane %v8987_v11, 4  ;;  %v686_v30 = vmax.f32 %v654_v12, 0.0  ;;  %v687_v31 = vmax.f32 %v655_v14, 0.0  ;;  %v620_v1 = vmul.f32 %v7699_v2, %v8904_v0 }
  0x5c   : > { %v876_v29 = vrot.slane %v8997_v23, 4  ;;  %v1250_v32 = vld [vmem:[#allocation2 + $0xc] sm:$0xf]  ;;  %v1251_v33 = vld [vmem:[#allocation2 + $0x10] sm:$0xf]  ;;  %v9013_v35 = vor.u32 %v872_v8, %v8997_v23  ;;  %v1158_v44 = vsel %vm8954_vm14, %v866_v19, %v1157_v48  ;;  %v9023_v21 = vmul.f32 %v7700_v3, %v8904_v0 }
  0x5d   : > { %v1282_v34 = vld [vmem:[#allocation2 + $0x14] sm:$0x1]  ;;  %v1325_v36 = vshrl.u32 %v1250_v32, 16  ;;  %v1328_v37 = vshll.u32 %v1250_v32, 16  ;;  %v1334_v38 = vshll.u32 %v1251_v33, 16  ;;  %v1338_v39 = vshrl.u32 %v1251_v33, 16 }
  0x5e   : > { %v3055_v40 = vld [vmem:[#allocation2 + $0xc] sm:$0xf]  ;;  %1159 = vst [vmem:[#allocation2 + $0x30] sm:$0xf] %v1158_v44  ;;  %v1344_v41 = vshll.u32 %v1282_v34, 16  ;;  %v9026_v45 = vadd.f32 %v8919_v15, %v619_v20  ;;  %v688_v46 = vmax.f32 %v9007_v26, 0.0  ;;  %v9031_v48 = vpack.c.bf16 %v686_v30, %v686_v30 }
  0x5f   : > { %v3056_v42 = vld [vmem:[#allocation2 + $0x10] sm:$0xf]  ;;  %v3104_v43 = vshrl.u32 %v3055_v40, 16  ;;  %v1327_v2 = vrot.slane %v1325_v36, 4  ;;  %v1330_v54 = vrot.slane %v1328_v37, 5  ;;  %v1336_v55 = vrot.slane %v1334_v38, 5 }
  0x60   : > { %v1340_v51 = vrot.slane %v1338_v39, 4  ;;  %v3057_v3 = vld [vmem:[#allocation2 + $0x14] sm:$0x1]  ;;  %v1346_v56 = vrot.slane %v1344_v41, 5  ;;  %v3107_v59 = vshll.u32 %v3055_v40, 16  ;;  %v3113_v61 = vshll.u32 %v3056_v42, 16 }
  0x61   : > { %v3106_v57 = vrot.slane %v3104_v43, 4  ;;  %v1331_v63 = vor.u32 %v1330_v54, %v1327_v2  ;;  %v3117_v8 = vshrl.u32 %v3056_v42, 16  ;;  %v3123_v10 = vshll.u32 %v3057_v3, 16  ;;  %v3058_v12 = vld [vmem:[#allocation2 + $0x18] sm:$0xf] }
  0x62   : > { %v1341_v7 = vor.u32 %v1340_v51, %v1336_v55  ;;  %v9029_v14 = vld [vmem:[#allocation2 + $0x1c] sm:$0xf]  ;;  %v3109_v47 = vrot.slane %v3107_v59, 5  ;;  %v3115_v16 = vrot.slane %v3113_v61, 5  ;;  %v9033_v19 = vpack.c.bf16 %v687_v31, %v687_v31  ;;  %v9035_v36 = vld [vmem:[#allocation2 + $0x20] sm:$0x1] }
  0x63   : > { %v1332_v20 = vrot.slane %v1331_v63, 4  ;;  %v3119_v33 = vrot.slane %v3117_v8, 4  ;;  %v3125_v34 = vrot.slane %v3123_v10, 5  ;;  %v3128_v37 = vshrl.u32 %v3058_v12, 16  ;;  %v1252_v51 = vld [vmem:[#allocation2 + $0x18] sm:$0xf] }
  0x64   : > { %v1342_v32 = vrot.slane %v1341_v7, 4  ;;  %v3110_v44 = vor.u32 %v3109_v47, %v3106_v57  ;;  %v3131_v38 = vshll.u32 %v3058_v12, 16  ;;  %v3137_v39 = vshll.u32 %v9029_v14, 16  ;;  %v1253_v7 = vld [vmem:[#allocation2 + $0x1c] sm:$0xf] }
  0x65   : > { %v1337_v40 = vsel %vm8851_vm6, %v1332_v20, %v1336_v55  ;;  %v3120_v41 = vor.u32 %v3119_v33, %v3115_v16  ;;  %v3141_v31 = vshrl.u32 %v9029_v14, 16  ;;  %v3130_v2 = vrot.slane %v3128_v37, 4  ;;  %v1283_v20 = vld [vmem:[#allocation2 + $0x20] sm:$0x1]  ;;  %v1254_v33 = vld [vmem:[#allocation2 + $0x24] sm:$0xf] }
  0x66   : > { %v1347_v30 = vsel %vm8851_vm6, %v1342_v32, %v1346_v56  ;;  %v3111_v43 = vrot.slane %v3110_v44, 4  ;;  %v3133_v54 = vrot.slane %v3131_v38, 5  ;;  %v3139_v57 = vrot.slane %v3137_v39, 5  ;;  %v1255_v39 = vld [vmem:[#allocation2 + $0x28] sm:$0xf] }
  0x67   : > { %v7133_v42 = vcombine.low %v1337_v40, %v1347_v30  ;;  %v3121_v3 = vrot.slane %v3120_v41, 4  ;;  %v3143_v59 = vrot.slane %v3141_v31, 4  ;;  %v3147_v61 = vshll.u32 %v9035_v36, 16  ;;  %v1284_v31 = vld [vmem:[#allocation2 + $0x2c] sm:$0x1] }
  0x68   : > { %v3116_v55 = vsel %vm8851_vm6, %v3111_v43, %v3115_v16  ;;  %v3134_v63 = vor.u32 %v3133_v54, %v3130_v2  ;;  %v3854_v56 = vrot.slane %v9029_v14, 5  ;;  %v9049_v8 = vadd.f32 %v8919_v15, %v620_v1 }
  0x69   : > { %7925 = vmatmul.mubr.msk.bf16.vlgmr.msra.gmra.mrb[0].mxu1 %vm1734_vm7, %v7133_v42  ;;  %v3126_v10 = vsel %vm8851_vm6, %v3121_v3, %v3125_v34  ;;  %v3144_v12 = vor.u32 %v3143_v59, %v3139_v57  ;;  %v3149_v47 = vrot.slane %v3147_v61, 5  ;;  %v1349_v32 = vshrl.u32 %v1252_v51, 16  ;;  %v3061_v59 = vld [vmem:[#allocation2 + $0x24] sm:$0xf] }
  0x6a   : > { %7957 = vmatpush3.bf16.msra.mxu1 %v8889_v50  ;;  %v7279_v44 = vcombine.low %v3116_v55, %v3126_v10  ;;  %v3135_v37 = vrot.slane %v3134_v63, 4  ;;  %v1352_v38 = vshll.u32 %v1252_v51, 16  ;;  %v1358_v1 = vshll.u32 %v1253_v7, 16  ;;  %v3062_v10 = vld [vmem:[#allocation2 + $0x28] sm:$0xf] }
  0x6b   : > { %v3145_v40 = vrot.slane %v3144_v12, 4  ;;  %v1351_v30 = vrot.slane %v1349_v32, 4  ;;  %v1362_v41 = vshrl.u32 %v1253_v7, 16  ;;  %v1368_v42 = vshll.u32 %v1283_v20, 16 }
  0x6c   : > { %8060 = vmatprep.mubr.msk.bf16.mxu0 %vm1734_vm7, %v7279_v44  ;;  %v3140_v34 = vsel %vm8851_vm6, %v3135_v37, %v3139_v57  ;;  %v1354_v50 = vrot.slane %v1352_v38, 5  ;;  %v1373_v43 = vshrl.u32 %v1254_v33, 16  ;;  %v1360_v54 = vrot.slane %v1358_v1, 5 }
  0x6d   : > { %v3150_v2 = vsel %vm8851_vm6, %v3145_v40, %v3149_v47  ;;  %v1364_v3 = vrot.slane %v1362_v41, 4  ;;  %v1376_v51 = vshll.u32 %v1254_v33, 16  ;;  %v1370_v63 = vrot.slane %v1368_v42, 5  ;;  %v1161_v41 = vld [vmem:[#allocation2 + $0x38] sm:$0x1] }
  0x6e   : > { %v7280_v61 = vcombine.low %v3140_v34, %v3150_v2  ;;  %v1355_v55 = vor.u32 %v1354_v50, %v1351_v30  ;;  %v1375_v7 = vrot.slane %v1373_v43, 4  ;;  %v1382_v44 = vshll.u32 %v1255_v39, 16  ;;  %v3063_v30 = vld [vmem:[#allocation2 + $0x2c] sm:$0x1]  ;;  %v3064_v43 = vld [vmem:[#allocation2 + $0x30] sm:$0xf] }
  0x6f   : > { %v1365_v12 = vor.u32 %v1364_v3, %v1360_v54  ;;  %v1378_v32 = vrot.slane %v1376_v51, 5  ;;  %v1386_v16 = vshrl.u32 %v1255_v39, 16  ;;  %v1392_v20 = vshll.u32 %v1284_v31, 16  ;;  %v1256_v2 = vld [vmem:[#allocation2 + $0x30] sm:$0xf] }
  0x70   : > { %8061 = vmatmul.mubr.msk.bf16.vlgmr.msra.gmra.mrb[0].mxu0 %vm1734_vm7, %v7280_v61  ;;  %v1356_v57 = vrot.slane %v1355_v55, 4  ;;  %v3152_v37 = vshrl.u32 %v3061_v59, 16  ;;  %v3155_v38 = vshll.u32 %v3061_v59, 16  ;;  %v1384_v40 = vrot.slane %v1382_v44, 5 }
  0x71   : > { %8093 = vmatpush3.bf16.msra.mxu0 %v8886_v49  ;;  %v1366_v47 = vrot.slane %v1365_v12, 4  ;;  %v1379_v33 = vor.u32 %v1378_v32, %v1375_v7  ;;  %v1388_v1 = vrot.slane %v1386_v16, 4  ;;  %v1394_v50 = vrot.slane %v1392_v20, 5 }
  0x72   : > { %v1361_v34 = vsel %vm8851_vm6, %v1356_v57, %v1360_v54  ;;  %v3154_v42 = vrot.slane %v3152_v37, 4  ;;  %v3157_v39 = vrot.slane %v3155_v38, 5  ;;  %v3161_v49 = vshll.u32 %v3062_v10, 16 }
  0x73   : > { %v1371_v31 = vsel %vm8851_vm6, %v1366_v47, %v1370_v63  ;;  %v1380_v3 = vrot.slane %v1379_v33, 4  ;;  %v1389_v51 = vor.u32 %v1388_v1, %v1384_v40  ;;  %v3165_v55 = vshrl.u32 %v3062_v10, 16 }
  0x74   : > { %v7134_v59 = vcombine.low %v1361_v34, %v1371_v31  ;;  %v3158_v61 = vor.u32 %v3157_v39, %v3154_v42  ;;  %v3171_v16 = vshll.u32 %v3063_v30, 16  ;;  %v3163_v54 = vrot.slane %v3161_v49, 5 }
  0x75   : > { %v1385_v7 = vsel %vm8851_vm6, %v1380_v3, %v1384_v40  ;;  %v1390_v12 = vrot.slane %v1389_v51, 4  ;;  %v875_v32 = vsel %vm8948_vm13, %v867_v28, %v9013_v35  ;;  %v3167_v44 = vrot.slane %v3165_v55, 4 }
  0x76   : > { %7928 = vmatprep.mubr.msk.bf16.mxu1 %vm1734_vm7, %v7134_v59  ;;  %v3159_v63 = vrot.slane %v3158_v61, 4  ;;  %v3173_v57 = vrot.slane %v3171_v16, 5  ;;  %1160 = vst.msk [vmem:[#allocation2 + $0x34] sm:$0xf] %vm1130_vm10, %v875_v32  ;;  %v1162_v10 = vsel %vm8960_vm15, %v876_v29, %v1161_v41  ;;  %v3176_v11 = vshrl.u32 %v3064_v43, 16 }
  0x77   : > { %v1395_v20 = vsel %vm8851_vm6, %v1390_v12, %v1394_v50  ;;  %1163 = vst [vmem:[#allocation2 + $0x38] sm:$0x1] %v1162_v10  ;;  %v3179_v37 = vshll.u32 %v3064_v43, 16  ;;  %v1397_v38 = vshrl.u32 %v1256_v2, 16  ;;  %v3168_v47 = vor.u32 %v3167_v44, %v3163_v54  ;;  %v1164_v12 = vld [vmem:[#allocation2 + $0x3c] sm:$0xf] }
  0x78   : > { %v7135_v28 = vcombine.low %v1385_v7, %v1395_v20  ;;  %v3164_v35 = vsel %vm8851_vm6, %v3159_v63, %v3163_v54  ;;  %v1400_v33 = vshll.u32 %v1256_v2, 16  ;;  %v3178_v40 = vrot.slane %v3176_v11, 4  ;;  %v1168_v44 = vld [vmem:[#allocation2 + $0x44] sm:$0x1] }
  0x79   : > { %v3181_v1 = vrot.slane %v3179_v37, 5  ;;  %v1399_v30 = vrot.slane %v1397_v38, 4  ;;  %v878_v23 = vshrl.u32 %v9031_v48, 16  ;;  %v3169_v29 = vrot.slane %v3168_v47, 4 }
  0x7a   : > { %7929 = vmatmul.mubr.msk.bf16.gmra.mrb[4].mxu1 %vm1734_vm7, %v7135_v28  ;;  %v1402_v41 = vrot.slane %v1400_v33, 5  ;;  %v881_v34 = vshll.u32 %v9031_v48, 16  ;;  %v886_v50 = vshrl.u32 %v9033_v19, 16  ;;  %v889_v43 = vshll.u32 %v9033_v19, 16 }
  0x7b   : > { %v3182_v42 = vor.u32 %v3181_v1, %v3178_v40  ;;  %v880_v39 = vrot.slane %v878_v23, 7  ;;  %v689_v31 = vmax.f32 %v9026_v45, 0.0  ;;  %v3174_v2 = vsel %vm8851_vm6, %v3169_v29, %v3173_v57 }
  0x7c   : > { %v1403_v3 = vor.u32 %v1402_v41, %v1399_v30  ;;  %v888_v51 = vrot.slane %v886_v50, 7  ;;  %v7587_v49 = vpack.c.bf16 %v688_v46, %v688_v46  ;;  %v7281_v59 = vcombine.low %v3164_v35, %v3174_v2 }
  0x7d   : > { %v3065_v61 = vld [vmem:[#allocation2 + $0x34] sm:$0xf]  ;;  %v3183_v48 = vrot.slane %v3182_v42, 4  ;;  %v883_v16 = vor.u32 %v881_v34, %v880_v39  ;;  %v884_v7 = vrot.slane %v880_v39, 4  ;;  %v7588_v57 = vpack.c.bf16 %v689_v31, %v689_v31 }
  0x7e   : > { %v1257_v55 = vld [vmem:[#allocation2 + $0x34] sm:$0xf]  ;;  %v3066_v54 = vld [vmem:[#allocation2 + $0x38] sm:$0x1]  ;;  %v3185_v19 = vshll.u32 %v3065_v61, 16  ;;  %v3189_v32 = vshrl.u32 %v3065_v61, 16  ;;  %v891_v63 = vor.u32 %v889_v43, %v888_v51  ;;  %8064 = vmatprep.mubr.msk.bf16.mxu0 %vm1734_vm7, %v7281_v59  ;;  %v659_v59 = vadd.f32 %v8919_v15, %v9023_v21 }
  0x7f   : > { %v1285_v45 = vld [vmem:[#allocation2 + $0x38] sm:$0x1]  ;;  %v3195_v10 = vshll.u32 %v3066_v54, 16  ;;  %v1404_v26 = vrot.slane %v1403_v3, 4  ;;  %v1406_v20 = vshll.u32 %v1257_v55, 16  ;;  %v1410_v46 = vshrl.u32 %v1257_v55, 16 }
  0x80   : > { %v3187_v11 = vrot.slane %v3185_v19, 5  ;;  %v3191_v37 = vrot.slane %v3189_v32, 4  ;;  %v1416_v38 = vshll.u32 %v1285_v45, 16  ;;  %v892_v28 = vsel %vm8948_vm13, %v884_v7, %v891_v63  ;;  %v1171_v54 = vld [vmem:[#allocation2 + $0x48] sm:$0xf] }
  0x81   : > { %v3197_v35 = vrot.slane %v3195_v10, 5  ;;  %v1408_v47 = vrot.slane %v1406_v20, 5  ;;  %v1412_v33 = vrot.slane %v1410_v46, 4  ;;  %v893_v40 = vrot.slane %v888_v51, 4  ;;  %1167 = vst.msk [vmem:[#allocation2 + $0x40] sm:$0xf] %vm1130_vm10, %v892_v28 }
  0x82   : > { %v3188_v1 = vsel %vm8851_vm6, %v3183_v48, %v3187_v11  ;;  %v3192_v30 = vor.u32 %v3191_v37, %v3187_v11  ;;  %v1418_v23 = vrot.slane %v1416_v38, 5  ;;  %v1165_v29 = vsel %vm8954_vm14, %v883_v16, %v1164_v12  ;;  %v1175_v19 = vld [vmem:[#allocation2 + $0x50] sm:$0x1] }
  0x83   : > { %v1409_v41 = vsel %vm8851_vm6, %v1404_v26, %v1408_v47  ;;  %v1413_v34 = vor.u32 %v1412_v33, %v1408_v47  ;;  %1166 = vst [vmem:[#allocation2 + $0x3c] sm:$0xf] %v1165_v29  ;;  %v1169_v50 = vsel %vm8960_vm15, %v893_v40, %v1168_v44  ;;  %v895_v42 = vshrl.u32 %v7587_v49, 16 }
  0x84   : > { %v3193_v39 = vrot.slane %v3192_v30, 4  ;;  %1170 = vst [vmem:[#allocation2 + $0x44] sm:$0x1] %v1169_v50  ;;  %v898_v43 = vshll.u32 %v7587_v49, 16  ;;  %v903_v31 = vshrl.u32 %v7588_v57, 16  ;;  %v906_v2 = vshll.u32 %v7588_v57, 16 }
  0x85   : > { %v1414_v3 = vrot.slane %v1413_v34, 4  ;;  %v897_v51 = vrot.slane %v895_v42, 7  ;;  %v690_v61 = vmax.f32 %v9049_v8, 0.0  ;;  %v9114_v16 = vmul.f32 %v7703_v4, %v8904_v0 }
  0x86   : > { %v3198_v48 = vsel %vm8851_vm6, %v3193_v39, %v3197_v35  ;;  %v905_v55 = vrot.slane %v903_v31, 7  ;;  %v9119_v49 = vmul.f32 %v7704_v5, %v8904_v0  ;;  %v691_v4 = vmax.f32 %v659_v59, 0.0 }
  0x87   : > { %v7282_v7 = vcombine.low %v3188_v1, %v3198_v48  ;;  %v1419_v21 = vsel %vm8851_vm6, %v1414_v3, %v1418_v23  ;;  %v900_v12 = vor.u32 %v898_v43, %v897_v51  ;;  %v901_v8 = vrot.slane %v897_v51, 4 }
  0x88   : > { %v7136_v32 = vcombine.low %v1409_v41, %v1419_v21  ;;  %v1259_v45 = vld [vmem:[#allocation2 + $0x40] sm:$0xf]  ;;  %v908_v44 = vor.u32 %v906_v2, %v905_v55  ;;  %v910_v57 = vrot.slane %v905_v55, 4  ;;  %v9131_v28 = vpack.c.bf16 %v690_v61, %v690_v61 }
  0x89   : > { %v3068_v63 = vld [vmem:[#allocation2 + $0x40] sm:$0xf]  ;;  %8065 = vmatmul.mubr.msk.bf16.gmra.mrb[4].mxu0 %vm1734_vm7, %v7282_v7  ;;  %v1430_v10 = vshll.u32 %v1259_v45, 16  ;;  %v1434_v52 = vshrl.u32 %v1259_v45, 16  ;;  %v1172_v37 = vsel %vm8954_vm14, %v900_v12, %v1171_v54  ;;  %v9134_v55 = vpack.c.bf16 %v691_v4, %v691_v4 }
  0x8a   : > { %v3209_v5 = vshll.u32 %v3068_v63, 16  ;;  %v3213_v26 = vshrl.u32 %v3068_v63, 16  ;;  %7932 = vmatprep.mubr.msk.bf16.mxu1 %vm1734_vm7, %v7136_v32  ;;  %v1258_v20 = vld [vmem:[#allocation2 + $0x3c] sm:$0xf]  ;;  %v909_v11 = vsel %vm8948_vm13, %v901_v8, %v908_v44  ;;  %v1176_v38 = vsel %vm8960_vm15, %v910_v57, %v1175_v19  ;;  %1173 = vst [vmem:[#allocation2 + $0x48] sm:$0xf] %v1172_v37 }
  0x8b   : > { %v3067_v46 = vld [vmem:[#allocation2 + $0x3c] sm:$0xf]  ;;  %v1286_v35 = vld [vmem:[#allocation2 + $0x44] sm:$0x1]  ;;  %v1421_v47 = vshrl.u32 %v1258_v20, 16  ;;  %v1424_v33 = vshll.u32 %v1258_v20, 16  ;;  %v660_v4 = vadd.f32 %v8919_v15, %v9114_v16 }
  0x8c   : > { %v1432_v40 = vrot.slane %v1430_v10, 5  ;;  %v1436_v1 = vrot.slane %v1434_v52, 4  ;;  %1174 = vst.msk [vmem:[#allocation2 + $0x4c] sm:$0xf] %vm1130_vm10, %v909_v11  ;;  %1177 = vst [vmem:[#allocation2 + $0x50] sm:$0x1] %v1176_v38  ;;  %v9147_v52 = vadd.f32 %v8919_v15, %v9119_v49 }
  0x8d   : > { %v1440_v30 = vshll.u32 %v1286_v35, 16  ;;  %v3069_v23 = vld [vmem:[#allocation2 + $0x44] sm:$0x1]  ;;  %v3200_v29 = vshrl.u32 %v3067_v46, 16  ;;  %v3203_v41 = vshll.u32 %v3067_v46, 16  ;;  %v3211_v34 = vrot.slane %v3209_v5, 5 }
  0x8e   : > { %v1423_v50 = vrot.slane %v1421_v47, 4  ;;  %v1426_v42 = vrot.slane %v1424_v33, 5  ;;  %v1437_v39 = vor.u32 %v1436_v1, %v1432_v40  ;;  %v3215_v43 = vrot.slane %v3213_v26, 4 }
  0x8f   : > { %v1442_v31 = vrot.slane %v1440_v30, 5  ;;  %v3202_v2 = vrot.slane %v3200_v29, 4  ;;  %v3205_v3 = vrot.slane %v3203_v41, 5  ;;  %v3219_v51 = vshll.u32 %v3069_v23, 16 }
  0x90   : > { %v1427_v59 = vor.u32 %v1426_v42, %v1423_v50  ;;  %v1438_v61 = vrot.slane %v1437_v39, 4  ;;  %v3216_v48 = vor.u32 %v3215_v43, %v3211_v34  ;;  %v912_v12 = vshrl.u32 %v9131_v28, 16 }
  0x91   : > { %v3206_v7 = vor.u32 %v3205_v3, %v3202_v2  ;;  %v3221_v21 = vrot.slane %v3219_v51, 5  ;;  %v915_v8 = vshll.u32 %v9131_v28, 16  ;;  %v920_v45 = vshrl.u32 %v9134_v55, 16  ;;  %v3070_v44 = vld [vmem:[#allocation2 + $0x48] sm:$0xf] }
  0x92   : > { %v1428_v54 = vrot.slane %v1427_v59, 4  ;;  %v1443_v19 = vsel %vm8851_vm6, %v1438_v61, %v1442_v31  ;;  %v3217_v32 = vrot.slane %v3216_v48, 4  ;;  %v9141_v10 = vrot.slane %v912_v12, 7  ;;  %v1260_v37 = vld [vmem:[#allocation2 + $0x48] sm:$0xf] }
  0x93   : > { %v3207_v63 = vrot.slane %v3206_v7, 4  ;;  %v3071_v57 = vld [vmem:[#allocation2 + $0x4c] sm:$0xf]  ;;  %v3072_v20 = vld [vmem:[#allocation2 + $0x50] sm:$0x1]  ;;  %v3224_v46 = vshrl.u32 %v3070_v44, 16 }
  0x94   : > { %v1433_v5 = vsel %vm8851_vm6, %v1428_v54, %v1432_v40  ;;  %v3222_v26 = vsel %vm8851_vm6, %v3217_v32, %v3221_v21  ;;  %v3227_v11 = vshll.u32 %v3070_v44, 16  ;;  %v3233_v35 = vshll.u32 %v3071_v57, 16  ;;  %v1261_v47 = vld [vmem:[#allocation2 + $0x4c] sm:$0xf]  ;;  %v1287_v23 = vld [vmem:[#allocation2 + $0x50] sm:$0x1] }
  0x95   : > { %v7137_v38 = vcombine.low %v1433_v5, %v1443_v19  ;;  %v3212_v28 = vsel %vm8851_vm6, %v3207_v63, %v3211_v34  ;;  %v3237_v16 = vshrl.u32 %v3071_v57, 16  ;;  %v3226_v49 = vrot.slane %v3224_v46, 4  ;;  %v1178_v31 = vld [vmem:[#allocation2 + $0x54] sm:$0xf] }
  0x96   : > { %v7283_v33 = vcombine.low %v3212_v28, %v3222_v26  ;;  %v3229_v1 = vrot.slane %v3227_v11, 5  ;;  %v3243_v30 = vshll.u32 %v3072_v20, 16  ;;  %v3235_v40 = vrot.slane %v3233_v35, 5 }
  0x97   : > { %7933 = vmatmul.mubr.msk.bf16.gmra.mrb[8].mxu1 %vm1734_vm7, %v7137_v38  ;;  %v3239_v29 = vrot.slane %v3237_v16, 4  ;;  %v1445_v41 = vshrl.u32 %v1260_v37, 16  ;;  %v1448_v50 = vshll.u32 %v1260_v37, 16  ;;  %v1454_v43 = vshll.u32 %v1261_v47, 16 }
  0x98   : > { %8068 = vmatprep.mubr.msk.bf16.mxu0 %vm1734_vm7, %v7283_v33  ;;  %v3230_v42 = vor.u32 %v3229_v1, %v3226_v49  ;;  %v3245_v39 = vrot.slane %v3243_v30, 5  ;;  %v1458_v34 = vshrl.u32 %v1261_v47, 16  ;;  %v1464_v59 = vshll.u32 %v1287_v23, 16 }
  0x99   : > { %v3240_v2 = vor.u32 %v3239_v29, %v3235_v40  ;;  %v1447_v3 = vrot.slane %v1445_v41, 4  ;;  %v1450_v51 = vrot.slane %v1448_v50, 5  ;;  %v1456_v48 = vrot.slane %v1454_v43, 5 }
  0x9a   : > { %v3231_v61 = vrot.slane %v3230_v42, 4  ;;  %v1460_v7 = vrot.slane %v1458_v34, 4  ;;  %v917_v21 = vor.u32 %v915_v8, %v9141_v10  ;;  %v1466_v19 = vrot.slane %v1464_v59, 5  ;;  %v1182_v8 = vld [vmem:[#allocation2 + $0x5c] sm:$0x1] }
  0x9b   : > { %v3241_v12 = vrot.slane %v3240_v2, 4  ;;  %v1451_v54 = vor.u32 %v1450_v51, %v1447_v3  ;;  %v918_v32 = vrot.slane %v9141_v10, 4  ;;  %v922_v57 = vrot.slane %v920_v45, 7 }
  0x9c   : > { %v3236_v63 = vsel %vm8851_vm6, %v3231_v61, %v3235_v40  ;;  %v1461_v44 = vor.u32 %v1460_v7, %v1456_v48  ;;  %v923_v5 = vshll.u32 %v9134_v55, 16  ;;  %v1179_v46 = vsel %vm8954_vm14, %v917_v21, %v1178_v31 }
  0x9d   : > { %v3246_v26 = vsel %vm8851_vm6, %v3241_v12, %v3245_v39  ;;  %v1452_v20 = vrot.slane %v1451_v54, 4  ;;  %v692_v11 = vmax.f32 %v660_v4, 0.0  ;;  %v927_v10 = vrot.slane %v922_v57, 4  ;;  %1180 = vst [vmem:[#allocation2 + $0x54] sm:$0xf] %v1179_v46 }
  0x9e   : > { %v7284_v37 = vcombine.low %v3236_v63, %v3246_v26  ;;  %v1462_v38 = vrot.slane %v1461_v44, 4  ;;  %v925_v28 = vor.u32 %v923_v5, %v922_v57  ;;  %v693_v45 = vmax.f32 %v9147_v52, 0.0  ;;  %v1185_v39 = vld [vmem:[#allocation2 + $0x60] sm:$0xf]  ;;  %v1189_v5 = vld [vmem:[#allocation2 + $0x68] sm:$0x1] }
  0x9f   : > { %v1457_v35 = vsel %vm8851_vm6, %v1452_v20, %v1456_v48  ;;  %v7591_v55 = vpack.c.bf16 %v692_v11, %v692_v11  ;;  %v624_v16 = vmul.f32 %v7707_v6, %v8904_v0  ;;  %v1183_v33 = vsel %vm8960_vm15, %v927_v10, %v1182_v8 }
  0xa0   : > { %8069 = vmatmul.mubr.msk.bf16.gmra.mrb[8].mxu0 %vm1734_vm7, %v7284_v37  ;;  %v1467_v4 = vsel %vm8851_vm6, %v1462_v38, %v1466_v19  ;;  %v926_v47 = vsel %vm8948_vm13, %v918_v32, %v925_v28  ;;  %v625_v52 = vmul.f32 %v7708_v17, %v8904_v0  ;;  %1184 = vst [vmem:[#allocation2 + $0x5c] sm:$0x1] %v1183_v33 }
  0xa1   : > { %v7138_v49 = vcombine.low %v1457_v35, %v1467_v4  ;;  %1181 = vst.msk [vmem:[#allocation2 + $0x58] sm:$0xf] %vm1130_vm10, %v926_v47  ;;  %v7592_v6 = vpack.c.bf16 %v693_v45, %v693_v45  ;;  %v929_v1 = vshrl.u32 %v7591_v55, 16  ;;  %v932_v30 = vshll.u32 %v7591_v55, 16 }
  0xa2   : > { %v662_v23 = vadd.f32 %v8919_v15, %v624_v16  ;;  %v663_v40 = vadd.f32 %v8919_v15, %v625_v52  ;;  %v626_v29 = vmul.f32 %v7711_v18, %v8904_v0  ;;  %v628_v42 = vmul.f32 %v7715_v25, %v8904_v0 }
  0xa3   : > { %7936 = vmatprep.mubr.msk.bf16.mxu1 %vm1734_vm7, %v7138_v49  ;;  %v931_v17 = vrot.slane %v929_v1, 7  ;;  %v937_v41 = vshrl.u32 %v7592_v6, 16  ;;  %v940_v50 = vshll.u32 %v7592_v6, 16  ;;  %v9199_v18 = vadd.f32 %v8919_v15, %v627_v53  ;;  %v9214_v6 = vld [vmem:[%s8752_s14 + $0x58] sm:$0xff]  }
  0xa4   : > { %v694_v43 = vmax.f32 %v662_v23, 0.0  ;;  %v695_v34 = vmax.f32 %v663_v40, 0.0  ;;  %v9196_v31 = vadd.f32 %v8919_v15, %v626_v29  ;;  %v1262_v62 = vld [vmem:[#allocation2 + $0x54] sm:$0xf]  ;;  %v629_v59 = vmul.f32 %v7716_v27, %v8904_v0 }
  0xa5   : > { %v3073_v22 = vld [vmem:[#allocation2 + $0x54] sm:$0xf]  ;;  %v934_v2 = vor.u32 %v932_v30, %v931_v17  ;;  %v935_v3 = vrot.slane %v931_v17, 4  ;;  %v939_v51 = vrot.slane %v937_v41, 7  ;;  %v1469_v61 = vshrl.u32 %v1262_v62, 16 }
  0xa6   : > { %v1472_v25 = vshll.u32 %v1262_v62, 16  ;;  %v3248_v48 = vshrl.u32 %v3073_v22, 16  ;;  %v3251_v7 = vshll.u32 %v3073_v22, 16  ;;  %v9206_v19 = vpack.c.bf16 %v694_v43, %v694_v43 }
  0xa7   : > { %v942_v21 = vor.u32 %v940_v50, %v939_v51  ;;  %v944_v12 = vrot.slane %v939_v51, 4  ;;  %v1186_v54 = vsel %vm8954_vm14, %v934_v2, %v1185_v39  ;;  %v1288_v63 = vld [vmem:[#allocation2 + $0x5c] sm:$0x1]  ;;  %v1471_v44 = vrot.slane %v1469_v61, 4 }
  0xa8   : > { %v1263_v32 = vld [vmem:[#allocation2 + $0x58] sm:$0xf]  ;;  %v1474_v57 = vrot.slane %v1472_v25, 5  ;;  %1187 = vst [vmem:[#allocation2 + $0x60] sm:$0xf] %v1186_v54  ;;  %v9208_v26 = vpack.c.bf16 %v695_v34, %v695_v34  ;;  %v9211_v60 = vadd.f32 %v8919_v15, %v628_v42  ;;  %v1488_v46 = vshll.u32 %v1288_v63, 16 }
  0xa9   : > { %v1478_v27 = vshll.u32 %v1263_v32, 16  ;;  %v1482_v20 = vshrl.u32 %v1263_v32, 16  ;;  %v3074_v8 = vld [vmem:[#allocation2 + $0x58] sm:$0xf]  ;;  %v3250_v11 = vrot.slane %v3248_v48, 4  ;;  %v3253_v28 = vrot.slane %v3251_v7, 5 }
  0xaa   : > { %v1475_v37 = vor.u32 %v1474_v57, %v1471_v44  ;;  %v3075_v38 = vld [vmem:[#allocation2 + $0x5c] sm:$0x1]  ;;  %v3257_v10 = vshll.u32 %v3074_v8, 16  ;;  %v3261_v35 = vshrl.u32 %v3074_v8, 16  ;;  %v1490_v16 = vrot.slane %v1488_v46, 5 }
  0xab   : > { %v1480_v45 = vrot.slane %v1478_v27, 5  ;;  %v1484_v55 = vrot.slane %v1482_v20, 4  ;;  %v3267_v4 = vshll.u32 %v3075_v38, 16  ;;  %v3254_v33 = vor.u32 %v3253_v28, %v3250_v11  ;;  %v1192_v32 = vld [vmem:[#allocation2 + $0x6c] sm:$0xf] }
  0xac   : > { %v1476_v47 = vrot.slane %v1475_v37, 4  ;;  %v3259_v52 = vrot.slane %v3257_v10, 5  ;;  %v3263_v49 = vrot.slane %v3261_v35, 4  ;;  %v943_v23 = vsel %vm8948_vm13, %v935_v3, %v942_v21  ;;  %v7360_v21 = vld [vmem:[%s11710_s5 + $0xc] sm:$0x3] }
  0xad   : > { %v1485_v1 = vor.u32 %v1484_v55, %v1480_v45  ;;  %v3269_v30 = vrot.slane %v3267_v4, 5  ;;  %v1190_v40 = vsel %vm8960_vm15, %v944_v12, %v1189_v5  ;;  %v3255_v53 = vrot.slane %v3254_v33, 4  ;;  %1188 = vst.msk [vmem:[#allocation2 + $0x64] sm:$0xf] %vm1130_vm10, %v943_v23  ;;  %8524 = vmatprep.subr.msk.bf16.mxu0 %vm1783_vm3, %v7360_v21 }
  0xae   : > { %v1481_v29 = vsel %vm8851_vm6, %v1476_v47, %v1480_v45  ;;  %v3264_v17 = vor.u32 %v3263_v49, %v3259_v52  ;;  %1191 = vst [vmem:[#allocation2 + $0x68] sm:$0x1] %v1190_v40  ;;  %v946_v41 = vshrl.u32 %v9206_v19, 16  ;;  %v949_v43 = vshll.u32 %v9206_v19, 16 }
  0xaf   : > { %v1486_v50 = vrot.slane %v1485_v1, 4  ;;  %v3076_v42 = vld [vmem:[#allocation2 + $0x60] sm:$0xf]  ;;  %v9226_v34 = vadd.f32 %v8919_v15, %v629_v59  ;;  %v7719_v62 = vunpack.c.l.bf16 %v9214_v6  ;;  %v3260_v22 = vsel %vm8851_vm6, %v3255_v53, %v3259_v52 }
  0xb0   : > { %v1264_v39 = vld [vmem:[#allocation2 + $0x60] sm:$0xf]  ;;  %v3265_v2 = vrot.slane %v3264_v17, 4  ;;  %v3272_v3 = vshrl.u32 %v3076_v42, 16  ;;  %v3275_v51 = vshll.u32 %v3076_v42, 16  ;;  %v948_v7 = vrot.slane %v946_v41, 7 }
  0xb1   : > { %v1491_v61 = vsel %vm8851_vm6, %v1486_v50, %v1490_v16  ;;  %v1493_v25 = vshrl.u32 %v1264_v39, 16  ;;  %v1496_v48 = vshll.u32 %v1264_v39, 16  ;;  %v954_v46 = vshrl.u32 %v9208_v26, 16  ;;  %v7212_v42 = vld [vmem:[%s11710_s5 + $0x4] sm:$0x3] }
  0xb2   : > { %v7139_v59 = vcombine.low %v1481_v29, %v1491_v61  ;;  %v3270_v12 = vsel %vm8851_vm6, %v3265_v2, %v3269_v30  ;;  %v3274_v54 = vrot.slane %v3272_v3, 4  ;;  %v3277_v19 = vrot.slane %v3275_v51, 5  ;;  %v1196_v30 = vld [vmem:[#allocation2 + $0x74] sm:$0x1]  ;;  %8520 = vmatprep.subr.msk.bf16.mxu1 %vm1783_vm3, %v7212_v42 }
  0xb3   : > { %v7285_v63 = vcombine.low %v3260_v22, %v3270_v12  ;;  %v1495_v44 = vrot.slane %v1493_v25, 4  ;;  %v1498_v57 = vrot.slane %v1496_v48, 5  ;;  %v951_v5 = vor.u32 %v949_v43, %v948_v7 }
  0xb4   : > { %7937 = vmatmul.mubr.msk.bf16.gmra.mrb[12].mxu1 %vm1734_vm7, %v7139_v59  ;;  %v3278_v27 = vor.u32 %v3277_v19, %v3274_v54  ;;  %v952_v20 = vrot.slane %v948_v7, 4  ;;  %v957_v8 = vshll.u32 %v9208_v26, 16  ;;  %v3077_v11 = vld [vmem:[#allocation2 + $0x64] sm:$0xf]  ;;  %v7720_v35 = vunpack.c.h.bf16 %v9214_v6 }
  0xb5   : > { %8072 = vmatprep.mubr.msk.bf16.mxu0 %vm1734_vm7, %v7285_v63  ;;  %v3078_v37 = vld [vmem:[#allocation2 + $0x68] sm:$0x1]  ;;  %v1265_v38 = vld [vmem:[#allocation2 + $0x64] sm:$0xf]  ;;  %v1499_v28 = vor.u32 %v1498_v57, %v1495_v44  ;;  %v1193_v10 = vsel %vm8954_vm14, %v951_v5, %v1192_v32  ;;  %v9247_v45 = vmul.f32 %v7719_v62, %v8904_v0  ;;  %v3281_v16 = vshll.u32 %v3077_v11, 16 }
  0xb6   : > { %v3279_v55 = vrot.slane %v3278_v27, 4  ;;  %v3285_v4 = vshrl.u32 %v3077_v11, 16  ;;  %v3291_v47 = vshll.u32 %v3078_v37, 16  ;;  %v1289_v33 = vld [vmem:[#allocation2 + $0x68] sm:$0x1]  ;;  %v1502_v52 = vshll.u32 %v1265_v38, 16 }
  0xb7   : > { %1194 = vst [vmem:[#allocation2 + $0x6c] sm:$0xf] %v1193_v10  ;;  %v1500_v26 = vrot.slane %v1499_v28, 4  ;;  %v1506_v49 = vshrl.u32 %v1265_v38, 16  ;;  %v1512_v1 = vshll.u32 %v1289_v33, 16  ;;  %v3283_v23 = vrot.slane %v3281_v16, 5 }
  0xb8   : > { %v3287_v40 = vrot.slane %v3285_v4, 4  ;;  %v3293_v29 = vrot.slane %v3291_v47, 5  ;;  %v956_v53 = vrot.slane %v954_v46, 7  ;;  %v1504_v17 = vrot.slane %v1502_v52, 5 }
  0xb9   : > { %v1508_v6 = vrot.slane %v1506_v49, 4  ;;  %v1514_v41 = vrot.slane %v1512_v1, 5  ;;  %v696_v50 = vmax.f32 %v9196_v31, 0.0  ;;  %v3284_v39 = vsel %vm8851_vm6, %v3279_v55, %v3283_v23  ;;  %v1199_v49 = vld [vmem:[#allocation2 + $0x78] sm:$0xf] }
  0xba   : > { %v3288_v43 = vor.u32 %v3287_v40, %v3283_v23  ;;  %v959_v62 = vor.u32 %v957_v8, %v956_v53  ;;  %v961_v22 = vrot.slane %v956_v53, 4  ;;  %v1505_v2 = vsel %vm8851_vm6, %v1500_v26, %v1504_v17 }
  0xbb   : > { %v1509_v3 = vor.u32 %v1508_v6, %v1504_v17  ;;  %v697_v51 = vmax.f32 %v9199_v18, 0.0  ;;  %v7595_v61 = vpack.c.bf16 %v696_v50, %v696_v50  ;;  %v698_v7 = vmax.f32 %v9211_v60, 0.0 }
  0xbc   : > { %v3289_v31 = vrot.slane %v3288_v43, 4  ;;  %v960_v25 = vsel %vm8948_vm13, %v952_v20, %v959_v62  ;;  %v1197_v48 = vsel %vm8960_vm15, %v961_v22, %v1196_v30  ;;  %v631_v18 = vmul.f32 %v7720_v35, %v8904_v0 }
  0xbd   : > { %v1510_v21 = vrot.slane %v1509_v3, 4  ;;  %1195 = vst.msk [vmem:[#allocation2 + $0x70] sm:$0xf] %vm1130_vm10, %v960_v25  ;;  %1198 = vst [vmem:[#allocation2 + $0x74] sm:$0x1] %v1197_v48  ;;  %v7596_v54 = vpack.c.bf16 %v697_v51, %v697_v51  ;;  %v963_v19 = vshrl.u32 %v7595_v61, 16  ;;  %v7597_v47 = vpack.c.bf16 %v698_v7, %v698_v7 }
  0xbe   : > { %v1266_v59 = vld [vmem:[#allocation2 + $0x6c] sm:$0xf]  ;;  %v3294_v32 = vsel %vm8851_vm6, %v3289_v31, %v3293_v29  ;;  %v966_v28 = vshll.u32 %v7595_v61, 16  ;;  %v699_v4 = vmax.f32 %v9226_v34, 0.0  ;;  %v668_v1 = vadd.f32 %v8919_v15, %v9247_v45  ;;  %v1203_v29 = vld [vmem:[#allocation2 + $0x80] sm:$0x1] }
  0xbf   : > { %v3079_v12 = vld [vmem:[#allocation2 + $0x6c] sm:$0xf]  ;;  %v1517_v63 = vshrl.u32 %v1266_v59, 16  ;;  %v1520_v44 = vshll.u32 %v1266_v59, 16  ;;  %v7286_v5 = vcombine.low %v3284_v39, %v3294_v32  ;;  %v1515_v60 = vsel %vm8851_vm6, %v1510_v21, %v1514_v41 }
  0xc0   : > { %v3296_v57 = vshrl.u32 %v3079_v12, 16  ;;  %v3299_v27 = vshll.u32 %v3079_v12, 16  ;;  %v965_v20 = vrot.slane %v963_v19, 7  ;;  %v7140_v46 = vcombine.low %v1505_v2, %v1515_v60 }
  0xc1   : > { %v1519_v8 = vrot.slane %v1517_v63, 4  ;;  %v1522_v11 = vrot.slane %v1520_v44, 5  ;;  %8073 = vmatmul.mubr.msk.bf16.gmra.mrb[12].mxu0 %vm1734_vm7, %v7286_v5  ;;  %v971_v35 = vshrl.u32 %v7596_v54, 16  ;;  %v974_v16 = vshll.u32 %v7596_v54, 16 }
  0xc2   : > { %v3298_v37 = vrot.slane %v3296_v57, 4  ;;  %v3301_v38 = vrot.slane %v3299_v27, 5  ;;  %v969_v10 = vrot.slane %v965_v20, 4  ;;  %7940 = vmatprep.mubr.msk.bf16.mxu1 %vm1734_vm7, %v7140_v46  ;;  %v968_v26 = vor.u32 %v966_v28, %v965_v20  ;;  %v9288_v57 = vld [vmem:[%s8752_s14 + $0x60] sm:$0xff]  }
  0xc3   : > { %v1523_v55 = vor.u32 %v1522_v11, %v1519_v8  ;;  %v973_v52 = vrot.slane %v971_v35, 7  ;;  %v7598_v53 = vpack.c.bf16 %v699_v4, %v699_v4  ;;  %v980_v17 = vshrl.u32 %v7597_v47, 16  ;;  %v1206_v20 = vld [vmem:[#allocation2 + $0x84] sm:$0xf] }
  0xc4   : > { %v3302_v33 = vor.u32 %v3301_v38, %v3298_v37  ;;  %v1267_v30 = vld [vmem:[#allocation2 + $0x70] sm:$0xf]  ;;  %v1290_v23 = vld [vmem:[#allocation2 + $0x74] sm:$0x1]  ;;  %v669_v6 = vadd.f32 %v8919_v15, %v631_v18  ;;  %v1200_v21 = vsel %vm8954_vm14, %v968_v26, %v1199_v49  ;;  %v983_v44 = vshll.u32 %v7597_v47, 16 }
  0xc5   : > { %v1524_v40 = vrot.slane %v1523_v55, 4  ;;  %v1526_v41 = vshll.u32 %v1267_v30, 16  ;;  %v1530_v50 = vshrl.u32 %v1267_v30, 16  ;;  %v1536_v42 = vshll.u32 %v1290_v23, 16  ;;  %v3080_v34 = vld [vmem:[#allocation2 + $0x70] sm:$0xf] }
  0xc6   : > { %v3303_v39 = vrot.slane %v3302_v33, 4  ;;  %v3081_v43 = vld [vmem:[#allocation2 + $0x74] sm:$0x1]  ;;  %v3305_v62 = vshll.u32 %v3080_v34, 16  ;;  %v3309_v22 = vshrl.u32 %v3080_v34, 16  ;;  %v976_v2 = vor.u32 %v974_v16, %v973_v52  ;;  %v9296_v16 = vld [vmem:[%s8752_s14 + $0x68] sm:$0xff]  }
  0xc7   : > { %v978_v3 = vrot.slane %v973_v52, 4  ;;  %v1528_v51 = vrot.slane %v1526_v41, 5  ;;  %v1532_v45 = vrot.slane %v1530_v50, 4  ;;  %v1538_v61 = vrot.slane %v1536_v42, 5  ;;  %1201 = vst [vmem:[#allocation2 + $0x78] sm:$0xf] %v1200_v21 }
  0xc8   : > { %v3315_v31 = vshll.u32 %v3081_v43, 16  ;;  %v3307_v25 = vrot.slane %v3305_v62, 5  ;;  %v3311_v48 = vrot.slane %v3309_v22, 4  ;;  %v977_v7 = vsel %vm8948_vm13, %v969_v10, %v976_v2  ;;  %v1210_v30 = vld [vmem:[#allocation2 + $0x8c] sm:$0x1] }
  0xc9   : > { %v1529_v59 = vsel %vm8851_vm6, %v1524_v40, %v1528_v51  ;;  %v1533_v12 = vor.u32 %v1532_v45, %v1528_v51  ;;  %1202 = vst.msk [vmem:[#allocation2 + $0x7c] sm:$0xf] %vm1130_vm10, %v977_v7  ;;  %v1204_v19 = vsel %vm8960_vm15, %v978_v3, %v1203_v29  ;;  %v982_v63 = vrot.slane %v980_v17, 7 }
  0xca   : > { %v3317_v54 = vrot.slane %v3315_v31, 5  ;;  %v3308_v18 = vsel %vm8851_vm6, %v3303_v39, %v3307_v25  ;;  %v3312_v32 = vor.u32 %v3311_v48, %v3307_v25  ;;  %1205 = vst [vmem:[#allocation2 + $0x80] sm:$0x1] %v1204_v19  ;;  %v988_v60 = vshrl.u32 %v7598_v53, 16 }
  0xcb   : > { %v1534_v5 = vrot.slane %v1533_v12, 4  ;;  %v991_v27 = vshll.u32 %v7598_v53, 16  ;;  %v700_v46 = vmax.f32 %v668_v1, 0.0  ;;  %v985_v11 = vor.u32 %v983_v44, %v982_v63 }
  0xcc   : > { %v3313_v8 = vrot.slane %v3312_v32, 4  ;;  %v986_v37 = vrot.slane %v982_v63, 4  ;;  %v701_v38 = vmax.f32 %v669_v6, 0.0  ;;  %v990_v10 = vrot.slane %v988_v60, 7 }
  0xcd   : > { %v1539_v28 = vsel %vm8851_vm6, %v1534_v5, %v1538_v61  ;;  %v9292_v35 = vpack.c.bf16 %v700_v46, %v700_v46  ;;  %v7723_v55 = vunpack.c.l.bf16 %v9288_v57  ;;  %v1207_v33 = vsel %vm8954_vm14, %v985_v11, %v1206_v20 }
  0xce   : > { %v7141_v4 = vcombine.low %v1529_v59, %v1539_v28  ;;  %v3318_v47 = vsel %vm8851_vm6, %v3313_v8, %v3317_v54  ;;  %v9302_v26 = vpack.c.bf16 %v701_v38, %v701_v38  ;;  %v993_v49 = vor.u32 %v991_v27, %v990_v10  ;;  %1208 = vst [vmem:[#allocation2 + $0x84] sm:$0xf] %v1207_v33  ;;  %v3082_v40 = vld [vmem:[#allocation2 + $0x78] sm:$0xf] }
  0xcf   : > { %v7287_v52 = vcombine.low %v3308_v18, %v3318_v47  ;;  %v995_v1 = vrot.slane %v990_v10, 4  ;;  %v997_v23 = vshrl.u32 %v9292_v35, 16  ;;  %v1268_v53 = vld [vmem:[#allocation2 + $0x78] sm:$0xf]  ;;  %v7724_v17 = vunpack.c.h.bf16 %v9288_v57 }
  0xd0   : > { %7941 = vmatmul.mubr.msk.bf16.gmra.mrb[16].mxu1 %vm1734_vm7, %v7141_v4  ;;  %v3083_v29 = vld [vmem:[#allocation2 + $0x7c] sm:$0xf]  ;;  %v632_v6 = vmul.f32 %v7723_v55, %v8904_v0  ;;  %v7727_v41 = vunpack.c.l.bf16 %v9296_v16  ;;  %v7728_v50 = vunpack.c.h.bf16 %v9296_v16  ;;  %v3320_v34 = vshrl.u32 %v3082_v40, 16 }
  0xd1   : > { %8076 = vmatprep.mubr.msk.bf16.mxu0 %vm1734_vm7, %v7287_v52  ;;  %v3084_v42 = vld [vmem:[#allocation2 + $0x80] sm:$0x1]  ;;  %v3323_v39 = vshll.u32 %v3082_v40, 16  ;;  %v3329_v43 = vshll.u32 %v3083_v29, 16  ;;  %v3333_v62 = vshrl.u32 %v3083_v29, 16  ;;  %v1541_v51 = vshrl.u32 %v1268_v53, 16 }
  0xd2   : > { %v3339_v22 = vshll.u32 %v3084_v42, 16  ;;  %v1269_v2 = vld [vmem:[#allocation2 + $0x7c] sm:$0xf]  ;;  %v1291_v3 = vld [vmem:[#allocation2 + $0x80] sm:$0x1]  ;;  %v994_v45 = vsel %vm8948_vm13, %v986_v37, %v993_v49  ;;  %v1211_v61 = vsel %vm8960_vm15, %v995_v1, %v1210_v30  ;;  %v3322_v31 = vrot.slane %v3320_v34, 4 }
  0xd3   : > { %v3325_v25 = vrot.slane %v3323_v39, 5  ;;  %v3331_v48 = vrot.slane %v3329_v43, 5  ;;  %v3335_v7 = vrot.slane %v3333_v62, 4  ;;  %1209 = vst.msk [vmem:[#allocation2 + $0x88] sm:$0xf] %vm1130_vm10, %v994_v45  ;;  %v1543_v59 = vrot.slane %v1541_v51, 4 }
  0xd4   : > { %1212 = vst [vmem:[#allocation2 + $0x8c] sm:$0x1] %v1211_v61  ;;  %v3341_v21 = vrot.slane %v3339_v22, 5  ;;  %v1544_v12 = vshll.u32 %v1268_v53, 16  ;;  %v1550_v54 = vshll.u32 %v1269_v2, 16  ;;  %v1554_v32 = vshrl.u32 %v1269_v2, 16 }
  0xd5   : > { %v3326_v19 = vor.u32 %v3325_v25, %v3322_v31  ;;  %v3336_v18 = vor.u32 %v3335_v7, %v3331_v48  ;;  %v1560_v63 = vshll.u32 %v1291_v3, 16  ;;  %v1270_v5 = vld [vmem:[#allocation2 + $0x84] sm:$0xf]  ;;  %v633_v27 = vmul.f32 %v7724_v17, %v8904_v0 }
  0xd6   : > { %v1546_v44 = vrot.slane %v1544_v12, 5  ;;  %v1552_v57 = vrot.slane %v1550_v54, 5  ;;  %v3085_v60 = vld [vmem:[#allocation2 + $0x84] sm:$0xf]  ;;  %v9318_v20 = vadd.f32 %v8919_v15, %v632_v6  ;;  %v1556_v11 = vrot.slane %v1554_v32, 4 }
  0xd7   : > { %v3327_v46 = vrot.slane %v3326_v19, 4  ;;  %v3337_v8 = vrot.slane %v3336_v18, 4  ;;  %v1562_v37 = vrot.slane %v1560_v63, 5  ;;  %v1565_v28 = vshrl.u32 %v1270_v5, 16 }
  0xd8   : > { %v1547_v38 = vor.u32 %v1546_v44, %v1543_v59  ;;  %v1568_v10 = vshll.u32 %v1270_v5, 16  ;;  %v3344_v55 = vshrl.u32 %v3085_v60, 16  ;;  %v1557_v33 = vor.u32 %v1556_v11, %v1552_v57 }
  0xd9   : > { %v3332_v4 = vsel %vm8851_vm6, %v3327_v46, %v3331_v48  ;;  %v3342_v47 = vsel %vm8851_vm6, %v3337_v8, %v3341_v21  ;;  %v3347_v52 = vshll.u32 %v3085_v60, 16  ;;  %v1567_v29 = vrot.slane %v1565_v28, 4  ;;  %v1213_v46 = vld [vmem:[#allocation2 + $0x90] sm:$0xf] }
  0xda   : > { %v7288_v49 = vcombine.low %v3332_v4, %v3342_v47  ;;  %v1548_v1 = vrot.slane %v1547_v38, 4  ;;  %v1271_v30 = vld [vmem:[#allocation2 + $0x88] sm:$0xf]  ;;  %v671_v53 = vadd.f32 %v8919_v15, %v633_v27  ;;  %v1558_v17 = vrot.slane %v1557_v33, 4 }
  0xdb   : > { %v1292_v40 = vld [vmem:[#allocation2 + $0x8c] sm:$0x1]  ;;  %v1570_v6 = vrot.slane %v1568_v10, 5  ;;  %v1574_v42 = vshll.u32 %v1271_v30, 16  ;;  %v1578_v34 = vshrl.u32 %v1271_v30, 16  ;;  %v3346_v2 = vrot.slane %v3344_v55, 4 }
  0xdc   : > { %v9325_v39 = vld [vmem:[#allocation2 + $0x88] sm:$0xf]  ;;  %8077 = vmatmul.mubr.msk.bf16.gmra.mrb[16].mxu0 %vm1734_vm7, %v7288_v49  ;;  %v1553_v43 = vsel %vm8851_vm6, %v1548_v1, %v1552_v57  ;;  %v1584_v62 = vshll.u32 %v1292_v40, 16  ;;  %v3087_v22 = vld [vmem:[#allocation2 + $0x8c] sm:$0x1]  ;;  %v3349_v3 = vrot.slane %v3347_v52, 5  ;;  %v1563_v51 = vsel %vm8851_vm6, %v1558_v17, %v1562_v37 }
  0xdd   : > { %v1571_v45 = vor.u32 %v1570_v6, %v1567_v29  ;;  %v1576_v61 = vrot.slane %v1574_v42, 5  ;;  %v1580_v31 = vrot.slane %v1578_v34, 4  ;;  %v7142_v25 = vcombine.low %v1553_v43, %v1563_v51  ;;  %v7750_v55 = vld [vmem:[%s8752_s14 + $0x70] sm:$0xff]   ;;  %v1217_v1 = vld [vmem:[#allocation2 + $0x98] sm:$0x1] }
  0xde   : > { %v1586_v48 = vrot.slane %v1584_v62, 5  ;;  %v3350_v7 = vor.u32 %v3349_v3, %v3346_v2  ;;  %v3353_v21 = vshll.u32 %v9325_v39, 16  ;;  %v3357_v54 = vshrl.u32 %v9325_v39, 16 }
  0xdf   : > { %v1572_v59 = vrot.slane %v1571_v45, 4  ;;  %v1581_v12 = vor.u32 %v1580_v31, %v1576_v61  ;;  %v3363_v19 = vshll.u32 %v3087_v22, 16  ;;  %7944 = vmatprep.mubr.msk.bf16.mxu1 %vm1734_vm7, %v7142_v25  ;;  %v999_v63 = vrot.slane %v997_v23, 7  ;;  %v9365_v22 = vld [vmem:[%s8752_s14 + $0x78] sm:$0xff]   ;;  %s6201_s14 = scvt.s32.f32 %s8743_s26 }
  0xe0   : > { %v3351_v18 = vrot.slane %v3350_v7, 4  ;;  %v3355_v32 = vrot.slane %v3353_v21, 5  ;;  %v1000_v44 = vshll.u32 %v9292_v35, 16  ;;  %v3359_v60 = vrot.slane %v3357_v54, 4 }
  0xe1   : > { %v1577_v57 = vsel %vm8851_vm6, %v1572_v59, %v1576_v61  ;;  %v1582_v5 = vrot.slane %v1581_v12, 4  ;;  %v3365_v27 = vrot.slane %v3363_v19, 5  ;;  %v1003_v37 = vrot.slane %v999_v63, 4  ;;  %v1220_v59 = vld [vmem:[#allocation2 + $0x9c] sm:$0xf]  ;;  %s10689_s16 = smul.f32 256.0, %s6201_s14 }
  0xe2   : > { %v3356_v8 = vsel %vm8851_vm6, %v3351_v18, %v3355_v32  ;;  %v1002_v11 = vor.u32 %v1000_v44, %v999_v63  ;;  %v1005_v38 = vshrl.u32 %v9302_v26, 16  ;;  %v3360_v23 = vor.u32 %v3359_v60, %v3355_v32  ;;  %v1224_v12 = vld [vmem:[#allocation2 + $0xa4] sm:$0x1] }
  0xe3   : > { %v1587_v28 = vsel %vm8851_vm6, %v1582_v5, %v1586_v48  ;;  %v1008_v35 = vshll.u32 %v9302_v26, 16  ;;  %v702_v10 = vmax.f32 %v9318_v20, 0.0  ;;  %v703_v52 = vmax.f32 %v671_v53, 0.0  ;;  %s6217_s29 = smul.f32 256.0, %s10689_s16 }
  0xe4   : > { %v7143_v4 = vcombine.low %v1577_v57, %v1587_v28  ;;  %v1007_v47 = vrot.slane %v1005_v38, 7  ;;  %v1214_v33 = vsel %vm8954_vm14, %v1002_v11, %v1213_v46  ;;  %v3361_v49 = vrot.slane %v3360_v23, 4 }
  0xe5   : > { %1215 = vst [vmem:[#allocation2 + $0x90] sm:$0xf] %v1214_v33  ;;  %v7601_v30 = vpack.c.bf16 %v702_v10, %v702_v10  ;;  %v634_v40 = vmul.f32 %v7727_v41, %v8904_v0  ;;  %v635_v26 = vmul.f32 %v7728_v50, %v8904_v0  ;;  %v7602_v17 = vpack.c.bf16 %v703_v52, %v703_v52 }
  0xe6   : > { %7945 = vmatmul.mubr.msk.bf16.gmra.mrb[20].mxu1 %vm1734_vm7, %v7143_v4  ;;  %v1010_v20 = vor.u32 %v1008_v35, %v1007_v47  ;;  %v1012_v29 = vrot.slane %v1007_v47, 4  ;;  %v7731_v6 = vunpack.c.l.bf16 %v7750_v55  ;;  %v3366_v53 = vsel %vm8851_vm6, %v3361_v49, %v3365_v27 }
  0xe7   : > { %v1014_v42 = vshrl.u32 %v7601_v30, 16  ;;  %v1017_v34 = vshll.u32 %v7601_v30, 16  ;;  %v672_v43 = vadd.f32 %v8919_v15, %v634_v40  ;;  %v7289_v62 = vcombine.low %v3356_v8, %v3366_v53 }
  0xe8   : > { %v1011_v41 = vsel %vm8948_vm13, %v1003_v37, %v1010_v20  ;;  %v1218_v16 = vsel %vm8960_vm15, %v1012_v29, %v1217_v1  ;;  %v1022_v50 = vshrl.u32 %v7602_v17, 16  ;;  %v1025_v3 = vshll.u32 %v7602_v17, 16 }
  0xe9   : > { %1216 = vst.msk [vmem:[#allocation2 + $0x94] sm:$0xf] %vm1130_vm10, %v1011_v41  ;;  %1219 = vst [vmem:[#allocation2 + $0x98] sm:$0x1] %v1218_v16  ;;  %v1016_v2 = vrot.slane %v1014_v42, 7  ;;  %v673_v51 = vadd.f32 %v8919_v15, %v635_v26  ;;  %v704_v45 = vmax.f32 %v672_v43, 0.0  ;;  %8080 = vmatprep.mubr.msk.bf16.mxu0 %vm1734_vm7, %v7289_v62  ;;  %v7732_v25 = vunpack.c.h.bf16 %v7750_v55 }
  0xea   : > { %v9371_v61 = vrot.slane %v3854_v56, 4  ;;  %v1024_v31 = vrot.slane %v1022_v50, 7  ;;  %v636_v48 = vmul.f32 %v7731_v6, %v8904_v0  ;;  %v7735_v19 = vunpack.c.l.bf16 %v9365_v22 }
  0xeb   : > { %v1019_v7 = vor.u32 %v1017_v34, %v1016_v2  ;;  %v1020_v21 = vrot.slane %v1016_v2, 4  ;;  %v705_v54 = vmax.f32 %v673_v51, 0.0  ;;  %v9378_v57 = vpack.c.bf16 %v704_v45, %v704_v45 }
  0xec   : > { %v3088_v18 = vld [vmem:[#allocation2 + $0x90] sm:$0xf]  ;;  %v1027_v63 = vor.u32 %v1025_v3, %v1024_v31  ;;  %v1029_v44 = vrot.slane %v1024_v31, 4  ;;  %v637_v5 = vmul.f32 %v7732_v25, %v8904_v0  ;;  %v9390_v28 = vadd.f32 %v8919_v15, %v636_v48 }
  0xed   : > { %v9376_v32 = vld [vmem:[#allocation2 + $0x90] sm:$0xf]  ;;  %v3368_v60 = vshrl.u32 %v3088_v18, 16  ;;  %v3371_v27 = vshll.u32 %v3088_v18, 16  ;;  %v1221_v37 = vsel %vm8954_vm14, %v1019_v7, %v1220_v59  ;;  %v9399_v52 = vpack.c.bf16 %v705_v54, %v705_v54 }
  0xee   : > { %v1589_v46 = vshrl.u32 %v9376_v32, 16  ;;  %v1592_v8 = vshll.u32 %v9376_v32, 16  ;;  %v1028_v11 = vsel %vm8948_vm13, %v1020_v21, %v1027_v63  ;;  %v1225_v38 = vsel %vm8960_vm15, %v1029_v44, %v1224_v12  ;;  %1222 = vst [vmem:[#allocation2 + $0x9c] sm:$0xf] %v1221_v37 }
  0xef   : > { %v3370_v23 = vrot.slane %v3368_v60, 4  ;;  %v3373_v35 = vrot.slane %v3371_v27, 5  ;;  %1223 = vst.msk [vmem:[#allocation2 + $0xa0] sm:$0xf] %vm1130_vm10, %v1028_v11  ;;  %1226 = vst [vmem:[#allocation2 + $0xa4] sm:$0x1] %v1225_v38  ;;  %v9402_v49 = vadd.f32 %v8919_v15, %v637_v5  ;;  %v7736_v1 = vunpack.c.h.bf16 %v9365_v22 }
  0xf0   : > { %v1591_v10 = vrot.slane %v1589_v46, 4  ;;  %v1594_v55 = vrot.slane %v1592_v8, 5  ;;  %v9393_v4 = vld [vmem:[#allocation2 + $0x94] sm:$0xf]  ;;  %v9395_v47 = vld [vmem:[#allocation2 + $0x98] sm:$0x1]  ;;  %v638_v30 = vmul.f32 %v7735_v19, %v8904_v0 }
  0xf1   : > { %v9397_v33 = vld [vmem:[#allocation2 + $0x94] sm:$0xf]  ;;  %v3374_v40 = vor.u32 %v3373_v35, %v3370_v23  ;;  %v3377_v26 = vshll.u32 %v9393_v4, 16  ;;  %v3381_v20 = vshrl.u32 %v9393_v4, 16  ;;  %v3387_v29 = vshll.u32 %v9395_v47, 16 }
  0xf2   : > { %v1293_v17 = vld [vmem:[#allocation2 + $0x98] sm:$0x1]  ;;  %v1595_v6 = vor.u32 %v1594_v55, %v1591_v10  ;;  %v1598_v53 = vshll.u32 %v9397_v33, 16  ;;  %v1602_v42 = vshrl.u32 %v9397_v33, 16  ;;  %v1031_v31 = vshrl.u32 %v9378_v57, 16 }
  0xf3   : > { %v1608_v34 = vshll.u32 %v1293_v17, 16  ;;  %v3375_v43 = vrot.slane %v3374_v40, 4  ;;  %v3379_v62 = vrot.slane %v3377_v26, 5  ;;  %v3383_v41 = vrot.slane %v3381_v20, 4 }
  0xf4   : > { %v3389_v16 = vrot.slane %v3387_v29, 5  ;;  %v1596_v50 = vrot.slane %v1595_v6, 4  ;;  %v1600_v22 = vrot.slane %v1598_v53, 5  ;;  %v1604_v2 = vrot.slane %v1602_v42, 4 }
  0xf5   : > { %v1610_v3 = vrot.slane %v1608_v34, 5  ;;  %v3380_v51 = vsel %vm8851_vm6, %v3375_v43, %v3379_v62  ;;  %v3384_v45 = vor.u32 %v3383_v41, %v3379_v62  ;;  %v1034_v25 = vshll.u32 %v9378_v57, 16  ;;  %v9417_v21 = vld [vmem:[#allocation2 + $0x9c] sm:$0xf]  ;;  %v1227_v34 = vld [vmem:[#allocation2 + $0xa8] sm:$0xf] }
  0xf6   : > { %v1601_v48 = vsel %vm8851_vm6, %v1596_v50, %v1600_v22  ;;  %v1605_v7 = vor.u32 %v1604_v2, %v1600_v22  ;;  %v9419_v59 = vld [vmem:[#allocation2 + $0xa0] sm:$0xf]  ;;  %v1294_v12 = vld [vmem:[#allocation2 + $0xa4] sm:$0x1]  ;;  %v639_v54 = vmul.f32 %v7736_v1, %v8904_v0  ;;  %v9423_v19 = vadd.f32 %v8919_v15, %v638_v30  ;;  %v3091_v5 = vld [vmem:[#allocation2 + $0x9c] sm:$0xf] }
  0xf7   : > { %v3385_v18 = vrot.slane %v3384_v45, 4  ;;  %v1613_v63 = vshrl.u32 %v9417_v21, 16  ;;  %v1616_v44 = vshll.u32 %v9417_v21, 16  ;;  %v1622_v57 = vshll.u32 %v9419_v59, 16  ;;  %v9429_v8 = vld [vmem:[#allocation2 + $0xa0] sm:$0xf] }
  0xf8   : > { %v1606_v60 = vrot.slane %v1605_v7, 4  ;;  %v1626_v27 = vshrl.u32 %v9419_v59, 16  ;;  %v1632_v46 = vshll.u32 %v1294_v12, 16  ;;  %v3392_v11 = vshrl.u32 %v3091_v5, 16  ;;  %v9433_v35 = vld [vmem:[#allocation2 + $0xa4] sm:$0x1] }
  0xf9   : > { %v3390_v0 = vsel %vm8851_vm6, %v3385_v18, %v3389_v16  ;;  %v1615_v37 = vrot.slane %v1613_v63, 4  ;;  %v1618_v38 = vrot.slane %v1616_v44, 5  ;;  %v1624_v23 = vrot.slane %v1622_v57, 5 }
  0xfa   : > { %v7290_v10 = vcombine.low %v3380_v51, %v3390_v0  ;;  %v1611_v55 = vsel %vm8851_vm6, %v1606_v60, %v1610_v3  ;;  %v1628_v1 = vrot.slane %v1626_v27, 4  ;;  %v1634_v30 = vrot.slane %v1632_v46, 5  ;;  %v1231_v60 = vld [vmem:[#allocation2 + $0xb0] sm:$0x1] }
  0xfb   : > { %v7144_v40 = vcombine.low %v1601_v48, %v1611_v55  ;;  %v1619_v26 = vor.u32 %v1618_v38, %v1615_v37  ;;  %v3394_v20 = vrot.slane %v3392_v11, 4  ;;  %v3395_v29 = vshll.u32 %v3091_v5, 16 }
  0xfc   : > { %8081 = vmatmul.mubr.msk.bf16.gmra.mrb[20].mxu0 %vm1734_vm7, %v7290_v10  ;;  %v1629_v17 = vor.u32 %v1628_v1, %v1624_v23  ;;  %v3401_v6 = vshll.u32 %v9429_v8, 16  ;;  %v3405_v53 = vshrl.u32 %v9429_v8, 16  ;;  %v3411_v42 = vshll.u32 %v9433_v35, 16 }
  0xfd   : > { %7948 = vmatprep.mubr.msk.bf16.mxu1 %vm1734_vm7, %v7144_v40  ;;  %v1620_v43 = vrot.slane %v1619_v26, 4  ;;  %v3397_v62 = vrot.slane %v3395_v29, 5  ;;  %v1033_v41 = vrot.slane %v1031_v31, 7  ;;  %v1039_v16 = vshrl.u32 %v9399_v52, 16  ;;  %v9469_v29 = vld [vmem:[#allocation2 + $0x10] sm:$0xf] }
  0xfe   : > { %v1630_v50 = vrot.slane %v1629_v17, 4  ;;  %v3403_v22 = vrot.slane %v3401_v6, 5  ;;  %v3407_v2 = vrot.slane %v3405_v53, 4  ;;  %v3413_v3 = vrot.slane %v3411_v42, 5  ;;  %v9472_v6 = vld [vmem:[#allocation2 + $0x14] sm:$0x1] }
  0xff   : > { %v1625_v51 = vsel %vm8851_vm6, %v1620_v43, %v1624_v23  ;;  %v3398_v45 = vor.u32 %v3397_v62, %v3394_v20  ;;  %v1036_v48 = vor.u32 %v1034_v25, %v1033_v41  ;;  %v1037_v7 = vrot.slane %v1033_v41, 4  ;;  %v1234_v43 = vld [vmem:[#allocation2 + $0xb4] sm:$0xf] }
 0x100   : > { %v1635_v12 = vsel %vm8851_vm6, %v1630_v50, %v1634_v30  ;;  %v3408_v18 = vor.u32 %v3407_v2, %v3403_v22  ;;  %v1041_v63 = vrot.slane %v1039_v16, 7  ;;  %v1042_v44 = vshll.u32 %v9399_v52, 16  ;;  %v8578_v62 = vld [vmem:[%s8757_s17 + $0x30] sm:$0xff]  }
 0x101   : > { %v7145_v31 = vcombine.low %v1625_v51, %v1635_v12  ;;  %v3399_v57 = vrot.slane %v3398_v45, 4  ;;  %v1228_v5 = vsel %vm8954_vm14, %v1036_v48, %v1227_v34  ;;  %v706_v27 = vmax.f32 %v9390_v28, 0.0 }
 0x102   : > { %v3409_v46 = vrot.slane %v3408_v18, 4  ;;  %v1044_v11 = vor.u32 %v1042_v44, %v1041_v63  ;;  %v1046_v0 = vrot.slane %v1041_v63, 4  ;;  %1229 = vst [vmem:[#allocation2 + $0xa8] sm:$0xf] %v1228_v5  ;;  %v707_v25 = vmax.f32 %v9402_v49, 0.0 }
 0x103   : > { %7949 = vmatmul.mubr.msk.bf16.gmra.mrb[24].mxu1 %vm1734_vm7, %v7145_v31  ;;  %v3404_v37 = vsel %vm8851_vm6, %v3399_v57, %v3403_v22  ;;  %v7605_v52 = vpack.c.bf16 %v706_v27, %v706_v27  ;;  %v677_v38 = vadd.f32 %v8919_v15, %v639_v54  ;;  %v708_v23 = vmax.f32 %v9423_v19, 0.0  ;;  %v1238_v27 = vld [vmem:[#allocation2 + $0xbc] sm:$0x1] }
 0x104   : > { %v3414_v10 = vsel %vm8851_vm6, %v3409_v46, %v3413_v3  ;;  %v1045_v28 = vsel %vm8948_vm13, %v1037_v7, %v1044_v11  ;;  %v1232_v55 = vsel %vm8960_vm15, %v1046_v0, %v1231_v60  ;;  %v7606_v49 = vpack.c.bf16 %v707_v25, %v707_v25 }
 0x105   : > { %v7291_v1 = vcombine.low %v3404_v37, %v3414_v10  ;;  %1230 = vst.msk [vmem:[#allocation2 + $0xac] sm:$0xf] %vm1130_vm10, %v1045_v28  ;;  %1233 = vst [vmem:[#allocation2 + $0xb0] sm:$0x1] %v1232_v55  ;;  %v1048_v30 = vshrl.u32 %v7605_v52, 16  ;;  %v1051_v40 = vshll.u32 %v7605_v52, 16  ;;  %v9464_v54 = vpack.c.bf16 %v708_v23, %v708_v23 }
 0x106   : > { %v709_v26 = vmax.f32 %v677_v38, 0.0  ;;  %v1056_v15 = vshrl.u32 %v7606_v49, 16  ;;  %v3847_v17 = vrot.slane %v9469_v29, 5  ;;  %v3850_v53 = vrot.slane %v9472_v6, 5 }
 0x107   : > { %8084 = vmatprep.mubr.msk.bf16.mxu0 %vm1734_vm7, %v7291_v1  ;;  %v1050_v19 = vrot.slane %v1048_v30, 7  ;;  %v1059_v34 = vshll.u32 %v7606_v49, 16  ;;  %v1065_v22 = vshrl.u32 %v9464_v54, 16  ;;  %v1068_v2 = vshll.u32 %v9464_v54, 16 }
 0x108   : > { %v9467_v20 = vpack.c.bf16 %v709_v26, %v709_v26  ;;  %v1058_v42 = vrot.slane %v1056_v15, 7  ;;  %v11794_v3 = vrot.slane %v9035_v36, 5 }
 0x109   : > { %v3094_v41 = vld [vmem:[#allocation2 + $0xa8] sm:$0xf]  ;;  %v1053_v50 = vor.u32 %v1051_v40, %v1050_v19  ;;  %v1054_v18 = vrot.slane %v1050_v19, 4  ;;  %v9509_v30 = vrot.slane %v1065_v22, 7  ;;  %v3781_v19 = vld [vmem:[#allocation2 + $0xc] sm:$0xe] }
 0x10a   : > { %v9479_v16 = vld [vmem:[#allocation2 + $0xa8] sm:$0xf]  ;;  %v9488_v51 = vsel %vm9475_vm2, %v9371_v61, %v11794_v3  ;;  %v3416_v45 = vshrl.u32 %v3094_v41, 16  ;;  %v3419_v48 = vshll.u32 %v3094_v41, 16  ;;  %v1063_v63 = vrot.slane %v1058_v42, 4 }
 0x10b   : > { %v1637_v7 = vshrl.u32 %v9479_v16, 16  ;;  %v1640_v12 = vshll.u32 %v9479_v16, 16  ;;  %v1235_v44 = vsel %vm8954_vm14, %v1053_v50, %v1234_v43  ;;  %v1073_v31 = vshrl.u32 %v9467_v20, 16 }
 0x10c   : > { %v9495_v57 = vld [vmem:[#allocation2 + $0xac] sm:$0xf]  ;;  %v9497_v36 = vld [vmem:[#allocation2 + $0xb0] sm:$0x1]  ;;  %v3418_v5 = vrot.slane %v3416_v45, 4  ;;  %v3421_v61 = vrot.slane %v3419_v48, 5  ;;  %v1061_v60 = vor.u32 %v1059_v34, %v1058_v42  ;;  %v1239_v41 = vsel %vm8960_vm15, %v1063_v63, %v1238_v27 }
 0x10d   : > { %1236 = vst [vmem:[#allocation2 + $0xb4] sm:$0xf] %v1235_v44  ;;  %v3425_v46 = vshll.u32 %v9495_v57, 16  ;;  %v3429_v11 = vshrl.u32 %v9495_v57, 16  ;;  %v3435_v0 = vshll.u32 %v9497_v36, 16  ;;  %v1639_v37 = vrot.slane %v1637_v7, 4 }
 0x10e   : > { %v9502_v25 = vld [vmem:[#allocation2 + $0xac] sm:$0xf]  ;;  %v3422_v52 = vor.u32 %v3421_v61, %v3418_v5  ;;  %v9504_v38 = vld [vmem:[#allocation2 + $0xb0] sm:$0x1]  ;;  %v1642_v23 = vrot.slane %v1640_v12, 5  ;;  %v1062_v43 = vsel %vm8948_vm13, %v1054_v18, %v1061_v60  ;;  %v1070_v44 = vor.u32 %v1068_v2, %v9509_v30 }
 0x10f   : > { %v1646_v10 = vshll.u32 %v9502_v25, 16  ;;  %v1650_v28 = vshrl.u32 %v9502_v25, 16  ;;  %v3427_v55 = vrot.slane %v3425_v46, 5  ;;  %v3431_v49 = vrot.slane %v3429_v11, 4  ;;  %1237 = vst.msk [vmem:[#allocation2 + $0xb8] sm:$0xf] %vm1130_vm10, %v1062_v43 }
 0x110   : > { %v1656_v1 = vshll.u32 %v9504_v38, 16  ;;  %v3423_v40 = vrot.slane %v3422_v52, 4  ;;  %v1643_v26 = vor.u32 %v1642_v23, %v1639_v37  ;;  %v3437_v34 = vrot.slane %v3435_v0, 5  ;;  %1240 = vst [vmem:[#allocation2 + $0xbc] sm:$0x1] %v1239_v41 }
 0x111   : > { %v1648_v15 = vrot.slane %v1646_v10, 5  ;;  %v1652_v54 = vrot.slane %v1650_v28, 4  ;;  %v3432_v42 = vor.u32 %v3431_v49, %v3427_v55  ;;  %v7311_v5 = vrot.slane %v3781_v19, 9  ;;  %v1241_v27 = vld [vmem:[#allocation2 + $0xc0] sm:$0xf] }
 0x112   : > { %v1644_v50 = vrot.slane %v1643_v26, 4  ;;  %v1658_v45 = vrot.slane %v1656_v1, 5  ;;  %v3428_v22 = vsel %vm8851_vm6, %v3423_v40, %v3427_v55  ;;  %v1075_v37 = vrot.slane %v1073_v31, 7 }
 0x113   : > { %v1653_v3 = vor.u32 %v1652_v54, %v1648_v15  ;;  %v3433_v48 = vrot.slane %v3432_v42, 4  ;;  %v1076_v1 = vshll.u32 %v9467_v20, 16  ;;  %v1071_v26 = vrot.slane %v9509_v30, 4  ;;  %v1245_v54 = vld [vmem:[#allocation2 + $0xc8] sm:$0x1] }
 0x114   : > { %v9518_v7 = vld [vmem:[#allocation2 + $0xb4] sm:$0xf]  ;;  %v1649_v18 = vsel %vm8851_vm6, %v1644_v50, %v1648_v15  ;;  %v1080_v15 = vrot.slane %v1075_v37, 4  ;;  %v1242_v31 = vsel %vm8954_vm14, %v1070_v44, %v1241_v27  ;;  %v9545_v30 = vsel %vm9475_vm2, %v7311_v5, %v3847_v17  ;;  %v3782_v5 = vld [vmem:[#allocation2 + $0x18] sm:$0xe] }
 0x115   : > { %v3097_v12 = vld [vmem:[#allocation2 + $0xb4] sm:$0xf]  ;;  %v1654_v63 = vrot.slane %v1653_v3, 4  ;;  %v1661_v61 = vshrl.u32 %v9518_v7, 16  ;;  %v1664_v60 = vshll.u32 %v9518_v7, 16  ;;  %v3438_v46 = vsel %vm8851_vm6, %v3433_v48, %v3437_v34 }
 0x116   : > { %v3440_v11 = vshrl.u32 %v3097_v12, 16  ;;  %v3443_v0 = vshll.u32 %v3097_v12, 16  ;;  %v7292_v52 = vcombine.low %v3428_v22, %v3438_v46  ;;  %v9535_v19 = vld [vmem:[#allocation2 + $0xb8] sm:$0xf]  ;;  %v1078_v20 = vor.u32 %v1076_v1, %v1075_v37  ;;  %1243 = vst [vmem:[#allocation2 + $0xc0] sm:$0xf] %v1242_v31 }
 0x117   : > { %v1659_v2 = vsel %vm8851_vm6, %v1654_v63, %v1658_v45  ;;  %v1663_v23 = vrot.slane %v1661_v61, 4  ;;  %v1666_v10 = vrot.slane %v1664_v60, 5  ;;  %v9537_v42 = vld [vmem:[#allocation2 + $0xbc] sm:$0x1]  ;;  %v9539_v34 = vld [vmem:[#allocation2 + $0xb8] sm:$0xf]  ;;  %v1246_v29 = vsel %vm8960_vm15, %v1080_v15, %v1245_v54 }
 0x118   : > { %v7146_v28 = vcombine.low %v1649_v18, %v1659_v2  ;;  %v3442_v55 = vrot.slane %v3440_v11, 4  ;;  %v3445_v49 = vrot.slane %v3443_v0, 5  ;;  %8085 = vmatmul.mubr.msk.bf16.gmra.mrb[24].mxu0 %vm1734_vm7, %v7292_v52  ;;  %v1670_v9 = vshll.u32 %v9535_v19, 16  ;;  %v9550_v3 = vld [vmem:[#allocation2 + $0xbc] sm:$0x1] }
 0x119   : > { %v1667_v40 = vor.u32 %v1666_v10, %v1663_v23  ;;  %v1674_v41 = vshrl.u32 %v9535_v19, 16  ;;  %v1680_v50 = vshll.u32 %v9537_v42, 16  ;;  %v3849_v45 = vrot.slane %v3847_v17, 4  ;;  %1247 = vst [vmem:[#allocation2 + $0xc8] sm:$0x1] %v1246_v29 }
 0x11a   : > { %7952 = vmatprep.mubr.msk.bf16.mxu1 %vm1734_vm7, %v7146_v28  ;;  %v3446_v43 = vor.u32 %v3445_v49, %v3442_v55  ;;  %v3449_v48 = vshll.u32 %v9539_v34, 16  ;;  %v3453_v12 = vshrl.u32 %v9539_v34, 16  ;;  %v3459_v44 = vshll.u32 %v9550_v3, 16  ;;  %v9584_v15 = vld [vmem:[#allocation2 + $0x4] sm:$0xf] }
 0x11b   : > { %v1668_v22 = vrot.slane %v1667_v40, 4  ;;  %v1672_v18 = vrot.slane %v1670_v9, 5  ;;  %v1676_v63 = vrot.slane %v1674_v41, 4  ;;  %v1079_v60 = vsel %vm8948_vm13, %v1071_v26, %v1078_v20  ;;  %v8594_v26 = vld [vmem:[#allocation2] sm:$0xf] }
 0x11c   : > { %v3447_v61 = vrot.slane %v3446_v43, 4  ;;  %v3451_v27 = vrot.slane %v3449_v48, 5  ;;  %v3455_v46 = vrot.slane %v3453_v12, 4  ;;  %1244 = vst.msk [vmem:[#allocation2 + $0xc4] sm:$0xf] %vm1130_vm10, %v1079_v60  ;;  %v1682_v11 = vrot.slane %v1680_v50, 5 }
 0x11d   : > { %v1677_v17 = vor.u32 %v1676_v63, %v1672_v18  ;;  %v9566_v0 = vsel %vm9475_vm2, %v3849_v45, %v3850_v53  ;;  %v7312_v37 = vrot.slane %v3782_v5, 9  ;;  %v3461_v58 = vrot.slane %v3459_v44, 5  ;;  %v3100_v28 = vld [vmem:[#allocation2 + $0xc0] sm:$0xf]  ;;  %v9599_v60 = vld [vmem:[#allocation2 + $0x10] sm:$0xf] }
 0x11e   : > { %v3456_v52 = vor.u32 %v3455_v46, %v3451_v27  ;;  %v7328_v2 = vcombine.low %v9545_v30, %v9566_v0  ;;  %v1673_v23 = vsel %vm8851_vm6, %v1668_v22, %v1672_v18  ;;  %v3452_v10 = vsel %vm8851_vm6, %v3447_v61, %v3451_v27  ;;  %v8596_v61 = vld [vmem:[#allocation2 + $0xc] sm:$0xf]  ;;  %v8598_v46 = vld [vmem:[#allocation2 + $0x18] sm:$0xf]  ;;  %v9602_v29 = vld [vmem:[#allocation2 + $0x1c] sm:$0xf] }
 0x11f   : > { %v1678_v13 = vrot.slane %v1677_v17, 4  ;;  %v9578_v6 = vsel %vm9475_vm2, %v7312_v37, %v3854_v56  ;;  %v3464_v55 = vshrl.u32 %v3100_v28, 16  ;;  %v3467_v49 = vshll.u32 %v3100_v28, 16  ;;  %v9614_v28 = vld [vmem:[%s11710_s5 + $0x6] sm:$0x3] }
 0x120   : > { %v3457_v53 = vrot.slane %v3456_v52, 4  ;;  %v7329_v1 = vcombine.low %v9578_v6, %v9488_v51  ;;  %v7164_v31 = vcombine.low %v8594_v26, %v9584_v15  ;;  %v9592_v41 = vld [vmem:[#allocation2 + $0xc8] sm:$0x1]  ;;  %v7165_v27 = vcombine.low %v8596_v61, %v9599_v60  ;;  %v3795_v51 = vld [vmem:[#allocation2 + $0xb4] sm:$0xe] }
 0x121   : > { %v1683_v40 = vsel %vm8851_vm6, %v1678_v13, %v1682_v11  ;;  %v3466_v56 = vrot.slane %v3464_v55, 4  ;;  %v3469_v43 = vrot.slane %v3467_v49, 5  ;;  %v3483_v48 = vshll.u32 %v9592_v41, 16  ;;  %v8600_v11 = vld [vmem:[#allocation2 + $0x28] sm:$0xf] }
 0x122   : > { %v7147_v54 = vcombine.low %v1673_v23, %v1683_v40  ;;  %v3462_v14 = vsel %vm8851_vm6, %v3457_v53, %v3461_v58  ;;  %v7166_v17 = vcombine.low %v8598_v46, %v9602_v29  ;;  %v3861_v37 = vrot.slane %v8600_v11, 5  ;;  %v8601_v23 = vld [vmem:[%s11710_s5 + $0x4] sm:$0x3]  ;;  %v8602_v55 = vld [vmem:[#allocation2 + $0x34] sm:$0xf] }
 0x123   : > { %v7293_v20 = vcombine.low %v3452_v10, %v3462_v14  ;;  %v9589_v9 = vld [vmem:[#allocation2 + $0xc4] sm:$0xf]  ;;  %v3470_v50 = vor.u32 %v3469_v43, %v3466_v56  ;;  %v3485_v63 = vrot.slane %v3483_v48, 5  ;;  %v2502_v13 = vsel %vm1783_vm3, %v8601_v23, 0  ;;  %v3784_v56 = vld [vmem:[#allocation2 + $0x30] sm:$0xe] }
 0x124   : > { %7953 = vmatmul.mubr.msk.bf16.gmra.mrb[28].mxu1 %vm1734_vm7, %v7147_v54  ;;  %v3473_v45 = vshll.u32 %v9589_v9, 16  ;;  %v3477_v22 = vshrl.u32 %v9589_v9, 16  ;;  %v3783_v10 = vld [vmem:[#allocation2 + $0x24] sm:$0xe]  ;;  %v3868_v49 = vrot.slane %v8602_v55, 5 }
 0x125   : > { %8088 = vmatprep.mubr.msk.bf16.mxu0 %vm1734_vm7, %v7293_v20  ;;  %7958 = vmatprep.mubr.msk.bf16.mxu1 %vm1734_vm7, %v7164_v31  ;;  %v3471_v12 = vrot.slane %v3470_v50, 4  ;;  %v7313_v26 = vrot.slane %v3783_v10, 9  ;;  %v3863_v31 = vrot.slane %v3861_v37, 4  ;;  %v8603_v54 = vld [vmem:[#allocation2 + $0x2c] sm:$0x1] }
 0x126   : > { %v3475_v44 = vrot.slane %v3473_v45, 5  ;;  %v3479_v5 = vrot.slane %v3477_v22, 4  ;;  %v3864_v14 = vrot.slane %v8603_v54, 5  ;;  %v8604_v43 = vld [vmem:[#allocation2 + $0x40] sm:$0xf] }
 0x127   : > { %v3875_v20 = vrot.slane %v8604_v43, 5  ;;  %v3785_v50 = vld [vmem:[#allocation2 + $0x3c] sm:$0xe]  ;;  %v8605_v45 = vld [vmem:[#allocation2 + $0x24] sm:$0xf] }
 0x128   : > { %v3480_v18 = vor.u32 %v3479_v5, %v3475_v44  ;;  %v3476_v52 = vsel %vm8851_vm6, %v3471_v12, %v3475_v44  ;;  %v9627_v22 = vld [vmem:[#allocation2 + $0x28] sm:$0xf]  ;;  %v7314_v12 = vrot.slane %v3784_v56, 9  ;;  %v3870_v44 = vrot.slane %v3868_v49, 4  ;;  %v8607_v5 = vld [vmem:[#allocation2 + $0x38] sm:$0x1] }
 0x129   : > { %v7167_v48 = vcombine.low %v8605_v45, %v9627_v22  ;;  %v3865_v61 = vsel %vm9475_vm2, %v3863_v31, %v3864_v14  ;;  %v9634_v46 = vld [vmem:[#allocation2 + $0x34] sm:$0xf]  ;;  %v7315_v0 = vrot.slane %v3785_v50, 9  ;;  %v9646_v23 = vld [vmem:[#allocation2 + $0x48] sm:$0xe] }
 0x12a   : > { %v3481_v58 = vrot.slane %v3480_v18, 4  ;;  %v3871_v18 = vrot.slane %v8607_v5, 5  ;;  %v8611_v10 = vld [vmem:[%s11710_s5 + $0xc] sm:$0x3]  ;;  %v9653_v55 = vld [vmem:[#allocation2 + $0x40] sm:$0xf] }
 0x12b   : > { %v3787_v54 = vld [vmem:[#allocation2 + $0x54] sm:$0xe]  ;;  %v3794_v14 = vld [vmem:[#allocation2 + $0xa8] sm:$0xe]  ;;  %v3876_v56 = vsel %vm9475_vm2, %v7315_v0, %v3875_v20  ;;  %v9660_v45 = vld [vmem:[#allocation2 + $0x4c] sm:$0xf] }
 0x12c   : > { %v3486_v53 = vsel %vm8851_vm6, %v3481_v58, %v3485_v63  ;;  %7959 = vmatmul.mubr.msk.bf16.vlgmr.msra.gmra.mrb[0].mxu1 %vm1734_vm7, %v7165_v27  ;;  %v3862_v63 = vsel %vm9475_vm2, %v7313_v26, %v3861_v37  ;;  %v8608_v27 = vld [vmem:[#allocation2 + $0x30] sm:$0xf]  ;;  %v9640_v58 = vsel %vm9475_vm2, %v7314_v12, %v3868_v49  ;;  %v9644_v37 = vsel %vm9475_vm2, %v3870_v44, %v3871_v18  ;;  %v8614_v26 = vld [vmem:[#allocation2 + $0x4c] sm:$0xf]  ;;  %v8615_v50 = vld [vmem:[#allocation2 + $0x48] sm:$0xf] }
 0x12d   : > { %v7294_v40 = vcombine.low %v3476_v52, %v3486_v53  ;;  %7991 = vmatpush3.bf16.msra.mxu1 %v2502_v13  ;;  %7962 = vmatprep.mubr.msk.bf16.mxu1 %vm1734_vm7, %v7166_v17  ;;  %v7168_v30 = vcombine.low %v8608_v27, %v9634_v46  ;;  %v8610_v17 = vld [vmem:[#allocation2 + $0x44] sm:$0x1]  ;;  %v7330_v52 = vcombine.low %v3862_v63, %v3865_v61  ;;  %v3793_v13 = vld [vmem:[#allocation2 + $0x9c] sm:$0xe]  ;;  %v4415_v53 = vsel %vm1783_vm3, %v8611_v10, 0 }
 0x12e   : > { %8521 = vmatprep.subr.msk.bf16.mxu1 %vm1783_vm3, %v9614_v28  ;;  %v3878_v11 = vrot.slane %v8610_v17, 5  ;;  %v3882_v31 = vrot.slane %v8614_v26, 5  ;;  %v8617_v12 = vld [vmem:[#allocation2 + $0x58] sm:$0xf]  ;;  %v9666_v5 = vld [vmem:[%s11710_s5 + $0xe] sm:$0x3] }
 0x12f   : > { %8089 = vmatmul.mubr.msk.bf16.gmra.mrb[28].mxu0 %vm1734_vm7, %v7294_v40  ;;  %v8613_v40 = vld [vmem:[#allocation2 + $0x3c] sm:$0xf]  ;;  %v3889_v44 = vrot.slane %v8617_v12, 5  ;;  %v7316_v18 = vrot.slane %v9646_v23, 9  ;;  %v8618_v63 = vld [vmem:[#allocation2 + $0x50] sm:$0x1] }
 0x130   : > { %8094 = vmatprep.mubr.msk.bf16.mxu0 %vm1734_vm7, %v7328_v2  ;;  %v3877_v2 = vrot.slane %v3875_v20, 4  ;;  %v7169_v49 = vcombine.low %v8613_v40, %v9653_v55  ;;  %v7331_v20 = vcombine.low %v9640_v58, %v9644_v37  ;;  %v3885_v61 = vrot.slane %v8618_v63, 5  ;;  %v3796_v37 = vld [vmem:[#allocation2 + $0xc0] sm:$0xe]  ;;  %v8620_v12 = vld [vmem:[#allocation2 + $0x54] sm:$0xf] }
 0x131   : > { %v7323_v27 = vrot.slane %v3793_v13, 9  ;;  %v3931_v0 = vrot.slane %v9429_v8, 5  ;;  %v7324_v17 = vrot.slane %v3794_v14, 9  ;;  %v3941_v58 = vrot.slane %v9497_v36, 5  ;;  %v8619_v13 = vld [vmem:[#allocation2 + $0x5c] sm:$0x1] }
 0x132   : > { %v3879_v43 = vsel %vm9475_vm2, %v3877_v2, %v3878_v11  ;;  %v3934_v2 = vrot.slane %v9433_v35, 5  ;;  %v3938_v11 = vrot.slane %v9495_v57, 5  ;;  %v3891_v23 = vrot.slane %v3889_v44, 4  ;;  %v9708_v63 = vld [vmem:[#allocation2 + $0x58] sm:$0xf] }
 0x133   : > { %v7332_v6 = vcombine.low %v3876_v56, %v3879_v43  ;;  %v9684_v8 = vsel %vm9475_vm2, %v7323_v27, %v3931_v0  ;;  %v3933_v35 = vrot.slane %v3931_v0, 4  ;;  %v7179_v57 = vcombine.low %v9518_v7, %v9535_v19 }
 0x134   : > { %7963 = vmatmul.mubr.msk.bf16.gmra.mrb[4].mxu1 %vm1734_vm7, %v7167_v48  ;;  %v7170_v48 = vcombine.low %v8615_v50, %v9660_v45  ;;  %v9688_v10 = vsel %vm9475_vm2, %v7324_v17, %v3938_v11  ;;  %v7325_v36 = vrot.slane %v3795_v51, 9  ;;  %v3945_v26 = vrot.slane %v9539_v34, 5  ;;  %v8622_v51 = vld [vmem:[#allocation2 + $0x64] sm:$0xf] }
 0x135   : > { %7966 = vmatprep.mubr.msk.bf16.mxu1 %vm1734_vm7, %v7168_v30  ;;  %v7317_v30 = vrot.slane %v3787_v54, 9  ;;  %v9695_v40 = vsel %vm9475_vm2, %v3933_v35, %v3934_v2  ;;  %v3948_v54 = vrot.slane %v9550_v3, 5  ;;  %v7326_v14 = vrot.slane %v3796_v37, 9  ;;  %v8625_v37 = vld [vmem:[#allocation2 + $0x70] sm:$0xf] }
 0x136   : > { %v7340_v56 = vcombine.low %v9684_v8, %v9695_v40  ;;  %v3955_v50 = vrot.slane %v9592_v41, 5  ;;  %v7171_v34 = vcombine.low %v8620_v12, %v9708_v63  ;;  %v3947_v27 = vrot.slane %v3945_v26, 4  ;;  %v8627_v12 = vld [vmem:[#allocation2 + $0x74] sm:$0x1] }
 0x137   : > { %8095 = vmatmul.mubr.msk.bf16.vlgmr.msra.gmra.mrb[0].mxu0 %vm1734_vm7, %v7329_v1  ;;  %v3884_v1 = vrot.slane %v3882_v31, 4  ;;  %v3890_v17 = vsel %vm9475_vm2, %v7317_v30, %v3889_v44  ;;  %v2321_v7 = vrot.slane %v9634_v46, 5  ;;  %v2860_v46 = vsel %vm1783_vm3, %v9614_v28, 0 }
 0x138   : > { %8127 = vmatpush3.bf16.msra.mxu0 %v4415_v53  ;;  %8098 = vmatprep.mubr.msk.bf16.mxu0 %vm1734_vm7, %v7330_v52  ;;  %v3892_v52 = vrot.slane %v8619_v13, 5  ;;  %v3940_v53 = vrot.slane %v3938_v11, 4  ;;  %v3896_v11 = vrot.slane %v8622_v51, 5  ;;  %v3789_v13 = vld [vmem:[#allocation2 + $0x6c] sm:$0xe] }
 0x139   : > { %8525 = vmatprep.subr.msk.bf16.mxu0 %vm1783_vm3, %v9666_v5  ;;  %v3886_v41 = vsel %vm9475_vm2, %v3884_v1, %v3885_v61  ;;  %v3788_v1 = vld [vmem:[#allocation2 + $0x60] sm:$0xe] }
 0x13a   : > { %v9704_v43 = vsel %vm9475_vm2, %v3940_v53, %v3941_v58  ;;  %v8623_v58 = vld [vmem:[#allocation2 + $0x60] sm:$0xf]  ;;  %v3893_v61 = vsel %vm9475_vm2, %v3891_v23, %v3892_v52  ;;  %v3898_v23 = vrot.slane %v3896_v11, 4  ;;  %v8626_v52 = vld [vmem:[#allocation2 + $0x68] sm:$0x1] }
 0x13b   : > { %v7341_v3 = vcombine.low %v9688_v10, %v9704_v43  ;;  %v8641_v10 = vld [vmem:[#allocation2 + $0x38] sm:$0x1] }
 0x13c   : > { %7967 = vmatmul.mubr.msk.bf16.gmra.mrb[8].mxu1 %vm1734_vm7, %v7169_v49  ;;  %v3952_v49 = vrot.slane %v9589_v9, 5  ;;  %v3883_v9 = vsel %vm9475_vm2, %v7316_v18, %v3882_v31  ;;  %v9734_v18 = vsel %vm9475_vm2, %v3947_v27, %v3948_v54  ;;  %v3899_v54 = vrot.slane %v8626_v52, 5 }
 0x13d   : > { %7970 = vmatprep.mubr.msk.bf16.mxu1 %vm1734_vm7, %v7170_v48  ;;  %v9715_v48 = vsel %vm9475_vm2, %v7325_v36, %v3945_v26  ;;  %v7333_v53 = vcombine.low %v3883_v9, %v3886_v41  ;;  %v7334_v36 = vcombine.low %v3890_v17, %v3893_v61  ;;  %v7318_v26 = vrot.slane %v3788_v1, 9  ;;  %v8628_v9 = vld [vmem:[#allocation2 + $0x6c] sm:$0xf]  ;;  %v9754_v41 = vld [vmem:[#allocation2 + $0x70] sm:$0xf] }
 0x13e   : > { %v9724_v0 = vsel %vm9475_vm2, %v7326_v14, %v3952_v49  ;;  %v3954_v2 = vrot.slane %v3952_v49, 4  ;;  %v7342_v44 = vcombine.low %v9715_v48, %v9734_v18  ;;  %v7319_v14 = vrot.slane %v3789_v13, 9  ;;  %v8630_v17 = vld [vmem:[#allocation2 + $0x7c] sm:$0xf]  ;;  %v3790_v61 = vld [vmem:[#allocation2 + $0x78] sm:$0xe] }
 0x13f   : > { %8099 = vmatmul.mubr.msk.bf16.gmra.mrb[4].mxu0 %vm1734_vm7, %v7331_v20  ;;  %v9729_v20 = vld [vmem:[#allocation2 + $0x64] sm:$0xf]  ;;  %v3906_v27 = vrot.slane %v8627_v12, 5  ;;  %v3910_v51 = vrot.slane %v8630_v17, 5  ;;  %v8631_v1 = vld [vmem:[#allocation2 + $0x78] sm:$0xf] }
 0x140   : > { %8102 = vmatprep.mubr.msk.bf16.mxu0 %vm1734_vm7, %v7332_v6  ;;  %v7172_v31 = vcombine.low %v8623_v58, %v9729_v20  ;;  %v3903_v6 = vrot.slane %v8625_v37, 5  ;;  %v9742_v30 = vsel %vm9475_vm2, %v3954_v2, %v3955_v50  ;;  %v3897_v50 = vsel %vm9475_vm2, %v7318_v26, %v3896_v11  ;;  %v9761_v37 = vld [vmem:[#allocation2 + $0x7c] sm:$0xf]  ;;  %v8634_v12 = vld [vmem:[#allocation2 + $0x8c] sm:$0x1] }
 0x141   : > { %v7343_v35 = vcombine.low %v9724_v0, %v9742_v30  ;;  %v7173_v2 = vcombine.low %v8628_v9, %v9754_v41  ;;  %v7174_v11 = vcombine.low %v8631_v1, %v9761_v37  ;;  %v3917_v13 = vrot.slane %v9325_v39, 5  ;;  %v9773_v9 = vld [vmem:[#allocation2 + $0x88] sm:$0xf]  ;;  %v9852_v18 = vld [vmem:[%s11712_s7] sm:$0x3] }
 0x142   : > { %v3905_v49 = vrot.slane %v3903_v6, 4  ;;  %v3904_v58 = vsel %vm9475_vm2, %v7319_v14, %v3903_v6  ;;  %v3912_v52 = vrot.slane %v3910_v51, 4  ;;  %v3924_v17 = vrot.slane %v9393_v4, 5  ;;  %v2255_v4 = vld [vmem:[#allocation2 + $0xb4] sm:$0xe] }
 0x143   : > { %v2324_v43 = vrot.slane %v8641_v10, 5  ;;  %v2335_v48 = vrot.slane %v9660_v45, 5  ;;  %v2247_v45 = vld [vmem:[#allocation2 + $0x54] sm:$0xe]  ;;  %v2356_v0 = vrot.slane %v9754_v41, 5  ;;  %v5141_v41 = vsel %vm1783_vm3, %v9666_v5, 0 }
 0x144   : > { %7971 = vmatmul.mubr.msk.bf16.gmra.mrb[12].mxu1 %vm1734_vm7, %v7171_v34  ;;  %v3900_v34 = vsel %vm9475_vm2, %v3898_v23, %v3899_v54  ;;  %v7320_v23 = vrot.slane %v3790_v61, 9  ;;  %v8633_v54 = vld [vmem:[#allocation2 + $0x80] sm:$0x1]  ;;  %v3792_v61 = vld [vmem:[#allocation2 + $0x90] sm:$0xe] }
 0x145   : > { %7974 = vmatprep.mubr.msk.bf16.mxu1 %vm1734_vm7, %v7172_v31  ;;  %v3907_v31 = vsel %vm9475_vm2, %v3905_v49, %v3906_v27  ;;  %v3913_v6 = vrot.slane %v8633_v54, 5  ;;  %v3919_v49 = vrot.slane %v3917_v13, 4  ;;  %v3920_v27 = vrot.slane %v8634_v12, 5 }
 0x146   : > { %v7336_v26 = vcombine.low %v3904_v58, %v3907_v31  ;;  %v3911_v39 = vsel %vm9475_vm2, %v7320_v23, %v3910_v51  ;;  %v7176_v51 = vcombine.low %v9376_v32, %v9397_v33  ;;  %v2240_v23 = vld [vmem:[#allocation2] sm:$0xe]  ;;  %v7178_v54 = vcombine.low %v9479_v16, %v9502_v25 }
 0x147   : > { %8103 = vmatmul.mubr.msk.bf16.gmra.mrb[8].mxu0 %vm1734_vm7, %v7333_v53  ;;  %v3791_v53 = vld [vmem:[#allocation2 + $0x84] sm:$0xe]  ;;  %v3921_v31 = vsel %vm9475_vm2, %v3919_v49, %v3920_v27  ;;  %v7196_v12 = vrot.slane %v2240_v23, 9 }
 0x148   : > { %8106 = vmatprep.mubr.msk.bf16.mxu0 %vm1734_vm7, %v7334_v36  ;;  %v7335_v36 = vcombine.low %v3897_v50, %v3900_v34  ;;  %v7321_v14 = vrot.slane %v3791_v53, 9  ;;  %v3914_v50 = vsel %vm9475_vm2, %v3912_v52, %v3913_v6  ;;  %v8635_v34 = vld [vmem:[#allocation2 + $0x84] sm:$0xf]  ;;  %v7322_v53 = vrot.slane %v3792_v61, 9 }
 0x149   : > { %v7337_v1 = vcombine.low %v3911_v39, %v3914_v50  ;;  %v7177_v52 = vcombine.low %v9417_v21, %v9419_v59  ;;  %v2401_v6 = vrot.slane %v9537_v42, 5  ;;  %v2300_v21 = vrot.slane %v9599_v60, 5  ;;  %v2242_v60 = vld [vmem:[#allocation2 + $0x18] sm:$0xe] }
 0x14a   : > { %v3918_v58 = vsel %vm9475_vm2, %v7321_v14, %v3917_v13  ;;  %v2293_v13 = vrot.slane %v9584_v15, 5  ;;  %v3925_v32 = vsel %vm9475_vm2, %v7322_v53, %v3924_v17  ;;  %v2398_v15 = vrot.slane %v9535_v19, 5  ;;  %v8637_v14 = vld [vmem:[#allocation2 + $0x8] sm:$0x1]  ;;  %v2244_v19 = vld [vmem:[#allocation2 + $0x30] sm:$0xe] }
 0x14b   : > { %v2296_v49 = vrot.slane %v8637_v14, 5  ;;  %v7198_v53 = vrot.slane %v2242_v60, 9  ;;  %v2246_v14 = vld [vmem:[#allocation2 + $0x48] sm:$0xe]  ;;  %v8643_v60 = vld [vmem:[#allocation2 + $0x50] sm:$0x1] }
 0x14c   : > { %7975 = vmatmul.mubr.msk.bf16.gmra.mrb[16].mxu1 %vm1734_vm7, %v7173_v2  ;;  %v7175_v2 = vcombine.low %v8635_v34, %v9773_v9  ;;  %v2295_v27 = vrot.slane %v2293_v13, 4  ;;  %v2400_v34 = vrot.slane %v2398_v15, 4  ;;  %v2294_v16 = vsel %vm9475_vm2, %v7196_v12, %v2293_v13 }
 0x14d   : > { %7978 = vmatprep.mubr.msk.bf16.mxu1 %vm1734_vm7, %v7174_v11  ;;  %v7338_v11 = vcombine.low %v3918_v58, %v3921_v31  ;;  %v8638_v31 = vld [vmem:[#allocation2 + $0x14] sm:$0x1]  ;;  %v2342_v12 = vrot.slane %v9708_v63, 5 }
 0x14e   : > { %v9808_v59 = vsel %vm9475_vm2, %v2400_v34, %v2401_v6  ;;  %v2297_v42 = vsel %vm9475_vm2, %v2295_v27, %v2296_v49  ;;  %v2303_v61 = vrot.slane %v8638_v31, 5  ;;  %v2328_v6 = vrot.slane %v9653_v55, 5  ;;  %v2248_v27 = vld [vmem:[#allocation2 + $0x60] sm:$0xe] }
 0x14f   : > { %8107 = vmatmul.mubr.msk.bf16.gmra.mrb[12].mxu0 %vm1734_vm7, %v7335_v36  ;;  %v3926_v36 = vrot.slane %v3924_v17, 4  ;;  %v2307_v17 = vrot.slane %v9602_v29, 5  ;;  %v2338_v31 = vrot.slane %v8643_v60, 5  ;;  %v8543_v60 = vld [vmem:[#allocation2 + $0x3c] sm:$0xff]  }
 0x150   : > { %8110 = vmatprep.mubr.msk.bf16.mxu0 %vm1734_vm7, %v7336_v26  ;;  %v3927_v26 = vrot.slane %v9395_v47, 5  ;;  %v7211_v47 = vrot.slane %v2255_v4, 9  ;;  %v2314_v4 = vrot.slane %v9627_v22, 5 }
 0x151   : > { %v2308_v13 = vsel %vm9475_vm2, %v7198_v53, %v2307_v17  ;;  %v7204_v53 = vrot.slane %v2248_v27, 9  ;;  %v2370_v27 = vrot.slane %v9773_v9, 5  ;;  %v4613_v9 = vld [vmem:[#allocation2 + $0x24] sm:$0xf] }
 0x152   : > { %v3928_v33 = vsel %vm9475_vm2, %v3926_v36, %v3927_v26  ;;  %v9801_v50 = vsel %vm9475_vm2, %v7211_v47, %v2398_v15  ;;  %v2309_v36 = vrot.slane %v2307_v17, 4  ;;  %v8639_v26 = vld [vmem:[#allocation2 + $0x20] sm:$0x1]  ;;  %v2323_v15 = vrot.slane %v2321_v7, 4 }
 0x153   : > { %v7339_v39 = vcombine.low %v3925_v32, %v3928_v33  ;;  %v2310_v29 = vrot.slane %v8639_v26, 5  ;;  %v2316_v32 = vrot.slane %v2314_v4, 4  ;;  %v8640_v33 = vld [vmem:[#allocation2 + $0x2c] sm:$0x1]  ;;  %v2330_v17 = vrot.slane %v2328_v6, 4 }
 0x154   : > { %7979 = vmatmul.mubr.msk.bf16.gmra.mrb[20].mxu1 %vm1734_vm7, %v7175_v2  ;;  %v2241_v2 = vld [vmem:[#allocation2 + $0xc] sm:$0xe] }
 0x155   : > { %7982 = vmatprep.mubr.msk.bf16.mxu1 %vm1734_vm7, %v7176_v51  ;;  %v7213_v51 = vcombine.low %v2294_v16, %v2297_v42  ;;  %v2311_v23 = vsel %vm9475_vm2, %v2309_v36, %v2310_v29  ;;  %v8642_v16 = vld [vmem:[#allocation2 + $0x44] sm:$0x1]  ;;  %v2249_v36 = vld [vmem:[#allocation2 + $0x6c] sm:$0xe] }
 0x156   : > { %v7215_v47 = vcombine.low %v2308_v13, %v2311_v23  ;;  %v2331_v42 = vrot.slane %v8642_v16, 5 }
 0x157   : > { %8111 = vmatmul.mubr.msk.bf16.gmra.mrb[16].mxu0 %vm1734_vm7, %v7337_v1  ;;  %v7197_v1 = vrot.slane %v2241_v2, 9  ;;  %v7202_v2 = vrot.slane %v2246_v14, 9  ;;  %v9909_v14 = vld [vmem:[#allocation2 + $0x90] sm:$0xe] }
 0x158   : > { %8114 = vmatprep.mubr.msk.bf16.mxu0 %vm1734_vm7, %v7338_v11  ;;  %v2302_v11 = vrot.slane %v2300_v21, 4 }
 0x159   : > { %v2301_v8 = vsel %vm9475_vm2, %v7197_v1, %v2300_v21  ;;  %v2325_v21 = vsel %vm9475_vm2, %v2323_v15, %v2324_v43  ;;  %v8644_v1 = vld [vmem:[#allocation2 + $0x5c] sm:$0x1]  ;;  %v9880_v13 = vsel %vm9475_vm2, %v7202_v2, %v2335_v48  ;;  %v8649_v2 = vld [vmem:[#allocation2 + $0x8c] sm:$0x1] }
 0x15a   : > { %v2304_v40 = vsel %vm9475_vm2, %v2302_v11, %v2303_v61  ;;  %v7203_v61 = vrot.slane %v2247_v45, 9  ;;  %v2345_v11 = vrot.slane %v8644_v1, 5 }
 0x15b   : > { %v7214_v22 = vcombine.low %v2301_v8, %v2304_v40  ;;  %v8541_v40 = vld [vmem:[#allocation2 + $0x24] sm:$0xff]  }
 0x15c   : > { %7983 = vmatmul.mubr.msk.bf16.gmra.mrb[24].mxu1 %vm1734_vm7, %v7177_v52  ;;  %v2317_v52 = vrot.slane %v8640_v33, 5 }
 0x15d   : > { %7986 = vmatprep.mubr.msk.bf16.mxu1 %vm1734_vm7, %v7178_v54  ;;  %v7200_v54 = vrot.slane %v2244_v19, 9  ;;  %v2251_v19 = vld [vmem:[#allocation2 + $0x84] sm:$0xe] }
 0x15e   : > { %v2318_v49 = vsel %vm9475_vm2, %v2316_v32, %v2317_v52  ;;  %v4610_v52 = vld [vmem:[#allocation2 + $0x18] sm:$0xf] }
 0x15f   : > { %8115 = vmatmul.mubr.msk.bf16.gmra.mrb[20].mxu0 %vm1734_vm7, %v7339_v39  ;;  %v2349_v39 = vrot.slane %v9729_v20, 5  ;;  %v2322_v34 = vsel %vm9475_vm2, %v7200_v54, %v2321_v7  ;;  %v2337_v20 = vrot.slane %v2335_v48, 4  ;;  %v7205_v7 = vrot.slane %v2249_v36, 9  ;;  %v9914_v48 = vld [vmem:[%s11710_s5 + $0x10] sm:$0x3] }
 0x160   : > { %8118 = vmatprep.mubr.msk.bf16.mxu0 %vm1734_vm7, %v7340_v56  ;;  %v2243_v56 = vld [vmem:[#allocation2 + $0x24] sm:$0xe]  ;;  %v7217_v26 = vcombine.low %v2322_v34, %v2325_v21  ;;  %v4611_v21 = vld [vmem:[#allocation2 + $0x1c] sm:$0xf]  ;;  %v2254_v36 = vld [vmem:[#allocation2 + $0xa8] sm:$0xe] }
 0x161   : > { %v2351_v29 = vrot.slane %v2349_v39, 4  ;;  %v9884_v23 = vsel %vm9475_vm2, %v2337_v20, %v2338_v31  ;;  %v9899_v33 = vsel %vm9475_vm2, %v7204_v53, %v2349_v39  ;;  %v8648_v39 = vld [vmem:[#allocation2 + $0x94] sm:$0xf]  ;;  %v2253_v20 = vld [vmem:[#allocation2 + $0x9c] sm:$0xe] }
 0x162   : > { %v7219_v43 = vcombine.low %v9880_v13, %v9884_v23  ;;  %v2377_v34 = vrot.slane %v8648_v39, 5  ;;  %v4614_v53 = vld [vmem:[#allocation2 + $0x28] sm:$0xf]  ;;  %v7209_v13 = vrot.slane %v2253_v20, 9  ;;  %v4683_v23 = vshrl.u32 %v4613_v9, 16 }
 0x164   : > { %7987 = vmatmul.mubr.msk.bf16.gmra.mrb[28].mxu1 %vm1734_vm7, %v7179_v57  ;;  %v7199_v57 = vrot.slane %v2243_v56, 9  ;;  %v2332_v56 = vsel %vm9475_vm2, %v2330_v17, %v2331_v42  ;;  %v7208_v17 = vrot.slane %v9909_v14, 9 }
 0x165   : > { %7992 = vmatprep.mubr.msk.bf16.mxu1 %vm1734_vm7, %v7213_v51  ;;  %v2344_v51 = vrot.slane %v2342_v12, 4 }
 0x166   : > { %v2315_v28 = vsel %vm9475_vm2, %v7199_v57, %v2314_v4  ;;  %v8645_v4 = vld [vmem:[#allocation2 + $0x68] sm:$0x1]  ;;  %v9891_v57 = vsel %vm9475_vm2, %v7203_v61, %v2342_v12  ;;  %v4662_v12 = vshll.u32 %v4610_v52, 16 }
 0x167   : > { %8119 = vmatmul.mubr.msk.bf16.gmra.mrb[24].mxu0 %vm1734_vm7, %v7341_v3  ;;  %v2245_v3 = vld [vmem:[#allocation2 + $0x3c] sm:$0xe]  ;;  %v7216_v63 = vcombine.low %v2315_v28, %v2318_v49  ;;  %v2352_v8 = vrot.slane %v8645_v4, 5  ;;  %v9895_v32 = vsel %vm9475_vm2, %v2344_v51, %v2345_v11  ;;  %v9921_v28 = vsel %vm9475_vm2, %v7205_v7, %v2356_v0  ;;  %v8650_v51 = vld [vmem:[#allocation2 + $0xa0] sm:$0xf] }
 0x168   : > { %8122 = vmatprep.mubr.msk.bf16.mxu0 %vm1734_vm7, %v7342_v44  ;;  %v8540_v44 = vld [vmem:[#allocation2 + $0x18] sm:$0xff]   ;;  %v7201_v55 = vrot.slane %v2245_v3, 9  ;;  %v2363_v3 = vrot.slane %v9761_v37, 5  ;;  %v4659_v49 = vshrl.u32 %v4610_v52, 16  ;;  %v2384_v1 = vrot.slane %v8650_v51, 5  ;;  %v8546_v51 = vld [vmem:[#allocation2 + $0x60] sm:$0xff]  }
 0x169   : > { %v9904_v5 = vsel %vm9475_vm2, %v2351_v29, %v2352_v8  ;;  %v2391_v11 = vrot.slane %v9502_v25, 5  ;;  %v4664_v29 = vrot.slane %v4662_v12, 5  ;;  %v4668_v4 = vshll.u32 %v4611_v21, 16  ;;  %v4615_v12 = vld [vmem:[#allocation2 + $0x2c] sm:$0x1] }
 0x16a   : > { %v2329_v30 = vsel %vm9475_vm2, %v7201_v55, %v2328_v6  ;;  %v7207_v6 = vrot.slane %v2251_v19, 9  ;;  %v7221_v37 = vcombine.low %v9899_v33, %v9904_v5  ;;  %v8647_v55 = vld [vmem:[#allocation2 + $0x80] sm:$0x1]  ;;  %v2365_v31 = vrot.slane %v2363_v3, 4 }
 0x16b   : > { %v7218_v10 = vcombine.low %v2329_v30, %v2332_v56  ;;  %v2366_v45 = vrot.slane %v8647_v55, 5  ;;  %v4672_v8 = vshrl.u32 %v4611_v21, 16  ;;  %v2372_v30 = vrot.slane %v2370_v27, 4 }
 0x16c   : > { %7993 = vmatmul.mubr.msk.bf16.vlgmr.msra.gmra.mrb[0].mxu1 %vm1734_vm7, %v7214_v22  ;;  %v8542_v22 = vld [vmem:[#allocation2 + $0x30] sm:$0xff]   ;;  %v9940_v61 = vsel %vm9475_vm2, %v7207_v6, %v2370_v27  ;;  %v4686_v7 = vshll.u32 %v4613_v9, 16  ;;  %v4692_v19 = vshll.u32 %v4614_v53, 16  ;;  %v4696_v25 = vshrl.u32 %v4614_v53, 16 }
 0x16d   : > { %8025 = vmatpush3.bf16.msra.mxu1 %v2860_v46  ;;  %7996 = vmatprep.mubr.msk.bf16.mxu1 %vm1734_vm7, %v7215_v47  ;;  %v2358_v47 = vrot.slane %v2356_v0, 4  ;;  %v8646_v46 = vld [vmem:[#allocation2 + $0x74] sm:$0x1]  ;;  %v8544_v0 = vld [vmem:[#allocation2 + $0x48] sm:$0xff]   ;;  %v4674_v6 = vrot.slane %v4672_v8, 4  ;;  %v4685_v55 = vrot.slane %v4683_v23, 4 }
 0x16e   : > { %8527 = vmatprep.subr.msk.bf16.mxu1 %vm1783_vm3, %v9852_v18  ;;  %v2359_v54 = vrot.slane %v8646_v46, 5  ;;  %v2394_v46 = vrot.slane %v9504_v38, 5  ;;  %v9960_v38 = vsel %vm9475_vm2, %v7208_v17, %v2377_v34  ;;  %v4688_v27 = vrot.slane %v4686_v7, 5  ;;  %v8545_v17 = vld [vmem:[#allocation2 + $0x54] sm:$0xff]   ;;  %v10029_v23 = vld [vmem:[#allocation2 + $0x4c] sm:$0xf] }
 0x16f   : > { %8123 = vmatmul.mubr.msk.bf16.gmra.mrb[28].mxu0 %vm1734_vm7, %v7343_v35  ;;  %v2250_v35 = vld [vmem:[#allocation2 + $0x78] sm:$0xe]  ;;  %v9966_v39 = vrot.slane %v4692_v19, 5  ;;  %v4698_v21 = vrot.slane %v4696_v25, 4 }
 0x170   : > { %8128 = vmatprep.mubr.msk.bf16.mxu0 %vm1734_vm7, %v8540_v44  ;;  %v7206_v15 = vrot.slane %v2250_v35, 9  ;;  %v7220_v44 = vcombine.low %v9891_v57, %v9895_v32  ;;  %v9929_v16 = vsel %vm9475_vm2, %v2358_v47, %v2359_v54  ;;  %v2379_v35 = vrot.slane %v2377_v34, 4  ;;  %v10002_v32 = vld [vmem:[#allocation2 + $0x34] sm:$0xf] }
 0x171   : > { %v7210_v47 = vrot.slane %v2254_v36, 9  ;;  %v2393_v54 = vrot.slane %v2391_v11, 4  ;;  %v4699_v57 = vor.u32 %v4698_v21, %v9966_v39 }
 0x172   : > { %v9933_v42 = vsel %vm9475_vm2, %v7206_v15, %v2363_v3  ;;  %v4612_v15 = vld [vmem:[#allocation2 + $0x20] sm:$0x1]  ;;  %v9947_v3 = vrot.slane %v4668_v4, 5 }
 0x173   : > { %v9978_v34 = vsel %vm9475_vm2, %v7210_v47, %v2391_v11  ;;  %v9982_v20 = vsel %vm9475_vm2, %v2393_v54, %v2394_v46  ;;  %v4616_v11 = vld [vmem:[#allocation2 + $0x30] sm:$0xf]  ;;  %v10033_v19 = vrot.slane %v4699_v57, 4 }
 0x174   : > { %7997 = vmatmul.mubr.msk.bf16.gmra.mrb[4].mxu1 %vm1734_vm7, %v7216_v63  ;;  %v2373_v63 = vrot.slane %v8649_v2, 5  ;;  %v8547_v54 = vld [vmem:[#allocation2 + $0x6c] sm:$0xff]  }
 0x175   : > { %8000 = vmatprep.mubr.msk.bf16.mxu1 %vm1734_vm7, %v7217_v26  ;;  %v4661_v26 = vrot.slane %v4659_v49, 4 }
 0x176   : > { %v9956_v14 = vsel %vm9475_vm2, %v2372_v30, %v2373_v63  ;;  %v4678_v63 = vshll.u32 %v4612_v15, 16  ;;  %v4622_v30 = vld [vmem:[#allocation2 + $0x48] sm:$0xf]  ;;  %v8548_v15 = vld [vmem:[#allocation2 + $0x78] sm:$0xff]  }
 0x177   : > { %8129 = vmatmul.mubr.msk.bf16.vlgmr.msra.gmra.mrb[0].mxu0 %vm1734_vm7, %v8541_v40  ;;  %v8651_v40 = vld [vmem:[#allocation2 + $0x98] sm:$0x1]  ;;  %v7224_v36 = vcombine.low %v9940_v61, %v9956_v14  ;;  %v4755_v47 = vshrl.u32 %v4622_v30, 16  ;;  %v4758_v46 = vshll.u32 %v4622_v30, 16  ;;  %v10061_v30 = vld [vmem:[#allocation2 + $0x64] sm:$0xf] }
 0x178   : > { %8161 = vmatpush3.bf16.msra.mxu0 %v5141_v41  ;;  %8132 = vmatprep.mubr.msk.bf16.mxu0 %vm1734_vm7, %v8542_v22  ;;  %v2380_v56 = vrot.slane %v8651_v40, 5  ;;  %v2386_v41 = vrot.slane %v2384_v1, 4  ;;  %v8652_v22 = vld [vmem:[#allocation2 + $0xa4] sm:$0x1]  ;;  %v4716_v40 = vshll.u32 %v10002_v32, 16  ;;  %11795 = vst [vmem:[#allocation3_spill] sm:$0xff] %v10061_v30 }
 0x179   : > { %8526 = vmatprep.subr.msk.bf16.mxu0 %vm1783_vm3, %v9914_v48  ;;  %v2387_v52 = vrot.slane %v8652_v22, 5 }
 0x17a   : > { %v9964_v49 = vsel %vm9475_vm2, %v2379_v35, %v2380_v56  ;;  %v4710_v35 = vshll.u32 %v4616_v11, 16  ;;  %v4720_v56 = vshrl.u32 %v10002_v32, 16 }
 0x17b   : > { %v9974_v2 = vsel %vm9475_vm2, %v2386_v41, %v2387_v52 }
 0x17c   : > { %8001 = vmatmul.mubr.msk.bf16.gmra.mrb[8].mxu1 %vm1734_vm7, %v7218_v10  ;;  %v4665_v10 = vor.u32 %v4664_v29, %v4661_v26  ;;  %v4689_v26 = vor.u32 %v4688_v27, %v4685_v55  ;;  %v4712_v55 = vrot.slane %v4710_v35, 5  ;;  %v10044_v27 = vrot.slane %v4716_v40, 5  ;;  %v10064_v35 = vld [vmem:[#allocation2 + $0x44] sm:$0x1] }
 0x17d   : > { %8004 = vmatprep.mubr.msk.bf16.mxu1 %vm1734_vm7, %v7219_v43  ;;  %v9952_v43 = vsel %vm9475_vm2, %v2365_v31, %v2366_v45  ;;  %v9970_v45 = vsel %vm9475_vm2, %v7209_v13, %v2384_v1  ;;  %v4702_v31 = vshll.u32 %v4615_v12, 16  ;;  %v7222_v1 = vcombine.low %v9921_v28, %v9929_v16  ;;  %v4619_v16 = vld [vmem:[#allocation2 + $0x3c] sm:$0xf] }
 0x17e   : > { %v9984_v9 = vrot.slane %v4665_v10, 4  ;;  %v7223_v53 = vcombine.low %v9933_v42, %v9952_v43  ;;  %v7225_v28 = vcombine.low %v9960_v38, %v9964_v49  ;;  %v10014_v42 = vld [vmem:[#allocation2 + $0x40] sm:$0xf]  ;;  %v10031_v7 = vrot.slane %v4689_v26, 4  ;;  %v8550_v10 = vld [vmem:[#allocation2 + $0x90] sm:$0xff]  }
 0x17f   : > { %8133 = vmatmul.mubr.msk.bf16.gmra.mrb[4].mxu0 %vm1734_vm7, %v8543_v60  ;;  %v4675_v60 = vor.u32 %v4674_v6, %v9947_v3  ;;  %v10023_v8 = vrot.slane %v4702_v31, 5  ;;  %v4731_v25 = vshrl.u32 %v4619_v16, 16  ;;  %v4734_v41 = vshll.u32 %v4619_v16, 16  ;;  %v4628_v26 = vld [vmem:[#allocation2 + $0x60] sm:$0xf] }
 0x180   : > { %8136 = vmatprep.mubr.msk.bf16.mxu0 %vm1734_vm7, %v8544_v0  ;;  %v4707_v0 = vshrl.u32 %v4616_v11, 16  ;;  %v4740_v22 = vshll.u32 %v10014_v42, 16  ;;  %v4744_v52 = vshrl.u32 %v10014_v42, 16  ;;  %v4764_v43 = vshll.u32 %v10029_v23, 16  ;;  %v10057_v11 = vld [vmem:[#allocation2 + $0x58] sm:$0xf] }
 0x181   : > { %v10021_v4 = vrot.slane %v4675_v60, 4  ;;  %v4768_v12 = vshrl.u32 %v10029_v23, 16  ;;  %v4722_v21 = vrot.slane %v4720_v56, 4  ;;  %v4812_v60 = vshll.u32 %v10061_v30, 16 }
 0x182   : > { %v4709_v6 = vrot.slane %v4707_v0, 4  ;;  %v10059_v57 = vrot.slane %v4740_v22, 5  ;;  %v4746_v16 = vrot.slane %v4744_v52, 4  ;;  %v4757_v0 = vrot.slane %v4755_v47, 4 }
 0x183   : > { %v10066_v40 = vrot.slane %v4764_v43, 5  ;;  %v4770_v56 = vrot.slane %v4768_v12, 4  ;;  %v4788_v22 = vshll.u32 %v10057_v11, 16  ;;  %v4792_v52 = vshrl.u32 %v10057_v11, 16  ;;  %v8549_v12 = vld [vmem:[#allocation2 + $0x84] sm:$0xff]  }
 0x184   : > { %8005 = vmatmul.mubr.msk.bf16.gmra.mrb[12].mxu1 %vm1734_vm7, %v7220_v44  ;;  %v10004_v44 = vld [vmem:[#allocation2 + $0x38] sm:$0x1]  ;;  %v4803_v47 = vshrl.u32 %v4628_v26, 16  ;;  %v4713_v58 = vor.u32 %v4712_v55, %v4709_v6  ;;  %v4816_v43 = vshrl.u32 %v10061_v30, 16 }
 0x185   : > { %8008 = vmatprep.mubr.msk.bf16.mxu1 %vm1734_vm7, %v7221_v37  ;;  %v10012_v37 = vrot.slane %v4678_v63, 5  ;;  %v4726_v13 = vshll.u32 %v10004_v44, 16  ;;  %v4771_v5 = vor.u32 %v4770_v56, %v10066_v40 }
 0x186   : > { %v4818_v61 = vrot.slane %v4816_v43, 4 }
 0x187   : > { %8137 = vmatmul.mubr.msk.bf16.gmra.mrb[8].mxu0 %vm1734_vm7, %v8545_v17  ;;  %v10046_v63 = vrot.slane %v4726_v13, 5  ;;  %v4625_v17 = vld [vmem:[#allocation2 + $0x54] sm:$0xf] }
 0x188   : > { %8140 = vmatprep.mubr.msk.bf16.mxu0 %vm1734_vm7, %v8546_v51  ;;  %v4733_v51 = vrot.slane %v4731_v25, 4  ;;  %v4779_v13 = vshrl.u32 %v4625_v17, 16  ;;  %v4782_v25 = vshll.u32 %v4625_v17, 16  ;;  %v4747_v17 = vor.u32 %v4746_v16, %v10059_v57 }
 0x18a   : > { %v4781_v6 = vrot.slane %v4779_v13, 4  ;;  %v4784_v55 = vrot.slane %v4782_v25, 5  ;;  %v10092_v13 = vld [vmem:[#allocation2 + $0x68] sm:$0x1]  ;;  %v10094_v25 = vrot.slane %v4812_v60, 5 }
 0x18b   : > { %v4822_v60 = vshll.u32 %v10092_v13, 16 }
 0x18c   : > { %8009 = vmatmul.mubr.msk.bf16.gmra.mrb[16].mxu1 %vm1734_vm7, %v7222_v1  ;;  %v4736_v1 = vrot.slane %v4734_v41, 5  ;;  %v10069_v41 = vld [vmem:[#allocation2 + $0x50] sm:$0x1]  ;;  %v4785_v38 = vor.u32 %v4784_v55, %v4781_v6 }
 0x18d   : > { %8012 = vmatprep.mubr.msk.bf16.mxu1 %vm1734_vm7, %v7223_v53  ;;  %v4760_v53 = vrot.slane %v4758_v46, 5  ;;  %v4806_v46 = vshll.u32 %v4628_v26, 16  ;;  %v4774_v33 = vshll.u32 %v10069_v41, 16  ;;  %v10080_v26 = vld [vmem:[#allocation2 + $0x5c] sm:$0x1] }
 0x18e   : > { %v4737_v31 = vor.u32 %v4736_v1, %v4733_v51  ;;  %v4794_v51 = vrot.slane %v4792_v52, 4  ;;  %v4805_v1 = vrot.slane %v4803_v47, 4  ;;  %v10096_v52 = vld [vmem:[#allocation2 + $0x70] sm:$0xf]  ;;  %v4772_v47 = vrot.slane %v4771_v5, 4 }
 0x18f   : > { %8141 = vmatmul.mubr.msk.bf16.gmra.mrb[12].mxu0 %vm1734_vm7, %v8547_v54  ;;  %v4723_v54 = vor.u32 %v4722_v21, %v10044_v27  ;;  %v4761_v29 = vor.u32 %v4760_v53, %v4757_v0  ;;  %v10086_v21 = vrot.slane %v4788_v22, 5  ;;  %v4808_v16 = vrot.slane %v4806_v46, 5  ;;  %v4631_v0 = vld [vmem:[#allocation2 + $0x6c] sm:$0xf] }
 0x190   : > { %8144 = vmatprep.mubr.msk.bf16.mxu0 %vm1734_vm7, %v8548_v15  ;;  %v4750_v15 = vshll.u32 %v10064_v35, 16  ;;  %v4714_v53 = vrot.slane %v4713_v58, 4  ;;  %v4738_v14 = vrot.slane %v4737_v31, 4  ;;  %v4776_v46 = vrot.slane %v4774_v33, 5 }
 0x191   : > { %v4724_v56 = vrot.slane %v4723_v54, 4  ;;  %v4762_v30 = vrot.slane %v4761_v29, 4  ;;  %v4798_v49 = vshll.u32 %v10080_v26, 16  ;;  %v4795_v58 = vor.u32 %v4794_v51, %v10086_v21 }
 0x192   : > { %v4752_v22 = vrot.slane %v4750_v15, 5  ;;  %v4827_v31 = vshrl.u32 %v4631_v0, 16  ;;  %v4819_v54 = vor.u32 %v4818_v61, %v10094_v25  ;;  %v4830_v29 = vshll.u32 %v4631_v0, 16  ;;  %v8551_v15 = vld [vmem:[#allocation2 + $0x9c] sm:$0xff]   ;;  %v10144_v61 = vld [vmem:[#allocation2 + $0x74] sm:$0x1] }
 0x193   : > { %v4836_v43 = vshll.u32 %v10096_v52, 16  ;;  %v4719_v33 = vsel %vm8851_vm6, %v4714_v53, %v10044_v27  ;;  %v4729_v5 = vsel %vm8851_vm6, %v4724_v56, %v10046_v63  ;;  %v4767_v6 = vsel %vm8851_vm6, %v4762_v30, %v10066_v40  ;;  %v4634_v63 = vld [vmem:[#allocation2 + $0x78] sm:$0xf] }
 0x194   : > { %8013 = vmatmul.mubr.msk.bf16.gmra.mrb[20].mxu1 %vm1734_vm7, %v7224_v36  ;;  %v4748_v36 = vrot.slane %v4747_v17, 4  ;;  %v4777_v55 = vsel %vm8851_vm6, %v4772_v47, %v4776_v46  ;;  %v10122_v27 = vrot.slane %v4785_v38, 4  ;;  %v10124_v51 = vrot.slane %v4798_v49, 5 }
 0x195   : > { %8016 = vmatprep.mubr.msk.bf16.mxu1 %vm1734_vm7, %v7225_v28  ;;  %v4809_v28 = vor.u32 %v4808_v16, %v4805_v1  ;;  %v11796_v1 = vcombine.low %v9970_v45, %v9974_v2  ;;  %v10130_v16 = vrot.slane %v4795_v58, 4  ;;  %v10134_v53 = vrot.slane %v4822_v60, 5  ;;  %v10189_v58 = vld [vmem:[#allocation2 + $0x7c] sm:$0xf] }
 0x196   : > { %v4753_v17 = vsel %vm8851_vm6, %v4748_v36, %v4752_v22  ;;  %v10136_v30 = vrot.slane %v4827_v31, 4  ;;  %v11797_v40 = vcombine.low %v9978_v34, %v9982_v20  ;;  %v10142_v56 = vrot.slane %v4819_v54, 4  ;;  %v5344_v31 = vld [vmem:[#allocation2 + $0x78] sm:$0xe] }
 0x197   : > { %8145 = vmatmul.mubr.msk.bf16.gmra.mrb[16].mxu0 %vm1734_vm7, %v8549_v12  ;;  %v4840_v12 = vshrl.u32 %v10096_v52, 16  ;;  %v10132_v0 = vrot.slane %v4809_v28, 4  ;;  %v10146_v45 = vrot.slane %v4830_v29, 5  ;;  %v10148_v2 = vrot.slane %v4836_v43, 5  ;;  %v8556_v28 = vld [vmem:[#allocation2 + $0xc] sm:$0xff]   ;;  %v8560_v29 = vld [vmem:[#allocation2 + $0x3c] sm:$0xff]  }
 0x198   : > { %8148 = vmatprep.mubr.msk.bf16.mxu0 %vm1734_vm7, %v8550_v10  ;;  %v4743_v10 = vsel %vm8851_vm6, %v4738_v14, %v10059_v57  ;;  %v8552_v57 = vld [vmem:[#allocation2 + $0xa8] sm:$0xff]   ;;  %v10154_v36 = vsel %vm1783_vm3, %v9914_v48, 0  ;;  %v10158_v22 = vsel %vm1783_vm3, %v9852_v18, 0  ;;  %v4851_v34 = vshrl.u32 %v4634_v63, 16 }
 0x199   : > { %v10150_v14 = vrot.slane %v4840_v12, 4  ;;  %v4854_v20 = vshll.u32 %v4634_v63, 16  ;;  %v11798_v47 = vsel %vm8851_vm6, %v10021_v4, %v10012_v37  ;;  %v11799_v46 = vsel %vm8851_vm6, %v9984_v9, %v9947_v3  ;;  %v5338_v3 = vld [vmem:[#allocation2 + $0x30] sm:$0xe]  ;;  %v10217_v43 = vld [vmem:[#allocation2 + $0x88] sm:$0xf] }
 0x19a   : > { %v10171_v48 = vcombine.low %v11799_v46, %v11798_v47  ;;  %v11800_v18 = vsel %vm8851_vm6, %v10033_v19, %v10023_v8  ;;  %v11801_v38 = vsel %vm8851_vm6, %v10031_v7, %v9966_v39  ;;  %v10185_v37 = vcombine.low %v4719_v33, %v4729_v5  ;;  %v10203_v19 = vld [vmem:[#allocation2 + $0x84] sm:$0xf]  ;;  %v5339_v12 = vld [vmem:[#allocation2 + $0x3c] sm:$0xe]  ;;  %v8553_v33 = vld [vmem:[#allocation2 + $0xb4] sm:$0xff]  }
 0x19b   : > { %v10183_v49 = vcombine.low %v11801_v38, %v11800_v18  ;;  %v10187_v4 = vcombine.low %v4743_v10, %v4753_v17  ;;  %v10192_v9 = vcombine.low %v4767_v6, %v4777_v55  ;;  %v8554_v5 = vld [vmem:[#allocation2 + $0xc0] sm:$0xff]   ;;  %v10219_v10 = vrot.slane %v4851_v34, 4  ;;  %v5341_v38 = vld [vmem:[#allocation2 + $0x54] sm:$0xe]  ;;  %v8555_v8 = vld [vmem:[#allocation2 + $0xcc] sm:$0xff]  }
 0x19c   : > { %8017 = vmatmul.mubr.msk.bf16.gmra.mrb[24].mxu1 %vm1734_vm7, %v11796_v1  ;;  %v10221_v17 = vrot.slane %v4854_v20, 5  ;;  %v7428_v6 = vrot.slane %v5338_v3, 9  ;;  %v5416_v1 = vrot.slane %v10002_v32, 5  ;;  %v11802_v47 = vcombine.low %v9801_v50, %v9808_v59  ;;  %v5345_v39 = vld [vmem:[#allocation2 + $0x84] sm:$0xe] }
 0x19d   : > { %8020 = vmatprep.mubr.msk.bf16.mxu1 %vm1734_vm7, %v11797_v40  ;;  %v5340_v40 = vld [vmem:[#allocation2 + $0x48] sm:$0xe]  ;;  %v7429_v46 = vrot.slane %v5339_v12, 9  ;;  %v5423_v18 = vrot.slane %v10014_v42, 5  ;;  %v5426_v50 = vrot.slane %v10064_v35, 5  ;;  %v5430_v42 = vrot.slane %v10029_v23, 5 }
 0x19e   : > { %v5418_v3 = vrot.slane %v5416_v1, 4  ;;  %v7430_v12 = vrot.slane %v5340_v40, 9  ;;  %v7431_v60 = vrot.slane %v5341_v38, 9  ;;  %v5342_v35 = vld [vmem:[#allocation2 + $0x60] sm:$0xe]  ;;  %vm6680_vm3 = vcmask 125952  }
 0x19f   : > { %8149 = vmatmul.mubr.msk.bf16.gmra.mrb[20].mxu0 %vm1734_vm7, %v8551_v15  ;;  %v10244_v59 = vsel %vm9475_vm2, %v7429_v46, %v5423_v18  ;;  %v8557_v46 = vld [vmem:[#allocation2 + $0x18] sm:$0xff]   ;;  %v10311_v7 = vld [vmem:[#allocation2 + $0x94] sm:$0xf]  ;;  %v5348_v20 = vld [vmem:[#allocation2 + $0xa8] sm:$0xe] }
 0x1a0   : > { %8152 = vmatprep.mubr.msk.bf16.mxu0 %vm1734_vm7, %v8552_v57  ;;  %v5419_v57 = vrot.slane %v10004_v44, 5  ;;  %v10239_v44 = vsel %vm9475_vm2, %v7428_v6, %v5416_v1  ;;  %v5433_v6 = vrot.slane %v10069_v41, 5  ;;  %v5437_v1 = vrot.slane %v10057_v11, 5  ;;  %v5343_v41 = vld [vmem:[#allocation2 + $0x6c] sm:$0xe]  ;;  %v8559_v11 = vld [vmem:[#allocation2 + $0x30] sm:$0xff]  }
 0x1a1   : > { %v5472_v54 = vrot.slane %v10311_v7, 5  ;;  %v10342_v34 = vld [vmem:[#allocation2 + $0xa4] sm:$0x1] }
 0x1a2   : > { %v5439_v38 = vrot.slane %v5437_v1, 4 }
 0x1a4   : > { %8021 = vmatmul.mubr.msk.bf16.gmra.mrb[28].mxu1 %vm1734_vm7, %v11802_v47  ;;  %v5425_v47 = vrot.slane %v5423_v18, 4  ;;  %v8558_v18 = vld [vmem:[#allocation2 + $0x24] sm:$0xff]  }
 0x1a5   : > { %8026 = vmatprep.mubr.msk.bf16.mxu1 %vm1734_vm7, %v8556_v28  ;;  %v10250_v28 = vsel %vm9475_vm2, %v5418_v3, %v5419_v57  ;;  %v5432_v57 = vrot.slane %v5430_v42, 4  ;;  %v5440_v3 = vrot.slane %v10080_v26, 5  ;;  %v5451_v26 = vrot.slane %v10096_v52, 5  ;;  %v10297_v52 = vld [vmem:[#allocation2 + $0x8c] sm:$0x1] }
 0x1a6   : > { %v10259_v23 = vsel %vm9475_vm2, %v5425_v47, %v5426_v50  ;;  %v7432_v47 = vrot.slane %v5342_v35, 9 }
 0x1a7   : > { %8153 = vmatmul.mubr.msk.bf16.gmra.mrb[24].mxu0 %vm1734_vm7, %v8553_v33  ;;  %v10263_v33 = vsel %vm9475_vm2, %v7430_v12, %v5430_v42  ;;  %v10274_v50 = vsel %vm9475_vm2, %v5432_v57, %v5433_v6  ;;  %v11803_v12 = vld [vmem:[#allocation3_spill] sm:$0xff]  ;;  %v5447_v42 = vrot.slane %v10092_v13, 5  ;;  %v10286_v6 = vld [vmem:[#allocation2 + $0x80] sm:$0x1]  ;;  %v7435_v13 = vrot.slane %v5345_v39, 9 }
 0x1a8   : > { %8156 = vmatprep.mubr.msk.bf16.mxu0 %vm1734_vm7, %v8554_v5  ;;  %v10269_v5 = vsel %vm9475_vm2, %v7431_v60, %v5437_v1  ;;  %v5444_v40 = vrot.slane %v11803_v12, 5  ;;  %v10282_v60 = vsel %vm9475_vm2, %v5439_v38, %v5440_v3  ;;  %v7433_v1 = vrot.slane %v5343_v41, 9 }
 0x1a9   : > { %v5454_v12 = vrot.slane %v10144_v61, 5  ;;  %v5453_v41 = vrot.slane %v5451_v26, 4  ;;  %v7434_v38 = vrot.slane %v5344_v31, 9  ;;  %v5458_v3 = vrot.slane %v10189_v58, 5 }
 0x1aa   : > { %v10292_v35 = vsel %vm9475_vm2, %v7432_v47, %v5444_v40  ;;  %v5446_v57 = vrot.slane %v5444_v40, 4  ;;  %v5461_v40 = vrot.slane %v10286_v6, 5 }
 0x1ab   : > { %11804 = vst [vmem:[#allocation3_spill] sm:$0xff] %v10292_v35  ;;  %v5460_v39 = vrot.slane %v5458_v3, 4  ;;  %v11819_v35 = vshll.u32 %v10189_v58, 16 }
 0x1ac   : > { %8027 = vmatmul.mubr.msk.bf16.vlgmr.msra.gmra.mrb[0].mxu1 %vm1734_vm7, %v8557_v46  ;;  %v10301_v46 = vsel %vm9475_vm2, %v7433_v1, %v5451_v26  ;;  %v10306_v47 = vsel %vm9475_vm2, %v5446_v57, %v5447_v42  ;;  %v10317_v1 = vsel %vm9475_vm2, %v5453_v41, %v5454_v12  ;;  %v10321_v42 = vsel %vm9475_vm2, %v7434_v38, %v5458_v3  ;;  %v5347_v26 = vld [vmem:[#allocation2 + $0x9c] sm:$0xe]  ;;  %v10327_v57 = vld [vmem:[#allocation2 + $0xa0] sm:$0xf] }
 0x1ad   : > { %8229 = vmatpush3.bf16.msra.mxu1 %v10158_v22  ;;  %8030 = vmatprep.mubr.msk.bf16.mxu1 %vm1734_vm7, %v8558_v18  ;;  %11805 = vst [vmem:[#allocation4_spill] sm:$0xff] %v10301_v46  ;;  %11806 = vst [vmem:[#allocation5_spill] sm:$0xff] %v10306_v47  ;;  %v5465_v22 = vrot.slane %v10217_v43, 5  ;;  %v5346_v18 = vld [vmem:[#allocation2 + $0x90] sm:$0xe]  ;;  %v5468_v38 = vrot.slane %v10297_v52, 5  ;;  %v10338_v3 = vsel %vm9475_vm2, %v5460_v39, %v5461_v40 }
 0x1ae   : > { %11807 = vst [vmem:[#allocation6_spill] sm:$0xff] %v10317_v1  ;;  %11808 = vst [vmem:[#allocation7_spill] sm:$0xff] %v10321_v42  ;;  %v7437_v31 = vrot.slane %v5347_v26, 9  ;;  %v5479_v63 = vrot.slane %v10327_v57, 5  ;;  %v5349_v40 = vld [vmem:[#allocation2 + $0xb4] sm:$0xe] }
 0x1af   : > { %8157 = vmatmul.mubr.msk.bf16.gmra.mrb[28].mxu0 %vm1734_vm7, %v8555_v8  ;;  %v10325_v8 = vld [vmem:[#allocation2 + $0x98] sm:$0x1]  ;;  %v10333_v12 = vsel %vm9475_vm2, %v7435_v13, %v5465_v22  ;;  %v5467_v41 = vrot.slane %v5465_v22, 4  ;;  %11810 = vst [vmem:[#allocation9_spill] sm:$0xff] %v10338_v3  ;;  %v10351_v39 = vld [vmem:[#allocation2 + $0xac] sm:$0xf] }
 0x1b0   : > { %8162 = vmatprep.mubr.msk.bf16.mxu0 %vm1734_vm7, %v10171_v48  ;;  %11809 = vst [vmem:[#allocation8_spill] sm:$0xff] %v10333_v12  ;;  %v7436_v48 = vrot.slane %v5346_v18, 9  ;;  %v5475_v32 = vrot.slane %v10325_v8, 5  ;;  %v10353_v18 = vld [vmem:[#allocation2 + $0xb8] sm:$0xf]  ;;  %v5474_v13 = vrot.slane %v5472_v54, 4 }
 0x1b1   : > { %v10348_v22 = vsel %vm9475_vm2, %v5467_v41, %v5468_v38  ;;  %v5482_v3 = vrot.slane %v10342_v34, 5  ;;  %v10363_v26 = vld [vmem:[#allocation2 + $0xb0] sm:$0x1]  ;;  %v10367_v41 = vsel %vm9475_vm2, %v7437_v31, %v5479_v63  ;;  %v5481_v38 = vrot.slane %v5479_v63, 4  ;;  %v10377_v12 = vld [vmem:[#allocation2 + $0xbc] sm:$0x1] }
 0x1b2   : > { %11811 = vst [vmem:[#allocation10_spill] sm:$0xff] %v10348_v22  ;;  %v10359_v15 = vsel %vm9475_vm2, %v7436_v48, %v5472_v54  ;;  %11813 = vst [vmem:[#allocation12_spill] sm:$0xff] %v10367_v41  ;;  %v7438_v42 = vrot.slane %v5348_v20, 9  ;;  %v5486_v1 = vrot.slane %v10351_v39, 5  ;;  %v10373_v48 = vsel %vm9475_vm2, %v5474_v13, %v5475_v32  ;;  %v5350_v22 = vld [vmem:[#allocation2 + $0xc0] sm:$0xe] }
 0x1b3   : > { %11812 = vst [vmem:[#allocation11_spill] sm:$0xff] %v10359_v15  ;;  %11814 = vst [vmem:[#allocation13_spill] sm:$0xff] %v10373_v48  ;;  %v5489_v54 = vrot.slane %v10363_v26, 5  ;;  %v7439_v55 = vrot.slane %v5349_v40, 9  ;;  %v10383_v20 = vsel %vm9475_vm2, %v5481_v38, %v5482_v3  ;;  %v5351_v31 = vld [vmem:[#allocation2 + $0xcc] sm:$0xe] }
 0x1b4   : > { %8031 = vmatmul.mubr.msk.bf16.gmra.mrb[4].mxu1 %vm1734_vm7, %v8559_v11  ;;  %v5493_v11 = vrot.slane %v10353_v18, 5  ;;  %11815 = vst [vmem:[#allocation14_spill] sm:$0xff] %v10383_v20  ;;  %v5488_v32 = vrot.slane %v5486_v1, 4  ;;  %v10391_v13 = vld [vmem:[#allocation2 + $0xc4] sm:$0xf]  ;;  %v7440_v63 = vrot.slane %v5350_v22, 9 }
 0x1b5   : > { %8034 = vmatprep.mubr.msk.bf16.mxu1 %vm1734_vm7, %v8560_v29  ;;  %v10387_v29 = vsel %vm9475_vm2, %v7438_v42, %v5486_v1  ;;  %v10393_v40 = vld [vmem:[#allocation2 + $0xc8] sm:$0x1]  ;;  %v5496_v42 = vrot.slane %v10377_v12, 5  ;;  %v10405_v1 = vld [vmem:[#allocation2 + $0xd0] sm:$0xf]  ;;  %v5500_v20 = vrot.slane %v10391_v13, 5 }
 0x1b6   : > { %v10399_v3 = vsel %vm9475_vm2, %v7439_v55, %v5493_v11  ;;  %v5495_v38 = vrot.slane %v5493_v11, 4  ;;  %v10409_v48 = vsel %vm9475_vm2, %v5488_v32, %v5489_v54  ;;  %v5503_v55 = vrot.slane %v10393_v40, 5  ;;  %v8562_v11 = vld [vmem:[#allocation2 + $0x54] sm:$0xff]  }
 0x1b7   : > { %8163 = vmatmul.mubr.msk.bf16.vlgmr.msra.gmra.mrb[0].mxu0 %vm1734_vm7, %v10183_v49  ;;  %11816 = vst [vmem:[#allocation15_spill] sm:$0xff] %v10399_v3  ;;  %v8561_v49 = vld [vmem:[#allocation2 + $0x48] sm:$0xff]   ;;  %11817 = vst [vmem:[#allocation16_spill] sm:$0xff] %v10409_v48  ;;  %v10413_v41 = vld [vmem:[#allocation2 + $0xd4] sm:$0x1]  ;;  %v7441_v15 = vrot.slane %v5351_v31, 9  ;;  %v10426_v54 = vsel %vm9475_vm2, %v7440_v63, %v5500_v20  ;;  %v4857_v63 = vor.u32 %v10221_v17, %v10219_v10 }
 0x1b8   : > { %8195 = vmatpush3.bf16.msra.mxu0 %v10154_v36  ;;  %8166 = vmatprep.mubr.msk.bf16.mxu0 %vm1734_vm7, %v10185_v37  ;;  %v10419_v37 = vsel %vm9475_vm2, %v5495_v38, %v5496_v42  ;;  %v5507_v46 = vrot.slane %v10405_v1, 5  ;;  %v5502_v32 = vrot.slane %v5500_v20, 4  ;;  %v5510_v47 = vrot.slane %v10413_v41, 5  ;;  %v4640_v3 = vld [vmem:[#allocation2 + $0x90] sm:$0xf] }
 0x1b9   : > { %11818 = vst [vmem:[#allocation17_spill] sm:$0xff] %v10419_v37  ;;  %v10431_v36 = vrot.slane %v11819_v35, 5  ;;  %v11820_v38 = vshrl.u32 %v10189_v58, 16  ;;  %v11821_v20 = vshrl.u32 %v10203_v19, 16  ;;  %v11822_v37 = vshll.u32 %v10203_v19, 16 }
 0x1ba   : > { %v10437_v31 = vsel %vm9475_vm2, %v7441_v15, %v5507_v46  ;;  %v5509_v48 = vrot.slane %v5507_v46, 4  ;;  %v10448_v58 = vsel %vm9475_vm2, %v5502_v32, %v5503_v55  ;;  %v11823_v15 = vshll.u32 %v10217_v43, 16 }
 0x1bb   : > { %v4866_v42 = vrot.slane %v11820_v38, 4  ;;  %v4877_v22 = vrot.slane %v11821_v20, 4  ;;  %v4880_v35 = vrot.slane %v11822_v37, 5  ;;  %v7457_v17 = vcombine.low %v10426_v54, %v10448_v58 }
 0x1bc   : > { %8035 = vmatmul.mubr.msk.bf16.gmra.mrb[8].mxu1 %vm1734_vm7, %v8561_v49  ;;  %v10453_v46 = vrot.slane %v11823_v15, 5  ;;  %v11824_v49 = vshrl.u32 %v10217_v43, 16  ;;  %v10461_v19 = vsel %vm9475_vm2, %v5509_v48, %v5510_v47  ;;  %v11825_v55 = vor.u32 %v10146_v45, %v10136_v30  ;;  %v8563_v45 = vld [vmem:[#allocation2 + $0x60] sm:$0xff]  }
 0x1bd   : > { %8038 = vmatprep.mubr.msk.bf16.mxu1 %vm1734_vm7, %v8562_v11  ;;  %v11826_v11 = vor.u32 %v10150_v14, %v10148_v2  ;;  %v11827_v38 = vshll.u32 %v10144_v61, 16  ;;  %v7458_v43 = vcombine.low %v10437_v31, %v10461_v19  ;;  %v4867_v47 = vor.u32 %v4866_v42, %v10431_v36  ;;  %v4643_v42 = vld [vmem:[#allocation2 + $0x9c] sm:$0xf] }
 0x1be   : > { %v4890_v10 = vrot.slane %v11824_v49, 4  ;;  %v4834_v37 = vrot.slane %v11825_v55, 4  ;;  %v4870_v48 = vshll.u32 %v10286_v6, 16  ;;  %v4899_v15 = vshrl.u32 %v4640_v3, 16  ;;  %v8564_v49 = vld [vmem:[#allocation2 + $0x6c] sm:$0xff]  }
 0x1bf   : > { %v4844_v32 = vrot.slane %v11826_v11, 4  ;;  %v4848_v20 = vrot.slane %v11827_v38, 5  ;;  %8167 = vmatmul.mubr.msk.bf16.gmra.mrb[4].mxu0 %vm1734_vm7, %v10187_v4  ;;  %v4902_v30 = vshll.u32 %v4640_v3, 16  ;;  %v4908_v14 = vshll.u32 %v10311_v7, 16 }
 0x1c0   : > { %8170 = vmatprep.mubr.msk.bf16.mxu0 %vm1734_vm7, %v10192_v9  ;;  %v4912_v61 = vshrl.u32 %v10311_v7, 16  ;;  %v4858_v55 = vrot.slane %v4857_v63, 4  ;;  %v4881_v11 = vor.u32 %v4880_v35, %v4877_v22  ;;  %v4891_v38 = vor.u32 %v4890_v10, %v10453_v46  ;;  %v4646_v10 = vld [vmem:[#allocation2 + $0xa8] sm:$0xf] }
 0x1c1   : > { %v4894_v4 = vshll.u32 %v10297_v52, 16  ;;  %v11828_v6 = vsel %vm8851_vm6, %v10130_v16, %v10124_v51  ;;  %v11829_v9 = vsel %vm8851_vm6, %v10122_v27, %v10086_v21  ;;  %v11830_v7 = vsel %vm8851_vm6, %v10142_v56, %v10134_v53 }
 0x1c2   : > { %v7399_v3 = vcombine.low %v11829_v9, %v11828_v6  ;;  %v11831_v52 = vsel %vm8851_vm6, %v10132_v0, %v10094_v25  ;;  %v4839_v51 = vsel %vm8851_vm6, %v4834_v37, %v10148_v2  ;;  %v4849_v16 = vsel %vm8851_vm6, %v4844_v32, %v4848_v20 }
 0x1c3   : > { %v7400_v22 = vcombine.low %v11831_v52, %v11830_v7  ;;  %v4868_v21 = vrot.slane %v4867_v47, 4  ;;  %v4872_v27 = vrot.slane %v4870_v48, 5  ;;  %v4901_v63 = vrot.slane %v4899_v15, 4 }
 0x1c4   : > { %v4904_v35 = vrot.slane %v4902_v30, 5  ;;  %8039 = vmatmul.mubr.msk.bf16.gmra.mrb[12].mxu1 %vm1734_vm7, %v8563_v45  ;;  %v10509_v53 = vrot.slane %v4908_v14, 5  ;;  %v4914_v56 = vrot.slane %v4912_v61, 4  ;;  %v4923_v6 = vshrl.u32 %v4643_v42, 16  ;;  %v8565_v61 = vld [vmem:[#allocation2 + $0x78] sm:$0xff]  }
 0x1c5   : > { %v4926_v25 = vshll.u32 %v4643_v42, 16  ;;  %8042 = vmatprep.mubr.msk.bf16.mxu1 %vm1734_vm7, %v8564_v49  ;;  %v4863_v0 = vsel %vm8851_vm6, %v4858_v55, %v10431_v36  ;;  %v4882_v2 = vrot.slane %v4881_v11, 4  ;;  %v4892_v37 = vrot.slane %v4891_v38, 4  ;;  %v8566_v42 = vld [vmem:[#allocation2 + $0x84] sm:$0xff]  }
 0x1c6   : > { %v4896_v32 = vrot.slane %v4894_v4, 5  ;;  %v4932_v20 = vshll.u32 %v10327_v57, 16  ;;  %v4936_v47 = vshrl.u32 %v10327_v57, 16  ;;  %v4947_v48 = vshrl.u32 %v4646_v10, 16 }
 0x1c7   : > { %v4950_v15 = vshll.u32 %v4646_v10, 16  ;;  %8171 = vmatmul.mubr.msk.bf16.gmra.mrb[8].mxu0 %vm1734_vm7, %v7399_v3  ;;  %v4873_v30 = vsel %vm8851_vm6, %v4868_v21, %v4872_v27  ;;  %v4918_v45 = vshll.u32 %v10325_v8, 16  ;;  %v4956_v14 = vshll.u32 %v10351_v39, 16 }
 0x1c8   : > { %v4960_v36 = vshrl.u32 %v10351_v39, 16  ;;  %8174 = vmatprep.mubr.msk.bf16.mxu0 %vm1734_vm7, %v7400_v22  ;;  %v4905_v49 = vor.u32 %v4904_v35, %v4901_v63  ;;  %v4915_v55 = vor.u32 %v4914_v56, %v10509_v53  ;;  %v4925_v57 = vrot.slane %v4923_v6, 4  ;;  %v4649_v63 = vld [vmem:[#allocation2 + $0xb4] sm:$0xf] }
 0x1c9   : > { %v4928_v11 = vrot.slane %v4926_v25, 5  ;;  %v7401_v38 = vcombine.low %v4839_v51, %v4849_v16  ;;  %v4887_v4 = vsel %vm8851_vm6, %v4882_v2, %v10453_v46  ;;  %v4897_v8 = vsel %vm8851_vm6, %v4892_v37, %v4896_v32  ;;  %v4652_v2 = vld [vmem:[#allocation2 + $0xc0] sm:$0xf] }
 0x1ca   : > { %v10530_v9 = vrot.slane %v4932_v20, 5  ;;  %v4938_v39 = vrot.slane %v4936_v47, 4  ;;  %v4949_v3 = vrot.slane %v4947_v48, 4  ;;  %v4952_v7 = vrot.slane %v4950_v15, 5 }
 0x1cb   : > { %v7402_v52 = vcombine.low %v4863_v0, %v4873_v30  ;;  %v4920_v22 = vrot.slane %v4918_v45, 5  ;;  %v10532_v21 = vrot.slane %v4956_v14, 5  ;;  %v4962_v27 = vrot.slane %v4960_v36, 4  ;;  %v8568_v45 = vld [vmem:[#allocation2 + $0x9c] sm:$0xff]  }
 0x1cc   : > { %8043 = vmatmul.mubr.msk.bf16.gmra.mrb[16].mxu1 %vm1734_vm7, %v8565_v61  ;;  %v4906_v51 = vrot.slane %v4905_v49, 4  ;;  %v4916_v16 = vrot.slane %v4915_v55, 4  ;;  %v4929_v46 = vor.u32 %v4928_v11, %v4925_v57  ;;  %v4942_v35 = vshll.u32 %v10342_v34, 16  ;;  %v8567_v34 = vld [vmem:[#allocation2 + $0x90] sm:$0xff]  }
 0x1cd   : > { %v7403_v10 = vcombine.low %v4887_v4, %v4897_v8  ;;  %8046 = vmatprep.mubr.msk.bf16.mxu1 %vm1734_vm7, %v8566_v42  ;;  %v4939_v56 = vor.u32 %v4938_v39, %v10530_v9  ;;  %v4953_v6 = vor.u32 %v4952_v7, %v4949_v3  ;;  %v4966_v25 = vshll.u32 %v10363_v26, 16 }
 0x1ce   : > { %v4971_v0 = vshrl.u32 %v4649_v63, 16  ;;  %v4963_v37 = vor.u32 %v4962_v27, %v10532_v21  ;;  %v4974_v32 = vshll.u32 %v4649_v63, 16  ;;  %v4980_v20 = vshll.u32 %v10353_v18, 16 }
 0x1cf   : > { %8175 = vmatmul.mubr.msk.bf16.gmra.mrb[12].mxu0 %vm1734_vm7, %v7401_v38  ;;  %v4984_v47 = vshrl.u32 %v10353_v18, 16  ;;  %v4911_v48 = vsel %vm8851_vm6, %v4906_v51, %v10509_v53  ;;  %v4921_v26 = vsel %vm8851_vm6, %v4916_v16, %v4920_v22  ;;  %v4930_v15 = vrot.slane %v4929_v46, 4  ;;  %v4655_v22 = vld [vmem:[#allocation2 + $0xcc] sm:$0xf] }
 0x1d0   : > { %8178 = vmatprep.mubr.msk.bf16.mxu0 %vm1734_vm7, %v7402_v52  ;;  %v4944_v30 = vrot.slane %v4942_v35, 5  ;;  %v4995_v14 = vshrl.u32 %v4652_v2, 16  ;;  %v4998_v36 = vshll.u32 %v4652_v2, 16  ;;  %v5004_v61 = vshll.u32 %v10391_v13, 16 }
 0x1d1   : > { %v5008_v49 = vshrl.u32 %v10391_v13, 16  ;;  %v4940_v18 = vrot.slane %v4939_v56, 4  ;;  %v4954_v55 = vrot.slane %v4953_v6, 4  ;;  %v4968_v57 = vrot.slane %v4966_v25, 5  ;;  %v8569_v56 = vld [vmem:[#allocation2 + $0xa8] sm:$0xff]  }
 0x1d2   : > { %v4973_v11 = vrot.slane %v4971_v0, 4  ;;  %v4964_v38 = vrot.slane %v4963_v37, 4  ;;  %v4976_v4 = vrot.slane %v4974_v32, 5  ;;  %v4982_v8 = vrot.slane %v4980_v20, 5  ;;  %v8570_v0 = vld [vmem:[#allocation2 + $0xb4] sm:$0xff]  }
 0x1d3   : > { %v4986_v53 = vrot.slane %v4984_v47, 4  ;;  %v7404_v42 = vcombine.low %v4911_v48, %v4921_v26  ;;  %v4997_v39 = vrot.slane %v4995_v14, 4  ;;  %v5000_v3 = vrot.slane %v4998_v36, 5 }
 0x1d4   : > { %8047 = vmatmul.mubr.msk.bf16.gmra.mrb[20].mxu1 %vm1734_vm7, %v8567_v34  ;;  %v5006_v7 = vrot.slane %v5004_v61, 5  ;;  %v5010_v52 = vrot.slane %v5008_v49, 4  ;;  %v4935_v13 = vsel %vm8851_vm6, %v4930_v15, %v10530_v9  ;;  %v4945_v27 = vsel %vm8851_vm6, %v4940_v18, %v4944_v30  ;;  %v8571_v61 = vld [vmem:[#allocation2 + $0xc0] sm:$0xff]  }
 0x1d5   : > { %8050 = vmatprep.mubr.msk.bf16.mxu1 %vm1734_vm7, %v8568_v45  ;;  %v4990_v63 = vshll.u32 %v10377_v12, 16  ;;  %v4959_v51 = vsel %vm8851_vm6, %v4954_v55, %v10532_v21  ;;  %v4969_v16 = vsel %vm8851_vm6, %v4964_v38, %v4968_v57  ;;  %v4977_v46 = vor.u32 %v4976_v4, %v4973_v11  ;;  %v8572_v38 = vld [vmem:[%s8757_s17] sm:$0xff]   ;;  %v8653_v4 = vld [vmem:[#allocation2 + $0x1c] sm:$0xf] }
 0x1d6   : > { %v4987_v35 = vor.u32 %v4986_v53, %v4982_v8  ;;  %v5019_v9 = vshrl.u32 %v4655_v22, 16  ;;  %v5022_v6 = vshll.u32 %v4655_v22, 16  ;;  %v5028_v25 = vshll.u32 %v10405_v1, 16 }
 0x1d7   : > { %8179 = vmatmul.mubr.msk.bf16.gmra.mrb[16].mxu0 %vm1734_vm7, %v7403_v10  ;;  %v5032_v12 = vshrl.u32 %v10405_v1, 16  ;;  %v5001_v10 = vor.u32 %v5000_v3, %v4997_v39  ;;  %v5011_v2 = vor.u32 %v5010_v52, %v5006_v7  ;;  %v5014_v37 = vshll.u32 %v10393_v40, 16 }
 0x1d8   : > { %8182 = vmatprep.mubr.msk.bf16.mxu0 %vm1734_vm7, %v7404_v42  ;;  %v7405_v21 = vcombine.low %v4935_v13, %v4945_v27  ;;  %v7406_v32 = vcombine.low %v4959_v51, %v4969_v16  ;;  %v4978_v20 = vrot.slane %v4977_v46, 4  ;;  %v4988_v47 = vrot.slane %v4987_v35, 4  ;;  %v8654_v13 = vld [vmem:[#allocation2 + $0x20] sm:$0x1]  ;;  %v8573_v16 = vld [vmem:[%s8757_s17 + $0x8] sm:$0xff]  }
 0x1d9   : > { %v4992_v34 = vrot.slane %v4990_v63, 5  ;;  %v5021_v48 = vrot.slane %v5019_v9, 4  ;;  %v5024_v26 = vrot.slane %v5022_v6, 5  ;;  %v5030_v15 = vrot.slane %v5028_v25, 5  ;;  %v8655_v46 = vld [vmem:[#allocation2 + $0x28] sm:$0xf] }
 0x1da   : > { %v5034_v30 = vrot.slane %v5032_v12, 4  ;;  %v5002_v1 = vrot.slane %v5001_v10, 4  ;;  %v5012_v45 = vrot.slane %v5011_v2, 4  ;;  %v5016_v14 = vrot.slane %v5014_v37, 5  ;;  %v5337_v6 = vld [vmem:[#allocation2 + $0x24] sm:$0xe] }
 0x1db   : > { %v4983_v40 = vsel %vm8851_vm6, %v4978_v20, %v4982_v8  ;;  %v4993_v36 = vsel %vm8851_vm6, %v4988_v47, %v4992_v34  ;;  %v5025_v49 = vor.u32 %v5024_v26, %v5021_v48  ;;  %v5038_v55 = vshll.u32 %v10413_v41, 16  ;;  %v5336_v8 = vld [vmem:[#allocation2 + $0x18] sm:$0xe]  ;;  %v8574_v25 = vld [vmem:[%s8757_s17 + $0x10] sm:$0xff]   ;;  %v8656_v2 = vld [vmem:[#allocation2 + $0x2c] sm:$0x1] }
 0x1dc   : > { %8051 = vmatmul.mubr.msk.bf16.gmra.mrb[24].mxu1 %vm1734_vm7, %v8569_v56  ;;  %v5035_v18 = vor.u32 %v5034_v30, %v5030_v15  ;;  %v5007_v57 = vsel %vm8851_vm6, %v5002_v1, %v5006_v7  ;;  %v5017_v11 = vsel %vm8851_vm6, %v5012_v45, %v5016_v14  ;;  %v5402_v53 = vrot.slane %v8653_v4, 5  ;;  %v8575_v20 = vld [vmem:[%s8757_s17 + $0x18] sm:$0xff]   ;;  %v8576_v47 = vld [vmem:[%s8757_s17 + $0x20] sm:$0xff]   ;;  %v8577_v26 = vld [vmem:[%s8757_s17 + $0x28] sm:$0xff]  }
 0x1dd   : > { %8054 = vmatprep.mubr.msk.bf16.mxu1 %vm1734_vm7, %v8570_v0  ;;  %v7407_v42 = vcombine.low %v4983_v40, %v4993_v36  ;;  %v7408_v39 = vcombine.low %v5007_v57, %v5017_v11  ;;  %v5026_v3 = vrot.slane %v5025_v49, 4  ;;  %v5040_v22 = vrot.slane %v5038_v55, 5  ;;  %v11839_v14 = vld [vmem:[#allocation4_spill] sm:$0xff]  ;;  %v11840_v40 = vld [vmem:[#allocation6_spill] sm:$0xff]  ;;  %v8583_v49 = vld [vmem:[%s8757_s17 + $0x58] sm:$0xff]  }
 0x1de   : > { %v5036_v52 = vrot.slane %v5035_v18, 4  ;;  %v7426_v41 = vrot.slane %v5336_v8, 9  ;;  %v5404_v7 = vrot.slane %v5402_v53, 4  ;;  %v5405_v27 = vrot.slane %v8654_v13, 5  ;;  %v8584_v18 = vld [vmem:[%s8757_s17 + $0x60] sm:$0xff]   ;;  %v11846_v57 = vld [vmem:[#allocation10_spill] sm:$0xff] }
 0x1df   : > { %8183 = vmatmul.mubr.msk.bf16.gmra.mrb[20].mxu0 %vm1734_vm7, %v7405_v21  ;;  %v5031_v63 = vsel %vm8851_vm6, %v5026_v3, %v5030_v15  ;;  %v5409_v35 = vrot.slane %v8655_v46, 5  ;;  %v7427_v10 = vrot.slane %v5337_v6, 9  ;;  %v5412_v37 = vrot.slane %v8656_v2, 5  ;;  %v11845_v55 = vld [vmem:[#allocation8_spill] sm:$0xff]  ;;  %v11849_v4 = vld [vmem:[#allocation13_spill] sm:$0xff]  ;;  %v11852_v3 = vld [vmem:[#allocation14_spill] sm:$0xff] }
 0x1e0   : > { %8186 = vmatprep.mubr.msk.bf16.mxu0 %vm1734_vm7, %v7406_v32  ;;  %v5041_v51 = vsel %vm8851_vm6, %v5036_v52, %v5040_v22  ;;  %v5403_v56 = vsel %vm9475_vm2, %v7426_v41, %v5402_v53  ;;  %v5406_v9 = vsel %vm9475_vm2, %v5404_v7, %v5405_v27  ;;  %v11832_v48 = vcombine.low %v10239_v44, %v10250_v28  ;;  %v8579_v44 = vld [vmem:[%s8757_s17 + $0x38] sm:$0xff]   ;;  %v8580_v28 = vld [vmem:[%s8757_s17 + $0x40] sm:$0xff]   ;;  %v8585_v8 = vld [vmem:[%s8757_s17 + $0x68] sm:$0xff]  }
 0x1e1   : > { %v7409_v12 = vcombine.low %v5031_v63, %v5041_v51  ;;  %v7443_v0 = vcombine.low %v5403_v56, %v5406_v9  ;;  %v5411_v24 = vrot.slane %v5409_v35, 4  ;;  %v5410_v21 = vsel %vm9475_vm2, %v7427_v10, %v5409_v35  ;;  %v11854_v22 = vld [vmem:[#allocation16_spill] sm:$0xff]  ;;  %v8587_v7 = vld [vmem:[%s8757_s17 + $0x78] sm:$0xff]   ;;  %v11857_v27 = vld [vmem:[#allocation17_spill] sm:$0xff] }
 0x1e2   : > { %v11833_v15 = vcombine.low %v10244_v59, %v10259_v23  ;;  %v11834_v30 = vcombine.low %v10263_v33, %v10274_v50  ;;  %v11835_v1 = vcombine.low %v10269_v5, %v10282_v60  ;;  %v11836_v59 = vld [vmem:[#allocation3_spill] sm:$0xff]  ;;  %v11837_v23 = vld [vmem:[#allocation5_spill] sm:$0xff]  ;;  %v8582_v50 = vld [vmem:[%s8757_s17 + $0x50] sm:$0xff]   ;;  %v11841_v36 = vcombine.low %v11839_v14, %v11840_v40 }
 0x1e3   : > { %v5413_v32 = vsel %vm9475_vm2, %v5411_v24, %v5412_v37  ;;  %v11838_v45 = vcombine.low %v11836_v59, %v11837_v23  ;;  %v8581_v33 = vld [vmem:[%s8757_s17 + $0x48] sm:$0xff]   ;;  %v11842_v5 = vld [vmem:[#allocation7_spill] sm:$0xff]  ;;  %v11847_v11 = vcombine.low %v11845_v55, %v11846_v57  ;;  %v11855_v41 = vcombine.low %v10387_v29, %v11854_v22 }
 0x1e4   : > { %8055 = vmatmul.mubr.msk.bf16.gmra.mrb[28].mxu1 %vm1734_vm7, %v8571_v61  ;;  %v7444_v34 = vcombine.low %v5410_v21, %v5413_v32  ;;  %v11843_v60 = vld [vmem:[#allocation9_spill] sm:$0xff]  ;;  %v11856_v13 = vld [vmem:[#allocation15_spill] sm:$0xff] }
 0x1e5   : > { %8230 = vmatprep.mubr.msk.bf16.mxu1 %vm1734_vm7, %v8572_v38  ;;  %v11844_v61 = vcombine.low %v11842_v5, %v11843_v60  ;;  %v11848_v38 = vld [vmem:[#allocation11_spill] sm:$0xff]  ;;  %v11858_v63 = vcombine.low %v11856_v13, %v11857_v27 }
 0x1e6   : > { %v11850_v53 = vcombine.low %v11848_v38, %v11849_v4 }
 0x1e7   : > { %8187 = vmatmul.mubr.msk.bf16.gmra.mrb[24].mxu0 %vm1734_vm7, %v7407_v42  ;;  %v8586_v42 = vld [vmem:[%s8757_s17 + $0x70] sm:$0xff]   ;;  %s6203_s17 = sadd.f32 256.0, %s10689_s16 }
 0x1e8   : > { %8190 = vmatprep.mubr.msk.bf16.mxu0 %vm1734_vm7, %v7408_v39  ;;  %v11851_v39 = vld [vmem:[#allocation12_spill] sm:$0xff] }
 0x1e9   : > { %v11853_v52 = vcombine.low %v11851_v39, %v11852_v3  ;;  %v6206_v29 = vstv %s6203_s17 }
 0x1ea   : > { %8590 = vrcp.f32 %v6206_v29 }
 0x1ec   : > { %8231 = vmatmul.mubr.msk.bf16.vlgmr.msra.gmra.mrb[32].mxu1 %vm1734_vm7, %v8573_v16 }
 0x1ed   : > { %8234 = vmatprep.mubr.msk.bf16.mxu1 %vm1734_vm7, %v8574_v25 }
 0x1ef   : > { %8191 = vmatmul.mubr.msk.bf16.gmra.mrb[28].mxu0 %vm1734_vm7, %v7409_v12 }
 0x1f0   : > { %8196 = vmatprep.mubr.msk.bf16.mxu0 %vm1734_vm7, %v7443_v0 }
 0x1f4   : > { %8235 = vmatmul.mubr.msk.bf16.gmra.mrb[36].mxu1 %vm1734_vm7, %v8575_v20  ;;  %v8591_v51 = vpop.eup %8590 }
 0x1f5   : > { %8238 = vmatprep.mubr.msk.bf16.mxu1 %vm1734_vm7, %v8576_v47  ;;  %8528 = vpush %v8591_v51 }
 0x1f7   : > { %8197 = vmatmul.mubr.msk.bf16.vlgmr.msra.gmra.mrb[0].mxu0 %vm1734_vm7, %v7444_v34 }
 0x1f8   : > { %8200 = vmatprep.mubr.msk.bf16.mxu0 %vm1734_vm7, %v11832_v48 }
 0x1fc   : > { %8239 = vmatmul.mubr.msk.bf16.gmra.mrb[40].mxu1 %vm1734_vm7, %v8577_v26 }
 0x1fd   : > { %8242 = vmatprep.mubr.msk.bf16.mxu1 %vm1734_vm7, %v8578_v62 }
 0x1ff   : > { %8201 = vmatmul.mubr.msk.bf16.gmra.mrb[4].mxu0 %vm1734_vm7, %v11833_v15 }
 0x200   : > { %8204 = vmatprep.mubr.msk.bf16.mxu0 %vm1734_vm7, %v11834_v30 }
 0x204   : > { %8243 = vmatmul.mubr.msk.bf16.gmra.mrb[44].mxu1 %vm1734_vm7, %v8579_v44 }
 0x205   : > { %8246 = vmatprep.mubr.msk.bf16.mxu1 %vm1734_vm7, %v8580_v28 }
 0x207   : > { %8205 = vmatmul.mubr.msk.bf16.gmra.mrb[8].mxu0 %vm1734_vm7, %v11835_v1 }
 0x208   : > { %8208 = vmatprep.mubr.msk.bf16.mxu0 %vm1734_vm7, %v11838_v45 }
 0x20c   : > { %8247 = vmatmul.mubr.msk.bf16.gmra.mrb[48].mxu1 %vm1734_vm7, %v8581_v33 }
 0x20d   : > { %8250 = vmatprep.mubr.msk.bf16.mxu1 %vm1734_vm7, %v8582_v50 }
 0x20f   : > { %8209 = vmatmul.mubr.msk.bf16.gmra.mrb[12].mxu0 %vm1734_vm7, %v11841_v36 }
 0x210   : > { %8212 = vmatprep.mubr.msk.bf16.mxu0 %vm1734_vm7, %v11844_v61 }
 0x214   : > { %8251 = vmatmul.mubr.msk.bf16.gmra.mrb[52].mxu1 %vm1734_vm7, %v8583_v49 }
 0x215   : > { %8254 = vmatprep.mubr.msk.bf16.mxu1 %vm1734_vm7, %v8584_v18 }
 0x217   : > { %8213 = vmatmul.mubr.msk.bf16.gmra.mrb[16].mxu0 %vm1734_vm7, %v11847_v11 }
 0x218   : > { %8216 = vmatprep.mubr.msk.bf16.mxu0 %vm1734_vm7, %v11850_v53 }
 0x21c   : > { %8255 = vmatmul.mubr.msk.bf16.gmra.mrb[56].mxu1 %vm1734_vm7, %v8585_v8 }
 0x21d   : > { %8258 = vmatprep.mubr.msk.bf16.mxu1 %vm1734_vm7, %v8586_v42 }
 0x21f   : > { %8217 = vmatmul.mubr.msk.bf16.gmra.mrb[20].mxu0 %vm1734_vm7, %v11853_v52 }
 0x220   : > { %8220 = vmatprep.mubr.msk.bf16.mxu0 %vm1734_vm7, %v11855_v41 }
 0x224   : > { %8259 = vmatmul.mubr.msk.bf16.gmra.mrb[60].mxu1 %vm1734_vm7, %v8587_v7 }
 0x226   : > { %s11415_s26 = spop %8528 }
 0x227   : > { %8221 = vmatmul.mubr.msk.bf16.gmra.mrb[24].mxu0 %vm1734_vm7, %v11858_v63  ;;  %s11636_s30 = smul.f32 %s11415_s26, %s6217_s29 }
 0x228   : > { %8224 = vmatprep.mubr.msk.bf16.mxu0 %vm1734_vm7, %v7457_v17 }
 0x22f   : > { %8225 = vmatmul.mubr.msk.bf16.gmra.mrb[28].mxu0 %vm1734_vm7, %v7458_v43 }
 0x27f   : > { %v10692_v16 = vpop.f32.mrb[0].mxu1 }
 0x280   : > { %v10694_v46 = vpop.f32.mrb[1].mxu1 }
 0x281   : > { %v10696_v54 = vpop.f32.mrb[2].mxu1 }
 0x282   : > { %v10698_v58 = vpop.f32.mrb[3].mxu1 }
 0x287   : > { %v10700_v31 = vpop.f32.mrb[4].mxu1 }
 0x288   : > { %v10702_v17 = vpop.f32.mrb[5].mxu1 }
 0x289   : > { %v10704_v19 = vpop.f32.mrb[6].mxu1 }
 0x28a   : > { %v10706_v43 = vpop.f32.mrb[7].mxu1 }
 0x28f   : > { %v10708_v35 = vpop.f32.mrb[8].mxu1 }
 0x290   : > { %v10710_v56 = vpop.f32.mrb[9].mxu1 }
 0x291   : > { %v10712_v9 = vpop.f32.mrb[10].mxu1 }
 0x292   : > { %v10714_v6 = vpop.f32.mrb[11].mxu1 }
 0x297   : > { %v10716_v25 = vpop.f32.mrb[12].mxu1 }
 0x298   : > { %v10718_v12 = vpop.f32.mrb[13].mxu1 }
 0x299   : > { %v10720_v0 = vpop.f32.mrb[14].mxu1 }
 0x29a   : > { %v10722_v10 = vpop.f32.mrb[15].mxu1 }
 0x29f   : > { %v10724_v24 = vpop.f32.mrb[16].mxu1 }
 0x2a0   : > { %v10726_v2 = vpop.f32.mrb[17].mxu1 }
 0x2a1   : > { %v10728_v37 = vpop.f32.mrb[18].mxu1 }
 0x2a2   : > { %v10730_v21 = vpop.f32.mrb[19].mxu1 }
 0x2a7   : > { %v10732_v32 = vpop.f32.mrb[20].mxu1 }
 0x2a8   : > { %v10734_v20 = vpop.f32.mrb[21].mxu1 }
 0x2a9   : > { %v10736_v47 = vpop.f32.mrb[22].mxu1 }
 0x2aa   : > { %v10738_v34 = vpop.f32.mrb[23].mxu1 }
 0x2af   : > { %v10740_v48 = vpop.f32.mrb[24].mxu1 }
 0x2b0   : > { %v10742_v26 = vpop.f32.mrb[25].mxu1 }
 0x2b1   : > { %v10744_v62 = vpop.f32.mrb[26].mxu1 }
 0x2b2   : > { %v10746_v15 = vpop.f32.mrb[27].mxu1 }
 0x2b7   : > { %v10748_v30 = vpop.f32.mrb[28].mxu1 }
 0x2b8   : > { %v10750_v44 = vpop.f32.mrb[29].mxu1 }
 0x2b9   : > { %v10752_v28 = vpop.f32.mrb[30].mxu1 }
 0x2ba   : > { %v10754_v1 = vpop.f32.mrb[31].mxu1 }
 0x2bf   : > { %v8232_v59 = vpop.f32.mrb[32].mxu1 }
 0x2c0   : > { %v7643_v23 = vpack.c.bf16 %v8232_v59, %v8232_v59  ;;  %v6425_v45 = vpop.f32.mrb[33].mxu1 }
 0x2c1   : > { %v7641_v33 = vpack.c.bf16 %v6425_v45, %v6425_v45  ;;  %v8233_v50 = vpop.f32.mrb[34].mxu1 }
 0x2c2   : > { %6683 = vst.msk [vmem:[%s8767_s23 + $0x8] sm:$0xf] %vm6680_vm3, %v7643_v23  ;;  %v10758_v14 = vpack.c.bf16 %v8233_v50, %v8232_v59  ;;  %v7644_v40 = vpack.c.bf16 %v8233_v50, %v8233_v50  ;;  %v6428_v36 = vpop.f32.mrb[35].mxu1 }
 0x2c3   : > { %6681 = vst.msk [vmem:[%s8767_s23] sm:$0xf] %vm6680_vm3, %v7641_v33  ;;  %v10762_v5 = vpack.c.bf16 %v6428_v36, %v6425_v45  ;;  %v7642_v60 = vpack.c.bf16 %v6428_v36, %v6428_v36 }
 0x2c4   : > { %6684 = vst.msk [vmem:[%s8767_s23 + $0xc] sm:$0xf] %vm6680_vm3, %v7644_v40  ;;  %v11764_v61 = vunpack.c.l.bf16 %v10758_v14  ;;  %v11746_v38 = vunpack.c.h.bf16 %v10758_v14 }
 0x2c5   : > { %6682 = vst.msk [vmem:[%s8767_s23 + $0x4] sm:$0xf] %vm6680_vm3, %v7642_v60  ;;  %v6713_v49 = vunpack.c.l.bf16 %v10762_v5  ;;  %v11765_v18 = vunpack.c.h.bf16 %v10762_v5 }
 0x2c6   : > { %v6749_v42 = vsel %vm6745_vm4, %v11764_v61, 0.0  ;;  %v6751_v23 = vsel %vm6745_vm4, %v11746_v38, 0.0 }
 0x2c7   : > { %v6746_v55 = vsel %vm6745_vm4, %v6713_v49, 0.0  ;;  %v6747_v57 = vsel %vm6745_vm4, %v11765_v18, 0.0  ;;  %v8236_v11 = vpop.f32.mrb[36].mxu1 }
 0x2c8   : > { %v6748_v4 = vadd.f32 %v6747_v57, %v6746_v55  ;;  %v7647_v53 = vpack.c.bf16 %v8236_v11, %v8236_v11  ;;  %v6441_v8 = vpop.f32.mrb[37].mxu1 }
 0x2c9   : > { %v7645_v39 = vpack.c.bf16 %v6441_v8, %v6441_v8  ;;  %v8237_v3 = vpop.f32.mrb[38].mxu1 }
 0x2ca   : > { %v8198_v52 = vpop.f32.mrb[0].mxu0  ;;  %v6750_v22 = vadd.f32 %v6749_v42, %v6748_v4  ;;  %6687 = vst.msk [vmem:[%s8767_s23 + $0x18] sm:$0xf] %vm6680_vm3, %v7647_v53  ;;  %v10783_v41 = vpack.c.bf16 %v8237_v3, %v8236_v11  ;;  %v7648_v7 = vpack.c.bf16 %v8237_v3, %v8237_v3  ;;  %v6444_v13 = vpop.f32.mrb[39].mxu1 }
 0x2cb   : > { %v8262_v27 = vadd.f32 %v8198_v52, %v10692_v16  ;;  %v5647_v63 = vpop.f32.mrb[1].mxu0  ;;  %6685 = vst.msk [vmem:[%s8767_s23 + $0x10] sm:$0xf] %vm6680_vm3, %v7645_v39  ;;  %v10788_v29 = vpack.c.bf16 %v6444_v13, %v6441_v8  ;;  %v7646_v51 = vpack.c.bf16 %v6444_v13, %v6444_v13 }
 0x2cc   : > { %v8263_v59 = vadd.f32 %v5647_v63, %v10694_v46  ;;  %v8199_v45 = vpop.f32.mrb[2].mxu0  ;;  %6688 = vst.msk [vmem:[%s8767_s23 + $0x1c] sm:$0xf] %vm6680_vm3, %v7648_v7  ;;  %v6752_v55 = vadd.f32 %v6751_v23, %v6750_v22  ;;  %v11741_v22 = vunpack.c.h.bf16 %v10783_v41 }
 0x2cd   : > { %v7611_v33 = vpack.c.bf16 %v8262_v27, %v8262_v27  ;;  %v8264_v16 = vadd.f32 %v8199_v45, %v10696_v54  ;;  %v5650_v50 = vpop.f32.mrb[3].mxu0  ;;  %6686 = vst.msk [vmem:[%s8767_s23 + $0x14] sm:$0xf] %vm6680_vm3, %v7646_v51  ;;  %v11745_v40 = vunpack.c.l.bf16 %v10788_v29  ;;  %v11743_v36 = vunpack.c.h.bf16 %v10788_v29 }
 0x2ce   : > { %v7609_v46 = vpack.c.bf16 %v8263_v59, %v8263_v59  ;;  %v8265_v60 = vadd.f32 %v5650_v50, %v10698_v58  ;;  %v11737_v54 = vunpack.c.l.bf16 %v10783_v41 }
 0x2cf   : > { %5936 = vst.msk [vmem:[%s8762_s20 + $0x8] sm:$0xf] %vm1130_vm10, %v7611_v33  ;;  %v10804_v57 = vpack.c.bf16 %v8264_v16, %v8262_v27  ;;  %v7612_v11 = vpack.c.bf16 %v8264_v16, %v8264_v16  ;;  %v6753_v4 = vsel %vm6745_vm4, %v11745_v40, 0.0  ;;  %v8240_v53 = vpop.f32.mrb[40].mxu1  ;;  %v6755_v7 = vsel %vm6745_vm4, %v11743_v36, 0.0 }
 0x2d0   : > { %5934 = vst.msk [vmem:[%s8762_s20] sm:$0xf] %vm1130_vm10, %v7609_v46  ;;  %v10812_v8 = vpack.c.bf16 %v8265_v60, %v8263_v59  ;;  %v7610_v58 = vpack.c.bf16 %v8265_v60, %v8265_v60  ;;  %v6754_v42 = vadd.f32 %v6753_v4, %v6752_v55  ;;  %v7651_v39 = vpack.c.bf16 %v8240_v53, %v8240_v53  ;;  %v6457_v3 = vpop.f32.mrb[41].mxu1 }
 0x2d1   : > { %5937 = vst.msk [vmem:[%s8762_s20 + $0xc] sm:$0xf] %vm1130_vm10, %v7612_v11  ;;  %v11735_v52 = vunpack.c.l.bf16 %v10804_v57  ;;  %v7649_v13 = vpack.c.bf16 %v6457_v3, %v6457_v3  ;;  %v8241_v27 = vpop.f32.mrb[42].mxu1  ;;  %v11739_v16 = vunpack.c.h.bf16 %v10804_v57  ;;  %v6757_v60 = vsel %vm6745_vm4, %v11737_v54, 0.0 }
 0x2d2   : > { %5935 = vst.msk [vmem:[%s8762_s20 + $0x4] sm:$0xf] %vm1130_vm10, %v7610_v58  ;;  %v11736_v63 = vunpack.c.l.bf16 %v10812_v8  ;;  %v11738_v51 = vunpack.c.h.bf16 %v10812_v8  ;;  %v8202_v59 = vpop.f32.mrb[4].mxu0  ;;  %v6756_v23 = vadd.f32 %v6755_v7, %v6754_v42  ;;  %v10827_v45 = vpack.c.bf16 %v8241_v27, %v8240_v53  ;;  %v6460_v33 = vpop.f32.mrb[43].mxu1 }
 0x2d3   : > { %6691 = vst.msk [vmem:[%s8767_s23 + $0x28] sm:$0xf] %vm6680_vm3, %v7651_v39  ;;  %v8266_v50 = vadd.f32 %v8202_v59, %v10700_v31  ;;  %v5663_v46 = vpop.f32.mrb[5].mxu0  ;;  %6689 = vst.msk [vmem:[%s8767_s23 + $0x20] sm:$0xf] %vm6680_vm3, %v7649_v13  ;;  %v7652_v55 = vpack.c.bf16 %v8241_v27, %v8241_v27  ;;  %v6001_v11 = vsel %vm1734_vm7, %v11735_v52, 0.0  ;;  %v10851_v54 = vpack.c.bf16 %v6460_v33, %v6457_v3 }
 0x2d4   : > { %v5998_v4 = vsel %vm1734_vm7, %v11736_v63, 0.0  ;;  %v5999_v31 = vsel %vm1734_vm7, %v11738_v51, 0.0  ;;  %v8267_v53 = vadd.f32 %v5663_v46, %v10702_v17  ;;  %v8203_v58 = vpop.f32.mrb[6].mxu0  ;;  %v11740_v27 = vunpack.c.l.bf16 %v10827_v45 }
 0x2d5   : > { %v6000_v42 = vadd.f32 %v5999_v31, %v5998_v4  ;;  %v7615_v39 = vpack.c.bf16 %v8266_v50, %v8266_v50  ;;  %v8268_v7 = vadd.f32 %v8203_v58, %v10704_v19  ;;  %v5666_v13 = vpop.f32.mrb[7].mxu0  ;;  %6692 = vst.msk [vmem:[%s8767_s23 + $0x2c] sm:$0xf] %vm6680_vm3, %v7652_v55  ;;  %v6758_v52 = vadd.f32 %v6757_v60, %v6756_v23 }
 0x2d6   : > { %v7613_v59 = vpack.c.bf16 %v8267_v53, %v8267_v53  ;;  %v8269_v63 = vadd.f32 %v5666_v13, %v10706_v43  ;;  %v6759_v17 = vsel %vm6745_vm4, %v11741_v22, 0.0  ;;  %v6003_v23 = vsel %vm1734_vm7, %v11739_v16, 0.0 }
 0x2d7   : > { %v6002_v51 = vadd.f32 %v6001_v11, %v6000_v42  ;;  %5940 = vst.msk [vmem:[%s8762_s20 + $0x18] sm:$0xf] %vm1130_vm10, %v7615_v39  ;;  %v10858_v19 = vpack.c.bf16 %v8268_v7, %v8266_v50  ;;  %v7616_v46 = vpack.c.bf16 %v8268_v7, %v8268_v7  ;;  %v8244_v55 = vpop.f32.mrb[44].mxu1  ;;  %v7650_v60 = vpack.c.bf16 %v6460_v33, %v6460_v33 }
 0x2d8   : > { %5938 = vst.msk [vmem:[%s8762_s20 + $0x10] sm:$0xf] %vm1130_vm10, %v7613_v59  ;;  %v10865_v43 = vpack.c.bf16 %v8269_v63, %v8267_v53  ;;  %v7614_v3 = vpack.c.bf16 %v8269_v63, %v8269_v63  ;;  %v10867_v11 = vpop.f32.mrb[45].mxu1  ;;  %v11756_v4 = vunpack.c.h.bf16 %v10827_v45  ;;  %v6765_v31 = vsel %vm6745_vm4, %v11740_v27, 0.0 }
 0x2d9   : > { %5941 = vst.msk [vmem:[%s8762_s20 + $0x1c] sm:$0xf] %vm1130_vm10, %v7616_v46  ;;  %v11751_v50 = vunpack.c.l.bf16 %v10858_v19  ;;  %v11742_v58 = vunpack.c.l.bf16 %v10851_v54  ;;  %v8245_v42 = vpop.f32.mrb[46].mxu1  ;;  %v11763_v39 = vunpack.c.h.bf16 %v10851_v54  ;;  %v6760_v7 = vadd.f32 %v6759_v17, %v6758_v52 }
 0x2da   : > { %5939 = vst.msk [vmem:[%s8762_s20 + $0x14] sm:$0xf] %vm1130_vm10, %v7614_v3  ;;  %v11744_v63 = vunpack.c.l.bf16 %v10865_v43  ;;  %v11747_v33 = vunpack.c.h.bf16 %v10865_v43  ;;  %v8206_v53 = vpop.f32.mrb[8].mxu0  ;;  %v10884_v13 = vpop.f32.mrb[47].mxu1  ;;  %v11749_v59 = vunpack.c.h.bf16 %v10858_v19  ;;  %v6004_v46 = vadd.f32 %v6003_v23, %v6002_v51 }
 0x2db   : > { %6690 = vst.msk [vmem:[%s8767_s23 + $0x24] sm:$0xf] %vm6680_vm3, %v7650_v60  ;;  %v8270_v16 = vadd.f32 %v8206_v53, %v10708_v35  ;;  %v5679_v27 = vpop.f32.mrb[9].mxu0  ;;  %v6761_v3 = vsel %vm6745_vm4, %v11742_v58, 0.0  ;;  %v6763_v58 = vsel %vm6745_vm4, %v11763_v39, 0.0 }
 0x2dc   : > { %v6005_v60 = vsel %vm1734_vm7, %v11744_v63, 0.0  ;;  %v6007_v52 = vsel %vm1734_vm7, %v11747_v33, 0.0  ;;  %v8271_v17 = vadd.f32 %v5679_v27, %v10710_v56  ;;  %v8207_v22 = vpop.f32.mrb[10].mxu0  ;;  %v6762_v51 = vadd.f32 %v6761_v3, %v6760_v7 }
 0x2dd   : > { %v6006_v23 = vadd.f32 %v6005_v60, %v6004_v46  ;;  %v7619_v35 = vpack.c.bf16 %v8270_v16, %v8270_v16  ;;  %v8272_v53 = vadd.f32 %v8207_v22, %v10712_v9  ;;  %v5682_v36 = vpop.f32.mrb[11].mxu0  ;;  %v7655_v33 = vpack.c.bf16 %v8244_v55, %v8244_v55 }
 0x2de   : > { %v7617_v63 = vpack.c.bf16 %v8271_v17, %v8271_v17  ;;  %v6764_v40 = vadd.f32 %v6763_v58, %v6762_v51  ;;  %v8273_v38 = vadd.f32 %v5682_v36, %v10714_v6  ;;  %v7653_v9 = vpack.c.bf16 %v10867_v11, %v10867_v11 }
 0x2df   : > { %v6008_v56 = vadd.f32 %v6007_v52, %v6006_v23  ;;  %5944 = vst.msk [vmem:[%s8762_s20 + $0x28] sm:$0xf] %vm1130_vm10, %v7619_v35  ;;  %v10905_v27 = vpack.c.bf16 %v8272_v53, %v8270_v16  ;;  %v7620_v7 = vpack.c.bf16 %v8272_v53, %v8272_v53  ;;  %v10909_v22 = vpop.f32.mrb[48].mxu1  ;;  %v6009_v58 = vsel %vm1734_vm7, %v11751_v50, 0.0 }
 0x2e0   : > { %5942 = vst.msk [vmem:[%s8762_s20 + $0x20] sm:$0xf] %vm1130_vm10, %v7617_v63  ;;  %v10916_v6 = vpack.c.bf16 %v8273_v38, %v8271_v17  ;;  %v7618_v36 = vpack.c.bf16 %v8273_v38, %v8273_v38  ;;  %v10920_v16 = vpack.c.bf16 %v8245_v42, %v8244_v55  ;;  %v10922_v46 = vpop.f32.mrb[49].mxu1  ;;  %v6767_v60 = vsel %vm6745_vm4, %v11756_v4, 0.0 }
 0x2e1   : > { %6695 = vst.msk [vmem:[%s8767_s23 + $0x38] sm:$0xf] %vm6680_vm3, %v7655_v33  ;;  %v6010_v3 = vadd.f32 %v6009_v58, %v6008_v56  ;;  %v11748_v52 = vunpack.c.l.bf16 %v10905_v27  ;;  %6693 = vst.msk [vmem:[%s8767_s23 + $0x30] sm:$0xf] %vm6680_vm3, %v7653_v9  ;;  %v7656_v63 = vpack.c.bf16 %v8245_v42, %v8245_v42  ;;  %v10932_v38 = vpop.f32.mrb[50].mxu1  ;;  %v6011_v55 = vsel %vm1734_vm7, %v11749_v59, 0.0 }
 0x2e2   : > { %5945 = vst.msk [vmem:[%s8762_s20 + $0x2c] sm:$0xf] %vm1130_vm10, %v7620_v7  ;;  %v6766_v33 = vadd.f32 %v6765_v31, %v6764_v40  ;;  %5943 = vst.msk [vmem:[%s8762_s20 + $0x24] sm:$0xf] %vm1130_vm10, %v7618_v36  ;;  %v11750_v17 = vunpack.c.l.bf16 %v10916_v6  ;;  %v11752_v51 = vunpack.c.h.bf16 %v10916_v6  ;;  %v8210_v23 = vpop.f32.mrb[12].mxu0  ;;  %v10941_v35 = vpop.f32.mrb[51].mxu1  ;;  %v11753_v53 = vunpack.c.h.bf16 %v10905_v27 }
 0x2e3   : > { %v6012_v56 = vadd.f32 %v6011_v55, %v6010_v3  ;;  %v8274_v42 = vadd.f32 %v8210_v23, %v10716_v25  ;;  %v5695_v7 = vpop.f32.mrb[13].mxu0  ;;  %6696 = vst.msk [vmem:[%s8767_s23 + $0x3c] sm:$0xf] %vm6680_vm3, %v7656_v63  ;;  %v11754_v9 = vunpack.c.l.bf16 %v10920_v16  ;;  %v6017_v40 = vsel %vm1734_vm7, %v11748_v52, 0.0 }
 0x2e4   : > { %v6013_v31 = vsel %vm1734_vm7, %v11750_v17, 0.0  ;;  %v8275_v58 = vadd.f32 %v5695_v7, %v10718_v12  ;;  %v11757_v36 = vunpack.c.h.bf16 %v10920_v16  ;;  %v8211_v3 = vpop.f32.mrb[14].mxu0  ;;  %v6015_v63 = vsel %vm1734_vm7, %v11752_v51, 0.0 }
 0x2e5   : > { %v6014_v25 = vadd.f32 %v6013_v31, %v6012_v56  ;;  %v7623_v55 = vpack.c.bf16 %v8274_v42, %v8274_v42  ;;  %v8276_v23 = vadd.f32 %v8211_v3, %v10720_v0  ;;  %v5698_v52 = vpop.f32.mrb[15].mxu0  ;;  %v10962_v17 = vpack.c.bf16 %v10884_v13, %v10867_v11 }
 0x2e6   : > { %v7621_v59 = vpack.c.bf16 %v8275_v58, %v8275_v58  ;;  %v7654_v12 = vpack.c.bf16 %v10884_v13, %v10884_v13  ;;  %v6768_v7 = vadd.f32 %v6767_v60, %v6766_v33  ;;  %v8277_v51 = vadd.f32 %v5698_v52, %v10722_v10 }
 0x2e7   : > { %v6016_v50 = vadd.f32 %v6015_v63, %v6014_v25  ;;  %5948 = vst.msk [vmem:[%s8762_s20 + $0x38] sm:$0xf] %vm1130_vm10, %v7623_v55  ;;  %v10968_v56 = vpack.c.bf16 %v8276_v23, %v8274_v42  ;;  %v7624_v31 = vpack.c.bf16 %v8276_v23, %v8276_v23  ;;  %v10971_v0 = vpop.f32.mrb[52].mxu1  ;;  %v11755_v11 = vunpack.c.l.bf16 %v10962_v17 }
 0x2e8   : > { %5946 = vst.msk [vmem:[%s8762_s20 + $0x30] sm:$0xf] %vm1130_vm10, %v7621_v59  ;;  %v11758_v13 = vunpack.c.h.bf16 %v10962_v17  ;;  %v7659_v60 = vpack.c.bf16 %v10909_v22, %v10909_v22  ;;  %v7657_v33 = vpack.c.bf16 %v10922_v46, %v10922_v46  ;;  %v10983_v42 = vpop.f32.mrb[53].mxu1  ;;  %v6019_v10 = vsel %vm1734_vm7, %v11753_v53, 0.0 }
 0x2e9   : > { %6694 = vst.msk [vmem:[%s8767_s23 + $0x34] sm:$0xf] %vm6680_vm3, %v7654_v12  ;;  %v6018_v59 = vadd.f32 %v6017_v40, %v6016_v50  ;;  %v6773_v52 = vsel %vm6745_vm4, %v11754_v9, 0.0  ;;  %v10993_v3 = vpack.c.bf16 %v8277_v51, %v8275_v58  ;;  %v10995_v25 = vpop.f32.mrb[54].mxu1  ;;  %v11761_v63 = vunpack.c.l.bf16 %v10968_v56 }
 0x2ea   : > { %5949 = vst.msk [vmem:[%s8762_s20 + $0x3c] sm:$0xf] %vm1130_vm10, %v7624_v31  ;;  %v6769_v55 = vsel %vm6745_vm4, %v11755_v11, 0.0  ;;  %v7622_v23 = vpack.c.bf16 %v8277_v51, %v8277_v51  ;;  %v8214_v50 = vpop.f32.mrb[16].mxu0  ;;  %v11007_v40 = vpack.c.bf16 %v10932_v38, %v10909_v22  ;;  %v11009_v58 = vpop.f32.mrb[55].mxu1  ;;  %v6775_v12 = vsel %vm6745_vm4, %v11757_v36, 0.0 }
 0x2eb   : > { %6699 = vst.msk [vmem:[%s8767_s23 + $0x48] sm:$0xf] %vm6680_vm3, %v7659_v60  ;;  %6697 = vst.msk [vmem:[%s8767_s23 + $0x40] sm:$0xf] %vm6680_vm3, %v7657_v33  ;;  %v6770_v31 = vadd.f32 %v6769_v55, %v6768_v7  ;;  %v6771_v51 = vsel %vm6745_vm4, %v11758_v13, 0.0  ;;  %v11759_v60 = vunpack.c.l.bf16 %v10993_v3  ;;  %v5711_v53 = vpop.f32.mrb[17].mxu0  ;;  %v11762_v33 = vunpack.c.h.bf16 %v10993_v3 }
 0x2ec   : > { %5947 = vst.msk [vmem:[%s8762_s20 + $0x34] sm:$0xf] %vm1130_vm10, %v7622_v23  ;;  %v6020_v22 = vadd.f32 %v6019_v10, %v6018_v59  ;;  %v8278_v9 = vadd.f32 %v8214_v50, %v10724_v24  ;;  %v8279_v11 = vadd.f32 %v5711_v53, %v10726_v2  ;;  %v8215_v4 = vpop.f32.mrb[18].mxu0  ;;  %v11760_v7 = vunpack.c.h.bf16 %v10968_v56 }
 0x2ed   : > { %v6772_v55 = vadd.f32 %v6771_v51, %v6770_v31  ;;  %v6021_v36 = vsel %vm1734_vm7, %v11759_v60, 0.0  ;;  %v7660_v23 = vpack.c.bf16 %v10932_v38, %v10932_v38  ;;  %v5714_v13 = vpop.f32.mrb[19].mxu0  ;;  %v6025_v24 = vsel %vm1734_vm7, %v11761_v63, 0.0 }
 0x2ee   : > { %v6022_v10 = vadd.f32 %v6021_v36, %v6020_v22  ;;  %v7627_v2 = vpack.c.bf16 %v8278_v9, %v8278_v9  ;;  %v7625_v53 = vpack.c.bf16 %v8279_v11, %v8279_v11  ;;  %v6023_v50 = vsel %vm1734_vm7, %v11762_v33, 0.0 }
 0x2ef   : > { %v6774_v59 = vadd.f32 %v6773_v52, %v6772_v55  ;;  %6700 = vst.msk [vmem:[%s8767_s23 + $0x4c] sm:$0xf] %vm6680_vm3, %v7660_v23  ;;  %v11766_v31 = vunpack.c.l.bf16 %v11007_v40  ;;  %v8280_v38 = vadd.f32 %v8215_v4, %v10728_v37  ;;  %v11039_v51 = vpop.f32.mrb[56].mxu1  ;;  %v11047_v36 = vpack.c.bf16 %v10941_v35, %v10922_v46 }
 0x2f0   : > { %v6024_v60 = vadd.f32 %v6023_v50, %v6022_v10  ;;  %5952 = vst.msk [vmem:[%s8762_s20 + $0x48] sm:$0xf] %vm1130_vm10, %v7627_v2  ;;  %5950 = vst.msk [vmem:[%s8762_s20 + $0x40] sm:$0xf] %vm1130_vm10, %v7625_v53  ;;  %v7658_v52 = vpack.c.bf16 %v10941_v35, %v10941_v35  ;;  %v8281_v22 = vadd.f32 %v5714_v13, %v10730_v21  ;;  %v11052_v55 = vpop.f32.mrb[57].mxu1  ;;  %v6027_v37 = vsel %vm1734_vm7, %v11760_v7, 0.0 }
 0x2f1   : > { %v11057_v4 = vpack.c.bf16 %v8280_v38, %v8278_v9  ;;  %v7628_v23 = vpack.c.bf16 %v8280_v38, %v8280_v38  ;;  %v6776_v10 = vadd.f32 %v6775_v12, %v6774_v59  ;;  %v11059_v2 = vpop.f32.mrb[58].mxu1  ;;  %v11768_v35 = vunpack.c.l.bf16 %v11047_v36 }
 0x2f2   : > { %v6026_v46 = vadd.f32 %v6025_v24, %v6024_v60  ;;  %6698 = vst.msk [vmem:[%s8767_s23 + $0x44] sm:$0xf] %vm6680_vm3, %v7658_v52  ;;  %v11767_v21 = vunpack.c.h.bf16 %v11047_v36  ;;  %v11065_v13 = vpack.c.bf16 %v8281_v22, %v8279_v11  ;;  %v8218_v53 = vpop.f32.mrb[20].mxu0  ;;  %v11067_v50 = vpop.f32.mrb[59].mxu1  ;;  %v11774_v9 = vunpack.c.h.bf16 %v11007_v40 }
 0x2f3   : > { %v6781_v12 = vsel %vm6745_vm4, %v11766_v31, 0.0  ;;  %5953 = vst.msk [vmem:[%s8762_s20 + $0x4c] sm:$0xf] %vm1130_vm10, %v7628_v23  ;;  %v7626_v60 = vpack.c.bf16 %v8281_v22, %v8281_v22  ;;  %v7663_v24 = vpack.c.bf16 %v10971_v0, %v10971_v0  ;;  %v5727_v59 = vpop.f32.mrb[21].mxu0  ;;  %v11769_v11 = vunpack.c.l.bf16 %v11057_v4 }
 0x2f4   : > { %v6777_v38 = vsel %vm6745_vm4, %v11768_v35, 0.0  ;;  %v11772_v52 = vunpack.c.l.bf16 %v11065_v13  ;;  %v11771_v7 = vunpack.c.h.bf16 %v11065_v13  ;;  %v8219_v63 = vpop.f32.mrb[22].mxu0  ;;  %v11770_v33 = vunpack.c.h.bf16 %v11057_v4 }
 0x2f5   : > { %v6778_v39 = vadd.f32 %v6777_v38, %v6776_v10  ;;  %v6779_v22 = vsel %vm6745_vm4, %v11767_v21, 0.0  ;;  %5951 = vst.msk [vmem:[%s8762_s20 + $0x44] sm:$0xf] %vm1130_vm10, %v7626_v60  ;;  %v6028_v23 = vadd.f32 %v6027_v37, %v6026_v46  ;;  %v5730_v61 = vpop.f32.mrb[23].mxu0  ;;  %v8282_v10 = vadd.f32 %v8218_v53, %v10732_v32 }
 0x2f6   : > { %6703 = vst.msk [vmem:[%s8767_s23 + $0x58] sm:$0xf] %vm6680_vm3, %v7663_v24  ;;  %v6029_v18 = vsel %vm1734_vm7, %v11772_v52, 0.0  ;;  %v6031_v31 = vsel %vm1734_vm7, %v11771_v7, 0.0  ;;  %v7661_v38 = vpack.c.bf16 %v10983_v42, %v10983_v42  ;;  %v8283_v37 = vadd.f32 %v5727_v59, %v10734_v20 }
 0x2f7   : > { %v6780_v21 = vadd.f32 %v6779_v22, %v6778_v39  ;;  %v6030_v35 = vadd.f32 %v6029_v18, %v6028_v23  ;;  %v11103_v46 = vpack.c.bf16 %v10995_v25, %v10971_v0  ;;  %v11105_v60 = vpop.f32.mrb[60].mxu1  ;;  %v7631_v24 = vpack.c.bf16 %v8282_v10, %v8282_v10 }
 0x2f8   : > { %6701 = vst.msk [vmem:[%s8767_s23 + $0x50] sm:$0xf] %vm6680_vm3, %v7661_v38  ;;  %v7664_v32 = vpack.c.bf16 %v10995_v25, %v10995_v25  ;;  %v8284_v53 = vadd.f32 %v8219_v63, %v10736_v47  ;;  %v11114_v18 = vpack.c.bf16 %v11009_v58, %v10983_v42  ;;  %v11116_v20 = vpop.f32.mrb[61].mxu1  ;;  %v7629_v59 = vpack.c.bf16 %v8283_v37, %v8283_v37 }
 0x2f9   : > { %v6782_v39 = vadd.f32 %v6781_v12, %v6780_v21  ;;  %v6032_v0 = vadd.f32 %v6031_v31, %v6030_v35  ;;  %v11773_v22 = vunpack.c.l.bf16 %v11103_v46  ;;  %v11119_v23 = vpop.f32.mrb[62].mxu1  ;;  %v6033_v25 = vsel %vm1734_vm7, %v11769_v11, 0.0  ;;  %5956 = vst.msk [vmem:[%s8762_s20 + $0x58] sm:$0xf] %vm1130_vm10, %v7631_v24 }
 0x2fa   : > { %6704 = vst.msk [vmem:[%s8767_s23 + $0x5c] sm:$0xf] %vm6680_vm3, %v7664_v32  ;;  %v11128_v47 = vpack.c.bf16 %v8284_v53, %v8282_v10  ;;  %v7632_v42 = vpack.c.bf16 %v8284_v53, %v8284_v53  ;;  %v7662_v63 = vpack.c.bf16 %v11009_v58, %v11009_v58  ;;  %v8222_v31 = vpop.f32.mrb[24].mxu0  ;;  %v11132_v35 = vpop.f32.mrb[63].mxu1  ;;  %v6783_v21 = vsel %vm6745_vm4, %v11774_v9, 0.0 }
 0x2fb   : > { %v6034_v12 = vadd.f32 %v6033_v25, %v6032_v0  ;;  %5954 = vst.msk [vmem:[%s8762_s20 + $0x50] sm:$0xf] %vm1130_vm10, %v7629_v59  ;;  %v11775_v38 = vunpack.c.l.bf16 %v11114_v18  ;;  %v6734_v24 = vunpack.c.h.bf16 %v11114_v18  ;;  %v5743_v10 = vpop.f32.mrb[25].mxu0  ;;  %v6035_v32 = vsel %vm1734_vm7, %v11770_v33, 0.0 }
 0x2fc   : > { %v6736_v58 = vunpack.c.h.bf16 %v11103_v46  ;;  %v6789_v53 = vsel %vm6745_vm4, %v11773_v22, 0.0  ;;  %5957 = vst.msk [vmem:[%s8762_s20 + $0x5c] sm:$0xf] %vm1130_vm10, %v7632_v42  ;;  %v6784_v0 = vadd.f32 %v6783_v21, %v6782_v39  ;;  %v8223_v59 = vpop.f32.mrb[26].mxu0  ;;  %v11777_v25 = vunpack.c.l.bf16 %v11128_v47 }
 0x2fd   : > { %6702 = vst.msk [vmem:[%s8767_s23 + $0x54] sm:$0xf] %vm6680_vm3, %v7662_v63  ;;  %v11776_v11 = vunpack.c.h.bf16 %v11128_v47  ;;  %v6785_v33 = vsel %vm6745_vm4, %v11775_v38, 0.0  ;;  %v8285_v7 = vadd.f32 %v5730_v61, %v10738_v34  ;;  %v5746_v52 = vpop.f32.mrb[27].mxu0  ;;  %v6787_v42 = vsel %vm6745_vm4, %v6734_v24, 0.0 }
 0x2fe   : > { %v6786_v22 = vadd.f32 %v6785_v33, %v6784_v0  ;;  %v6036_v39 = vadd.f32 %v6035_v32, %v6034_v12  ;;  %v7667_v63 = vpack.c.bf16 %v11039_v51, %v11039_v51  ;;  %v8286_v38 = vadd.f32 %v8222_v31, %v10740_v48 }
 0x2ff   : > { %v11163_v21 = vpack.c.bf16 %v8285_v7, %v8283_v37  ;;  %v7630_v9 = vpack.c.bf16 %v8285_v7, %v8285_v7  ;;  %v7665_v34 = vpack.c.bf16 %v11052_v55, %v11052_v55  ;;  %v8287_v33 = vadd.f32 %v5743_v10, %v10742_v26 }
 0x300   : > { %v6788_v61 = vadd.f32 %v6787_v42, %v6786_v22  ;;  %6707 = vst.msk [vmem:[%s8767_s23 + $0x68] sm:$0xf] %vm6680_vm3, %v7667_v63  ;;  %v11173_v12 = vpack.c.bf16 %v11059_v2, %v11039_v51  ;;  %v7668_v37 = vpack.c.bf16 %v11059_v2, %v11059_v2  ;;  %v7635_v31 = vpack.c.bf16 %v8286_v38, %v8286_v38 }
 0x301   : > { %5955 = vst.msk [vmem:[%s8762_s20 + $0x54] sm:$0xf] %vm1130_vm10, %v7630_v9  ;;  %v11779_v48 = vunpack.c.l.bf16 %v11163_v21  ;;  %v11778_v7 = vunpack.c.h.bf16 %v11163_v21  ;;  %v8288_v22 = vadd.f32 %v8223_v59, %v10744_v62  ;;  %v7633_v10 = vpack.c.bf16 %v8287_v33, %v8287_v33 }
 0x302   : > { %6705 = vst.msk [vmem:[%s8767_s23 + $0x60] sm:$0xf] %vm6680_vm3, %v7665_v34  ;;  %v6790_v26 = vadd.f32 %v6789_v53, %v6788_v61  ;;  %6708 = vst.msk [vmem:[%s8767_s23 + $0x6c] sm:$0xf] %vm6680_vm3, %v7668_v37  ;;  %v8226_v51 = vpop.f32.mrb[28].mxu0  ;;  %v6739_v9 = vunpack.c.l.bf16 %v11173_v12  ;;  %v6791_v62 = vsel %vm6745_vm4, %v6736_v58, 0.0  ;;  %v11204_v63 = vpack.c.bf16 %v11067_v50, %v11052_v55 }
 0x303   : > { %v6037_v2 = vsel %vm1734_vm7, %v11779_v48, 0.0  ;;  %5960 = vst.msk [vmem:[%s8762_s20 + $0x68] sm:$0xf] %vm1130_vm10, %v7635_v31  ;;  %v11192_v32 = vpack.c.bf16 %v8288_v22, %v8286_v38  ;;  %v7636_v0 = vpack.c.bf16 %v8288_v22, %v8288_v22  ;;  %v5759_v42 = vpop.f32.mrb[29].mxu0  ;;  %v6041_v53 = vsel %vm1734_vm7, %v11777_v25, 0.0 }
 0x304   : > { %v6038_v59 = vadd.f32 %v6037_v2, %v6036_v39  ;;  %5958 = vst.msk [vmem:[%s8762_s20 + $0x60] sm:$0xf] %vm1130_vm10, %v7633_v10  ;;  %v8227_v38 = vpop.f32.mrb[30].mxu0  ;;  %v6043_v34 = vsel %vm1734_vm7, %v11776_v11, 0.0  ;;  %v6039_v61 = vsel %vm1734_vm7, %v11778_v7, 0.0  ;;  %v7666_v39 = vpack.c.bf16 %v11067_v50, %v11067_v50 }
 0x305   : > { %5961 = vst.msk [vmem:[%s8762_s20 + $0x6c] sm:$0xf] %vm1130_vm10, %v7636_v0  ;;  %v6792_v37 = vadd.f32 %v6791_v62, %v6790_v26  ;;  %v5762_v31 = vpop.f32.mrb[31].mxu0  ;;  %v6737_v55 = vunpack.c.l.bf16 %v11204_v63  ;;  %v6738_v10 = vunpack.c.h.bf16 %v11204_v63  ;;  %v8289_v2 = vadd.f32 %v5746_v52, %v10746_v15 }
 0x306   : > { %v6040_v22 = vadd.f32 %v6039_v61, %v6038_v59  ;;  %v6740_v11 = vunpack.c.h.bf16 %v11173_v12  ;;  %v6797_v25 = vsel %vm6745_vm4, %v6739_v9, 0.0  ;;  %6706 = vst.msk [vmem:[%s8767_s23 + $0x64] sm:$0xf] %vm6680_vm3, %v7666_v39  ;;  %v7671_v50 = vpack.c.bf16 %v11105_v60, %v11105_v60 }
 0x307   : > { %v8290_v26 = vadd.f32 %v8226_v51, %v10748_v30  ;;  %v6793_v15 = vsel %vm6745_vm4, %v6737_v55, 0.0  ;;  %v6795_v52 = vsel %vm6745_vm4, %v6738_v10, 0.0  ;;  %v11234_v62 = vpack.c.bf16 %v8289_v2, %v8287_v33 }
 0x308   : > { %v6042_v0 = vadd.f32 %v6041_v53, %v6040_v22  ;;  %v6794_v59 = vadd.f32 %v6793_v15, %v6792_v37  ;;  %v7634_v61 = vpack.c.bf16 %v8289_v2, %v8289_v2  ;;  %6711 = vst.msk [vmem:[%s8767_s23 + $0x78] sm:$0xf] %vm6680_vm3, %v7671_v50  ;;  %v7669_v30 = vpack.c.bf16 %v11116_v20, %v11116_v20 }
 0x309   : > { %v7639_v39 = vpack.c.bf16 %v8290_v26, %v8290_v26  ;;  %v5990_v51 = vunpack.c.l.bf16 %v11234_v62  ;;  %v11783_v53 = vunpack.c.h.bf16 %v11234_v62  ;;  %v8291_v7 = vadd.f32 %v5759_v42, %v10750_v44 }
 0x30a   : > { %v6044_v22 = vadd.f32 %v6043_v34, %v6042_v0  ;;  %v6796_v48 = vadd.f32 %v6795_v52, %v6794_v59  ;;  %5959 = vst.msk [vmem:[%s8762_s20 + $0x64] sm:$0xf] %vm1130_vm10, %v7634_v61  ;;  %v11251_v33 = vpack.c.bf16 %v11119_v23, %v11105_v60  ;;  %v7672_v37 = vpack.c.bf16 %v11119_v23, %v11119_v23 }
 0x30b   : > { %5964 = vst.msk [vmem:[%s8762_s20 + $0x78] sm:$0xf] %vm1130_vm10, %v7639_v39  ;;  %v8292_v34 = vadd.f32 %v8227_v38, %v10752_v28  ;;  %v11781_v44 = vunpack.c.l.bf16 %v11192_v32  ;;  %v6045_v42 = vsel %vm1734_vm7, %v5990_v51, 0.0  ;;  %v7637_v2 = vpack.c.bf16 %v8291_v7, %v8291_v7 }
 0x30c   : > { %6709 = vst.msk [vmem:[%s8767_s23 + $0x70] sm:$0xf] %vm6680_vm3, %v7669_v30  ;;  %v11262_v50 = vpack.c.bf16 %v11132_v35, %v11116_v20  ;;  %v11780_v60 = vunpack.c.h.bf16 %v11192_v32  ;;  %v6798_v0 = vadd.f32 %v6797_v25, %v6796_v48  ;;  %v6046_v15 = vadd.f32 %v6045_v42, %v6044_v22  ;;  %6712 = vst.msk [vmem:[%s8767_s23 + $0x7c] sm:$0xf] %vm6680_vm3, %v7672_v37 }
 0x30d   : > { %v6047_v28 = vsel %vm1734_vm7, %v11783_v53, 0.0  ;;  %5962 = vst.msk [vmem:[%s8762_s20 + $0x70] sm:$0xf] %vm1130_vm10, %v7637_v2  ;;  %v11272_v23 = vpack.c.bf16 %v8292_v34, %v8290_v26  ;;  %v7640_v38 = vpack.c.bf16 %v8292_v34, %v8292_v34  ;;  %v7670_v20 = vpack.c.bf16 %v11132_v35, %v11132_v35 }
 0x30e   : > { %v6741_v52 = vunpack.c.l.bf16 %v11262_v50  ;;  %v6799_v25 = vsel %vm6745_vm4, %v6740_v11, 0.0  ;;  %v6048_v48 = vadd.f32 %v6047_v28, %v6046_v15  ;;  %v6742_v59 = vunpack.c.h.bf16 %v11262_v50 }
 0x30f   : > { %v6049_v61 = vsel %vm1734_vm7, %v11781_v44, 0.0  ;;  %5965 = vst.msk [vmem:[%s8762_s20 + $0x7c] sm:$0xf] %vm1130_vm10, %v7640_v38  ;;  %v6800_v26 = vadd.f32 %v6799_v25, %v6798_v0  ;;  %v6743_v30 = vunpack.c.l.bf16 %v11251_v33  ;;  %v8293_v22 = vadd.f32 %v5762_v31, %v10754_v1 }
 0x310   : > { %6710 = vst.msk [vmem:[%s8767_s23 + $0x74] sm:$0xf] %vm6680_vm3, %v7670_v20  ;;  %v6801_v35 = vsel %vm6745_vm4, %v6741_v52, 0.0  ;;  %v6050_v39 = vadd.f32 %v6049_v61, %v6048_v48  ;;  %v6051_v37 = vsel %vm1734_vm7, %v11780_v60, 0.0  ;;  %v6744_v42 = vunpack.c.h.bf16 %v11251_v33 }
 0x311   : > { %v6802_v34 = vadd.f32 %v6801_v35, %v6800_v26  ;;  %v6803_v2 = vsel %vm6745_vm4, %v6742_v59, 0.0  ;;  %v11296_v50 = vpack.c.bf16 %v8293_v22, %v8291_v7  ;;  %v7638_v15 = vpack.c.bf16 %v8293_v22, %v8293_v22 }
 0x312   : > { %v6052_v28 = vadd.f32 %v6051_v37, %v6050_v39  ;;  %v6805_v38 = vsel %vm6745_vm4, %v6743_v30, 0.0  ;;  %v6807_v25 = vsel %vm6745_vm4, %v6744_v42, 0.0  ;;  %v5996_v48 = vunpack.c.l.bf16 %v11272_v23 }
 0x313   : > { %v6804_v0 = vadd.f32 %v6803_v2, %v6802_v34  ;;  %5963 = vst.msk [vmem:[%s8762_s20 + $0x74] sm:$0xf] %vm1130_vm10, %v7638_v15  ;;  %v5994_v1 = vunpack.c.l.bf16 %v11296_v50  ;;  %v5995_v31 = vunpack.c.h.bf16 %v11296_v50  ;;  %v11782_v44 = vunpack.c.h.bf16 %v11272_v23  ;;  %s6209_s20 = smul.f32 256.0, %s11415_s26 }
 0x314   : > { %v6057_v37 = vsel %vm1734_vm7, %v5996_v48, 0.0 }
 0x315   : > { %v6806_v20 = vadd.f32 %v6805_v38, %v6804_v0  ;;  %v6053_v7 = vsel %vm1734_vm7, %v5994_v1, 0.0  ;;  %v6055_v35 = vsel %vm1734_vm7, %v5995_v31, 0.0 }
 0x316   : > { %v6054_v26 = vadd.f32 %v6053_v7, %v6052_v28  ;;  %v6059_v28 = vsel %vm1734_vm7, %v11782_v44, 0.0 }
 0x317   : > { %v6808_v61 = vadd.f32 %v6807_v25, %v6806_v20 }
 0x318   : > { %v6056_v22 = vadd.f32 %v6055_v35, %v6054_v26  ;;  %v11860_v35 = vunpack.c.h.bf16 %v11047_v36 }
 0x319   : > { %v6809_v39 = vrot.slane %v6808_v61, 4 }
 0x31a   : > { %v6058_v2 = vadd.f32 %v6057_v37, %v6056_v22  ;;  %v11862_v37 = vunpack.c.h.bf16 %v11007_v40 }
 0x31b   : > { %v6810_v34 = vadd.f32 %v6809_v39, %v6808_v61  ;;  %v11859_v61 = vunpack.c.l.bf16 %v11047_v36 }
 0x31c   : > { %v6060_v7 = vadd.f32 %v6059_v28, %v6058_v2 }
 0x31d   : > { %v6811_v15 = vrot.slane %v6810_v34, 2 }
 0x31e   : > { %v6061_v12 = vrot.slane %v6060_v7, 4 }
 0x31f   : > { %v6812_v0 = vadd.f32 %v6811_v15, %v6810_v34  ;;  %v11863_v34 = vunpack.c.l.bf16 %v11114_v18  ;;  %v11864_v15 = vunpack.c.l.bf16 %v11103_v46 }
 0x321   : > { %v6813_v38 = vrot.slane %v6812_v0, 1 }
 0x323   : > { %v6814_v60 = vadd.f32 %v6813_v38, %v6812_v0 }
 0x325   : > { %v11317_v20 = vmul.f32 0.00390625, %v6814_v60  ;;  %v11861_v60 = vunpack.c.l.bf16 %v11007_v40 }
 0x327   : > { %v6816_v25 = vsub.f32 %v6713_v49, %v11317_v20  ;;  %v11328_v26 = vsub.f32 %v11859_v61, %v11317_v20  ;;  %v11333_v39 = vsub.f32 %v11860_v35, %v11317_v20  ;;  %v11338_v22 = vsub.f32 %v11861_v60, %v11317_v20 }
 0x328   : > { %v11343_v49 = vsub.f32 %v11862_v37, %v11317_v20  ;;  %v11348_v2 = vsub.f32 %v11863_v34, %v11317_v20  ;;  %v11353_v36 = vsub.f32 %v6734_v24, %v11317_v20  ;;  %v11358_v0 = vsub.f32 %v11864_v15, %v11317_v20 }
 0x329   : > { %v11363_v40 = vsub.f32 %v6736_v58, %v11317_v20  ;;  %v11368_v38 = vsub.f32 %v6737_v55, %v11317_v20  ;;  %v11373_v18 = vsub.f32 %v6738_v10, %v11317_v20  ;;  %v11378_v24 = vsub.f32 %v6739_v9, %v11317_v20 }
 0x32a   : > { %v11383_v46 = vsub.f32 %v6740_v11, %v11317_v20  ;;  %v11865_v58 = vunpack.c.h.bf16 %v10762_v5  ;;  %v11389_v28 = vsub.f32 %v6741_v52, %v11317_v20  ;;  %v11392_v63 = vsub.f32 %v6742_v59, %v11317_v20 }
 0x32b   : > { %v11395_v10 = vsub.f32 %v6743_v30, %v11317_v20  ;;  %v11866_v9 = vunpack.c.l.bf16 %v10758_v14  ;;  %v11867_v11 = vunpack.c.h.bf16 %v10758_v14  ;;  %v6848_v5 = vmul.f32 %v6816_v25, %v6816_v25 }
 0x32c   : > { %v6817_v55 = vsub.f32 %v11865_v58, %v11317_v20  ;;  %v11868_v52 = vunpack.c.l.bf16 %v10788_v29  ;;  %v6062_v34 = vadd.f32 %v6061_v12, %v6060_v7  ;;  %v11869_v30 = vunpack.c.h.bf16 %v10788_v29 }
 0x32d   : > { %v6818_v61 = vsub.f32 %v11866_v9, %v11317_v20  ;;  %v6819_v35 = vsub.f32 %v11867_v11, %v11317_v20  ;;  %v6880_v9 = vsel %vm6745_vm4, %v6848_v5, 0.0  ;;  %v11870_v14 = vunpack.c.l.bf16 %v10783_v41 }
 0x32e   : > { %v6849_v60 = vmul.f32 %v6817_v55, %v6817_v55  ;;  %v6820_v37 = vsub.f32 %v11868_v52, %v11317_v20  ;;  %v6821_v15 = vsub.f32 %v11869_v30, %v11317_v20  ;;  %v11871_v29 = vunpack.c.h.bf16 %v10783_v41 }
 0x32f   : > { %v6850_v59 = vmul.f32 %v6818_v61, %v6818_v61  ;;  %v6851_v58 = vmul.f32 %v6819_v35, %v6819_v35  ;;  %v6822_v25 = vsub.f32 %v11870_v14, %v11317_v20  ;;  %v6063_v61 = vrot.slane %v6062_v34, 2 }
 0x330   : > { %v6881_v44 = vsel %vm6745_vm4, %v6849_v60, 0.0  ;;  %v6852_v55 = vmul.f32 %v6820_v37, %v6820_v37  ;;  %v6823_v12 = vsub.f32 %v11871_v29, %v11317_v20  ;;  %v6853_v35 = vmul.f32 %v6821_v15, %v6821_v15 }
 0x331   : > { %v6882_v53 = vadd.f32 %v6881_v44, %v6880_v9  ;;  %v6883_v11 = vsel %vm6745_vm4, %v6850_v59, 0.0  ;;  %v6885_v5 = vsel %vm6745_vm4, %v6851_v58, 0.0  ;;  %v11872_v60 = vunpack.c.l.bf16 %v10851_v54 }
 0x332   : > { %v6854_v37 = vmul.f32 %v6822_v25, %v6822_v25  ;;  %v6887_v59 = vsel %vm6745_vm4, %v6852_v55, 0.0  ;;  %v6064_v9 = vadd.f32 %v6063_v61, %v6062_v34  ;;  %v11873_v41 = vunpack.c.h.bf16 %v10851_v54 }
 0x333   : > { %v6884_v7 = vadd.f32 %v6883_v11, %v6882_v53  ;;  %v6824_v52 = vsub.f32 %v11872_v60, %v11317_v20  ;;  %v6949_v53 = vld [vmem:[%s11717_s12] sm:$0x1]  ;;  %v6855_v58 = vmul.f32 %v6823_v12, %v6823_v12  ;;  %v6889_v14 = vsel %vm6745_vm4, %v6853_v35, 0.0 }
 0x334   : > { %v6825_v15 = vsub.f32 %v11873_v41, %v11317_v20  ;;  %v11438_v25 = vsub.f32 %v6744_v42, %v11317_v20  ;;  %v11874_v34 = vunpack.c.l.bf16 %v10827_v45  ;;  %v6891_v29 = vsel %vm6745_vm4, %v6854_v37, 0.0 }
 0x335   : > { %v6886_v44 = vadd.f32 %v6885_v5, %v6884_v7  ;;  %v11433_v7 = vstv %s6209_s20  ;;  %v6856_v61 = vmul.f32 %v6824_v52, %v6824_v52  ;;  %v11445_v54 = vsub.f32 %v11317_v20, %v6949_v53 }
 0x336   : > { %v6826_v55 = vsub.f32 %v11874_v34, %v11317_v20  ;;  %v6065_v35 = vrot.slane %v6064_v9, 1  ;;  %v11875_v5 = vunpack.c.h.bf16 %v10827_v45  ;;  %v6857_v60 = vmul.f32 %v6825_v15, %v6825_v15 }
 0x337   : > { %v6888_v30 = vadd.f32 %v6887_v59, %v6886_v44  ;;  %v6893_v33 = vsel %vm6745_vm4, %v6855_v58, 0.0  ;;  %v6951_v42 = vmul.f32 %v11445_v54, %v11433_v7  ;;  %v11876_v52 = vunpack.c.l.bf16 %v10962_v17 }
 0x338   : > { %v6827_v44 = vsub.f32 %v11875_v5, %v11317_v20  ;;  %v6895_v41 = vsel %vm6745_vm4, %v6856_v61, 0.0  ;;  %v6066_v34 = vadd.f32 %v6065_v35, %v6064_v9  ;;  %v11877_v45 = vunpack.c.h.bf16 %v10962_v17 }
 0x339   : > { %v6890_v11 = vadd.f32 %v6889_v14, %v6888_v30  ;;  %v6828_v37 = vsub.f32 %v11876_v52, %v11317_v20  ;;  %v6858_v30 = vmul.f32 %v6826_v55, %v6826_v55  ;;  %v6952_v14 = vadd.f32 %v6951_v42, %v6949_v53 }
 0x33a   : > { %v6829_v15 = vsub.f32 %v11877_v45, %v11317_v20  ;;  %v6859_v58 = vmul.f32 %v6827_v44, %v6827_v44  ;;  %v11878_v55 = vunpack.c.l.bf16 %v10920_v16  ;;  %v11469_v5 = vmul.f32 0.00390625, %v6066_v34 }
 0x33b   : > { %v6892_v12 = vadd.f32 %v6891_v29, %v6890_v11  ;;  %v6897_v29 = vsel %vm6745_vm4, %v6857_v60, 0.0  ;;  %6954 = vst.msk [vmem:[%s11717_s12] sm:$0x1] %vm6953_vm5, %v6952_v14  ;;  %v6860_v53 = vmul.f32 %v6828_v37, %v6828_v37  ;;  %v6899_v9 = vsel %vm6745_vm4, %v6858_v30, 0.0 }
 0x33c   : > { %v6830_v61 = vsub.f32 %v11878_v55, %v11317_v20  ;;  %v11879_v17 = vunpack.c.h.bf16 %v10920_v16  ;;  %v6861_v60 = vmul.f32 %v6829_v15, %v6829_v15  ;;  %v11479_v37 = vsub.f32 %v5994_v1, %v11469_v5 }
 0x33d   : > { %v6894_v59 = vadd.f32 %v6893_v33, %v6892_v12  ;;  %v6901_v33 = vsel %vm6745_vm4, %v6859_v58, 0.0  ;;  %v6903_v52 = vsel %vm6745_vm4, %v6860_v53, 0.0  ;;  %v11484_v30 = vsub.f32 %v5995_v31, %v11469_v5 }
 0x33e   : > { %v6831_v44 = vsub.f32 %v11879_v17, %v11317_v20  ;;  %v11489_v16 = vsub.f32 %v5996_v48, %v11469_v5  ;;  %v6905_v14 = vsel %vm6745_vm4, %v6861_v60, 0.0  ;;  %v11881_v1 = vunpack.c.h.bf16 %v10812_v8 }
 0x33f   : > { %v6896_v11 = vadd.f32 %v6895_v41, %v6894_v59  ;;  %v6862_v59 = vmul.f32 %v6830_v61, %v6830_v61  ;;  %v6864_v50 = vmul.f32 %v11328_v26, %v11328_v26  ;;  %v11882_v48 = vunpack.c.l.bf16 %v10804_v57 }
 0x340   : > { %v6863_v20 = vmul.f32 %v6831_v44, %v6831_v44  ;;  %v6069_v15 = vsub.f32 %v11881_v1, %v11469_v5  ;;  %v6866_v26 = vmul.f32 %v11338_v22, %v11338_v22  ;;  %v11884_v60 = vunpack.c.l.bf16 %v10865_v43 }
 0x341   : > { %v6898_v12 = vadd.f32 %v6897_v29, %v6896_v11  ;;  %v11880_v11 = vunpack.c.l.bf16 %v10812_v8  ;;  %v6907_v31 = vsel %vm6745_vm4, %v6862_v59, 0.0  ;;  %v6070_v29 = vsub.f32 %v11882_v48, %v11469_v5 }
 0x342   : > { %v6909_v55 = vsel %vm6745_vm4, %v6863_v20, 0.0  ;;  %v11883_v8 = vunpack.c.h.bf16 %v10804_v57  ;;  %v6911_v17 = vsel %vm6745_vm4, %v6864_v50, 0.0 }
 0x343   : > { %v6900_v35 = vadd.f32 %v6899_v9, %v6898_v12  ;;  %v6068_v34 = vsub.f32 %v11880_v11, %v11469_v5  ;;  %v6865_v12 = vmul.f32 %v11333_v39, %v11333_v39  ;;  %v6102_v39 = vmul.f32 %v6070_v29, %v6070_v29 }
 0x344   : > { %v6071_v9 = vsub.f32 %v11883_v8, %v11469_v5  ;;  %v6868_v11 = vmul.f32 %v11348_v2, %v11348_v2  ;;  %v11887_v2 = vunpack.c.h.bf16 %v10858_v19 }
 0x345   : > { %v6902_v42 = vadd.f32 %v6901_v33, %v6900_v35  ;;  %v6100_v61 = vmul.f32 %v6068_v34, %v6068_v34  ;;  %v6101_v35 = vmul.f32 %v6069_v15, %v6069_v15  ;;  %v6072_v33 = vsub.f32 %v11884_v60, %v11469_v5 }
 0x346   : > { %v6913_v59 = vsel %vm6745_vm4, %v6865_v12, 0.0  ;;  %v6103_v20 = vmul.f32 %v6071_v9, %v6071_v9  ;;  %v6915_v34 = vsel %vm6745_vm4, %v6866_v26, 0.0  ;;  %v6075_v12 = vsub.f32 %v11887_v2, %v11469_v5 }
 0x347   : > { %v6904_v41 = vadd.f32 %v6903_v52, %v6902_v42  ;;  %v6867_v42 = vmul.f32 %v11343_v49, %v11343_v49  ;;  %v6132_v57 = vsel %vm1734_vm7, %v6100_v61, 0.0  ;;  %v11886_v49 = vunpack.c.l.bf16 %v10858_v19 }
 0x348   : > { %v6104_v50 = vmul.f32 %v6072_v33, %v6072_v33  ;;  %v6137_v61 = vsel %vm1734_vm7, %v6103_v20, 0.0  ;;  %v6919_v8 = vsel %vm6745_vm4, %v6868_v11, 0.0  ;;  %v6871_v19 = vmul.f32 %v11363_v40, %v11363_v40 }
 0x349   : > { %v6906_v45 = vadd.f32 %v6905_v14, %v6904_v41  ;;  %v11885_v41 = vunpack.c.h.bf16 %v10865_v43  ;;  %v6133_v14 = vsel %vm1734_vm7, %v6101_v35, 0.0  ;;  %v6074_v15 = vsub.f32 %v11886_v49, %v11469_v5 }
 0x34a   : > { %v6869_v43 = vmul.f32 %v11353_v36, %v11353_v36  ;;  %v11888_v36 = vunpack.c.l.bf16 %v10916_v6  ;;  %v6925_v49 = vsel %vm6745_vm4, %v6871_v19, 0.0  ;;  %v6876_v19 = vmul.f32 %v11389_v28, %v11389_v28 }
 0x34b   : > { %v6908_v58 = vadd.f32 %v6907_v31, %v6906_v45  ;;  %v6073_v22 = vsub.f32 %v11885_v41, %v11469_v5  ;;  %v6134_v45 = vadd.f32 %v6133_v14, %v6132_v57  ;;  %v6135_v31 = vsel %vm1734_vm7, %v6102_v39, 0.0 }
 0x34c   : > { %v6076_v26 = vsub.f32 %v11888_v36, %v11469_v5  ;;  %v6921_v60 = vsel %vm6745_vm4, %v6869_v43, 0.0  ;;  %v6107_v57 = vmul.f32 %v6075_v12, %v6075_v12  ;;  %v6872_v41 = vmul.f32 %v11368_v38, %v11368_v38 }
 0x34d   : > { %v6910_v53 = vadd.f32 %v6909_v55, %v6908_v58  ;;  %v6917_v58 = vsel %vm6745_vm4, %v6867_v42, 0.0  ;;  %v6136_v48 = vadd.f32 %v6135_v31, %v6134_v45  ;;  %v6105_v55 = vmul.f32 %v6073_v22, %v6073_v22 }
 0x34e   : > { %v11889_v42 = vunpack.c.h.bf16 %v10916_v6  ;;  %v11890_v22 = vunpack.c.l.bf16 %v10905_v27  ;;  %v11891_v38 = vunpack.c.h.bf16 %v10905_v27  ;;  %v6927_v2 = vsel %vm6745_vm4, %v6872_v41, 0.0 }
 0x34f   : > { %v6912_v44 = vadd.f32 %v6911_v17, %v6910_v53  ;;  %v6870_v53 = vmul.f32 %v11358_v0, %v11358_v0  ;;  %v6138_v9 = vadd.f32 %v6137_v61, %v6136_v48  ;;  %v6106_v17 = vmul.f32 %v6074_v15, %v6074_v15  ;;  %v6204_v0 = vld [vmem:[%s11714_s9] sm:$0x1] }
 0x350   : > { %v6078_v20 = vsub.f32 %v11890_v22, %v11469_v5  ;;  %v11563_v6 = vsub.f32 %v11469_v5, %v6204_v0  ;;  %v6079_v15 = vsub.f32 %v11891_v38, %v11469_v5  ;;  %v11895_v28 = vunpack.c.h.bf16 %v10968_v56 }
 0x351   : > { %v6914_v52 = vadd.f32 %v6913_v59, %v6912_v44  ;;  %v6139_v44 = vsel %vm1734_vm7, %v6104_v50, 0.0  ;;  %v6077_v59 = vsub.f32 %v11889_v42, %v11469_v5  ;;  %v6923_v40 = vsel %vm6745_vm4, %v6870_v53, 0.0 }
 0x352   : > { %v6140_v33 = vadd.f32 %v6139_v44, %v6138_v9  ;;  %v6143_v45 = vsel %vm1734_vm7, %v6106_v17, 0.0  ;;  %v6211_v48 = vmul.f32 %v11433_v7, %v11563_v6  ;;  %v6110_v61 = vmul.f32 %v6078_v20, %v6078_v20 }
 0x353   : > { %v6916_v1 = vadd.f32 %v6915_v34, %v6914_v52  ;;  %v6141_v52 = vsel %vm1734_vm7, %v6105_v55, 0.0  ;;  %v6108_v34 = vmul.f32 %v6076_v26, %v6076_v26  ;;  %v6109_v43 = vmul.f32 %v6077_v59, %v6077_v59 }
 0x354   : > { %v6142_v14 = vadd.f32 %v6141_v52, %v6140_v33  ;;  %v6875_v9 = vmul.f32 %v11383_v46, %v11383_v46  ;;  %v6111_v17 = vmul.f32 %v6079_v15, %v6079_v15  ;;  %v6151_v42 = vsel %vm1734_vm7, %v6110_v61, 0.0 }
 0x355   : > { %v6918_v29 = vadd.f32 %v6917_v58, %v6916_v1  ;;  %v6873_v1 = vmul.f32 %v11373_v18, %v11373_v18  ;;  %v6145_v58 = vsel %vm1734_vm7, %v6107_v57, 0.0  ;;  %v11892_v18 = vunpack.c.l.bf16 %v10993_v3 }
 0x356   : > { %v6144_v50 = vadd.f32 %v6143_v45, %v6142_v14  ;;  %v6147_v53 = vsel %vm1734_vm7, %v6108_v34, 0.0  ;;  %v6149_v44 = vsel %vm1734_vm7, %v6109_v43, 0.0  ;;  %v6877_v59 = vmul.f32 %v11392_v63, %v11392_v63 }
 0x357   : > { %v6920_v35 = vadd.f32 %v6919_v8, %v6918_v29  ;;  %v6874_v29 = vmul.f32 %v11378_v24, %v11378_v24  ;;  %v6080_v12 = vsub.f32 %v11892_v18, %v11469_v5  ;;  %v6212_v8 = vadd.f32 %v6211_v48, %v6204_v0 }
 0x358   : > { %v6146_v55 = vadd.f32 %v6145_v58, %v6144_v50  ;;  %v6929_v7 = vsel %vm6745_vm4, %v6873_v1, 0.0  ;;  %v11893_v24 = vunpack.c.h.bf16 %v10993_v3  ;;  %v11894_v0 = vunpack.c.l.bf16 %v10968_v56 }
 0x359   : > { %v6922_v39 = vadd.f32 %v6921_v60, %v6920_v35  ;;  %6214 = vst.msk [vmem:[%s11714_s9] sm:$0x1] %vm1138_vm12, %v6212_v8  ;;  %v6931_v46 = vsel %vm6745_vm4, %v6874_v29, 0.0  ;;  %v6933_v57 = vsel %vm6745_vm4, %v6875_v9, 0.0  ;;  %v6153_v20 = vsel %vm1734_vm7, %v6111_v17, 0.0 }
 0x35a   : > { %v6148_v35 = vadd.f32 %v6147_v53, %v6146_v55  ;;  %v6081_v26 = vsub.f32 %v11893_v24, %v11469_v5  ;;  %v6082_v3 = vsub.f32 %v11894_v0, %v11469_v5  ;;  %v6878_v14 = vmul.f32 %v11395_v10, %v11395_v10 }
 0x35b   : > { %v6924_v11 = vadd.f32 %v6923_v40, %v6922_v39  ;;  %v6112_v39 = vmul.f32 %v6080_v12, %v6080_v12  ;;  %v6083_v40 = vsub.f32 %v11895_v28, %v11469_v5  ;;  %v11896_v63 = vunpack.c.l.bf16 %v11065_v13 }
 0x35c   : > { %v6150_v60 = vadd.f32 %v6149_v44, %v6148_v35  ;;  %v6113_v22 = vmul.f32 %v6081_v26, %v6081_v26  ;;  %v6937_v56 = vsel %vm6745_vm4, %v6877_v59, 0.0  ;;  %v6879_v50 = vmul.f32 %v11438_v25, %v11438_v25 }
 0x35d   : > { %v6926_v31 = vadd.f32 %v6925_v49, %v6924_v11  ;;  %v6935_v11 = vsel %vm6745_vm4, %v6876_v19, 0.0  ;;  %v6084_v1 = vsub.f32 %v11896_v63, %v11469_v5  ;;  %v6114_v49 = vmul.f32 %v6082_v3, %v6082_v3 }
 0x35e   : > { %v6152_v52 = vadd.f32 %v6151_v42, %v6150_v60  ;;  %v6155_v38 = vsel %vm1734_vm7, %v6112_v39, 0.0  ;;  %v11897_v10 = vunpack.c.h.bf16 %v11065_v13  ;;  %v6115_v58 = vmul.f32 %v6083_v40, %v6083_v40 }
 0x35f   : > { %v6928_v27 = vadd.f32 %v6927_v2, %v6926_v31  ;;  %v6157_v48 = vsel %vm1734_vm7, %v6113_v22, 0.0  ;;  %v6939_v29 = vsel %vm6745_vm4, %v6878_v14, 0.0  ;;  %v11898_v12 = vunpack.c.l.bf16 %v11057_v4 }
 0x360   : > { %v6154_v34 = vadd.f32 %v6153_v20, %v6152_v52  ;;  %v6085_v43 = vsub.f32 %v11897_v10, %v11469_v5  ;;  %v6159_v25 = vsel %vm1734_vm7, %v6114_v49, 0.0  ;;  %v6941_v13 = vsel %vm6745_vm4, %v6879_v50, 0.0 }
 0x361   : > { %v6930_v36 = vadd.f32 %v6929_v7, %v6928_v27  ;;  %v6086_v55 = vsub.f32 %v11898_v12, %v11469_v5  ;;  %v6116_v27 = vmul.f32 %v6084_v1, %v6084_v1  ;;  %v11899_v53 = vunpack.c.h.bf16 %v11057_v4 }
 0x362   : > { %v6156_v15 = vadd.f32 %v6155_v38, %v6154_v34  ;;  %v6117_v9 = vmul.f32 %v6085_v43, %v6085_v43  ;;  %v6161_v7 = vsel %vm1734_vm7, %v6115_v58, 0.0  ;;  %v11900_v24 = vunpack.c.l.bf16 %v11163_v21  ;;  %v6955_v58 = vld [vmem:[%s11718_s13] sm:$0x1] }
 0x363   : > { %v6932_v33 = vadd.f32 %v6931_v46, %v6930_v36  ;;  %v6087_v8 = vsub.f32 %v11899_v53, %v11469_v5  ;;  %v6118_v17 = vmul.f32 %v6086_v55, %v6086_v55  ;;  %v6163_v44 = vsel %vm1734_vm7, %v6116_v27, 0.0 }
 0x364   : > { %v6158_v2 = vadd.f32 %v6157_v48, %v6156_v15  ;;  %v6088_v26 = vsub.f32 %v11900_v24, %v11469_v5  ;;  %v11901_v4 = vunpack.c.h.bf16 %v11163_v21  ;;  %v6165_v0 = vsel %vm1734_vm7, %v6117_v9, 0.0 }
 0x365   : > { %v6934_v41 = vadd.f32 %v6933_v57, %v6932_v33  ;;  %v6119_v33 = vmul.f32 %v6087_v8, %v6087_v8  ;;  %v11902_v42 = vunpack.c.l.bf16 %v11128_v47  ;;  %v6167_v52 = vsel %vm1734_vm7, %v6118_v17, 0.0 }
 0x366   : > { %v6160_v61 = vadd.f32 %v6159_v25, %v6158_v2  ;;  %v6089_v60 = vsub.f32 %v11901_v4, %v11469_v5  ;;  %v6120_v57 = vmul.f32 %v6088_v26, %v6088_v26  ;;  %v6222_v40 = vstv %s11636_s30 }
 0x367   : > { %v6936_v45 = vadd.f32 %v6935_v11, %v6934_v41  ;;  %v6090_v59 = vsub.f32 %v11902_v42, %v11469_v5  ;;  %v6956_v21 = vmul.f32 %v11445_v54, %v11445_v54  ;;  %v11903_v22 = vunpack.c.h.bf16 %v11128_v47 }
 0x368   : > { %v6162_v36 = vadd.f32 %v6161_v7, %v6160_v61  ;;  %v6121_v14 = vmul.f32 %v6089_v60, %v6089_v60  ;;  %v6169_v11 = vsel %vm1734_vm7, %v6119_v33, 0.0  ;;  %v6092_v63 = vsub.f32 %v5990_v51, %v11469_v5 }
 0x369   : > { %v6938_v31 = vadd.f32 %v6937_v56, %v6936_v45  ;;  %v6091_v20 = vsub.f32 %v11903_v22, %v11469_v5  ;;  %v6122_v1 = vmul.f32 %v6090_v59, %v6090_v59  ;;  %v6171_v49 = vsel %vm1734_vm7, %v6120_v57, 0.0 }
 0x36a   : > { %v6164_v46 = vadd.f32 %v6163_v44, %v6162_v36  ;;  %v6957_v15 = vmul.f32 %v6956_v21, %v6222_v40  ;;  %v11904_v54 = vunpack.c.h.bf16 %v11234_v62  ;;  %v11905_v51 = vunpack.c.l.bf16 %v11192_v32 }
 0x36b   : > { %v6940_v18 = vadd.f32 %v6939_v29, %v6938_v31  ;;  %v6123_v50 = vmul.f32 %v6091_v20, %v6091_v20  ;;  %v6173_v31 = vsel %vm1734_vm7, %v6121_v14, 0.0  ;;  %v6124_v29 = vmul.f32 %v6092_v63, %v6092_v63  ;;  %v6215_v20 = vld [vmem:[%s11715_s10] sm:$0x1] }
 0x36c   : > { %v6166_v39 = vadd.f32 %v6165_v0, %v6164_v46  ;;  %v6093_v47 = vsub.f32 %v11904_v54, %v11469_v5  ;;  %v6094_v48 = vsub.f32 %v11905_v51, %v11469_v5  ;;  %v6175_v2 = vsel %vm1734_vm7, %v6122_v1, 0.0 }
 0x36d   : > { %v6942_v35 = vadd.f32 %v6941_v13, %v6940_v18  ;;  %v11906_v62 = vunpack.c.h.bf16 %v11192_v32  ;;  %v6177_v25 = vsel %vm1734_vm7, %v6123_v50, 0.0  ;;  %v6179_v8 = vsel %vm1734_vm7, %v6124_v29, 0.0 }
 0x36e   : > { %v6168_v28 = vadd.f32 %v6167_v52, %v6166_v39  ;;  %v6125_v27 = vmul.f32 %v6093_v47, %v6093_v47  ;;  %v6126_v53 = vmul.f32 %v6094_v48, %v6094_v48  ;;  %v6128_v32 = vmul.f32 %v11479_v37, %v11479_v37 }
 0x36f   : > { %v6943_v19 = vrot.slane %v6942_v35, 4  ;;  %v6095_v55 = vsub.f32 %v11906_v62, %v11469_v5  ;;  %v6129_v17 = vmul.f32 %v11484_v30, %v11484_v30  ;;  %v6130_v60 = vmul.f32 %v11489_v16, %v11489_v16 }
 0x370   : > { %v6170_v45 = vadd.f32 %v6169_v11, %v6168_v28  ;;  %v6183_v24 = vsel %vm1734_vm7, %v6126_v53, 0.0  ;;  %v6187_v33 = vsel %vm1734_vm7, %v6128_v32, 0.0  ;;  %v6216_v16 = vmul.f32 %v11563_v6, %v11563_v6 }
 0x371   : > { %v6944_v3 = vadd.f32 %v6943_v19, %v6942_v35  ;;  %v6127_v7 = vmul.f32 %v6095_v55, %v6095_v55  ;;  %v6181_v35 = vsel %vm1734_vm7, %v6125_v27, 0.0  ;;  %v11907_v19 = vunpack.c.h.bf16 %v11272_v23 }
 0x372   : > { %v6172_v56 = vadd.f32 %v6171_v49, %v6170_v45  ;;  %v6189_v37 = vsel %vm1734_vm7, %v6129_v17, 0.0  ;;  %v6191_v42 = vsel %vm1734_vm7, %v6130_v60, 0.0  ;;  %v6223_v22 = vmul.f32 %v6222_v40, %v6216_v16 }
 0x373   : > { %v6945_v41 = vrot.slane %v6944_v3, 2  ;;  %v6185_v44 = vsel %vm1734_vm7, %v6127_v7, 0.0  ;;  %v6099_v46 = vsub.f32 %v11907_v19, %v11469_v5 }
 0x374   : > { %v6174_v43 = vadd.f32 %v6173_v31, %v6172_v56 }
 0x375   : > { %v6946_v34 = vadd.f32 %v6945_v41, %v6944_v3  ;;  %v6131_v3 = vmul.f32 %v6099_v46, %v6099_v46 }
 0x376   : > { %v6176_v12 = vadd.f32 %v6175_v2, %v6174_v43 }
 0x377   : > { %v6947_v38 = vrot.slane %v6946_v34, 1  ;;  %v6193_v59 = vsel %vm1734_vm7, %v6131_v3, 0.0 }
 0x378   : > { %v6178_v13 = vadd.f32 %v6177_v25, %v6176_v12 }
 0x379   : > { %v6948_v10 = vadd.f32 %v6947_v38, %v6946_v34 }
 0x37a   : > { %v6180_v9 = vadd.f32 %v6179_v8, %v6178_v13 }
 0x37b   : > { %v6958_v18 = vadd.f32 %v6957_v15, %v6948_v10 }
 0x37c   : > { %v6182_v36 = vadd.f32 %v6181_v35, %v6180_v9 }
 0x37d   : > { %v6959_v61 = vadd.f32 %v6958_v18, %v6955_v58 }
 0x37e   : > { %v6184_v26 = vadd.f32 %v6183_v24, %v6182_v36 }
 0x37f   : > { %6960 = vst.msk [vmem:[%s11718_s13] sm:$0x1] %vm6953_vm5, %v6959_v61 }
 0x380   : > { %v6186_v4 = vadd.f32 %v6185_v44, %v6184_v26 }
 0x382   : > { %v6188_v0 = vadd.f32 %v6187_v33, %v6186_v4 }
 0x384   : > { %v6190_v39 = vadd.f32 %v6189_v37, %v6188_v0 }
 0x386   : > { %v6192_v30 = vadd.f32 %v6191_v42, %v6190_v39 }
 0x388   : > { %v6194_v57 = vadd.f32 %v6193_v59, %v6192_v30 }
 0x38a   : > { %v6195_v52 = vrot.slane %v6194_v57, 4 }
 0x38c   : > { %v6196_v23 = vadd.f32 %v6195_v52, %v6194_v57 }
 0x38e   : > { %v6197_v5 = vrot.slane %v6196_v23, 2 }
 0x390   : > { %v6198_v41 = vadd.f32 %v6197_v5, %v6196_v23 }
 0x392   : > { %v6199_v28 = vrot.slane %v6198_v41, 1 }
 0x394   : > { %v6200_v21 = vadd.f32 %v6199_v28, %v6198_v41 }
 0x396   : > { %v6224_v14 = vadd.f32 %v6223_v22, %v6200_v21 }
 0x398   : > { %v6225_v11 = vadd.f32 %v6224_v14, %v6215_v20 }
 0x39a   : > { %6226 = vst.msk [vmem:[%s11715_s10] sm:$0x1] %vm1138_vm12, %v6225_v11 }
 0x39b PF: > { %s24_s25 = sadd.s32 1, %s8663_s25  }
 0x39c   : > { %p21_p5 = scmp.ge.s32.totalorder %s24_s25, 4  }
 0x39e   :  { %23 = sbr.rel (!%p21_p5) target bundleno = 1 (0x1), region = 143 }

</bundles_post_ra>
